<compile_context>
chip_gen: v6e
topology: v6e:2x2x1
jax: 0.10.0
libtpu: 0.0.40
codegen_flags: <defaults>
</compile_context>

<pallas_src>
import functools
import math

import jax
import jax.numpy as jnp
from jax import lax
from jax.experimental import pallas as pl
from jax.experimental.pallas import tpu as pltpu

# ----------------------- small synthetic config -----------------------
B = 2          # batch
S = 8          # sequence length
H = 32         # hidden size
NH = 2         # attention heads
DH = H // NH   # head dim
FFN = 64       # intermediate size
NLAYERS = 2
VOCAB = 100
TYPE_VOCAB = 2
MAXPOS = 16
L = 8          # num_labels
LN_EPS = 1e-12


# ======================= fused BERT + CRF kernel =======================

def _bert_crf_kernel(x_ref, bias_ref, len_ref, lab_ref,
                     emb_g_ref, emb_b_ref,
                     qkv_w_ref, qkv_b_ref, ao_w_ref, ao_b_ref,
                     aln_g_ref, aln_b_ref, i_w_ref, i_b_ref,
                     o_w_ref, o_b_ref, oln_g_ref, oln_b_ref,
                     cls_w_ref, cls_b_ref,
                     start_ref, end_ref, trans_ref,
                     loss_ref, tags_ref,
                     *, nlayers, batch, seq, nheads, dhead, nlabels):
    """Embedding-LN + encoder layers + classifier + CRF loss/Viterbi, all in VMEM."""
    hidden = nheads * dhead

    def ln(v, g, b):
        mu = jnp.mean(v, axis=-1, keepdims=True)
        vc = v - mu
        var = jnp.mean(vc * vc, axis=-1, keepdims=True)
        return vc * lax.rsqrt(var + LN_EPS) * g + b

    def mm(v, w_bf16):
        # bf16 MXU operands (weights pre-cast at pack time), f32 accumulation.
        return jnp.dot(v.astype(jnp.bfloat16), w_bf16, preferred_element_type=jnp.float32)

    def gelu(v):
        # TODO(synk): erf-based gelu if exact HF-BERT activation is required.
        c = math.sqrt(2.0 / math.pi)
        return 0.5 * v * (1.0 + jnp.tanh(c * (v + 0.044715 * v * v * v)))

    # ---------------- encoder ----------------
    x = ln(x_ref[...], emb_g_ref[...], emb_b_ref[...])       # (B*S, H) f32
    bias3 = bias_ref[...]                                     # (B, 1, S) additive key mask

    for lyr in range(nlayers):
        # fused QKV projection; 1/sqrt(DH) already folded into the q columns at pack time
        qkv = mm(x, qkv_w_ref[lyr]) + qkv_b_ref[lyr]          # (B*S, 3H) f32
        qkv3 = qkv.reshape(batch, seq, 3 * hidden)            # leading-dim split only

        ctx_heads = []
        for h in range(nheads):                               # NH small static unroll
            c0 = h * dhead
            qh = qkv3[:, :, c0:c0 + dhead].astype(jnp.bfloat16)
            kh = qkv3[:, :, hidden + c0:hidden + c0 + dhead].astype(jnp.bfloat16)
            vh = qkv3[:, :, 2 * hidden + c0:2 * hidden + c0 + dhead].astype(jnp.bfloat16)
            s = jnp.einsum('bqd,bkd->bqk', qh, kh,
                           preferred_element_type=jnp.float32) + bias3   # (B, S, S)
            m = jnp.max(s, axis=-1, keepdims=True)
            p = jnp.exp(s - m)
            p = p * pl.reciprocal(jnp.sum(p, axis=-1, keepdims=True), approx=True)
            ctx_heads.append(jnp.einsum('bqk,bkd->bqd', p.astype(jnp.bfloat16), vh,
                                        preferred_element_type=jnp.float32))
        ctx = jnp.concatenate(ctx_heads, axis=-1).reshape(batch * seq, hidden)

        attn_out = mm(ctx, ao_w_ref[lyr]) + ao_b_ref[lyr]
        x = ln(attn_out + x, aln_g_ref[lyr], aln_b_ref[lyr])

        inter = gelu(mm(x, i_w_ref[lyr]) + i_b_ref[lyr])
        ffn_out = mm(inter, o_w_ref[lyr]) + o_b_ref[lyr]
        x = ln(ffn_out + x, oln_g_ref[lyr], oln_b_ref[lyr])

    logits = mm(x, cls_w_ref[...]) + cls_b_ref[...]           # (B*S, L) f32

    # ---------------- CRF: loss + Viterbi, fully unrolled over time ----------------
    lenv = len_ref[...]                                       # (B, 1) i32
    lab = lab_ref[...]                                        # (B, S) i32
    start = start_ref[...]                                    # (1, L)
    end = end_ref[...]                                        # (1, L)
    trans = trans_ref[...]                                    # (L, L) trans[i, j] = i -> j
    trans_rows = [trans[k:k + 1, :] for k in range(nlabels)]  # loop-invariant (1, L) rows
    lane = lax.broadcasted_iota(jnp.int32, (batch, nlabels), 1)

    # time-major emission rows and gold one-hots, static slices (seq is compile-time)
    e_list, oh_list = [], []
    for t in range(seq):
        rows = [logits[b * seq + t:b * seq + t + 1, :] for b in range(batch)]
        e_list.append(jnp.concatenate(rows, axis=0))                       # (B, L)
        oh_list.append((lane == lab[:, t:t + 1]).astype(jnp.float32))      # (B, L)

    # t = 0 (mask[:, 0] assumed 1: contiguous-prefix masks)
    init = start + e_list[0]
    num = jnp.sum(init * oh_list[0], axis=1, keepdims=True)   # (B, 1) gold score so far
    alpha = init                                              # forward (logsumexp) state
    delta = init                                              # Viterbi state
    oh_prev = oh_list[0]
    bp_list = [None] * seq

    for t in range(1, seq):
        e_t, oh_t = e_list[t], oh_list[t]
        m_t = lenv > t                                        # (B, 1) bool, mask from lengths

        # gold-path score: emission + transition (VPU select/sum, no MXU)
        emit_sc = jnp.sum(e_t * oh_t, axis=1, keepdims=True)
        pair_row = oh_prev[:, 0:1] * trans_rows[0]
        for k in range(1, nlabels):
            pair_row = pair_row + oh_prev[:, k:k + 1] * trans_rows[k]
        tr_sc = jnp.sum(pair_row * oh_t, axis=1, keepdims=True)
        num = num + jnp.where(m_t, emit_sc + tr_sc, 0.0)

        # forward recursion: logsumexp over previous label, unrolled on VPU/EUP
        fcands = [alpha[:, k:k + 1] + trans_rows[k] for k in range(nlabels)]
        cmax = fcands[0]
        for c in fcands[1:]:
            cmax = jnp.maximum(cmax, c)
        csum = jnp.exp(fcands[0] - cmax)
        for c in fcands[1:]:
            csum = csum + jnp.exp(c - cmax)
        alpha = jnp.where(m_t, cmax + jnp.log(csum) + e_t, alpha)

        # Viterbi recursion: max over previous label + backpointers (registers only)
        vcands = [delta[:, k:k + 1] + trans_rows[k] for k in range(nlabels)]
        best = vcands[0]
        bp = jnp.zeros((batch, nlabels), jnp.int32)
        for k in range(1, nlabels):
            upd = vcands[k] > best                            # strict ">" keeps first argmax
            bp = jnp.where(upd, k, bp)
            best = jnp.where(upd, vcands[k], best)
        bp_list[t] = bp
        delta = jnp.where(m_t, best + e_t, delta)

        # one-hot of gold tag at the last valid position seen so far
        oh_prev = jnp.where(m_t, oh_t, oh_prev)

    # ---- log-likelihood and mean loss (single (1,1) store) ----
    end_sc = jnp.sum(end * oh_prev, axis=1, keepdims=True)
    fin = alpha + end
    fmax = jnp.max(fin, axis=1, keepdims=True)
    denom = fmax + jnp.log(jnp.sum(jnp.exp(fin - fmax), axis=1, keepdims=True))
    llh = num + end_sc - denom                                # (B, 1)
    loss_ref[...] = jnp.sum(-llh, axis=0, keepdims=True) * (1.0 / batch)

    # ---- Viterbi finalize + batched traceback; ONE lane-dense store at the end ----
    vfin = delta + end
    vmax = jnp.max(vfin, axis=1, keepdims=True)
    best_idx = jnp.min(jnp.where(vfin >= vmax, lane, nlabels), axis=1, keepdims=True)
    best_oh = (lane == best_idx).astype(jnp.float32)

    lenm1 = lenv - 1                                          # (B, 1) last valid position
    tag_cols = [None] * seq
    is_last = lenm1 == (seq - 1)
    tag_cols[seq - 1] = jnp.where(is_last, best_idx, 0)
    cur_oh = jnp.where(is_last, best_oh, jnp.zeros_like(best_oh))

    for t in range(seq - 2, -1, -1):
        bprow = bp_list[t + 1].astype(jnp.float32)            # (B, L)
        from_bp = jnp.sum(bprow * cur_oh, axis=1, keepdims=True).astype(jnp.int32)
        is_last_t = lenm1 == t
        active = lenm1 >= t
        new_tag = jnp.where(is_last_t, best_idx, from_bp)
        tag_cols[t] = jnp.where(active, new_tag, 0)           # padding positions -> tag 0
        cur_oh = jnp.where(active, (lane == new_tag).astype(jnp.float32), cur_oh)

    tags_ref[...] = jnp.concatenate(tag_cols, axis=1)         # (B, S) i32, single store


# ======================= parameter packing & call wrapper =======================

def _pack_params(params):
    layers = params['layers']
    scale = 1.0 / math.sqrt(DH)

    def stack(key):
        return jnp.stack([lyr[key] for lyr in layers], axis=0)

    # 1/sqrt(DH) folded into the q columns (weight AND bias) at pack time.
    qkv_w = jnp.stack(
        [jnp.concatenate([l['q_w'] * scale, l['k_w'], l['v_w']], axis=1) for l in layers],
        axis=0)
    qkv_b = jnp.stack(
        [jnp.concatenate([l['q_b'] * scale, l['k_b'], l['v_b']], axis=0)[None, :]
         for l in layers], axis=0)
    return dict(
        emb_g=params['emb_ln_g'].reshape(1, H),
        emb_b=params['emb_ln_b'].reshape(1, H),
        qkv_w=qkv_w.astype(jnp.bfloat16),              # (NL, H, 3H)
        qkv_b=qkv_b,                                   # (NL, 1, 3H) f32
        ao_w=stack('ao_w').astype(jnp.bfloat16),       # (NL, H, H)
        ao_b=stack('ao_b')[:, None, :],
        aln_g=stack('attn_ln_g')[:, None, :],
        aln_b=stack('attn_ln_b')[:, None, :],
        i_w=stack('i_w').astype(jnp.bfloat16),         # (NL, H, FFN)
        i_b=stack('i_b')[:, None, :],
        o_w=stack('o_w').astype(jnp.bfloat16),         # (NL, FFN, H)
        o_b=stack('o_b')[:, None, :],
        oln_g=stack('out_ln_g')[:, None, :],
        oln_b=stack('out_ln_b')[:, None, :],
        cls_w=params['cls_w'].astype(jnp.bfloat16),    # (H, L)
        cls_b=params['cls_b'].reshape(1, L),
        crf_start=params['crf']['start'].reshape(1, L),
        crf_end=params['crf']['end'].reshape(1, L),
        crf_trans=params['crf']['trans'],              # (L, L)
    )


def bert_crf_fused(x_emb, attn_bias, lengths, labels, p, *, batch, seq):
    def fs(arr):
        if arr.ndim == 3:
            return pl.BlockSpec(arr.shape, lambda i: (0, 0, 0))
        return pl.BlockSpec(arr.shape, lambda i: (0, 0))

    inputs = (x_emb, attn_bias, lengths, labels,
              p['emb_g'], p['emb_b'],
              p['qkv_w'], p['qkv_b'], p['ao_w'], p['ao_b'],
              p['aln_g'], p['aln_b'], p['i_w'], p['i_b'],
              p['o_w'], p['o_b'], p['oln_g'], p['oln_b'],
              p['cls_w'], p['cls_b'],
              p['crf_start'], p['crf_end'], p['crf_trans'])

    return pl.pallas_call(
        functools.partial(_bert_crf_kernel, nlayers=NLAYERS, batch=batch, seq=seq,
                          nheads=NH, dhead=DH, nlabels=L),
        out_shape=(jax.ShapeDtypeStruct((1, 1), jnp.float32),
                   jax.ShapeDtypeStruct((batch, seq), jnp.int32)),
        grid=(1,),
        in_specs=[fs(a) for a in inputs],
        out_specs=(pl.BlockSpec((1, 1), lambda i: (0, 0)),
                   pl.BlockSpec((batch, seq), lambda i: (0, 0))),
        compiler_params=pltpu.CompilerParams(dimension_semantics=("arbitrary",)),
    )(*inputs)


# ======================= model glue (plain JAX) =======================

def init_params(key):
    keys = jax.random.split(key, 32)
    kit = iter(keys)

    def dense(shape):
        return jax.random.normal(next(kit), shape, jnp.float32) * 0.02

    params = {
        'word_emb': dense((VOCAB, H)),
        'pos_emb': dense((MAXPOS, H)),
        'type_emb': dense((TYPE_VOCAB, H)),
        'emb_ln_g': jnp.ones((H,), jnp.float32),
        'emb_ln_b': jnp.zeros((H,), jnp.float32),
        'layers': [],
        'cls_w': dense((H, L)),
        'cls_b': jnp.zeros((L,), jnp.float32),
        'crf': {
            'start': jax.random.uniform(next(kit), (L,), jnp.float32, -0.1, 0.1),
            'end': jax.random.uniform(next(kit), (L,), jnp.float32, -0.1, 0.1),
            'trans': jax.random.uniform(next(kit), (L, L), jnp.float32, -0.1, 0.1),
        },
    }
    for _ in range(NLAYERS):
        params['layers'].append({
            'q_w': dense((H, H)), 'q_b': jnp.zeros((H,), jnp.float32),
            'k_w': dense((H, H)), 'k_b': jnp.zeros((H,), jnp.float32),
            'v_w': dense((H, H)), 'v_b': jnp.zeros((H,), jnp.float32),
            'ao_w': dense((H, H)), 'ao_b': jnp.zeros((H,), jnp.float32),
            'attn_ln_g': jnp.ones((H,), jnp.float32), 'attn_ln_b': jnp.zeros((H,), jnp.float32),
            'i_w': dense((H, FFN)), 'i_b': jnp.zeros((FFN,), jnp.float32),
            'o_w': dense((FFN, H)), 'o_b': jnp.zeros((H,), jnp.float32),
            'out_ln_g': jnp.ones((H,), jnp.float32), 'out_ln_b': jnp.zeros((H,), jnp.float32),
        })
    return params


def bert_crf_forward(params, input_ids, token_type_ids, attention_mask, labels):
    B_, S_ = input_ids.shape
    pos_ids = jnp.arange(S_)
    # embedding table gathers stay in XLA (no clean Pallas equivalent for tiny gathers)
    x = (params['word_emb'][input_ids]
         + params['pos_emb'][pos_ids][None, :, :]
         + params['type_emb'][token_type_ids]).reshape(B_ * S_, H)

    maskf = attention_mask.astype(jnp.float32)
    attn_bias = ((1.0 - maskf) * -10000.0)[:, None, :]              # (B, 1, S) additive
    lengths = jnp.sum(attention_mask, axis=1).astype(jnp.int32)[:, None]  # (B, 1)

    packed = _pack_params(params)
    loss_arr, tags = bert_crf_fused(x, attn_bias, lengths, labels.astype(jnp.int32),
                                    packed, batch=B_, seq=S_)

    loss = loss_arr[0, 0]                     # mean over batch of -log-likelihood
    # torch: pad_sequence of B tensors of shape (1, S) -> (1, B, S), padded tags = 0
    tags_tensor = tags[None, :, :].astype(jnp.int32)
    return loss, tags_tensor


if __name__ == "__main__":
    key = jax.random.PRNGKey(0)
    pk, ik, lk = jax.random.split(key, 3)
    params = init_params(pk)

    input_ids = jax.random.randint(ik, (B, S), 0, VOCAB, dtype=jnp.int32)
    token_type_ids = jnp.zeros((B, S), jnp.int32)
    seq_lengths = jnp.array([S, S - 3], jnp.int32)      # mask[:, 0] is always 1
    attention_mask = (jnp.arange(S)[None, :] < seq_lengths[:, None]).astype(jnp.int32)
    labels = jax.random.randint(lk, (B, S), 0, L, dtype=jnp.int32)

    fwd = jax.jit(bert_crf_forward)
    loss, tags_tensor = fwd(params, input_ids, token_type_ids, attention_mask, labels)
    jax.block_until_ready((loss, tags_tensor))

    assert loss.shape == () and tags_tensor.shape == (1, B, S)
    print("KERNEL_OK")
</pallas_src>

<mosaic_0001>
module attributes {stable_mosaic.version = 11 : i64} {
  func.func @_bert_crf_kernel(%arg0: i32, %arg1: memref<16x32xf32, #tpu.memory_space<vmem>>, %arg2: memref<2x1x8xf32, #tpu.memory_space<vmem>>, %arg3: memref<2x1xi32, #tpu.memory_space<vmem>>, %arg4: memref<2x8xi32, #tpu.memory_space<vmem>>, %arg5: memref<1x32xf32, #tpu.memory_space<vmem>>, %arg6: memref<1x32xf32, #tpu.memory_space<vmem>>, %arg7: memref<2x32x96xbf16, #tpu.memory_space<vmem>>, %arg8: memref<2x1x96xf32, #tpu.memory_space<vmem>>, %arg9: memref<2x32x32xbf16, #tpu.memory_space<vmem>>, %arg10: memref<2x1x32xf32, #tpu.memory_space<vmem>>, %arg11: memref<2x1x32xf32, #tpu.memory_space<vmem>>, %arg12: memref<2x1x32xf32, #tpu.memory_space<vmem>>, %arg13: memref<2x32x64xbf16, #tpu.memory_space<vmem>>, %arg14: memref<2x1x64xf32, #tpu.memory_space<vmem>>, %arg15: memref<2x64x32xbf16, #tpu.memory_space<vmem>>, %arg16: memref<2x1x32xf32, #tpu.memory_space<vmem>>, %arg17: memref<2x1x32xf32, #tpu.memory_space<vmem>>, %arg18: memref<2x1x32xf32, #tpu.memory_space<vmem>>, %arg19: memref<32x8xbf16, #tpu.memory_space<vmem>>, %arg20: memref<1x8xf32, #tpu.memory_space<vmem>>, %arg21: memref<1x8xf32, #tpu.memory_space<vmem>>, %arg22: memref<1x8xf32, #tpu.memory_space<vmem>>, %arg23: memref<8x8xf32, #tpu.memory_space<vmem>>, %arg24: memref<1x1xf32, #tpu.memory_space<vmem>>, %arg25: memref<2x8xi32, #tpu.memory_space<vmem>>) attributes {dimension_semantics = [#tpu.dimension_semantics<arbitrary>], iteration_bounds = array<i64: 1>, scalar_prefetch = 0 : i64, scratch_operands = 0 : i64, tpu.core_type = #tpu.core_type<tc>, window_params = [{pipeline_mode = #tpu.pipeline_mode<synchronous>, transform_indices = @transform_0, window_bounds = array<i64: 16, 32>}, {pipeline_mode = #tpu.pipeline_mode<synchronous>, transform_indices = @transform_1, window_bounds = array<i64: 2, 1, 8>}, {pipeline_mode = #tpu.pipeline_mode<synchronous>, transform_indices = @transform_2, window_bounds = array<i64: 2, 1>}, {pipeline_mode = #tpu.pipeline_mode<synchronous>, transform_indices = @transform_3, window_bounds = array<i64: 2, 8>}, {pipeline_mode = #tpu.pipeline_mode<synchronous>, transform_indices = @transform_4, window_bounds = array<i64: 1, 32>}, {pipeline_mode = #tpu.pipeline_mode<synchronous>, transform_indices = @transform_5, window_bounds = array<i64: 1, 32>}, {pipeline_mode = #tpu.pipeline_mode<synchronous>, transform_indices = @transform_6, window_bounds = array<i64: 2, 32, 96>}, {pipeline_mode = #tpu.pipeline_mode<synchronous>, transform_indices = @transform_7, window_bounds = array<i64: 2, 1, 96>}, {pipeline_mode = #tpu.pipeline_mode<synchronous>, transform_indices = @transform_8, window_bounds = array<i64: 2, 32, 32>}, {pipeline_mode = #tpu.pipeline_mode<synchronous>, transform_indices = @transform_9, window_bounds = array<i64: 2, 1, 32>}, {pipeline_mode = #tpu.pipeline_mode<synchronous>, transform_indices = @transform_10, window_bounds = array<i64: 2, 1, 32>}, {pipeline_mode = #tpu.pipeline_mode<synchronous>, transform_indices = @transform_11, window_bounds = array<i64: 2, 1, 32>}, {pipeline_mode = #tpu.pipeline_mode<synchronous>, transform_indices = @transform_12, window_bounds = array<i64: 2, 32, 64>}, {pipeline_mode = #tpu.pipeline_mode<synchronous>, transform_indices = @transform_13, window_bounds = array<i64: 2, 1, 64>}, {pipeline_mode = #tpu.pipeline_mode<synchronous>, transform_indices = @transform_14, window_bounds = array<i64: 2, 64, 32>}, {pipeline_mode = #tpu.pipeline_mode<synchronous>, transform_indices = @transform_15, window_bounds = array<i64: 2, 1, 32>}, {pipeline_mode = #tpu.pipeline_mode<synchronous>, transform_indices = @transform_16, window_bounds = array<i64: 2, 1, 32>}, {pipeline_mode = #tpu.pipeline_mode<synchronous>, transform_indices = @transform_17, window_bounds = array<i64: 2, 1, 32>}, {pipeline_mode = #tpu.pipeline_mode<synchronous>, transform_indices = @transform_18, window_bounds = array<i64: 32, 8>}, {pipeline_mode = #tpu.pipeline_mode<synchronous>, transform_indices = @transform_19, window_bounds = array<i64: 1, 8>}, {pipeline_mode = #tpu.pipeline_mode<synchronous>, transform_indices = @transform_20, window_bounds = array<i64: 1, 8>}, {pipeline_mode = #tpu.pipeline_mode<synchronous>, transform_indices = @transform_21, window_bounds = array<i64: 1, 8>}, {pipeline_mode = #tpu.pipeline_mode<synchronous>, transform_indices = @transform_22, window_bounds = array<i64: 8, 8>}, {pipeline_mode = #tpu.pipeline_mode<synchronous>, transform_indices = @transform_23, window_bounds = array<i64: 1, 1>}, {pipeline_mode = #tpu.pipeline_mode<synchronous>, transform_indices = @transform_24, window_bounds = array<i64: 2, 8>}]} {
    %c0 = arith.constant 0 : index
    %c0_0 = arith.constant 0 : index
    %0 = vector.load %arg1[%c0, %c0_0] : memref<16x32xf32, #tpu.memory_space<vmem>>, vector<16x32xf32>
    %c0_1 = arith.constant 0 : index
    %c0_2 = arith.constant 0 : index
    %1 = vector.load %arg5[%c0_1, %c0_2] : memref<1x32xf32, #tpu.memory_space<vmem>>, vector<1x32xf32>
    %c0_3 = arith.constant 0 : index
    %c0_4 = arith.constant 0 : index
    %2 = vector.load %arg6[%c0_3, %c0_4] : memref<1x32xf32, #tpu.memory_space<vmem>>, vector<1x32xf32>
    %cst = arith.constant dense<0.000000e+00> : vector<16xf32>
    %3 = vector.multi_reduction <add>, %0, %cst [1] : vector<16x32xf32> to vector<16xf32>
    %4 = vector.shape_cast %3 : vector<16xf32> to vector<16x1xf32>
    %cst_5 = arith.constant 3.200000e+01 : f32
    %5 = vector.broadcast %cst_5 : f32 to vector<16x1xf32>
    %6 = arith.divf %4, %5 : vector<16x1xf32>
    %7 = vector.broadcast %6 : vector<16x1xf32> to vector<16x32xf32>
    %8 = arith.subf %0, %7 : vector<16x32xf32>
    %9 = arith.mulf %8, %8 : vector<16x32xf32>
    %cst_6 = arith.constant dense<0.000000e+00> : vector<16xf32>
    %10 = vector.multi_reduction <add>, %9, %cst_6 [1] : vector<16x32xf32> to vector<16xf32>
    %11 = vector.shape_cast %10 : vector<16xf32> to vector<16x1xf32>
    %cst_7 = arith.constant 3.200000e+01 : f32
    %12 = vector.broadcast %cst_7 : f32 to vector<16x1xf32>
    %13 = arith.divf %11, %12 : vector<16x1xf32>
    %cst_8 = arith.constant 9.99999996E-13 : f32
    %14 = vector.broadcast %cst_8 : f32 to vector<16x1xf32>
    %15 = arith.addf %13, %14 : vector<16x1xf32>
    %16 = math.rsqrt %15 : vector<16x1xf32>
    %17 = vector.broadcast %16 : vector<16x1xf32> to vector<16x32xf32>
    %18 = arith.mulf %8, %17 : vector<16x32xf32>
    %19 = vector.broadcast %1 : vector<1x32xf32> to vector<16x32xf32>
    %20 = arith.mulf %18, %19 : vector<16x32xf32>
    %21 = vector.broadcast %2 : vector<1x32xf32> to vector<16x32xf32>
    %22 = arith.addf %20, %21 : vector<16x32xf32>
    %c0_9 = arith.constant 0 : index
    %c0_10 = arith.constant 0 : index
    %c0_11 = arith.constant 0 : index
    %23 = vector.load %arg2[%c0_9, %c0_10, %c0_11] : memref<2x1x8xf32, #tpu.memory_space<vmem>>, vector<2x1x8xf32>
    %c0_12 = arith.constant 0 : index
    %c0_13 = arith.constant 0 : index
    %c0_14 = arith.constant 0 : index
    %24 = vector.load %arg7[%c0_12, %c0_13, %c0_14] : memref<2x32x96xbf16, #tpu.memory_space<vmem>>, vector<1x32x96xbf16>
    %25 = vector.shape_cast %24 : vector<1x32x96xbf16> to vector<32x96xbf16>
    %26 = arith.truncf %22 : vector<16x32xf32> to vector<16x32xbf16>
    %cst_15 = arith.constant dense<0.000000e+00> : vector<16x96xf32>
    %27 = tpu.matmul %26, %25, %cst_15 {dimension_numbers = #tpu.dot_dimension_numbers<[1], [0], [0], [1], [0, 0, 1, 1], [], []>} : vector<16x32xbf16>, vector<32x96xbf16>, vector<16x96xf32> -> vector<16x96xf32>
    %c0_16 = arith.constant 0 : index
    %c0_17 = arith.constant 0 : index
    %c0_18 = arith.constant 0 : index
    %28 = vector.load %arg8[%c0_16, %c0_17, %c0_18] : memref<2x1x96xf32, #tpu.memory_space<vmem>>, vector<1x1x96xf32>
    %29 = vector.shape_cast %28 : vector<1x1x96xf32> to vector<1x96xf32>
    %30 = vector.broadcast %29 : vector<1x96xf32> to vector<16x96xf32>
    %31 = arith.addf %27, %30 : vector<16x96xf32>
    %32 = vector.shape_cast %31 : vector<16x96xf32> to vector<2x8x96xf32>
    %33 = vector.extract_strided_slice %32 {offsets = [0, 0, 0], sizes = [2, 8, 16], strides = [1, 1, 1]} : vector<2x8x96xf32> to vector<2x8x16xf32>
    %34 = arith.truncf %33 : vector<2x8x16xf32> to vector<2x8x16xbf16>
    %35 = vector.extract_strided_slice %32 {offsets = [0, 0, 32], sizes = [2, 8, 16], strides = [1, 1, 1]} : vector<2x8x96xf32> to vector<2x8x16xf32>
    %36 = arith.truncf %35 : vector<2x8x16xf32> to vector<2x8x16xbf16>
    %37 = vector.extract_strided_slice %32 {offsets = [0, 0, 64], sizes = [2, 8, 16], strides = [1, 1, 1]} : vector<2x8x96xf32> to vector<2x8x16xf32>
    %38 = arith.truncf %37 : vector<2x8x16xf32> to vector<2x8x16xbf16>
    "tpu.trace_start"() <{level = 10 : i32, message = "bqd,bkd->bqk"}> : () -> ()
    %cst_19 = arith.constant dense<0.000000e+00> : vector<2x8x8xf32>
    %39 = tpu.matmul %34, %36, %cst_19 {dimension_numbers = #tpu.dot_dimension_numbers<[2], [2], [1], [1], [0, 0, 0, 1, 1, 1], [0], [0]>} : vector<2x8x16xbf16>, vector<2x8x16xbf16>, vector<2x8x8xf32> -> vector<2x8x8xf32>
    "tpu.trace_stop"() : () -> ()
    %40 = vector.broadcast %23 : vector<2x1x8xf32> to vector<2x8x8xf32>
    %41 = arith.addf %39, %40 : vector<2x8x8xf32>
    %cst_20 = arith.constant dense<0xFF800000> : vector<2x8xf32>
    %42 = vector.multi_reduction <maximumf>, %41, %cst_20 [2] : vector<2x8x8xf32> to vector<2x8xf32>
    %43 = vector.shape_cast %42 : vector<2x8xf32> to vector<2x8x1xf32>
    %44 = vector.broadcast %43 : vector<2x8x1xf32> to vector<2x8x8xf32>
    %45 = arith.subf %41, %44 : vector<2x8x8xf32>
    %46 = math.exp %45 : vector<2x8x8xf32>
    %cst_21 = arith.constant dense<0.000000e+00> : vector<2x8xf32>
    %47 = vector.multi_reduction <add>, %46, %cst_21 [2] : vector<2x8x8xf32> to vector<2x8xf32>
    %48 = vector.shape_cast %47 : vector<2x8xf32> to vector<2x8x1xf32>
    %49 = tpu.reciprocal %48 {approx = true} : vector<2x8x1xf32> -> vector<2x8x1xf32>
    %50 = vector.broadcast %49 : vector<2x8x1xf32> to vector<2x8x8xf32>
    %51 = arith.mulf %46, %50 : vector<2x8x8xf32>
    %52 = arith.truncf %51 : vector<2x8x8xf32> to vector<2x8x8xbf16>
    "tpu.trace_start"() <{level = 10 : i32, message = "bqk,bkd->bqd"}> : () -> ()
    %cst_22 = arith.constant dense<0.000000e+00> : vector<2x8x16xf32>
    %53 = tpu.matmul %52, %38, %cst_22 {dimension_numbers = #tpu.dot_dimension_numbers<[2], [1], [1], [2], [0, 0, 0, 1, 1, 2], [0], [0]>} : vector<2x8x8xbf16>, vector<2x8x16xbf16>, vector<2x8x16xf32> -> vector<2x8x16xf32>
    "tpu.trace_stop"() : () -> ()
    %54 = vector.extract_strided_slice %32 {offsets = [0, 0, 16], sizes = [2, 8, 16], strides = [1, 1, 1]} : vector<2x8x96xf32> to vector<2x8x16xf32>
    %55 = arith.truncf %54 : vector<2x8x16xf32> to vector<2x8x16xbf16>
    %56 = vector.extract_strided_slice %32 {offsets = [0, 0, 48], sizes = [2, 8, 16], strides = [1, 1, 1]} : vector<2x8x96xf32> to vector<2x8x16xf32>
    %57 = arith.truncf %56 : vector<2x8x16xf32> to vector<2x8x16xbf16>
    %58 = vector.extract_strided_slice %32 {offsets = [0, 0, 80], sizes = [2, 8, 16], strides = [1, 1, 1]} : vector<2x8x96xf32> to vector<2x8x16xf32>
    %59 = arith.truncf %58 : vector<2x8x16xf32> to vector<2x8x16xbf16>
    "tpu.trace_start"() <{level = 10 : i32, message = "bqd,bkd->bqk"}> : () -> ()
    %cst_23 = arith.constant dense<0.000000e+00> : vector<2x8x8xf32>
    %60 = tpu.matmul %55, %57, %cst_23 {dimension_numbers = #tpu.dot_dimension_numbers<[2], [2], [1], [1], [0, 0, 0, 1, 1, 1], [0], [0]>} : vector<2x8x16xbf16>, vector<2x8x16xbf16>, vector<2x8x8xf32> -> vector<2x8x8xf32>
    "tpu.trace_stop"() : () -> ()
    %61 = vector.broadcast %23 : vector<2x1x8xf32> to vector<2x8x8xf32>
    %62 = arith.addf %60, %61 : vector<2x8x8xf32>
    %cst_24 = arith.constant dense<0xFF800000> : vector<2x8xf32>
    %63 = vector.multi_reduction <maximumf>, %62, %cst_24 [2] : vector<2x8x8xf32> to vector<2x8xf32>
    %64 = vector.shape_cast %63 : vector<2x8xf32> to vector<2x8x1xf32>
    %65 = vector.broadcast %64 : vector<2x8x1xf32> to vector<2x8x8xf32>
    %66 = arith.subf %62, %65 : vector<2x8x8xf32>
    %67 = math.exp %66 : vector<2x8x8xf32>
    %cst_25 = arith.constant dense<0.000000e+00> : vector<2x8xf32>
    %68 = vector.multi_reduction <add>, %67, %cst_25 [2] : vector<2x8x8xf32> to vector<2x8xf32>
    %69 = vector.shape_cast %68 : vector<2x8xf32> to vector<2x8x1xf32>
    %70 = tpu.reciprocal %69 {approx = true} : vector<2x8x1xf32> -> vector<2x8x1xf32>
    %71 = vector.broadcast %70 : vector<2x8x1xf32> to vector<2x8x8xf32>
    %72 = arith.mulf %67, %71 : vector<2x8x8xf32>
    %73 = arith.truncf %72 : vector<2x8x8xf32> to vector<2x8x8xbf16>
    "tpu.trace_start"() <{level = 10 : i32, message = "bqk,bkd->bqd"}> : () -> ()
    %cst_26 = arith.constant dense<0.000000e+00> : vector<2x8x16xf32>
    %74 = tpu.matmul %73, %59, %cst_26 {dimension_numbers = #tpu.dot_dimension_numbers<[2], [1], [1], [2], [0, 0, 0, 1, 1, 2], [0], [0]>} : vector<2x8x8xbf16>, vector<2x8x16xbf16>, vector<2x8x16xf32> -> vector<2x8x16xf32>
    "tpu.trace_stop"() : () -> ()
    %75 = tpu.concatenate %53, %74 in 2 : vector<2x8x16xf32>, vector<2x8x16xf32> -> vector<2x8x32xf32>
    %76 = vector.shape_cast %75 : vector<2x8x32xf32> to vector<16x32xf32>
    %c0_27 = arith.constant 0 : index
    %c0_28 = arith.constant 0 : index
    %c0_29 = arith.constant 0 : index
    %77 = vector.load %arg9[%c0_27, %c0_28, %c0_29] : memref<2x32x32xbf16, #tpu.memory_space<vmem>>, vector<1x32x32xbf16>
    %78 = vector.shape_cast %77 : vector<1x32x32xbf16> to vector<32x32xbf16>
    %79 = arith.truncf %76 : vector<16x32xf32> to vector<16x32xbf16>
    %cst_30 = arith.constant dense<0.000000e+00> : vector<16x32xf32>
    %80 = tpu.matmul %79, %78, %cst_30 {dimension_numbers = #tpu.dot_dimension_numbers<[1], [0], [0], [1], [0, 0, 1, 1], [], []>} : vector<16x32xbf16>, vector<32x32xbf16>, vector<16x32xf32> -> vector<16x32xf32>
    %c0_31 = arith.constant 0 : index
    %c0_32 = arith.constant 0 : index
    %c0_33 = arith.constant 0 : index
    %81 = vector.load %arg10[%c0_31, %c0_32, %c0_33] : memref<2x1x32xf32, #tpu.memory_space<vmem>>, vector<1x1x32xf32>
    %82 = vector.shape_cast %81 : vector<1x1x32xf32> to vector<1x32xf32>
    %83 = vector.broadcast %82 : vector<1x32xf32> to vector<16x32xf32>
    %84 = arith.addf %80, %83 : vector<16x32xf32>
    %85 = arith.addf %84, %22 : vector<16x32xf32>
    %c0_34 = arith.constant 0 : index
    %c0_35 = arith.constant 0 : index
    %c0_36 = arith.constant 0 : index
    %86 = vector.load %arg11[%c0_34, %c0_35, %c0_36] : memref<2x1x32xf32, #tpu.memory_space<vmem>>, vector<1x1x32xf32>
    %87 = vector.shape_cast %86 : vector<1x1x32xf32> to vector<1x32xf32>
    %c0_37 = arith.constant 0 : index
    %c0_38 = arith.constant 0 : index
    %c0_39 = arith.constant 0 : index
    %88 = vector.load %arg12[%c0_37, %c0_38, %c0_39] : memref<2x1x32xf32, #tpu.memory_space<vmem>>, vector<1x1x32xf32>
    %89 = vector.shape_cast %88 : vector<1x1x32xf32> to vector<1x32xf32>
    %cst_40 = arith.constant dense<0.000000e+00> : vector<16xf32>
    %90 = vector.multi_reduction <add>, %85, %cst_40 [1] : vector<16x32xf32> to vector<16xf32>
    %91 = vector.shape_cast %90 : vector<16xf32> to vector<16x1xf32>
    %cst_41 = arith.constant 3.200000e+01 : f32
    %92 = vector.broadcast %cst_41 : f32 to vector<16x1xf32>
    %93 = arith.divf %91, %92 : vector<16x1xf32>
    %94 = vector.broadcast %93 : vector<16x1xf32> to vector<16x32xf32>
    %95 = arith.subf %85, %94 : vector<16x32xf32>
    %96 = arith.mulf %95, %95 : vector<16x32xf32>
    %cst_42 = arith.constant dense<0.000000e+00> : vector<16xf32>
    %97 = vector.multi_reduction <add>, %96, %cst_42 [1] : vector<16x32xf32> to vector<16xf32>
    %98 = vector.shape_cast %97 : vector<16xf32> to vector<16x1xf32>
    %cst_43 = arith.constant 3.200000e+01 : f32
    %99 = vector.broadcast %cst_43 : f32 to vector<16x1xf32>
    %100 = arith.divf %98, %99 : vector<16x1xf32>
    %cst_44 = arith.constant 9.99999996E-13 : f32
    %101 = vector.broadcast %cst_44 : f32 to vector<16x1xf32>
    %102 = arith.addf %100, %101 : vector<16x1xf32>
    %103 = math.rsqrt %102 : vector<16x1xf32>
    %104 = vector.broadcast %103 : vector<16x1xf32> to vector<16x32xf32>
    %105 = arith.mulf %95, %104 : vector<16x32xf32>
    %106 = vector.broadcast %87 : vector<1x32xf32> to vector<16x32xf32>
    %107 = arith.mulf %105, %106 : vector<16x32xf32>
    %108 = vector.broadcast %89 : vector<1x32xf32> to vector<16x32xf32>
    %109 = arith.addf %107, %108 : vector<16x32xf32>
    %c0_45 = arith.constant 0 : index
    %c0_46 = arith.constant 0 : index
    %c0_47 = arith.constant 0 : index
    %110 = vector.load %arg13[%c0_45, %c0_46, %c0_47] : memref<2x32x64xbf16, #tpu.memory_space<vmem>>, vector<1x32x64xbf16>
    %111 = vector.shape_cast %110 : vector<1x32x64xbf16> to vector<32x64xbf16>
    %112 = arith.truncf %109 : vector<16x32xf32> to vector<16x32xbf16>
    %cst_48 = arith.constant dense<0.000000e+00> : vector<16x64xf32>
    %113 = tpu.matmul %112, %111, %cst_48 {dimension_numbers = #tpu.dot_dimension_numbers<[1], [0], [0], [1], [0, 0, 1, 1], [], []>} : vector<16x32xbf16>, vector<32x64xbf16>, vector<16x64xf32> -> vector<16x64xf32>
    %c0_49 = arith.constant 0 : index
    %c0_50 = arith.constant 0 : index
    %c0_51 = arith.constant 0 : index
    %114 = vector.load %arg14[%c0_49, %c0_50, %c0_51] : memref<2x1x64xf32, #tpu.memory_space<vmem>>, vector<1x1x64xf32>
    %115 = vector.shape_cast %114 : vector<1x1x64xf32> to vector<1x64xf32>
    %116 = vector.broadcast %115 : vector<1x64xf32> to vector<16x64xf32>
    %117 = arith.addf %113, %116 : vector<16x64xf32>
    %cst_52 = arith.constant 5.000000e-01 : f32
    %118 = vector.broadcast %cst_52 : f32 to vector<16x64xf32>
    %119 = arith.mulf %118, %117 : vector<16x64xf32>
    %cst_53 = arith.constant 4.471500e-02 : f32
    %120 = vector.broadcast %cst_53 : f32 to vector<16x64xf32>
    %121 = arith.mulf %120, %117 : vector<16x64xf32>
    %122 = arith.mulf %121, %117 : vector<16x64xf32>
    %123 = arith.mulf %122, %117 : vector<16x64xf32>
    %124 = arith.addf %117, %123 : vector<16x64xf32>
    %cst_54 = arith.constant 0.797884583 : f32
    %125 = vector.broadcast %cst_54 : f32 to vector<16x64xf32>
    %126 = arith.mulf %125, %124 : vector<16x64xf32>
    %127 = math.tanh %126 : vector<16x64xf32>
    %cst_55 = arith.constant 1.000000e+00 : f32
    %128 = vector.broadcast %cst_55 : f32 to vector<16x64xf32>
    %129 = arith.addf %128, %127 : vector<16x64xf32>
    %130 = arith.mulf %119, %129 : vector<16x64xf32>
    %c0_56 = arith.constant 0 : index
    %c0_57 = arith.constant 0 : index
    %c0_58 = arith.constant 0 : index
    %131 = vector.load %arg15[%c0_56, %c0_57, %c0_58] : memref<2x64x32xbf16, #tpu.memory_space<vmem>>, vector<1x64x32xbf16>
    %132 = vector.shape_cast %131 : vector<1x64x32xbf16> to vector<64x32xbf16>
    %133 = arith.truncf %130 : vector<16x64xf32> to vector<16x64xbf16>
    %cst_59 = arith.constant dense<0.000000e+00> : vector<16x32xf32>
    %134 = tpu.matmul %133, %132, %cst_59 {dimension_numbers = #tpu.dot_dimension_numbers<[1], [0], [0], [1], [0, 0, 1, 1], [], []>} : vector<16x64xbf16>, vector<64x32xbf16>, vector<16x32xf32> -> vector<16x32xf32>
    %c0_60 = arith.constant 0 : index
    %c0_61 = arith.constant 0 : index
    %c0_62 = arith.constant 0 : index
    %135 = vector.load %arg16[%c0_60, %c0_61, %c0_62] : memref<2x1x32xf32, #tpu.memory_space<vmem>>, vector<1x1x32xf32>
    %136 = vector.shape_cast %135 : vector<1x1x32xf32> to vector<1x32xf32>
    %137 = vector.broadcast %136 : vector<1x32xf32> to vector<16x32xf32>
    %138 = arith.addf %134, %137 : vector<16x32xf32>
    %139 = arith.addf %138, %109 : vector<16x32xf32>
    %c0_63 = arith.constant 0 : index
    %c0_64 = arith.constant 0 : index
    %c0_65 = arith.constant 0 : index
    %140 = vector.load %arg17[%c0_63, %c0_64, %c0_65] : memref<2x1x32xf32, #tpu.memory_space<vmem>>, vector<1x1x32xf32>
    %141 = vector.shape_cast %140 : vector<1x1x32xf32> to vector<1x32xf32>
    %c0_66 = arith.constant 0 : index
    %c0_67 = arith.constant 0 : index
    %c0_68 = arith.constant 0 : index
    %142 = vector.load %arg18[%c0_66, %c0_67, %c0_68] : memref<2x1x32xf32, #tpu.memory_space<vmem>>, vector<1x1x32xf32>
    %143 = vector.shape_cast %142 : vector<1x1x32xf32> to vector<1x32xf32>
    %cst_69 = arith.constant dense<0.000000e+00> : vector<16xf32>
    %144 = vector.multi_reduction <add>, %139, %cst_69 [1] : vector<16x32xf32> to vector<16xf32>
    %145 = vector.shape_cast %144 : vector<16xf32> to vector<16x1xf32>
    %cst_70 = arith.constant 3.200000e+01 : f32
    %146 = vector.broadcast %cst_70 : f32 to vector<16x1xf32>
    %147 = arith.divf %145, %146 : vector<16x1xf32>
    %148 = vector.broadcast %147 : vector<16x1xf32> to vector<16x32xf32>
    %149 = arith.subf %139, %148 : vector<16x32xf32>
    %150 = arith.mulf %149, %149 : vector<16x32xf32>
    %cst_71 = arith.constant dense<0.000000e+00> : vector<16xf32>
    %151 = vector.multi_reduction <add>, %150, %cst_71 [1] : vector<16x32xf32> to vector<16xf32>
    %152 = vector.shape_cast %151 : vector<16xf32> to vector<16x1xf32>
    %cst_72 = arith.constant 3.200000e+01 : f32
    %153 = vector.broadcast %cst_72 : f32 to vector<16x1xf32>
    %154 = arith.divf %152, %153 : vector<16x1xf32>
    %cst_73 = arith.constant 9.99999996E-13 : f32
    %155 = vector.broadcast %cst_73 : f32 to vector<16x1xf32>
    %156 = arith.addf %154, %155 : vector<16x1xf32>
    %157 = math.rsqrt %156 : vector<16x1xf32>
    %158 = vector.broadcast %157 : vector<16x1xf32> to vector<16x32xf32>
    %159 = arith.mulf %149, %158 : vector<16x32xf32>
    %160 = vector.broadcast %141 : vector<1x32xf32> to vector<16x32xf32>
    %161 = arith.mulf %159, %160 : vector<16x32xf32>
    %162 = vector.broadcast %143 : vector<1x32xf32> to vector<16x32xf32>
    %163 = arith.addf %161, %162 : vector<16x32xf32>
    %c1 = arith.constant 1 : index
    %c0_74 = arith.constant 0 : index
    %c0_75 = arith.constant 0 : index
    %164 = vector.load %arg7[%c1, %c0_74, %c0_75] : memref<2x32x96xbf16, #tpu.memory_space<vmem>>, vector<1x32x96xbf16>
    %165 = vector.shape_cast %164 : vector<1x32x96xbf16> to vector<32x96xbf16>
    %166 = arith.truncf %163 : vector<16x32xf32> to vector<16x32xbf16>
    %cst_76 = arith.constant dense<0.000000e+00> : vector<16x96xf32>
    %167 = tpu.matmul %166, %165, %cst_76 {dimension_numbers = #tpu.dot_dimension_numbers<[1], [0], [0], [1], [0, 0, 1, 1], [], []>} : vector<16x32xbf16>, vector<32x96xbf16>, vector<16x96xf32> -> vector<16x96xf32>
    %c1_77 = arith.constant 1 : index
    %c0_78 = arith.constant 0 : index
    %c0_79 = arith.constant 0 : index
    %168 = vector.load %arg8[%c1_77, %c0_78, %c0_79] : memref<2x1x96xf32, #tpu.memory_space<vmem>>, vector<1x1x96xf32>
    %169 = vector.shape_cast %168 : vector<1x1x96xf32> to vector<1x96xf32>
    %170 = vector.broadcast %169 : vector<1x96xf32> to vector<16x96xf32>
    %171 = arith.addf %167, %170 : vector<16x96xf32>
    %172 = vector.shape_cast %171 : vector<16x96xf32> to vector<2x8x96xf32>
    %173 = vector.extract_strided_slice %172 {offsets = [0, 0, 0], sizes = [2, 8, 16], strides = [1, 1, 1]} : vector<2x8x96xf32> to vector<2x8x16xf32>
    %174 = arith.truncf %173 : vector<2x8x16xf32> to vector<2x8x16xbf16>
    %175 = vector.extract_strided_slice %172 {offsets = [0, 0, 32], sizes = [2, 8, 16], strides = [1, 1, 1]} : vector<2x8x96xf32> to vector<2x8x16xf32>
    %176 = arith.truncf %175 : vector<2x8x16xf32> to vector<2x8x16xbf16>
    %177 = vector.extract_strided_slice %172 {offsets = [0, 0, 64], sizes = [2, 8, 16], strides = [1, 1, 1]} : vector<2x8x96xf32> to vector<2x8x16xf32>
    %178 = arith.truncf %177 : vector<2x8x16xf32> to vector<2x8x16xbf16>
    "tpu.trace_start"() <{level = 10 : i32, message = "bqd,bkd->bqk"}> : () -> ()
    %cst_80 = arith.constant dense<0.000000e+00> : vector<2x8x8xf32>
    %179 = tpu.matmul %174, %176, %cst_80 {dimension_numbers = #tpu.dot_dimension_numbers<[2], [2], [1], [1], [0, 0, 0, 1, 1, 1], [0], [0]>} : vector<2x8x16xbf16>, vector<2x8x16xbf16>, vector<2x8x8xf32> -> vector<2x8x8xf32>
    "tpu.trace_stop"() : () -> ()
    %180 = vector.broadcast %23 : vector<2x1x8xf32> to vector<2x8x8xf32>
    %181 = arith.addf %179, %180 : vector<2x8x8xf32>
    %cst_81 = arith.constant dense<0xFF800000> : vector<2x8xf32>
    %182 = vector.multi_reduction <maximumf>, %181, %cst_81 [2] : vector<2x8x8xf32> to vector<2x8xf32>
    %183 = vector.shape_cast %182 : vector<2x8xf32> to vector<2x8x1xf32>
    %184 = vector.broadcast %183 : vector<2x8x1xf32> to vector<2x8x8xf32>
    %185 = arith.subf %181, %184 : vector<2x8x8xf32>
    %186 = math.exp %185 : vector<2x8x8xf32>
    %cst_82 = arith.constant dense<0.000000e+00> : vector<2x8xf32>
    %187 = vector.multi_reduction <add>, %186, %cst_82 [2] : vector<2x8x8xf32> to vector<2x8xf32>
    %188 = vector.shape_cast %187 : vector<2x8xf32> to vector<2x8x1xf32>
    %189 = tpu.reciprocal %188 {approx = true} : vector<2x8x1xf32> -> vector<2x8x1xf32>
    %190 = vector.broadcast %189 : vector<2x8x1xf32> to vector<2x8x8xf32>
    %191 = arith.mulf %186, %190 : vector<2x8x8xf32>
    %192 = arith.truncf %191 : vector<2x8x8xf32> to vector<2x8x8xbf16>
    "tpu.trace_start"() <{level = 10 : i32, message = "bqk,bkd->bqd"}> : () -> ()
    %cst_83 = arith.constant dense<0.000000e+00> : vector<2x8x16xf32>
    %193 = tpu.matmul %192, %178, %cst_83 {dimension_numbers = #tpu.dot_dimension_numbers<[2], [1], [1], [2], [0, 0, 0, 1, 1, 2], [0], [0]>} : vector<2x8x8xbf16>, vector<2x8x16xbf16>, vector<2x8x16xf32> -> vector<2x8x16xf32>
    "tpu.trace_stop"() : () -> ()
    %194 = vector.extract_strided_slice %172 {offsets = [0, 0, 16], sizes = [2, 8, 16], strides = [1, 1, 1]} : vector<2x8x96xf32> to vector<2x8x16xf32>
    %195 = arith.truncf %194 : vector<2x8x16xf32> to vector<2x8x16xbf16>
    %196 = vector.extract_strided_slice %172 {offsets = [0, 0, 48], sizes = [2, 8, 16], strides = [1, 1, 1]} : vector<2x8x96xf32> to vector<2x8x16xf32>
    %197 = arith.truncf %196 : vector<2x8x16xf32> to vector<2x8x16xbf16>
    %198 = vector.extract_strided_slice %172 {offsets = [0, 0, 80], sizes = [2, 8, 16], strides = [1, 1, 1]} : vector<2x8x96xf32> to vector<2x8x16xf32>
    %199 = arith.truncf %198 : vector<2x8x16xf32> to vector<2x8x16xbf16>
    "tpu.trace_start"() <{level = 10 : i32, message = "bqd,bkd->bqk"}> : () -> ()
    %cst_84 = arith.constant dense<0.000000e+00> : vector<2x8x8xf32>
    %200 = tpu.matmul %195, %197, %cst_84 {dimension_numbers = #tpu.dot_dimension_numbers<[2], [2], [1], [1], [0, 0, 0, 1, 1, 1], [0], [0]>} : vector<2x8x16xbf16>, vector<2x8x16xbf16>, vector<2x8x8xf32> -> vector<2x8x8xf32>
    "tpu.trace_stop"() : () -> ()
    %201 = vector.broadcast %23 : vector<2x1x8xf32> to vector<2x8x8xf32>
    %202 = arith.addf %200, %201 : vector<2x8x8xf32>
    %cst_85 = arith.constant dense<0xFF800000> : vector<2x8xf32>
    %203 = vector.multi_reduction <maximumf>, %202, %cst_85 [2] : vector<2x8x8xf32> to vector<2x8xf32>
    %204 = vector.shape_cast %203 : vector<2x8xf32> to vector<2x8x1xf32>
    %205 = vector.broadcast %204 : vector<2x8x1xf32> to vector<2x8x8xf32>
    %206 = arith.subf %202, %205 : vector<2x8x8xf32>
    %207 = math.exp %206 : vector<2x8x8xf32>
    %cst_86 = arith.constant dense<0.000000e+00> : vector<2x8xf32>
    %208 = vector.multi_reduction <add>, %207, %cst_86 [2] : vector<2x8x8xf32> to vector<2x8xf32>
    %209 = vector.shape_cast %208 : vector<2x8xf32> to vector<2x8x1xf32>
    %210 = tpu.reciprocal %209 {approx = true} : vector<2x8x1xf32> -> vector<2x8x1xf32>
    %211 = vector.broadcast %210 : vector<2x8x1xf32> to vector<2x8x8xf32>
    %212 = arith.mulf %207, %211 : vector<2x8x8xf32>
    %213 = arith.truncf %212 : vector<2x8x8xf32> to vector<2x8x8xbf16>
    "tpu.trace_start"() <{level = 10 : i32, message = "bqk,bkd->bqd"}> : () -> ()
    %cst_87 = arith.constant dense<0.000000e+00> : vector<2x8x16xf32>
    %214 = tpu.matmul %213, %199, %cst_87 {dimension_numbers = #tpu.dot_dimension_numbers<[2], [1], [1], [2], [0, 0, 0, 1, 1, 2], [0], [0]>} : vector<2x8x8xbf16>, vector<2x8x16xbf16>, vector<2x8x16xf32> -> vector<2x8x16xf32>
    "tpu.trace_stop"() : () -> ()
    %215 = tpu.concatenate %193, %214 in 2 : vector<2x8x16xf32>, vector<2x8x16xf32> -> vector<2x8x32xf32>
    %216 = vector.shape_cast %215 : vector<2x8x32xf32> to vector<16x32xf32>
    %c1_88 = arith.constant 1 : index
    %c0_89 = arith.constant 0 : index
    %c0_90 = arith.constant 0 : index
    %217 = vector.load %arg9[%c1_88, %c0_89, %c0_90] : memref<2x32x32xbf16, #tpu.memory_space<vmem>>, vector<1x32x32xbf16>
    %218 = vector.shape_cast %217 : vector<1x32x32xbf16> to vector<32x32xbf16>
    %219 = arith.truncf %216 : vector<16x32xf32> to vector<16x32xbf16>
    %cst_91 = arith.constant dense<0.000000e+00> : vector<16x32xf32>
    %220 = tpu.matmul %219, %218, %cst_91 {dimension_numbers = #tpu.dot_dimension_numbers<[1], [0], [0], [1], [0, 0, 1, 1], [], []>} : vector<16x32xbf16>, vector<32x32xbf16>, vector<16x32xf32> -> vector<16x32xf32>
    %c1_92 = arith.constant 1 : index
    %c0_93 = arith.constant 0 : index
    %c0_94 = arith.constant 0 : index
    %221 = vector.load %arg10[%c1_92, %c0_93, %c0_94] : memref<2x1x32xf32, #tpu.memory_space<vmem>>, vector<1x1x32xf32>
    %222 = vector.shape_cast %221 : vector<1x1x32xf32> to vector<1x32xf32>
    %223 = vector.broadcast %222 : vector<1x32xf32> to vector<16x32xf32>
    %224 = arith.addf %220, %223 : vector<16x32xf32>
    %225 = arith.addf %224, %163 : vector<16x32xf32>
    %c1_95 = arith.constant 1 : index
    %c0_96 = arith.constant 0 : index
    %c0_97 = arith.constant 0 : index
    %226 = vector.load %arg11[%c1_95, %c0_96, %c0_97] : memref<2x1x32xf32, #tpu.memory_space<vmem>>, vector<1x1x32xf32>
    %227 = vector.shape_cast %226 : vector<1x1x32xf32> to vector<1x32xf32>
    %c1_98 = arith.constant 1 : index
    %c0_99 = arith.constant 0 : index
    %c0_100 = arith.constant 0 : index
    %228 = vector.load %arg12[%c1_98, %c0_99, %c0_100] : memref<2x1x32xf32, #tpu.memory_space<vmem>>, vector<1x1x32xf32>
    %229 = vector.shape_cast %228 : vector<1x1x32xf32> to vector<1x32xf32>
    %cst_101 = arith.constant dense<0.000000e+00> : vector<16xf32>
    %230 = vector.multi_reduction <add>, %225, %cst_101 [1] : vector<16x32xf32> to vector<16xf32>
    %231 = vector.shape_cast %230 : vector<16xf32> to vector<16x1xf32>
    %cst_102 = arith.constant 3.200000e+01 : f32
    %232 = vector.broadcast %cst_102 : f32 to vector<16x1xf32>
    %233 = arith.divf %231, %232 : vector<16x1xf32>
    %234 = vector.broadcast %233 : vector<16x1xf32> to vector<16x32xf32>
    %235 = arith.subf %225, %234 : vector<16x32xf32>
    %236 = arith.mulf %235, %235 : vector<16x32xf32>
    %cst_103 = arith.constant dense<0.000000e+00> : vector<16xf32>
    %237 = vector.multi_reduction <add>, %236, %cst_103 [1] : vector<16x32xf32> to vector<16xf32>
    %238 = vector.shape_cast %237 : vector<16xf32> to vector<16x1xf32>
    %cst_104 = arith.constant 3.200000e+01 : f32
    %239 = vector.broadcast %cst_104 : f32 to vector<16x1xf32>
    %240 = arith.divf %238, %239 : vector<16x1xf32>
    %cst_105 = arith.constant 9.99999996E-13 : f32
    %241 = vector.broadcast %cst_105 : f32 to vector<16x1xf32>
    %242 = arith.addf %240, %241 : vector<16x1xf32>
    %243 = math.rsqrt %242 : vector<16x1xf32>
    %244 = vector.broadcast %243 : vector<16x1xf32> to vector<16x32xf32>
    %245 = arith.mulf %235, %244 : vector<16x32xf32>
    %246 = vector.broadcast %227 : vector<1x32xf32> to vector<16x32xf32>
    %247 = arith.mulf %245, %246 : vector<16x32xf32>
    %248 = vector.broadcast %229 : vector<1x32xf32> to vector<16x32xf32>
    %249 = arith.addf %247, %248 : vector<16x32xf32>
    %c1_106 = arith.constant 1 : index
    %c0_107 = arith.constant 0 : index
    %c0_108 = arith.constant 0 : index
    %250 = vector.load %arg13[%c1_106, %c0_107, %c0_108] : memref<2x32x64xbf16, #tpu.memory_space<vmem>>, vector<1x32x64xbf16>
    %251 = vector.shape_cast %250 : vector<1x32x64xbf16> to vector<32x64xbf16>
    %252 = arith.truncf %249 : vector<16x32xf32> to vector<16x32xbf16>
    %cst_109 = arith.constant dense<0.000000e+00> : vector<16x64xf32>
    %253 = tpu.matmul %252, %251, %cst_109 {dimension_numbers = #tpu.dot_dimension_numbers<[1], [0], [0], [1], [0, 0, 1, 1], [], []>} : vector<16x32xbf16>, vector<32x64xbf16>, vector<16x64xf32> -> vector<16x64xf32>
    %c1_110 = arith.constant 1 : index
    %c0_111 = arith.constant 0 : index
    %c0_112 = arith.constant 0 : index
    %254 = vector.load %arg14[%c1_110, %c0_111, %c0_112] : memref<2x1x64xf32, #tpu.memory_space<vmem>>, vector<1x1x64xf32>
    %255 = vector.shape_cast %254 : vector<1x1x64xf32> to vector<1x64xf32>
    %256 = vector.broadcast %255 : vector<1x64xf32> to vector<16x64xf32>
    %257 = arith.addf %253, %256 : vector<16x64xf32>
    %cst_113 = arith.constant 5.000000e-01 : f32
    %258 = vector.broadcast %cst_113 : f32 to vector<16x64xf32>
    %259 = arith.mulf %258, %257 : vector<16x64xf32>
    %cst_114 = arith.constant 4.471500e-02 : f32
    %260 = vector.broadcast %cst_114 : f32 to vector<16x64xf32>
    %261 = arith.mulf %260, %257 : vector<16x64xf32>
    %262 = arith.mulf %261, %257 : vector<16x64xf32>
    %263 = arith.mulf %262, %257 : vector<16x64xf32>
    %264 = arith.addf %257, %263 : vector<16x64xf32>
    %cst_115 = arith.constant 0.797884583 : f32
    %265 = vector.broadcast %cst_115 : f32 to vector<16x64xf32>
    %266 = arith.mulf %265, %264 : vector<16x64xf32>
    %267 = math.tanh %266 : vector<16x64xf32>
    %cst_116 = arith.constant 1.000000e+00 : f32
    %268 = vector.broadcast %cst_116 : f32 to vector<16x64xf32>
    %269 = arith.addf %268, %267 : vector<16x64xf32>
    %270 = arith.mulf %259, %269 : vector<16x64xf32>
    %c1_117 = arith.constant 1 : index
    %c0_118 = arith.constant 0 : index
    %c0_119 = arith.constant 0 : index
    %271 = vector.load %arg15[%c1_117, %c0_118, %c0_119] : memref<2x64x32xbf16, #tpu.memory_space<vmem>>, vector<1x64x32xbf16>
    %272 = vector.shape_cast %271 : vector<1x64x32xbf16> to vector<64x32xbf16>
    %273 = arith.truncf %270 : vector<16x64xf32> to vector<16x64xbf16>
    %cst_120 = arith.constant dense<0.000000e+00> : vector<16x32xf32>
    %274 = tpu.matmul %273, %272, %cst_120 {dimension_numbers = #tpu.dot_dimension_numbers<[1], [0], [0], [1], [0, 0, 1, 1], [], []>} : vector<16x64xbf16>, vector<64x32xbf16>, vector<16x32xf32> -> vector<16x32xf32>
    %c1_121 = arith.constant 1 : index
    %c0_122 = arith.constant 0 : index
    %c0_123 = arith.constant 0 : index
    %275 = vector.load %arg16[%c1_121, %c0_122, %c0_123] : memref<2x1x32xf32, #tpu.memory_space<vmem>>, vector<1x1x32xf32>
    %276 = vector.shape_cast %275 : vector<1x1x32xf32> to vector<1x32xf32>
    %277 = vector.broadcast %276 : vector<1x32xf32> to vector<16x32xf32>
    %278 = arith.addf %274, %277 : vector<16x32xf32>
    %279 = arith.addf %278, %249 : vector<16x32xf32>
    %c1_124 = arith.constant 1 : index
    %c0_125 = arith.constant 0 : index
    %c0_126 = arith.constant 0 : index
    %280 = vector.load %arg17[%c1_124, %c0_125, %c0_126] : memref<2x1x32xf32, #tpu.memory_space<vmem>>, vector<1x1x32xf32>
    %281 = vector.shape_cast %280 : vector<1x1x32xf32> to vector<1x32xf32>
    %c1_127 = arith.constant 1 : index
    %c0_128 = arith.constant 0 : index
    %c0_129 = arith.constant 0 : index
    %282 = vector.load %arg18[%c1_127, %c0_128, %c0_129] : memref<2x1x32xf32, #tpu.memory_space<vmem>>, vector<1x1x32xf32>
    %283 = vector.shape_cast %282 : vector<1x1x32xf32> to vector<1x32xf32>
    %cst_130 = arith.constant dense<0.000000e+00> : vector<16xf32>
    %284 = vector.multi_reduction <add>, %279, %cst_130 [1] : vector<16x32xf32> to vector<16xf32>
    %285 = vector.shape_cast %284 : vector<16xf32> to vector<16x1xf32>
    %cst_131 = arith.constant 3.200000e+01 : f32
    %286 = vector.broadcast %cst_131 : f32 to vector<16x1xf32>
    %287 = arith.divf %285, %286 : vector<16x1xf32>
    %288 = vector.broadcast %287 : vector<16x1xf32> to vector<16x32xf32>
    %289 = arith.subf %279, %288 : vector<16x32xf32>
    %290 = arith.mulf %289, %289 : vector<16x32xf32>
    %cst_132 = arith.constant dense<0.000000e+00> : vector<16xf32>
    %291 = vector.multi_reduction <add>, %290, %cst_132 [1] : vector<16x32xf32> to vector<16xf32>
    %292 = vector.shape_cast %291 : vector<16xf32> to vector<16x1xf32>
    %cst_133 = arith.constant 3.200000e+01 : f32
    %293 = vector.broadcast %cst_133 : f32 to vector<16x1xf32>
    %294 = arith.divf %292, %293 : vector<16x1xf32>
    %cst_134 = arith.constant 9.99999996E-13 : f32
    %295 = vector.broadcast %cst_134 : f32 to vector<16x1xf32>
    %296 = arith.addf %294, %295 : vector<16x1xf32>
    %297 = math.rsqrt %296 : vector<16x1xf32>
    %298 = vector.broadcast %297 : vector<16x1xf32> to vector<16x32xf32>
    %299 = arith.mulf %289, %298 : vector<16x32xf32>
    %300 = vector.broadcast %281 : vector<1x32xf32> to vector<16x32xf32>
    %301 = arith.mulf %299, %300 : vector<16x32xf32>
    %302 = vector.broadcast %283 : vector<1x32xf32> to vector<16x32xf32>
    %303 = arith.addf %301, %302 : vector<16x32xf32>
    %c0_135 = arith.constant 0 : index
    %c0_136 = arith.constant 0 : index
    %304 = vector.load %arg19[%c0_135, %c0_136] : memref<32x8xbf16, #tpu.memory_space<vmem>>, vector<32x8xbf16>
    %305 = arith.truncf %303 : vector<16x32xf32> to vector<16x32xbf16>
    %cst_137 = arith.constant dense<0.000000e+00> : vector<16x8xf32>
    %306 = tpu.matmul %305, %304, %cst_137 {dimension_numbers = #tpu.dot_dimension_numbers<[1], [0], [0], [1], [0, 0, 1, 1], [], []>} : vector<16x32xbf16>, vector<32x8xbf16>, vector<16x8xf32> -> vector<16x8xf32>
    %c0_138 = arith.constant 0 : index
    %c0_139 = arith.constant 0 : index
    %307 = vector.load %arg20[%c0_138, %c0_139] : memref<1x8xf32, #tpu.memory_space<vmem>>, vector<1x8xf32>
    %308 = vector.broadcast %307 : vector<1x8xf32> to vector<16x8xf32>
    %309 = arith.addf %306, %308 : vector<16x8xf32>
    %c0_140 = arith.constant 0 : index
    %c0_141 = arith.constant 0 : index
    %310 = vector.load %arg3[%c0_140, %c0_141] : memref<2x1xi32, #tpu.memory_space<vmem>>, vector<2x1xi32>
    %c0_142 = arith.constant 0 : index
    %c0_143 = arith.constant 0 : index
    %311 = vector.load %arg4[%c0_142, %c0_143] : memref<2x8xi32, #tpu.memory_space<vmem>>, vector<2x8xi32>
    %c0_144 = arith.constant 0 : index
    %c0_145 = arith.constant 0 : index
    %312 = vector.load %arg21[%c0_144, %c0_145] : memref<1x8xf32, #tpu.memory_space<vmem>>, vector<1x8xf32>
    %c0_146 = arith.constant 0 : index
    %c0_147 = arith.constant 0 : index
    %313 = vector.load %arg22[%c0_146, %c0_147] : memref<1x8xf32, #tpu.memory_space<vmem>>, vector<1x8xf32>
    %c0_148 = arith.constant 0 : index
    %c0_149 = arith.constant 0 : index
    %314 = vector.load %arg23[%c0_148, %c0_149] : memref<8x8xf32, #tpu.memory_space<vmem>>, vector<8x8xf32>
    %315 = vector.extract_strided_slice %314 {offsets = [0, 0], sizes = [1, 8], strides = [1, 1]} : vector<8x8xf32> to vector<1x8xf32>
    %316 = vector.extract_strided_slice %314 {offsets = [1, 0], sizes = [1, 8], strides = [1, 1]} : vector<8x8xf32> to vector<1x8xf32>
    %317 = vector.extract_strided_slice %314 {offsets = [2, 0], sizes = [1, 8], strides = [1, 1]} : vector<8x8xf32> to vector<1x8xf32>
    %318 = vector.extract_strided_slice %314 {offsets = [3, 0], sizes = [1, 8], strides = [1, 1]} : vector<8x8xf32> to vector<1x8xf32>
    %319 = vector.extract_strided_slice %314 {offsets = [4, 0], sizes = [1, 8], strides = [1, 1]} : vector<8x8xf32> to vector<1x8xf32>
    %320 = vector.extract_strided_slice %314 {offsets = [5, 0], sizes = [1, 8], strides = [1, 1]} : vector<8x8xf32> to vector<1x8xf32>
    %321 = vector.extract_strided_slice %314 {offsets = [6, 0], sizes = [1, 8], strides = [1, 1]} : vector<8x8xf32> to vector<1x8xf32>
    %322 = vector.extract_strided_slice %314 {offsets = [7, 0], sizes = [1, 8], strides = [1, 1]} : vector<8x8xf32> to vector<1x8xf32>
    %323 = tpu.iota {dimensions = array<i32: 1>} : vector<2x8xi32>
    %324 = vector.extract_strided_slice %309 {offsets = [0, 0], sizes = [1, 8], strides = [1, 1]} : vector<16x8xf32> to vector<1x8xf32>
    %325 = vector.extract_strided_slice %309 {offsets = [8, 0], sizes = [1, 8], strides = [1, 1]} : vector<16x8xf32> to vector<1x8xf32>
    %326 = tpu.concatenate %324, %325 in 0 : vector<1x8xf32>, vector<1x8xf32> -> vector<2x8xf32>
    %327 = vector.extract_strided_slice %311 {offsets = [0, 0], sizes = [2, 1], strides = [1, 1]} : vector<2x8xi32> to vector<2x1xi32>
    %328 = vector.broadcast %327 : vector<2x1xi32> to vector<2x8xi32>
    %329 = arith.cmpi eq, %323, %328 : vector<2x8xi32>
    %330 = arith.extui %329 : vector<2x8xi1> to vector<2x8xi32>
    %331 = arith.sitofp %330 : vector<2x8xi32> to vector<2x8xf32>
    %332 = vector.extract_strided_slice %309 {offsets = [1, 0], sizes = [1, 8], strides = [1, 1]} : vector<16x8xf32> to vector<1x8xf32>
    %333 = vector.extract_strided_slice %309 {offsets = [9, 0], sizes = [1, 8], strides = [1, 1]} : vector<16x8xf32> to vector<1x8xf32>
    %334 = tpu.concatenate %332, %333 in 0 : vector<1x8xf32>, vector<1x8xf32> -> vector<2x8xf32>
    %335 = vector.extract_strided_slice %311 {offsets = [0, 1], sizes = [2, 1], strides = [1, 1]} : vector<2x8xi32> to vector<2x1xi32>
    %336 = vector.broadcast %335 : vector<2x1xi32> to vector<2x8xi32>
    %337 = arith.cmpi eq, %323, %336 : vector<2x8xi32>
    %338 = arith.extui %337 : vector<2x8xi1> to vector<2x8xi32>
    %339 = arith.sitofp %338 : vector<2x8xi32> to vector<2x8xf32>
    %340 = vector.extract_strided_slice %309 {offsets = [2, 0], sizes = [1, 8], strides = [1, 1]} : vector<16x8xf32> to vector<1x8xf32>
    %341 = vector.extract_strided_slice %309 {offsets = [10, 0], sizes = [1, 8], strides = [1, 1]} : vector<16x8xf32> to vector<1x8xf32>
    %342 = tpu.concatenate %340, %341 in 0 : vector<1x8xf32>, vector<1x8xf32> -> vector<2x8xf32>
    %343 = vector.extract_strided_slice %311 {offsets = [0, 2], sizes = [2, 1], strides = [1, 1]} : vector<2x8xi32> to vector<2x1xi32>
    %344 = vector.broadcast %343 : vector<2x1xi32> to vector<2x8xi32>
    %345 = arith.cmpi eq, %323, %344 : vector<2x8xi32>
    %346 = arith.extui %345 : vector<2x8xi1> to vector<2x8xi32>
    %347 = arith.sitofp %346 : vector<2x8xi32> to vector<2x8xf32>
    %348 = vector.extract_strided_slice %309 {offsets = [3, 0], sizes = [1, 8], strides = [1, 1]} : vector<16x8xf32> to vector<1x8xf32>
    %349 = vector.extract_strided_slice %309 {offsets = [11, 0], sizes = [1, 8], strides = [1, 1]} : vector<16x8xf32> to vector<1x8xf32>
    %350 = tpu.concatenate %348, %349 in 0 : vector<1x8xf32>, vector<1x8xf32> -> vector<2x8xf32>
    %351 = vector.extract_strided_slice %311 {offsets = [0, 3], sizes = [2, 1], strides = [1, 1]} : vector<2x8xi32> to vector<2x1xi32>
    %352 = vector.broadcast %351 : vector<2x1xi32> to vector<2x8xi32>
    %353 = arith.cmpi eq, %323, %352 : vector<2x8xi32>
    %354 = arith.extui %353 : vector<2x8xi1> to vector<2x8xi32>
    %355 = arith.sitofp %354 : vector<2x8xi32> to vector<2x8xf32>
    %356 = vector.extract_strided_slice %309 {offsets = [4, 0], sizes = [1, 8], strides = [1, 1]} : vector<16x8xf32> to vector<1x8xf32>
    %357 = vector.extract_strided_slice %309 {offsets = [12, 0], sizes = [1, 8], strides = [1, 1]} : vector<16x8xf32> to vector<1x8xf32>
    %358 = tpu.concatenate %356, %357 in 0 : vector<1x8xf32>, vector<1x8xf32> -> vector<2x8xf32>
    %359 = vector.extract_strided_slice %311 {offsets = [0, 4], sizes = [2, 1], strides = [1, 1]} : vector<2x8xi32> to vector<2x1xi32>
    %360 = vector.broadcast %359 : vector<2x1xi32> to vector<2x8xi32>
    %361 = arith.cmpi eq, %323, %360 : vector<2x8xi32>
    %362 = arith.extui %361 : vector<2x8xi1> to vector<2x8xi32>
    %363 = arith.sitofp %362 : vector<2x8xi32> to vector<2x8xf32>
    %364 = vector.extract_strided_slice %309 {offsets = [5, 0], sizes = [1, 8], strides = [1, 1]} : vector<16x8xf32> to vector<1x8xf32>
    %365 = vector.extract_strided_slice %309 {offsets = [13, 0], sizes = [1, 8], strides = [1, 1]} : vector<16x8xf32> to vector<1x8xf32>
    %366 = tpu.concatenate %364, %365 in 0 : vector<1x8xf32>, vector<1x8xf32> -> vector<2x8xf32>
    %367 = vector.extract_strided_slice %311 {offsets = [0, 5], sizes = [2, 1], strides = [1, 1]} : vector<2x8xi32> to vector<2x1xi32>
    %368 = vector.broadcast %367 : vector<2x1xi32> to vector<2x8xi32>
    %369 = arith.cmpi eq, %323, %368 : vector<2x8xi32>
    %370 = arith.extui %369 : vector<2x8xi1> to vector<2x8xi32>
    %371 = arith.sitofp %370 : vector<2x8xi32> to vector<2x8xf32>
    %372 = vector.extract_strided_slice %309 {offsets = [6, 0], sizes = [1, 8], strides = [1, 1]} : vector<16x8xf32> to vector<1x8xf32>
    %373 = vector.extract_strided_slice %309 {offsets = [14, 0], sizes = [1, 8], strides = [1, 1]} : vector<16x8xf32> to vector<1x8xf32>
    %374 = tpu.concatenate %372, %373 in 0 : vector<1x8xf32>, vector<1x8xf32> -> vector<2x8xf32>
    %375 = vector.extract_strided_slice %311 {offsets = [0, 6], sizes = [2, 1], strides = [1, 1]} : vector<2x8xi32> to vector<2x1xi32>
    %376 = vector.broadcast %375 : vector<2x1xi32> to vector<2x8xi32>
    %377 = arith.cmpi eq, %323, %376 : vector<2x8xi32>
    %378 = arith.extui %377 : vector<2x8xi1> to vector<2x8xi32>
    %379 = arith.sitofp %378 : vector<2x8xi32> to vector<2x8xf32>
    %380 = vector.extract_strided_slice %309 {offsets = [7, 0], sizes = [1, 8], strides = [1, 1]} : vector<16x8xf32> to vector<1x8xf32>
    %381 = vector.extract_strided_slice %309 {offsets = [15, 0], sizes = [1, 8], strides = [1, 1]} : vector<16x8xf32> to vector<1x8xf32>
    %382 = tpu.concatenate %380, %381 in 0 : vector<1x8xf32>, vector<1x8xf32> -> vector<2x8xf32>
    %383 = vector.extract_strided_slice %311 {offsets = [0, 7], sizes = [2, 1], strides = [1, 1]} : vector<2x8xi32> to vector<2x1xi32>
    %384 = vector.broadcast %383 : vector<2x1xi32> to vector<2x8xi32>
    %385 = arith.cmpi eq, %323, %384 : vector<2x8xi32>
    %386 = arith.extui %385 : vector<2x8xi1> to vector<2x8xi32>
    %387 = arith.sitofp %386 : vector<2x8xi32> to vector<2x8xf32>
    %388 = vector.broadcast %312 : vector<1x8xf32> to vector<2x8xf32>
    %389 = arith.addf %388, %326 : vector<2x8xf32>
    %390 = arith.mulf %389, %331 : vector<2x8xf32>
    %cst_150 = arith.constant dense<0.000000e+00> : vector<2xf32>
    %391 = vector.multi_reduction <add>, %390, %cst_150 [1] : vector<2x8xf32> to vector<2xf32>
    %392 = vector.shape_cast %391 : vector<2xf32> to vector<2x1xf32>
    %c1_i32 = arith.constant 1 : i32
    %393 = vector.broadcast %c1_i32 : i32 to vector<2x1xi32>
    %394 = arith.cmpi sgt, %310, %393 : vector<2x1xi32>
    %395 = arith.mulf %334, %339 : vector<2x8xf32>
    %cst_151 = arith.constant dense<0.000000e+00> : vector<2xf32>
    %396 = vector.multi_reduction <add>, %395, %cst_151 [1] : vector<2x8xf32> to vector<2xf32>
    %397 = vector.shape_cast %396 : vector<2xf32> to vector<2x1xf32>
    %398 = vector.extract_strided_slice %331 {offsets = [0, 0], sizes = [2, 1], strides = [1, 1]} : vector<2x8xf32> to vector<2x1xf32>
    %399 = vector.broadcast %398 : vector<2x1xf32> to vector<2x8xf32>
    %400 = vector.broadcast %315 : vector<1x8xf32> to vector<2x8xf32>
    %401 = arith.mulf %399, %400 : vector<2x8xf32>
    %402 = vector.extract_strided_slice %331 {offsets = [0, 1], sizes = [2, 1], strides = [1, 1]} : vector<2x8xf32> to vector<2x1xf32>
    %403 = vector.broadcast %402 : vector<2x1xf32> to vector<2x8xf32>
    %404 = vector.broadcast %316 : vector<1x8xf32> to vector<2x8xf32>
    %405 = arith.mulf %403, %404 : vector<2x8xf32>
    %406 = arith.addf %401, %405 : vector<2x8xf32>
    %407 = vector.extract_strided_slice %331 {offsets = [0, 2], sizes = [2, 1], strides = [1, 1]} : vector<2x8xf32> to vector<2x1xf32>
    %408 = vector.broadcast %407 : vector<2x1xf32> to vector<2x8xf32>
    %409 = vector.broadcast %317 : vector<1x8xf32> to vector<2x8xf32>
    %410 = arith.mulf %408, %409 : vector<2x8xf32>
    %411 = arith.addf %406, %410 : vector<2x8xf32>
    %412 = vector.extract_strided_slice %331 {offsets = [0, 3], sizes = [2, 1], strides = [1, 1]} : vector<2x8xf32> to vector<2x1xf32>
    %413 = vector.broadcast %412 : vector<2x1xf32> to vector<2x8xf32>
    %414 = vector.broadcast %318 : vector<1x8xf32> to vector<2x8xf32>
    %415 = arith.mulf %413, %414 : vector<2x8xf32>
    %416 = arith.addf %411, %415 : vector<2x8xf32>
    %417 = vector.extract_strided_slice %331 {offsets = [0, 4], sizes = [2, 1], strides = [1, 1]} : vector<2x8xf32> to vector<2x1xf32>
    %418 = vector.broadcast %417 : vector<2x1xf32> to vector<2x8xf32>
    %419 = vector.broadcast %319 : vector<1x8xf32> to vector<2x8xf32>
    %420 = arith.mulf %418, %419 : vector<2x8xf32>
    %421 = arith.addf %416, %420 : vector<2x8xf32>
    %422 = vector.extract_strided_slice %331 {offsets = [0, 5], sizes = [2, 1], strides = [1, 1]} : vector<2x8xf32> to vector<2x1xf32>
    %423 = vector.broadcast %422 : vector<2x1xf32> to vector<2x8xf32>
    %424 = vector.broadcast %320 : vector<1x8xf32> to vector<2x8xf32>
    %425 = arith.mulf %423, %424 : vector<2x8xf32>
    %426 = arith.addf %421, %425 : vector<2x8xf32>
    %427 = vector.extract_strided_slice %331 {offsets = [0, 6], sizes = [2, 1], strides = [1, 1]} : vector<2x8xf32> to vector<2x1xf32>
    %428 = vector.broadcast %427 : vector<2x1xf32> to vector<2x8xf32>
    %429 = vector.broadcast %321 : vector<1x8xf32> to vector<2x8xf32>
    %430 = arith.mulf %428, %429 : vector<2x8xf32>
    %431 = arith.addf %426, %430 : vector<2x8xf32>
    %432 = vector.extract_strided_slice %331 {offsets = [0, 7], sizes = [2, 1], strides = [1, 1]} : vector<2x8xf32> to vector<2x1xf32>
    %433 = vector.broadcast %432 : vector<2x1xf32> to vector<2x8xf32>
    %434 = vector.broadcast %322 : vector<1x8xf32> to vector<2x8xf32>
    %435 = arith.mulf %433, %434 : vector<2x8xf32>
    %436 = arith.addf %431, %435 : vector<2x8xf32>
    %437 = arith.mulf %436, %339 : vector<2x8xf32>
    %cst_152 = arith.constant dense<0.000000e+00> : vector<2xf32>
    %438 = vector.multi_reduction <add>, %437, %cst_152 [1] : vector<2x8xf32> to vector<2xf32>
    %439 = vector.shape_cast %438 : vector<2xf32> to vector<2x1xf32>
    %440 = arith.addf %397, %439 : vector<2x1xf32>
    %cst_153 = arith.constant 0.000000e+00 : f32
    %441 = vector.broadcast %cst_153 : f32 to vector<2x1xf32>
    %442 = arith.select %394, %440, %441 : vector<2x1xi1>, vector<2x1xf32>
    %443 = arith.addf %392, %442 : vector<2x1xf32>
    %444 = vector.extract_strided_slice %389 {offsets = [0, 0], sizes = [2, 1], strides = [1, 1]} : vector<2x8xf32> to vector<2x1xf32>
    %445 = vector.broadcast %444 : vector<2x1xf32> to vector<2x8xf32>
    %446 = vector.broadcast %315 : vector<1x8xf32> to vector<2x8xf32>
    %447 = arith.addf %445, %446 : vector<2x8xf32>
    %448 = vector.extract_strided_slice %389 {offsets = [0, 1], sizes = [2, 1], strides = [1, 1]} : vector<2x8xf32> to vector<2x1xf32>
    %449 = vector.broadcast %448 : vector<2x1xf32> to vector<2x8xf32>
    %450 = vector.broadcast %316 : vector<1x8xf32> to vector<2x8xf32>
    %451 = arith.addf %449, %450 : vector<2x8xf32>
    %452 = vector.extract_strided_slice %389 {offsets = [0, 2], sizes = [2, 1], strides = [1, 1]} : vector<2x8xf32> to vector<2x1xf32>
    %453 = vector.broadcast %452 : vector<2x1xf32> to vector<2x8xf32>
    %454 = vector.broadcast %317 : vector<1x8xf32> to vector<2x8xf32>
    %455 = arith.addf %453, %454 : vector<2x8xf32>
    %456 = vector.extract_strided_slice %389 {offsets = [0, 3], sizes = [2, 1], strides = [1, 1]} : vector<2x8xf32> to vector<2x1xf32>
    %457 = vector.broadcast %456 : vector<2x1xf32> to vector<2x8xf32>
    %458 = vector.broadcast %318 : vector<1x8xf32> to vector<2x8xf32>
    %459 = arith.addf %457, %458 : vector<2x8xf32>
    %460 = vector.extract_strided_slice %389 {offsets = [0, 4], sizes = [2, 1], strides = [1, 1]} : vector<2x8xf32> to vector<2x1xf32>
    %461 = vector.broadcast %460 : vector<2x1xf32> to vector<2x8xf32>
    %462 = vector.broadcast %319 : vector<1x8xf32> to vector<2x8xf32>
    %463 = arith.addf %461, %462 : vector<2x8xf32>
    %464 = vector.extract_strided_slice %389 {offsets = [0, 5], sizes = [2, 1], strides = [1, 1]} : vector<2x8xf32> to vector<2x1xf32>
    %465 = vector.broadcast %464 : vector<2x1xf32> to vector<2x8xf32>
    %466 = vector.broadcast %320 : vector<1x8xf32> to vector<2x8xf32>
    %467 = arith.addf %465, %466 : vector<2x8xf32>
    %468 = vector.extract_strided_slice %389 {offsets = [0, 6], sizes = [2, 1], strides = [1, 1]} : vector<2x8xf32> to vector<2x1xf32>
    %469 = vector.broadcast %468 : vector<2x1xf32> to vector<2x8xf32>
    %470 = vector.broadcast %321 : vector<1x8xf32> to vector<2x8xf32>
    %471 = arith.addf %469, %470 : vector<2x8xf32>
    %472 = vector.extract_strided_slice %389 {offsets = [0, 7], sizes = [2, 1], strides = [1, 1]} : vector<2x8xf32> to vector<2x1xf32>
    %473 = vector.broadcast %472 : vector<2x1xf32> to vector<2x8xf32>
    %474 = vector.broadcast %322 : vector<1x8xf32> to vector<2x8xf32>
    %475 = arith.addf %473, %474 : vector<2x8xf32>
    %476 = arith.maximumf %447, %451 : vector<2x8xf32>
    %477 = arith.maximumf %476, %455 : vector<2x8xf32>
    %478 = arith.maximumf %477, %459 : vector<2x8xf32>
    %479 = arith.maximumf %478, %463 : vector<2x8xf32>
    %480 = arith.maximumf %479, %467 : vector<2x8xf32>
    %481 = arith.maximumf %480, %471 : vector<2x8xf32>
    %482 = arith.maximumf %481, %475 : vector<2x8xf32>
    %483 = arith.subf %447, %482 : vector<2x8xf32>
    %484 = math.exp %483 : vector<2x8xf32>
    %485 = arith.subf %451, %482 : vector<2x8xf32>
    %486 = math.exp %485 : vector<2x8xf32>
    %487 = arith.addf %484, %486 : vector<2x8xf32>
    %488 = arith.subf %455, %482 : vector<2x8xf32>
    %489 = math.exp %488 : vector<2x8xf32>
    %490 = arith.addf %487, %489 : vector<2x8xf32>
    %491 = arith.subf %459, %482 : vector<2x8xf32>
    %492 = math.exp %491 : vector<2x8xf32>
    %493 = arith.addf %490, %492 : vector<2x8xf32>
    %494 = arith.subf %463, %482 : vector<2x8xf32>
    %495 = math.exp %494 : vector<2x8xf32>
    %496 = arith.addf %493, %495 : vector<2x8xf32>
    %497 = arith.subf %467, %482 : vector<2x8xf32>
    %498 = math.exp %497 : vector<2x8xf32>
    %499 = arith.addf %496, %498 : vector<2x8xf32>
    %500 = arith.subf %471, %482 : vector<2x8xf32>
    %501 = math.exp %500 : vector<2x8xf32>
    %502 = arith.addf %499, %501 : vector<2x8xf32>
    %503 = arith.subf %475, %482 : vector<2x8xf32>
    %504 = math.exp %503 : vector<2x8xf32>
    %505 = arith.addf %502, %504 : vector<2x8xf32>
    %506 = math.log %505 : vector<2x8xf32>
    %507 = arith.addf %482, %506 : vector<2x8xf32>
    %508 = arith.addf %507, %334 : vector<2x8xf32>
    %509 = vector.shape_cast %394 : vector<2x1xi1> to vector<2x1xi1>
    %510 = vector.broadcast %509 : vector<2x1xi1> to vector<2x8xi1>
    %511 = arith.select %510, %508, %389 : vector<2x8xi1>, vector<2x8xf32>
    %512 = vector.extract_strided_slice %389 {offsets = [0, 0], sizes = [2, 1], strides = [1, 1]} : vector<2x8xf32> to vector<2x1xf32>
    %513 = vector.broadcast %512 : vector<2x1xf32> to vector<2x8xf32>
    %514 = vector.broadcast %315 : vector<1x8xf32> to vector<2x8xf32>
    %515 = arith.addf %513, %514 : vector<2x8xf32>
    %516 = vector.extract_strided_slice %389 {offsets = [0, 1], sizes = [2, 1], strides = [1, 1]} : vector<2x8xf32> to vector<2x1xf32>
    %517 = vector.broadcast %516 : vector<2x1xf32> to vector<2x8xf32>
    %518 = vector.broadcast %316 : vector<1x8xf32> to vector<2x8xf32>
    %519 = arith.addf %517, %518 : vector<2x8xf32>
    %520 = vector.extract_strided_slice %389 {offsets = [0, 2], sizes = [2, 1], strides = [1, 1]} : vector<2x8xf32> to vector<2x1xf32>
    %521 = vector.broadcast %520 : vector<2x1xf32> to vector<2x8xf32>
    %522 = vector.broadcast %317 : vector<1x8xf32> to vector<2x8xf32>
    %523 = arith.addf %521, %522 : vector<2x8xf32>
    %524 = vector.extract_strided_slice %389 {offsets = [0, 3], sizes = [2, 1], strides = [1, 1]} : vector<2x8xf32> to vector<2x1xf32>
    %525 = vector.broadcast %524 : vector<2x1xf32> to vector<2x8xf32>
    %526 = vector.broadcast %318 : vector<1x8xf32> to vector<2x8xf32>
    %527 = arith.addf %525, %526 : vector<2x8xf32>
    %528 = vector.extract_strided_slice %389 {offsets = [0, 4], sizes = [2, 1], strides = [1, 1]} : vector<2x8xf32> to vector<2x1xf32>
    %529 = vector.broadcast %528 : vector<2x1xf32> to vector<2x8xf32>
    %530 = vector.broadcast %319 : vector<1x8xf32> to vector<2x8xf32>
    %531 = arith.addf %529, %530 : vector<2x8xf32>
    %532 = vector.extract_strided_slice %389 {offsets = [0, 5], sizes = [2, 1], strides = [1, 1]} : vector<2x8xf32> to vector<2x1xf32>
    %533 = vector.broadcast %532 : vector<2x1xf32> to vector<2x8xf32>
    %534 = vector.broadcast %320 : vector<1x8xf32> to vector<2x8xf32>
    %535 = arith.addf %533, %534 : vector<2x8xf32>
    %536 = vector.extract_strided_slice %389 {offsets = [0, 6], sizes = [2, 1], strides = [1, 1]} : vector<2x8xf32> to vector<2x1xf32>
    %537 = vector.broadcast %536 : vector<2x1xf32> to vector<2x8xf32>
    %538 = vector.broadcast %321 : vector<1x8xf32> to vector<2x8xf32>
    %539 = arith.addf %537, %538 : vector<2x8xf32>
    %540 = vector.extract_strided_slice %389 {offsets = [0, 7], sizes = [2, 1], strides = [1, 1]} : vector<2x8xf32> to vector<2x1xf32>
    %541 = vector.broadcast %540 : vector<2x1xf32> to vector<2x8xf32>
    %542 = vector.broadcast %322 : vector<1x8xf32> to vector<2x8xf32>
    %543 = arith.addf %541, %542 : vector<2x8xf32>
    %c0_i32 = arith.constant 0 : i32
    %544 = vector.broadcast %c0_i32 : i32 to vector<2x8xi32>
    %545 = arith.cmpf ogt, %519, %515 : vector<2x8xf32>
    %c1_i32_154 = arith.constant 1 : i32
    %546 = vector.broadcast %c1_i32_154 : i32 to vector<2x8xi32>
    %547 = arith.select %545, %546, %544 : vector<2x8xi1>, vector<2x8xi32>
    %548 = arith.select %545, %519, %515 : vector<2x8xi1>, vector<2x8xf32>
    %549 = arith.cmpf ogt, %523, %548 : vector<2x8xf32>
    %c2_i32 = arith.constant 2 : i32
    %550 = vector.broadcast %c2_i32 : i32 to vector<2x8xi32>
    %551 = arith.select %549, %550, %547 : vector<2x8xi1>, vector<2x8xi32>
    %552 = arith.select %549, %523, %548 : vector<2x8xi1>, vector<2x8xf32>
    %553 = arith.cmpf ogt, %527, %552 : vector<2x8xf32>
    %c3_i32 = arith.constant 3 : i32
    %554 = vector.broadcast %c3_i32 : i32 to vector<2x8xi32>
    %555 = arith.select %553, %554, %551 : vector<2x8xi1>, vector<2x8xi32>
    %556 = arith.select %553, %527, %552 : vector<2x8xi1>, vector<2x8xf32>
    %557 = arith.cmpf ogt, %531, %556 : vector<2x8xf32>
    %c4_i32 = arith.constant 4 : i32
    %558 = vector.broadcast %c4_i32 : i32 to vector<2x8xi32>
    %559 = arith.select %557, %558, %555 : vector<2x8xi1>, vector<2x8xi32>
    %560 = arith.select %557, %531, %556 : vector<2x8xi1>, vector<2x8xf32>
    %561 = arith.cmpf ogt, %535, %560 : vector<2x8xf32>
    %c5_i32 = arith.constant 5 : i32
    %562 = vector.broadcast %c5_i32 : i32 to vector<2x8xi32>
    %563 = arith.select %561, %562, %559 : vector<2x8xi1>, vector<2x8xi32>
    %564 = arith.select %561, %535, %560 : vector<2x8xi1>, vector<2x8xf32>
    %565 = arith.cmpf ogt, %539, %564 : vector<2x8xf32>
    %c6_i32 = arith.constant 6 : i32
    %566 = vector.broadcast %c6_i32 : i32 to vector<2x8xi32>
    %567 = arith.select %565, %566, %563 : vector<2x8xi1>, vector<2x8xi32>
    %568 = arith.select %565, %539, %564 : vector<2x8xi1>, vector<2x8xf32>
    %569 = arith.cmpf ogt, %543, %568 : vector<2x8xf32>
    %c7_i32 = arith.constant 7 : i32
    %570 = vector.broadcast %c7_i32 : i32 to vector<2x8xi32>
    %571 = arith.select %569, %570, %567 : vector<2x8xi1>, vector<2x8xi32>
    %572 = arith.select %569, %543, %568 : vector<2x8xi1>, vector<2x8xf32>
    %573 = arith.addf %572, %334 : vector<2x8xf32>
    %574 = vector.shape_cast %394 : vector<2x1xi1> to vector<2x1xi1>
    %575 = vector.broadcast %574 : vector<2x1xi1> to vector<2x8xi1>
    %576 = arith.select %575, %573, %389 : vector<2x8xi1>, vector<2x8xf32>
    %577 = vector.shape_cast %394 : vector<2x1xi1> to vector<2x1xi1>
    %578 = vector.broadcast %577 : vector<2x1xi1> to vector<2x8xi1>
    %579 = arith.select %578, %339, %331 : vector<2x8xi1>, vector<2x8xf32>
    %c2_i32_155 = arith.constant 2 : i32
    %580 = vector.broadcast %c2_i32_155 : i32 to vector<2x1xi32>
    %581 = arith.cmpi sgt, %310, %580 : vector<2x1xi32>
    %582 = arith.mulf %342, %347 : vector<2x8xf32>
    %cst_156 = arith.constant dense<0.000000e+00> : vector<2xf32>
    %583 = vector.multi_reduction <add>, %582, %cst_156 [1] : vector<2x8xf32> to vector<2xf32>
    %584 = vector.shape_cast %583 : vector<2xf32> to vector<2x1xf32>
    %585 = vector.extract_strided_slice %579 {offsets = [0, 0], sizes = [2, 1], strides = [1, 1]} : vector<2x8xf32> to vector<2x1xf32>
    %586 = vector.broadcast %585 : vector<2x1xf32> to vector<2x8xf32>
    %587 = vector.broadcast %315 : vector<1x8xf32> to vector<2x8xf32>
    %588 = arith.mulf %586, %587 : vector<2x8xf32>
    %589 = vector.extract_strided_slice %579 {offsets = [0, 1], sizes = [2, 1], strides = [1, 1]} : vector<2x8xf32> to vector<2x1xf32>
    %590 = vector.broadcast %589 : vector<2x1xf32> to vector<2x8xf32>
    %591 = vector.broadcast %316 : vector<1x8xf32> to vector<2x8xf32>
    %592 = arith.mulf %590, %591 : vector<2x8xf32>
    %593 = arith.addf %588, %592 : vector<2x8xf32>
    %594 = vector.extract_strided_slice %579 {offsets = [0, 2], sizes = [2, 1], strides = [1, 1]} : vector<2x8xf32> to vector<2x1xf32>
    %595 = vector.broadcast %594 : vector<2x1xf32> to vector<2x8xf32>
    %596 = vector.broadcast %317 : vector<1x8xf32> to vector<2x8xf32>
    %597 = arith.mulf %595, %596 : vector<2x8xf32>
    %598 = arith.addf %593, %597 : vector<2x8xf32>
    %599 = vector.extract_strided_slice %579 {offsets = [0, 3], sizes = [2, 1], strides = [1, 1]} : vector<2x8xf32> to vector<2x1xf32>
    %600 = vector.broadcast %599 : vector<2x1xf32> to vector<2x8xf32>
    %601 = vector.broadcast %318 : vector<1x8xf32> to vector<2x8xf32>
    %602 = arith.mulf %600, %601 : vector<2x8xf32>
    %603 = arith.addf %598, %602 : vector<2x8xf32>
    %604 = vector.extract_strided_slice %579 {offsets = [0, 4], sizes = [2, 1], strides = [1, 1]} : vector<2x8xf32> to vector<2x1xf32>
    %605 = vector.broadcast %604 : vector<2x1xf32> to vector<2x8xf32>
    %606 = vector.broadcast %319 : vector<1x8xf32> to vector<2x8xf32>
    %607 = arith.mulf %605, %606 : vector<2x8xf32>
    %608 = arith.addf %603, %607 : vector<2x8xf32>
    %609 = vector.extract_strided_slice %579 {offsets = [0, 5], sizes = [2, 1], strides = [1, 1]} : vector<2x8xf32> to vector<2x1xf32>
    %610 = vector.broadcast %609 : vector<2x1xf32> to vector<2x8xf32>
    %611 = vector.broadcast %320 : vector<1x8xf32> to vector<2x8xf32>
    %612 = arith.mulf %610, %611 : vector<2x8xf32>
    %613 = arith.addf %608, %612 : vector<2x8xf32>
    %614 = vector.extract_strided_slice %579 {offsets = [0, 6], sizes = [2, 1], strides = [1, 1]} : vector<2x8xf32> to vector<2x1xf32>
    %615 = vector.broadcast %614 : vector<2x1xf32> to vector<2x8xf32>
    %616 = vector.broadcast %321 : vector<1x8xf32> to vector<2x8xf32>
    %617 = arith.mulf %615, %616 : vector<2x8xf32>
    %618 = arith.addf %613, %617 : vector<2x8xf32>
    %619 = vector.extract_strided_slice %579 {offsets = [0, 7], sizes = [2, 1], strides = [1, 1]} : vector<2x8xf32> to vector<2x1xf32>
    %620 = vector.broadcast %619 : vector<2x1xf32> to vector<2x8xf32>
    %621 = vector.broadcast %322 : vector<1x8xf32> to vector<2x8xf32>
    %622 = arith.mulf %620, %621 : vector<2x8xf32>
    %623 = arith.addf %618, %622 : vector<2x8xf32>
    %624 = arith.mulf %623, %347 : vector<2x8xf32>
    %cst_157 = arith.constant dense<0.000000e+00> : vector<2xf32>
    %625 = vector.multi_reduction <add>, %624, %cst_157 [1] : vector<2x8xf32> to vector<2xf32>
    %626 = vector.shape_cast %625 : vector<2xf32> to vector<2x1xf32>
    %627 = arith.addf %584, %626 : vector<2x1xf32>
    %cst_158 = arith.constant 0.000000e+00 : f32
    %628 = vector.broadcast %cst_158 : f32 to vector<2x1xf32>
    %629 = arith.select %581, %627, %628 : vector<2x1xi1>, vector<2x1xf32>
    %630 = arith.addf %443, %629 : vector<2x1xf32>
    %631 = vector.extract_strided_slice %511 {offsets = [0, 0], sizes = [2, 1], strides = [1, 1]} : vector<2x8xf32> to vector<2x1xf32>
    %632 = vector.broadcast %631 : vector<2x1xf32> to vector<2x8xf32>
    %633 = vector.broadcast %315 : vector<1x8xf32> to vector<2x8xf32>
    %634 = arith.addf %632, %633 : vector<2x8xf32>
    %635 = vector.extract_strided_slice %511 {offsets = [0, 1], sizes = [2, 1], strides = [1, 1]} : vector<2x8xf32> to vector<2x1xf32>
    %636 = vector.broadcast %635 : vector<2x1xf32> to vector<2x8xf32>
    %637 = vector.broadcast %316 : vector<1x8xf32> to vector<2x8xf32>
    %638 = arith.addf %636, %637 : vector<2x8xf32>
    %639 = vector.extract_strided_slice %511 {offsets = [0, 2], sizes = [2, 1], strides = [1, 1]} : vector<2x8xf32> to vector<2x1xf32>
    %640 = vector.broadcast %639 : vector<2x1xf32> to vector<2x8xf32>
    %641 = vector.broadcast %317 : vector<1x8xf32> to vector<2x8xf32>
    %642 = arith.addf %640, %641 : vector<2x8xf32>
    %643 = vector.extract_strided_slice %511 {offsets = [0, 3], sizes = [2, 1], strides = [1, 1]} : vector<2x8xf32> to vector<2x1xf32>
    %644 = vector.broadcast %643 : vector<2x1xf32> to vector<2x8xf32>
    %645 = vector.broadcast %318 : vector<1x8xf32> to vector<2x8xf32>
    %646 = arith.addf %644, %645 : vector<2x8xf32>
    %647 = vector.extract_strided_slice %511 {offsets = [0, 4], sizes = [2, 1], strides = [1, 1]} : vector<2x8xf32> to vector<2x1xf32>
    %648 = vector.broadcast %647 : vector<2x1xf32> to vector<2x8xf32>
    %649 = vector.broadcast %319 : vector<1x8xf32> to vector<2x8xf32>
    %650 = arith.addf %648, %649 : vector<2x8xf32>
    %651 = vector.extract_strided_slice %511 {offsets = [0, 5], sizes = [2, 1], strides = [1, 1]} : vector<2x8xf32> to vector<2x1xf32>
    %652 = vector.broadcast %651 : vector<2x1xf32> to vector<2x8xf32>
    %653 = vector.broadcast %320 : vector<1x8xf32> to vector<2x8xf32>
    %654 = arith.addf %652, %653 : vector<2x8xf32>
    %655 = vector.extract_strided_slice %511 {offsets = [0, 6], sizes = [2, 1], strides = [1, 1]} : vector<2x8xf32> to vector<2x1xf32>
    %656 = vector.broadcast %655 : vector<2x1xf32> to vector<2x8xf32>
    %657 = vector.broadcast %321 : vector<1x8xf32> to vector<2x8xf32>
    %658 = arith.addf %656, %657 : vector<2x8xf32>
    %659 = vector.extract_strided_slice %511 {offsets = [0, 7], sizes = [2, 1], strides = [1, 1]} : vector<2x8xf32> to vector<2x1xf32>
    %660 = vector.broadcast %659 : vector<2x1xf32> to vector<2x8xf32>
    %661 = vector.broadcast %322 : vector<1x8xf32> to vector<2x8xf32>
    %662 = arith.addf %660, %661 : vector<2x8xf32>
    %663 = arith.maximumf %634, %638 : vector<2x8xf32>
    %664 = arith.maximumf %663, %642 : vector<2x8xf32>
    %665 = arith.maximumf %664, %646 : vector<2x8xf32>
    %666 = arith.maximumf %665, %650 : vector<2x8xf32>
    %667 = arith.maximumf %666, %654 : vector<2x8xf32>
    %668 = arith.maximumf %667, %658 : vector<2x8xf32>
    %669 = arith.maximumf %668, %662 : vector<2x8xf32>
    %670 = arith.subf %634, %669 : vector<2x8xf32>
    %671 = math.exp %670 : vector<2x8xf32>
    %672 = arith.subf %638, %669 : vector<2x8xf32>
    %673 = math.exp %672 : vector<2x8xf32>
    %674 = arith.addf %671, %673 : vector<2x8xf32>
    %675 = arith.subf %642, %669 : vector<2x8xf32>
    %676 = math.exp %675 : vector<2x8xf32>
    %677 = arith.addf %674, %676 : vector<2x8xf32>
    %678 = arith.subf %646, %669 : vector<2x8xf32>
    %679 = math.exp %678 : vector<2x8xf32>
    %680 = arith.addf %677, %679 : vector<2x8xf32>
    %681 = arith.subf %650, %669 : vector<2x8xf32>
    %682 = math.exp %681 : vector<2x8xf32>
    %683 = arith.addf %680, %682 : vector<2x8xf32>
    %684 = arith.subf %654, %669 : vector<2x8xf32>
    %685 = math.exp %684 : vector<2x8xf32>
    %686 = arith.addf %683, %685 : vector<2x8xf32>
    %687 = arith.subf %658, %669 : vector<2x8xf32>
    %688 = math.exp %687 : vector<2x8xf32>
    %689 = arith.addf %686, %688 : vector<2x8xf32>
    %690 = arith.subf %662, %669 : vector<2x8xf32>
    %691 = math.exp %690 : vector<2x8xf32>
    %692 = arith.addf %689, %691 : vector<2x8xf32>
    %693 = math.log %692 : vector<2x8xf32>
    %694 = arith.addf %669, %693 : vector<2x8xf32>
    %695 = arith.addf %694, %342 : vector<2x8xf32>
    %696 = vector.shape_cast %581 : vector<2x1xi1> to vector<2x1xi1>
    %697 = vector.broadcast %696 : vector<2x1xi1> to vector<2x8xi1>
    %698 = arith.select %697, %695, %511 : vector<2x8xi1>, vector<2x8xf32>
    %699 = vector.extract_strided_slice %576 {offsets = [0, 0], sizes = [2, 1], strides = [1, 1]} : vector<2x8xf32> to vector<2x1xf32>
    %700 = vector.broadcast %699 : vector<2x1xf32> to vector<2x8xf32>
    %701 = vector.broadcast %315 : vector<1x8xf32> to vector<2x8xf32>
    %702 = arith.addf %700, %701 : vector<2x8xf32>
    %703 = vector.extract_strided_slice %576 {offsets = [0, 1], sizes = [2, 1], strides = [1, 1]} : vector<2x8xf32> to vector<2x1xf32>
    %704 = vector.broadcast %703 : vector<2x1xf32> to vector<2x8xf32>
    %705 = vector.broadcast %316 : vector<1x8xf32> to vector<2x8xf32>
    %706 = arith.addf %704, %705 : vector<2x8xf32>
    %707 = vector.extract_strided_slice %576 {offsets = [0, 2], sizes = [2, 1], strides = [1, 1]} : vector<2x8xf32> to vector<2x1xf32>
    %708 = vector.broadcast %707 : vector<2x1xf32> to vector<2x8xf32>
    %709 = vector.broadcast %317 : vector<1x8xf32> to vector<2x8xf32>
    %710 = arith.addf %708, %709 : vector<2x8xf32>
    %711 = vector.extract_strided_slice %576 {offsets = [0, 3], sizes = [2, 1], strides = [1, 1]} : vector<2x8xf32> to vector<2x1xf32>
    %712 = vector.broadcast %711 : vector<2x1xf32> to vector<2x8xf32>
    %713 = vector.broadcast %318 : vector<1x8xf32> to vector<2x8xf32>
    %714 = arith.addf %712, %713 : vector<2x8xf32>
    %715 = vector.extract_strided_slice %576 {offsets = [0, 4], sizes = [2, 1], strides = [1, 1]} : vector<2x8xf32> to vector<2x1xf32>
    %716 = vector.broadcast %715 : vector<2x1xf32> to vector<2x8xf32>
    %717 = vector.broadcast %319 : vector<1x8xf32> to vector<2x8xf32>
    %718 = arith.addf %716, %717 : vector<2x8xf32>
    %719 = vector.extract_strided_slice %576 {offsets = [0, 5], sizes = [2, 1], strides = [1, 1]} : vector<2x8xf32> to vector<2x1xf32>
    %720 = vector.broadcast %719 : vector<2x1xf32> to vector<2x8xf32>
    %721 = vector.broadcast %320 : vector<1x8xf32> to vector<2x8xf32>
    %722 = arith.addf %720, %721 : vector<2x8xf32>
    %723 = vector.extract_strided_slice %576 {offsets = [0, 6], sizes = [2, 1], strides = [1, 1]} : vector<2x8xf32> to vector<2x1xf32>
    %724 = vector.broadcast %723 : vector<2x1xf32> to vector<2x8xf32>
    %725 = vector.broadcast %321 : vector<1x8xf32> to vector<2x8xf32>
    %726 = arith.addf %724, %725 : vector<2x8xf32>
    %727 = vector.extract_strided_slice %576 {offsets = [0, 7], sizes = [2, 1], strides = [1, 1]} : vector<2x8xf32> to vector<2x1xf32>
    %728 = vector.broadcast %727 : vector<2x1xf32> to vector<2x8xf32>
    %729 = vector.broadcast %322 : vector<1x8xf32> to vector<2x8xf32>
    %730 = arith.addf %728, %729 : vector<2x8xf32>
    %c0_i32_159 = arith.constant 0 : i32
    %731 = vector.broadcast %c0_i32_159 : i32 to vector<2x8xi32>
    %732 = arith.cmpf ogt, %706, %702 : vector<2x8xf32>
    %c1_i32_160 = arith.constant 1 : i32
    %733 = vector.broadcast %c1_i32_160 : i32 to vector<2x8xi32>
    %734 = arith.select %732, %733, %731 : vector<2x8xi1>, vector<2x8xi32>
    %735 = arith.select %732, %706, %702 : vector<2x8xi1>, vector<2x8xf32>
    %736 = arith.cmpf ogt, %710, %735 : vector<2x8xf32>
    %c2_i32_161 = arith.constant 2 : i32
    %737 = vector.broadcast %c2_i32_161 : i32 to vector<2x8xi32>
    %738 = arith.select %736, %737, %734 : vector<2x8xi1>, vector<2x8xi32>
    %739 = arith.select %736, %710, %735 : vector<2x8xi1>, vector<2x8xf32>
    %740 = arith.cmpf ogt, %714, %739 : vector<2x8xf32>
    %c3_i32_162 = arith.constant 3 : i32
    %741 = vector.broadcast %c3_i32_162 : i32 to vector<2x8xi32>
    %742 = arith.select %740, %741, %738 : vector<2x8xi1>, vector<2x8xi32>
    %743 = arith.select %740, %714, %739 : vector<2x8xi1>, vector<2x8xf32>
    %744 = arith.cmpf ogt, %718, %743 : vector<2x8xf32>
    %c4_i32_163 = arith.constant 4 : i32
    %745 = vector.broadcast %c4_i32_163 : i32 to vector<2x8xi32>
    %746 = arith.select %744, %745, %742 : vector<2x8xi1>, vector<2x8xi32>
    %747 = arith.select %744, %718, %743 : vector<2x8xi1>, vector<2x8xf32>
    %748 = arith.cmpf ogt, %722, %747 : vector<2x8xf32>
    %c5_i32_164 = arith.constant 5 : i32
    %749 = vector.broadcast %c5_i32_164 : i32 to vector<2x8xi32>
    %750 = arith.select %748, %749, %746 : vector<2x8xi1>, vector<2x8xi32>
    %751 = arith.select %748, %722, %747 : vector<2x8xi1>, vector<2x8xf32>
    %752 = arith.cmpf ogt, %726, %751 : vector<2x8xf32>
    %c6_i32_165 = arith.constant 6 : i32
    %753 = vector.broadcast %c6_i32_165 : i32 to vector<2x8xi32>
    %754 = arith.select %752, %753, %750 : vector<2x8xi1>, vector<2x8xi32>
    %755 = arith.select %752, %726, %751 : vector<2x8xi1>, vector<2x8xf32>
    %756 = arith.cmpf ogt, %730, %755 : vector<2x8xf32>
    %c7_i32_166 = arith.constant 7 : i32
    %757 = vector.broadcast %c7_i32_166 : i32 to vector<2x8xi32>
    %758 = arith.select %756, %757, %754 : vector<2x8xi1>, vector<2x8xi32>
    %759 = arith.select %756, %730, %755 : vector<2x8xi1>, vector<2x8xf32>
    %760 = arith.addf %759, %342 : vector<2x8xf32>
    %761 = vector.shape_cast %581 : vector<2x1xi1> to vector<2x1xi1>
    %762 = vector.broadcast %761 : vector<2x1xi1> to vector<2x8xi1>
    %763 = arith.select %762, %760, %576 : vector<2x8xi1>, vector<2x8xf32>
    %764 = vector.shape_cast %581 : vector<2x1xi1> to vector<2x1xi1>
    %765 = vector.broadcast %764 : vector<2x1xi1> to vector<2x8xi1>
    %766 = arith.select %765, %347, %579 : vector<2x8xi1>, vector<2x8xf32>
    %c3_i32_167 = arith.constant 3 : i32
    %767 = vector.broadcast %c3_i32_167 : i32 to vector<2x1xi32>
    %768 = arith.cmpi sgt, %310, %767 : vector<2x1xi32>
    %769 = arith.mulf %350, %355 : vector<2x8xf32>
    %cst_168 = arith.constant dense<0.000000e+00> : vector<2xf32>
    %770 = vector.multi_reduction <add>, %769, %cst_168 [1] : vector<2x8xf32> to vector<2xf32>
    %771 = vector.shape_cast %770 : vector<2xf32> to vector<2x1xf32>
    %772 = vector.extract_strided_slice %766 {offsets = [0, 0], sizes = [2, 1], strides = [1, 1]} : vector<2x8xf32> to vector<2x1xf32>
    %773 = vector.broadcast %772 : vector<2x1xf32> to vector<2x8xf32>
    %774 = vector.broadcast %315 : vector<1x8xf32> to vector<2x8xf32>
    %775 = arith.mulf %773, %774 : vector<2x8xf32>
    %776 = vector.extract_strided_slice %766 {offsets = [0, 1], sizes = [2, 1], strides = [1, 1]} : vector<2x8xf32> to vector<2x1xf32>
    %777 = vector.broadcast %776 : vector<2x1xf32> to vector<2x8xf32>
    %778 = vector.broadcast %316 : vector<1x8xf32> to vector<2x8xf32>
    %779 = arith.mulf %777, %778 : vector<2x8xf32>
    %780 = arith.addf %775, %779 : vector<2x8xf32>
    %781 = vector.extract_strided_slice %766 {offsets = [0, 2], sizes = [2, 1], strides = [1, 1]} : vector<2x8xf32> to vector<2x1xf32>
    %782 = vector.broadcast %781 : vector<2x1xf32> to vector<2x8xf32>
    %783 = vector.broadcast %317 : vector<1x8xf32> to vector<2x8xf32>
    %784 = arith.mulf %782, %783 : vector<2x8xf32>
    %785 = arith.addf %780, %784 : vector<2x8xf32>
    %786 = vector.extract_strided_slice %766 {offsets = [0, 3], sizes = [2, 1], strides = [1, 1]} : vector<2x8xf32> to vector<2x1xf32>
    %787 = vector.broadcast %786 : vector<2x1xf32> to vector<2x8xf32>
    %788 = vector.broadcast %318 : vector<1x8xf32> to vector<2x8xf32>
    %789 = arith.mulf %787, %788 : vector<2x8xf32>
    %790 = arith.addf %785, %789 : vector<2x8xf32>
    %791 = vector.extract_strided_slice %766 {offsets = [0, 4], sizes = [2, 1], strides = [1, 1]} : vector<2x8xf32> to vector<2x1xf32>
    %792 = vector.broadcast %791 : vector<2x1xf32> to vector<2x8xf32>
    %793 = vector.broadcast %319 : vector<1x8xf32> to vector<2x8xf32>
    %794 = arith.mulf %792, %793 : vector<2x8xf32>
    %795 = arith.addf %790, %794 : vector<2x8xf32>
    %796 = vector.extract_strided_slice %766 {offsets = [0, 5], sizes = [2, 1], strides = [1, 1]} : vector<2x8xf32> to vector<2x1xf32>
    %797 = vector.broadcast %796 : vector<2x1xf32> to vector<2x8xf32>
    %798 = vector.broadcast %320 : vector<1x8xf32> to vector<2x8xf32>
    %799 = arith.mulf %797, %798 : vector<2x8xf32>
    %800 = arith.addf %795, %799 : vector<2x8xf32>
    %801 = vector.extract_strided_slice %766 {offsets = [0, 6], sizes = [2, 1], strides = [1, 1]} : vector<2x8xf32> to vector<2x1xf32>
    %802 = vector.broadcast %801 : vector<2x1xf32> to vector<2x8xf32>
    %803 = vector.broadcast %321 : vector<1x8xf32> to vector<2x8xf32>
    %804 = arith.mulf %802, %803 : vector<2x8xf32>
    %805 = arith.addf %800, %804 : vector<2x8xf32>
    %806 = vector.extract_strided_slice %766 {offsets = [0, 7], sizes = [2, 1], strides = [1, 1]} : vector<2x8xf32> to vector<2x1xf32>
    %807 = vector.broadcast %806 : vector<2x1xf32> to vector<2x8xf32>
    %808 = vector.broadcast %322 : vector<1x8xf32> to vector<2x8xf32>
    %809 = arith.mulf %807, %808 : vector<2x8xf32>
    %810 = arith.addf %805, %809 : vector<2x8xf32>
    %811 = arith.mulf %810, %355 : vector<2x8xf32>
    %cst_169 = arith.constant dense<0.000000e+00> : vector<2xf32>
    %812 = vector.multi_reduction <add>, %811, %cst_169 [1] : vector<2x8xf32> to vector<2xf32>
    %813 = vector.shape_cast %812 : vector<2xf32> to vector<2x1xf32>
    %814 = arith.addf %771, %813 : vector<2x1xf32>
    %cst_170 = arith.constant 0.000000e+00 : f32
    %815 = vector.broadcast %cst_170 : f32 to vector<2x1xf32>
    %816 = arith.select %768, %814, %815 : vector<2x1xi1>, vector<2x1xf32>
    %817 = arith.addf %630, %816 : vector<2x1xf32>
    %818 = vector.extract_strided_slice %698 {offsets = [0, 0], sizes = [2, 1], strides = [1, 1]} : vector<2x8xf32> to vector<2x1xf32>
    %819 = vector.broadcast %818 : vector<2x1xf32> to vector<2x8xf32>
    %820 = vector.broadcast %315 : vector<1x8xf32> to vector<2x8xf32>
    %821 = arith.addf %819, %820 : vector<2x8xf32>
    %822 = vector.extract_strided_slice %698 {offsets = [0, 1], sizes = [2, 1], strides = [1, 1]} : vector<2x8xf32> to vector<2x1xf32>
    %823 = vector.broadcast %822 : vector<2x1xf32> to vector<2x8xf32>
    %824 = vector.broadcast %316 : vector<1x8xf32> to vector<2x8xf32>
    %825 = arith.addf %823, %824 : vector<2x8xf32>
    %826 = vector.extract_strided_slice %698 {offsets = [0, 2], sizes = [2, 1], strides = [1, 1]} : vector<2x8xf32> to vector<2x1xf32>
    %827 = vector.broadcast %826 : vector<2x1xf32> to vector<2x8xf32>
    %828 = vector.broadcast %317 : vector<1x8xf32> to vector<2x8xf32>
    %829 = arith.addf %827, %828 : vector<2x8xf32>
    %830 = vector.extract_strided_slice %698 {offsets = [0, 3], sizes = [2, 1], strides = [1, 1]} : vector<2x8xf32> to vector<2x1xf32>
    %831 = vector.broadcast %830 : vector<2x1xf32> to vector<2x8xf32>
    %832 = vector.broadcast %318 : vector<1x8xf32> to vector<2x8xf32>
    %833 = arith.addf %831, %832 : vector<2x8xf32>
    %834 = vector.extract_strided_slice %698 {offsets = [0, 4], sizes = [2, 1], strides = [1, 1]} : vector<2x8xf32> to vector<2x1xf32>
    %835 = vector.broadcast %834 : vector<2x1xf32> to vector<2x8xf32>
    %836 = vector.broadcast %319 : vector<1x8xf32> to vector<2x8xf32>
    %837 = arith.addf %835, %836 : vector<2x8xf32>
    %838 = vector.extract_strided_slice %698 {offsets = [0, 5], sizes = [2, 1], strides = [1, 1]} : vector<2x8xf32> to vector<2x1xf32>
    %839 = vector.broadcast %838 : vector<2x1xf32> to vector<2x8xf32>
    %840 = vector.broadcast %320 : vector<1x8xf32> to vector<2x8xf32>
    %841 = arith.addf %839, %840 : vector<2x8xf32>
    %842 = vector.extract_strided_slice %698 {offsets = [0, 6], sizes = [2, 1], strides = [1, 1]} : vector<2x8xf32> to vector<2x1xf32>
    %843 = vector.broadcast %842 : vector<2x1xf32> to vector<2x8xf32>
    %844 = vector.broadcast %321 : vector<1x8xf32> to vector<2x8xf32>
    %845 = arith.addf %843, %844 : vector<2x8xf32>
    %846 = vector.extract_strided_slice %698 {offsets = [0, 7], sizes = [2, 1], strides = [1, 1]} : vector<2x8xf32> to vector<2x1xf32>
    %847 = vector.broadcast %846 : vector<2x1xf32> to vector<2x8xf32>
    %848 = vector.broadcast %322 : vector<1x8xf32> to vector<2x8xf32>
    %849 = arith.addf %847, %848 : vector<2x8xf32>
    %850 = arith.maximumf %821, %825 : vector<2x8xf32>
    %851 = arith.maximumf %850, %829 : vector<2x8xf32>
    %852 = arith.maximumf %851, %833 : vector<2x8xf32>
    %853 = arith.maximumf %852, %837 : vector<2x8xf32>
    %854 = arith.maximumf %853, %841 : vector<2x8xf32>
    %855 = arith.maximumf %854, %845 : vector<2x8xf32>
    %856 = arith.maximumf %855, %849 : vector<2x8xf32>
    %857 = arith.subf %821, %856 : vector<2x8xf32>
    %858 = math.exp %857 : vector<2x8xf32>
    %859 = arith.subf %825, %856 : vector<2x8xf32>
    %860 = math.exp %859 : vector<2x8xf32>
    %861 = arith.addf %858, %860 : vector<2x8xf32>
    %862 = arith.subf %829, %856 : vector<2x8xf32>
    %863 = math.exp %862 : vector<2x8xf32>
    %864 = arith.addf %861, %863 : vector<2x8xf32>
    %865 = arith.subf %833, %856 : vector<2x8xf32>
    %866 = math.exp %865 : vector<2x8xf32>
    %867 = arith.addf %864, %866 : vector<2x8xf32>
    %868 = arith.subf %837, %856 : vector<2x8xf32>
    %869 = math.exp %868 : vector<2x8xf32>
    %870 = arith.addf %867, %869 : vector<2x8xf32>
    %871 = arith.subf %841, %856 : vector<2x8xf32>
    %872 = math.exp %871 : vector<2x8xf32>
    %873 = arith.addf %870, %872 : vector<2x8xf32>
    %874 = arith.subf %845, %856 : vector<2x8xf32>
    %875 = math.exp %874 : vector<2x8xf32>
    %876 = arith.addf %873, %875 : vector<2x8xf32>
    %877 = arith.subf %849, %856 : vector<2x8xf32>
    %878 = math.exp %877 : vector<2x8xf32>
    %879 = arith.addf %876, %878 : vector<2x8xf32>
    %880 = math.log %879 : vector<2x8xf32>
    %881 = arith.addf %856, %880 : vector<2x8xf32>
    %882 = arith.addf %881, %350 : vector<2x8xf32>
    %883 = vector.shape_cast %768 : vector<2x1xi1> to vector<2x1xi1>
    %884 = vector.broadcast %883 : vector<2x1xi1> to vector<2x8xi1>
    %885 = arith.select %884, %882, %698 : vector<2x8xi1>, vector<2x8xf32>
    %886 = vector.extract_strided_slice %763 {offsets = [0, 0], sizes = [2, 1], strides = [1, 1]} : vector<2x8xf32> to vector<2x1xf32>
    %887 = vector.broadcast %886 : vector<2x1xf32> to vector<2x8xf32>
    %888 = vector.broadcast %315 : vector<1x8xf32> to vector<2x8xf32>
    %889 = arith.addf %887, %888 : vector<2x8xf32>
    %890 = vector.extract_strided_slice %763 {offsets = [0, 1], sizes = [2, 1], strides = [1, 1]} : vector<2x8xf32> to vector<2x1xf32>
    %891 = vector.broadcast %890 : vector<2x1xf32> to vector<2x8xf32>
    %892 = vector.broadcast %316 : vector<1x8xf32> to vector<2x8xf32>
    %893 = arith.addf %891, %892 : vector<2x8xf32>
    %894 = vector.extract_strided_slice %763 {offsets = [0, 2], sizes = [2, 1], strides = [1, 1]} : vector<2x8xf32> to vector<2x1xf32>
    %895 = vector.broadcast %894 : vector<2x1xf32> to vector<2x8xf32>
    %896 = vector.broadcast %317 : vector<1x8xf32> to vector<2x8xf32>
    %897 = arith.addf %895, %896 : vector<2x8xf32>
    %898 = vector.extract_strided_slice %763 {offsets = [0, 3], sizes = [2, 1], strides = [1, 1]} : vector<2x8xf32> to vector<2x1xf32>
    %899 = vector.broadcast %898 : vector<2x1xf32> to vector<2x8xf32>
    %900 = vector.broadcast %318 : vector<1x8xf32> to vector<2x8xf32>
    %901 = arith.addf %899, %900 : vector<2x8xf32>
    %902 = vector.extract_strided_slice %763 {offsets = [0, 4], sizes = [2, 1], strides = [1, 1]} : vector<2x8xf32> to vector<2x1xf32>
    %903 = vector.broadcast %902 : vector<2x1xf32> to vector<2x8xf32>
    %904 = vector.broadcast %319 : vector<1x8xf32> to vector<2x8xf32>
    %905 = arith.addf %903, %904 : vector<2x8xf32>
    %906 = vector.extract_strided_slice %763 {offsets = [0, 5], sizes = [2, 1], strides = [1, 1]} : vector<2x8xf32> to vector<2x1xf32>
    %907 = vector.broadcast %906 : vector<2x1xf32> to vector<2x8xf32>
    %908 = vector.broadcast %320 : vector<1x8xf32> to vector<2x8xf32>
    %909 = arith.addf %907, %908 : vector<2x8xf32>
    %910 = vector.extract_strided_slice %763 {offsets = [0, 6], sizes = [2, 1], strides = [1, 1]} : vector<2x8xf32> to vector<2x1xf32>
    %911 = vector.broadcast %910 : vector<2x1xf32> to vector<2x8xf32>
    %912 = vector.broadcast %321 : vector<1x8xf32> to vector<2x8xf32>
    %913 = arith.addf %911, %912 : vector<2x8xf32>
    %914 = vector.extract_strided_slice %763 {offsets = [0, 7], sizes = [2, 1], strides = [1, 1]} : vector<2x8xf32> to vector<2x1xf32>
    %915 = vector.broadcast %914 : vector<2x1xf32> to vector<2x8xf32>
    %916 = vector.broadcast %322 : vector<1x8xf32> to vector<2x8xf32>
    %917 = arith.addf %915, %916 : vector<2x8xf32>
    %c0_i32_171 = arith.constant 0 : i32
    %918 = vector.broadcast %c0_i32_171 : i32 to vector<2x8xi32>
    %919 = arith.cmpf ogt, %893, %889 : vector<2x8xf32>
    %c1_i32_172 = arith.constant 1 : i32
    %920 = vector.broadcast %c1_i32_172 : i32 to vector<2x8xi32>
    %921 = arith.select %919, %920, %918 : vector<2x8xi1>, vector<2x8xi32>
    %922 = arith.select %919, %893, %889 : vector<2x8xi1>, vector<2x8xf32>
    %923 = arith.cmpf ogt, %897, %922 : vector<2x8xf32>
    %c2_i32_173 = arith.constant 2 : i32
    %924 = vector.broadcast %c2_i32_173 : i32 to vector<2x8xi32>
    %925 = arith.select %923, %924, %921 : vector<2x8xi1>, vector<2x8xi32>
    %926 = arith.select %923, %897, %922 : vector<2x8xi1>, vector<2x8xf32>
    %927 = arith.cmpf ogt, %901, %926 : vector<2x8xf32>
    %c3_i32_174 = arith.constant 3 : i32
    %928 = vector.broadcast %c3_i32_174 : i32 to vector<2x8xi32>
    %929 = arith.select %927, %928, %925 : vector<2x8xi1>, vector<2x8xi32>
    %930 = arith.select %927, %901, %926 : vector<2x8xi1>, vector<2x8xf32>
    %931 = arith.cmpf ogt, %905, %930 : vector<2x8xf32>
    %c4_i32_175 = arith.constant 4 : i32
    %932 = vector.broadcast %c4_i32_175 : i32 to vector<2x8xi32>
    %933 = arith.select %931, %932, %929 : vector<2x8xi1>, vector<2x8xi32>
    %934 = arith.select %931, %905, %930 : vector<2x8xi1>, vector<2x8xf32>
    %935 = arith.cmpf ogt, %909, %934 : vector<2x8xf32>
    %c5_i32_176 = arith.constant 5 : i32
    %936 = vector.broadcast %c5_i32_176 : i32 to vector<2x8xi32>
    %937 = arith.select %935, %936, %933 : vector<2x8xi1>, vector<2x8xi32>
    %938 = arith.select %935, %909, %934 : vector<2x8xi1>, vector<2x8xf32>
    %939 = arith.cmpf ogt, %913, %938 : vector<2x8xf32>
    %c6_i32_177 = arith.constant 6 : i32
    %940 = vector.broadcast %c6_i32_177 : i32 to vector<2x8xi32>
    %941 = arith.select %939, %940, %937 : vector<2x8xi1>, vector<2x8xi32>
    %942 = arith.select %939, %913, %938 : vector<2x8xi1>, vector<2x8xf32>
    %943 = arith.cmpf ogt, %917, %942 : vector<2x8xf32>
    %c7_i32_178 = arith.constant 7 : i32
    %944 = vector.broadcast %c7_i32_178 : i32 to vector<2x8xi32>
    %945 = arith.select %943, %944, %941 : vector<2x8xi1>, vector<2x8xi32>
    %946 = arith.select %943, %917, %942 : vector<2x8xi1>, vector<2x8xf32>
    %947 = arith.addf %946, %350 : vector<2x8xf32>
    %948 = vector.shape_cast %768 : vector<2x1xi1> to vector<2x1xi1>
    %949 = vector.broadcast %948 : vector<2x1xi1> to vector<2x8xi1>
    %950 = arith.select %949, %947, %763 : vector<2x8xi1>, vector<2x8xf32>
    %951 = vector.shape_cast %768 : vector<2x1xi1> to vector<2x1xi1>
    %952 = vector.broadcast %951 : vector<2x1xi1> to vector<2x8xi1>
    %953 = arith.select %952, %355, %766 : vector<2x8xi1>, vector<2x8xf32>
    %c4_i32_179 = arith.constant 4 : i32
    %954 = vector.broadcast %c4_i32_179 : i32 to vector<2x1xi32>
    %955 = arith.cmpi sgt, %310, %954 : vector<2x1xi32>
    %956 = arith.mulf %358, %363 : vector<2x8xf32>
    %cst_180 = arith.constant dense<0.000000e+00> : vector<2xf32>
    %957 = vector.multi_reduction <add>, %956, %cst_180 [1] : vector<2x8xf32> to vector<2xf32>
    %958 = vector.shape_cast %957 : vector<2xf32> to vector<2x1xf32>
    %959 = vector.extract_strided_slice %953 {offsets = [0, 0], sizes = [2, 1], strides = [1, 1]} : vector<2x8xf32> to vector<2x1xf32>
    %960 = vector.broadcast %959 : vector<2x1xf32> to vector<2x8xf32>
    %961 = vector.broadcast %315 : vector<1x8xf32> to vector<2x8xf32>
    %962 = arith.mulf %960, %961 : vector<2x8xf32>
    %963 = vector.extract_strided_slice %953 {offsets = [0, 1], sizes = [2, 1], strides = [1, 1]} : vector<2x8xf32> to vector<2x1xf32>
    %964 = vector.broadcast %963 : vector<2x1xf32> to vector<2x8xf32>
    %965 = vector.broadcast %316 : vector<1x8xf32> to vector<2x8xf32>
    %966 = arith.mulf %964, %965 : vector<2x8xf32>
    %967 = arith.addf %962, %966 : vector<2x8xf32>
    %968 = vector.extract_strided_slice %953 {offsets = [0, 2], sizes = [2, 1], strides = [1, 1]} : vector<2x8xf32> to vector<2x1xf32>
    %969 = vector.broadcast %968 : vector<2x1xf32> to vector<2x8xf32>
    %970 = vector.broadcast %317 : vector<1x8xf32> to vector<2x8xf32>
    %971 = arith.mulf %969, %970 : vector<2x8xf32>
    %972 = arith.addf %967, %971 : vector<2x8xf32>
    %973 = vector.extract_strided_slice %953 {offsets = [0, 3], sizes = [2, 1], strides = [1, 1]} : vector<2x8xf32> to vector<2x1xf32>
    %974 = vector.broadcast %973 : vector<2x1xf32> to vector<2x8xf32>
    %975 = vector.broadcast %318 : vector<1x8xf32> to vector<2x8xf32>
    %976 = arith.mulf %974, %975 : vector<2x8xf32>
    %977 = arith.addf %972, %976 : vector<2x8xf32>
    %978 = vector.extract_strided_slice %953 {offsets = [0, 4], sizes = [2, 1], strides = [1, 1]} : vector<2x8xf32> to vector<2x1xf32>
    %979 = vector.broadcast %978 : vector<2x1xf32> to vector<2x8xf32>
    %980 = vector.broadcast %319 : vector<1x8xf32> to vector<2x8xf32>
    %981 = arith.mulf %979, %980 : vector<2x8xf32>
    %982 = arith.addf %977, %981 : vector<2x8xf32>
    %983 = vector.extract_strided_slice %953 {offsets = [0, 5], sizes = [2, 1], strides = [1, 1]} : vector<2x8xf32> to vector<2x1xf32>
    %984 = vector.broadcast %983 : vector<2x1xf32> to vector<2x8xf32>
    %985 = vector.broadcast %320 : vector<1x8xf32> to vector<2x8xf32>
    %986 = arith.mulf %984, %985 : vector<2x8xf32>
    %987 = arith.addf %982, %986 : vector<2x8xf32>
    %988 = vector.extract_strided_slice %953 {offsets = [0, 6], sizes = [2, 1], strides = [1, 1]} : vector<2x8xf32> to vector<2x1xf32>
    %989 = vector.broadcast %988 : vector<2x1xf32> to vector<2x8xf32>
    %990 = vector.broadcast %321 : vector<1x8xf32> to vector<2x8xf32>
    %991 = arith.mulf %989, %990 : vector<2x8xf32>
    %992 = arith.addf %987, %991 : vector<2x8xf32>
    %993 = vector.extract_strided_slice %953 {offsets = [0, 7], sizes = [2, 1], strides = [1, 1]} : vector<2x8xf32> to vector<2x1xf32>
    %994 = vector.broadcast %993 : vector<2x1xf32> to vector<2x8xf32>
    %995 = vector.broadcast %322 : vector<1x8xf32> to vector<2x8xf32>
    %996 = arith.mulf %994, %995 : vector<2x8xf32>
    %997 = arith.addf %992, %996 : vector<2x8xf32>
    %998 = arith.mulf %997, %363 : vector<2x8xf32>
    %cst_181 = arith.constant dense<0.000000e+00> : vector<2xf32>
    %999 = vector.multi_reduction <add>, %998, %cst_181 [1] : vector<2x8xf32> to vector<2xf32>
    %1000 = vector.shape_cast %999 : vector<2xf32> to vector<2x1xf32>
    %1001 = arith.addf %958, %1000 : vector<2x1xf32>
    %cst_182 = arith.constant 0.000000e+00 : f32
    %1002 = vector.broadcast %cst_182 : f32 to vector<2x1xf32>
    %1003 = arith.select %955, %1001, %1002 : vector<2x1xi1>, vector<2x1xf32>
    %1004 = arith.addf %817, %1003 : vector<2x1xf32>
    %1005 = vector.extract_strided_slice %885 {offsets = [0, 0], sizes = [2, 1], strides = [1, 1]} : vector<2x8xf32> to vector<2x1xf32>
    %1006 = vector.broadcast %1005 : vector<2x1xf32> to vector<2x8xf32>
    %1007 = vector.broadcast %315 : vector<1x8xf32> to vector<2x8xf32>
    %1008 = arith.addf %1006, %1007 : vector<2x8xf32>
    %1009 = vector.extract_strided_slice %885 {offsets = [0, 1], sizes = [2, 1], strides = [1, 1]} : vector<2x8xf32> to vector<2x1xf32>
    %1010 = vector.broadcast %1009 : vector<2x1xf32> to vector<2x8xf32>
    %1011 = vector.broadcast %316 : vector<1x8xf32> to vector<2x8xf32>
    %1012 = arith.addf %1010, %1011 : vector<2x8xf32>
    %1013 = vector.extract_strided_slice %885 {offsets = [0, 2], sizes = [2, 1], strides = [1, 1]} : vector<2x8xf32> to vector<2x1xf32>
    %1014 = vector.broadcast %1013 : vector<2x1xf32> to vector<2x8xf32>
    %1015 = vector.broadcast %317 : vector<1x8xf32> to vector<2x8xf32>
    %1016 = arith.addf %1014, %1015 : vector<2x8xf32>
    %1017 = vector.extract_strided_slice %885 {offsets = [0, 3], sizes = [2, 1], strides = [1, 1]} : vector<2x8xf32> to vector<2x1xf32>
    %1018 = vector.broadcast %1017 : vector<2x1xf32> to vector<2x8xf32>
    %1019 = vector.broadcast %318 : vector<1x8xf32> to vector<2x8xf32>
    %1020 = arith.addf %1018, %1019 : vector<2x8xf32>
    %1021 = vector.extract_strided_slice %885 {offsets = [0, 4], sizes = [2, 1], strides = [1, 1]} : vector<2x8xf32> to vector<2x1xf32>
    %1022 = vector.broadcast %1021 : vector<2x1xf32> to vector<2x8xf32>
    %1023 = vector.broadcast %319 : vector<1x8xf32> to vector<2x8xf32>
    %1024 = arith.addf %1022, %1023 : vector<2x8xf32>
    %1025 = vector.extract_strided_slice %885 {offsets = [0, 5], sizes = [2, 1], strides = [1, 1]} : vector<2x8xf32> to vector<2x1xf32>
    %1026 = vector.broadcast %1025 : vector<2x1xf32> to vector<2x8xf32>
    %1027 = vector.broadcast %320 : vector<1x8xf32> to vector<2x8xf32>
    %1028 = arith.addf %1026, %1027 : vector<2x8xf32>
    %1029 = vector.extract_strided_slice %885 {offsets = [0, 6], sizes = [2, 1], strides = [1, 1]} : vector<2x8xf32> to vector<2x1xf32>
    %1030 = vector.broadcast %1029 : vector<2x1xf32> to vector<2x8xf32>
    %1031 = vector.broadcast %321 : vector<1x8xf32> to vector<2x8xf32>
    %1032 = arith.addf %1030, %1031 : vector<2x8xf32>
    %1033 = vector.extract_strided_slice %885 {offsets = [0, 7], sizes = [2, 1], strides = [1, 1]} : vector<2x8xf32> to vector<2x1xf32>
    %1034 = vector.broadcast %1033 : vector<2x1xf32> to vector<2x8xf32>
    %1035 = vector.broadcast %322 : vector<1x8xf32> to vector<2x8xf32>
    %1036 = arith.addf %1034, %1035 : vector<2x8xf32>
    %1037 = arith.maximumf %1008, %1012 : vector<2x8xf32>
    %1038 = arith.maximumf %1037, %1016 : vector<2x8xf32>
    %1039 = arith.maximumf %1038, %1020 : vector<2x8xf32>
    %1040 = arith.maximumf %1039, %1024 : vector<2x8xf32>
    %1041 = arith.maximumf %1040, %1028 : vector<2x8xf32>
    %1042 = arith.maximumf %1041, %1032 : vector<2x8xf32>
    %1043 = arith.maximumf %1042, %1036 : vector<2x8xf32>
    %1044 = arith.subf %1008, %1043 : vector<2x8xf32>
    %1045 = math.exp %1044 : vector<2x8xf32>
    %1046 = arith.subf %1012, %1043 : vector<2x8xf32>
    %1047 = math.exp %1046 : vector<2x8xf32>
    %1048 = arith.addf %1045, %1047 : vector<2x8xf32>
    %1049 = arith.subf %1016, %1043 : vector<2x8xf32>
    %1050 = math.exp %1049 : vector<2x8xf32>
    %1051 = arith.addf %1048, %1050 : vector<2x8xf32>
    %1052 = arith.subf %1020, %1043 : vector<2x8xf32>
    %1053 = math.exp %1052 : vector<2x8xf32>
    %1054 = arith.addf %1051, %1053 : vector<2x8xf32>
    %1055 = arith.subf %1024, %1043 : vector<2x8xf32>
    %1056 = math.exp %1055 : vector<2x8xf32>
    %1057 = arith.addf %1054, %1056 : vector<2x8xf32>
    %1058 = arith.subf %1028, %1043 : vector<2x8xf32>
    %1059 = math.exp %1058 : vector<2x8xf32>
    %1060 = arith.addf %1057, %1059 : vector<2x8xf32>
    %1061 = arith.subf %1032, %1043 : vector<2x8xf32>
    %1062 = math.exp %1061 : vector<2x8xf32>
    %1063 = arith.addf %1060, %1062 : vector<2x8xf32>
    %1064 = arith.subf %1036, %1043 : vector<2x8xf32>
    %1065 = math.exp %1064 : vector<2x8xf32>
    %1066 = arith.addf %1063, %1065 : vector<2x8xf32>
    %1067 = math.log %1066 : vector<2x8xf32>
    %1068 = arith.addf %1043, %1067 : vector<2x8xf32>
    %1069 = arith.addf %1068, %358 : vector<2x8xf32>
    %1070 = vector.shape_cast %955 : vector<2x1xi1> to vector<2x1xi1>
    %1071 = vector.broadcast %1070 : vector<2x1xi1> to vector<2x8xi1>
    %1072 = arith.select %1071, %1069, %885 : vector<2x8xi1>, vector<2x8xf32>
    %1073 = vector.extract_strided_slice %950 {offsets = [0, 0], sizes = [2, 1], strides = [1, 1]} : vector<2x8xf32> to vector<2x1xf32>
    %1074 = vector.broadcast %1073 : vector<2x1xf32> to vector<2x8xf32>
    %1075 = vector.broadcast %315 : vector<1x8xf32> to vector<2x8xf32>
    %1076 = arith.addf %1074, %1075 : vector<2x8xf32>
    %1077 = vector.extract_strided_slice %950 {offsets = [0, 1], sizes = [2, 1], strides = [1, 1]} : vector<2x8xf32> to vector<2x1xf32>
    %1078 = vector.broadcast %1077 : vector<2x1xf32> to vector<2x8xf32>
    %1079 = vector.broadcast %316 : vector<1x8xf32> to vector<2x8xf32>
    %1080 = arith.addf %1078, %1079 : vector<2x8xf32>
    %1081 = vector.extract_strided_slice %950 {offsets = [0, 2], sizes = [2, 1], strides = [1, 1]} : vector<2x8xf32> to vector<2x1xf32>
    %1082 = vector.broadcast %1081 : vector<2x1xf32> to vector<2x8xf32>
    %1083 = vector.broadcast %317 : vector<1x8xf32> to vector<2x8xf32>
    %1084 = arith.addf %1082, %1083 : vector<2x8xf32>
    %1085 = vector.extract_strided_slice %950 {offsets = [0, 3], sizes = [2, 1], strides = [1, 1]} : vector<2x8xf32> to vector<2x1xf32>
    %1086 = vector.broadcast %1085 : vector<2x1xf32> to vector<2x8xf32>
    %1087 = vector.broadcast %318 : vector<1x8xf32> to vector<2x8xf32>
    %1088 = arith.addf %1086, %1087 : vector<2x8xf32>
    %1089 = vector.extract_strided_slice %950 {offsets = [0, 4], sizes = [2, 1], strides = [1, 1]} : vector<2x8xf32> to vector<2x1xf32>
    %1090 = vector.broadcast %1089 : vector<2x1xf32> to vector<2x8xf32>
    %1091 = vector.broadcast %319 : vector<1x8xf32> to vector<2x8xf32>
    %1092 = arith.addf %1090, %1091 : vector<2x8xf32>
    %1093 = vector.extract_strided_slice %950 {offsets = [0, 5], sizes = [2, 1], strides = [1, 1]} : vector<2x8xf32> to vector<2x1xf32>
    %1094 = vector.broadcast %1093 : vector<2x1xf32> to vector<2x8xf32>
    %1095 = vector.broadcast %320 : vector<1x8xf32> to vector<2x8xf32>
    %1096 = arith.addf %1094, %1095 : vector<2x8xf32>
    %1097 = vector.extract_strided_slice %950 {offsets = [0, 6], sizes = [2, 1], strides = [1, 1]} : vector<2x8xf32> to vector<2x1xf32>
    %1098 = vector.broadcast %1097 : vector<2x1xf32> to vector<2x8xf32>
    %1099 = vector.broadcast %321 : vector<1x8xf32> to vector<2x8xf32>
    %1100 = arith.addf %1098, %1099 : vector<2x8xf32>
    %1101 = vector.extract_strided_slice %950 {offsets = [0, 7], sizes = [2, 1], strides = [1, 1]} : vector<2x8xf32> to vector<2x1xf32>
    %1102 = vector.broadcast %1101 : vector<2x1xf32> to vector<2x8xf32>
    %1103 = vector.broadcast %322 : vector<1x8xf32> to vector<2x8xf32>
    %1104 = arith.addf %1102, %1103 : vector<2x8xf32>
    %c0_i32_183 = arith.constant 0 : i32
    %1105 = vector.broadcast %c0_i32_183 : i32 to vector<2x8xi32>
    %1106 = arith.cmpf ogt, %1080, %1076 : vector<2x8xf32>
    %c1_i32_184 = arith.constant 1 : i32
    %1107 = vector.broadcast %c1_i32_184 : i32 to vector<2x8xi32>
    %1108 = arith.select %1106, %1107, %1105 : vector<2x8xi1>, vector<2x8xi32>
    %1109 = arith.select %1106, %1080, %1076 : vector<2x8xi1>, vector<2x8xf32>
    %1110 = arith.cmpf ogt, %1084, %1109 : vector<2x8xf32>
    %c2_i32_185 = arith.constant 2 : i32
    %1111 = vector.broadcast %c2_i32_185 : i32 to vector<2x8xi32>
    %1112 = arith.select %1110, %1111, %1108 : vector<2x8xi1>, vector<2x8xi32>
    %1113 = arith.select %1110, %1084, %1109 : vector<2x8xi1>, vector<2x8xf32>
    %1114 = arith.cmpf ogt, %1088, %1113 : vector<2x8xf32>
    %c3_i32_186 = arith.constant 3 : i32
    %1115 = vector.broadcast %c3_i32_186 : i32 to vector<2x8xi32>
    %1116 = arith.select %1114, %1115, %1112 : vector<2x8xi1>, vector<2x8xi32>
    %1117 = arith.select %1114, %1088, %1113 : vector<2x8xi1>, vector<2x8xf32>
    %1118 = arith.cmpf ogt, %1092, %1117 : vector<2x8xf32>
    %c4_i32_187 = arith.constant 4 : i32
    %1119 = vector.broadcast %c4_i32_187 : i32 to vector<2x8xi32>
    %1120 = arith.select %1118, %1119, %1116 : vector<2x8xi1>, vector<2x8xi32>
    %1121 = arith.select %1118, %1092, %1117 : vector<2x8xi1>, vector<2x8xf32>
    %1122 = arith.cmpf ogt, %1096, %1121 : vector<2x8xf32>
    %c5_i32_188 = arith.constant 5 : i32
    %1123 = vector.broadcast %c5_i32_188 : i32 to vector<2x8xi32>
    %1124 = arith.select %1122, %1123, %1120 : vector<2x8xi1>, vector<2x8xi32>
    %1125 = arith.select %1122, %1096, %1121 : vector<2x8xi1>, vector<2x8xf32>
    %1126 = arith.cmpf ogt, %1100, %1125 : vector<2x8xf32>
    %c6_i32_189 = arith.constant 6 : i32
    %1127 = vector.broadcast %c6_i32_189 : i32 to vector<2x8xi32>
    %1128 = arith.select %1126, %1127, %1124 : vector<2x8xi1>, vector<2x8xi32>
    %1129 = arith.select %1126, %1100, %1125 : vector<2x8xi1>, vector<2x8xf32>
    %1130 = arith.cmpf ogt, %1104, %1129 : vector<2x8xf32>
    %c7_i32_190 = arith.constant 7 : i32
    %1131 = vector.broadcast %c7_i32_190 : i32 to vector<2x8xi32>
    %1132 = arith.select %1130, %1131, %1128 : vector<2x8xi1>, vector<2x8xi32>
    %1133 = arith.select %1130, %1104, %1129 : vector<2x8xi1>, vector<2x8xf32>
    %1134 = arith.addf %1133, %358 : vector<2x8xf32>
    %1135 = vector.shape_cast %955 : vector<2x1xi1> to vector<2x1xi1>
    %1136 = vector.broadcast %1135 : vector<2x1xi1> to vector<2x8xi1>
    %1137 = arith.select %1136, %1134, %950 : vector<2x8xi1>, vector<2x8xf32>
    %1138 = vector.shape_cast %955 : vector<2x1xi1> to vector<2x1xi1>
    %1139 = vector.broadcast %1138 : vector<2x1xi1> to vector<2x8xi1>
    %1140 = arith.select %1139, %363, %953 : vector<2x8xi1>, vector<2x8xf32>
    %c5_i32_191 = arith.constant 5 : i32
    %1141 = vector.broadcast %c5_i32_191 : i32 to vector<2x1xi32>
    %1142 = arith.cmpi sgt, %310, %1141 : vector<2x1xi32>
    %1143 = arith.mulf %366, %371 : vector<2x8xf32>
    %cst_192 = arith.constant dense<0.000000e+00> : vector<2xf32>
    %1144 = vector.multi_reduction <add>, %1143, %cst_192 [1] : vector<2x8xf32> to vector<2xf32>
    %1145 = vector.shape_cast %1144 : vector<2xf32> to vector<2x1xf32>
    %1146 = vector.extract_strided_slice %1140 {offsets = [0, 0], sizes = [2, 1], strides = [1, 1]} : vector<2x8xf32> to vector<2x1xf32>
    %1147 = vector.broadcast %1146 : vector<2x1xf32> to vector<2x8xf32>
    %1148 = vector.broadcast %315 : vector<1x8xf32> to vector<2x8xf32>
    %1149 = arith.mulf %1147, %1148 : vector<2x8xf32>
    %1150 = vector.extract_strided_slice %1140 {offsets = [0, 1], sizes = [2, 1], strides = [1, 1]} : vector<2x8xf32> to vector<2x1xf32>
    %1151 = vector.broadcast %1150 : vector<2x1xf32> to vector<2x8xf32>
    %1152 = vector.broadcast %316 : vector<1x8xf32> to vector<2x8xf32>
    %1153 = arith.mulf %1151, %1152 : vector<2x8xf32>
    %1154 = arith.addf %1149, %1153 : vector<2x8xf32>
    %1155 = vector.extract_strided_slice %1140 {offsets = [0, 2], sizes = [2, 1], strides = [1, 1]} : vector<2x8xf32> to vector<2x1xf32>
    %1156 = vector.broadcast %1155 : vector<2x1xf32> to vector<2x8xf32>
    %1157 = vector.broadcast %317 : vector<1x8xf32> to vector<2x8xf32>
    %1158 = arith.mulf %1156, %1157 : vector<2x8xf32>
    %1159 = arith.addf %1154, %1158 : vector<2x8xf32>
    %1160 = vector.extract_strided_slice %1140 {offsets = [0, 3], sizes = [2, 1], strides = [1, 1]} : vector<2x8xf32> to vector<2x1xf32>
    %1161 = vector.broadcast %1160 : vector<2x1xf32> to vector<2x8xf32>
    %1162 = vector.broadcast %318 : vector<1x8xf32> to vector<2x8xf32>
    %1163 = arith.mulf %1161, %1162 : vector<2x8xf32>
    %1164 = arith.addf %1159, %1163 : vector<2x8xf32>
    %1165 = vector.extract_strided_slice %1140 {offsets = [0, 4], sizes = [2, 1], strides = [1, 1]} : vector<2x8xf32> to vector<2x1xf32>
    %1166 = vector.broadcast %1165 : vector<2x1xf32> to vector<2x8xf32>
    %1167 = vector.broadcast %319 : vector<1x8xf32> to vector<2x8xf32>
    %1168 = arith.mulf %1166, %1167 : vector<2x8xf32>
    %1169 = arith.addf %1164, %1168 : vector<2x8xf32>
    %1170 = vector.extract_strided_slice %1140 {offsets = [0, 5], sizes = [2, 1], strides = [1, 1]} : vector<2x8xf32> to vector<2x1xf32>
    %1171 = vector.broadcast %1170 : vector<2x1xf32> to vector<2x8xf32>
    %1172 = vector.broadcast %320 : vector<1x8xf32> to vector<2x8xf32>
    %1173 = arith.mulf %1171, %1172 : vector<2x8xf32>
    %1174 = arith.addf %1169, %1173 : vector<2x8xf32>
    %1175 = vector.extract_strided_slice %1140 {offsets = [0, 6], sizes = [2, 1], strides = [1, 1]} : vector<2x8xf32> to vector<2x1xf32>
    %1176 = vector.broadcast %1175 : vector<2x1xf32> to vector<2x8xf32>
    %1177 = vector.broadcast %321 : vector<1x8xf32> to vector<2x8xf32>
    %1178 = arith.mulf %1176, %1177 : vector<2x8xf32>
    %1179 = arith.addf %1174, %1178 : vector<2x8xf32>
    %1180 = vector.extract_strided_slice %1140 {offsets = [0, 7], sizes = [2, 1], strides = [1, 1]} : vector<2x8xf32> to vector<2x1xf32>
    %1181 = vector.broadcast %1180 : vector<2x1xf32> to vector<2x8xf32>
    %1182 = vector.broadcast %322 : vector<1x8xf32> to vector<2x8xf32>
    %1183 = arith.mulf %1181, %1182 : vector<2x8xf32>
    %1184 = arith.addf %1179, %1183 : vector<2x8xf32>
    %1185 = arith.mulf %1184, %371 : vector<2x8xf32>
    %cst_193 = arith.constant dense<0.000000e+00> : vector<2xf32>
    %1186 = vector.multi_reduction <add>, %1185, %cst_193 [1] : vector<2x8xf32> to vector<2xf32>
    %1187 = vector.shape_cast %1186 : vector<2xf32> to vector<2x1xf32>
    %1188 = arith.addf %1145, %1187 : vector<2x1xf32>
    %cst_194 = arith.constant 0.000000e+00 : f32
    %1189 = vector.broadcast %cst_194 : f32 to vector<2x1xf32>
    %1190 = arith.select %1142, %1188, %1189 : vector<2x1xi1>, vector<2x1xf32>
    %1191 = arith.addf %1004, %1190 : vector<2x1xf32>
    %1192 = vector.extract_strided_slice %1072 {offsets = [0, 0], sizes = [2, 1], strides = [1, 1]} : vector<2x8xf32> to vector<2x1xf32>
    %1193 = vector.broadcast %1192 : vector<2x1xf32> to vector<2x8xf32>
    %1194 = vector.broadcast %315 : vector<1x8xf32> to vector<2x8xf32>
    %1195 = arith.addf %1193, %1194 : vector<2x8xf32>
    %1196 = vector.extract_strided_slice %1072 {offsets = [0, 1], sizes = [2, 1], strides = [1, 1]} : vector<2x8xf32> to vector<2x1xf32>
    %1197 = vector.broadcast %1196 : vector<2x1xf32> to vector<2x8xf32>
    %1198 = vector.broadcast %316 : vector<1x8xf32> to vector<2x8xf32>
    %1199 = arith.addf %1197, %1198 : vector<2x8xf32>
    %1200 = vector.extract_strided_slice %1072 {offsets = [0, 2], sizes = [2, 1], strides = [1, 1]} : vector<2x8xf32> to vector<2x1xf32>
    %1201 = vector.broadcast %1200 : vector<2x1xf32> to vector<2x8xf32>
    %1202 = vector.broadcast %317 : vector<1x8xf32> to vector<2x8xf32>
    %1203 = arith.addf %1201, %1202 : vector<2x8xf32>
    %1204 = vector.extract_strided_slice %1072 {offsets = [0, 3], sizes = [2, 1], strides = [1, 1]} : vector<2x8xf32> to vector<2x1xf32>
    %1205 = vector.broadcast %1204 : vector<2x1xf32> to vector<2x8xf32>
    %1206 = vector.broadcast %318 : vector<1x8xf32> to vector<2x8xf32>
    %1207 = arith.addf %1205, %1206 : vector<2x8xf32>
    %1208 = vector.extract_strided_slice %1072 {offsets = [0, 4], sizes = [2, 1], strides = [1, 1]} : vector<2x8xf32> to vector<2x1xf32>
    %1209 = vector.broadcast %1208 : vector<2x1xf32> to vector<2x8xf32>
    %1210 = vector.broadcast %319 : vector<1x8xf32> to vector<2x8xf32>
    %1211 = arith.addf %1209, %1210 : vector<2x8xf32>
    %1212 = vector.extract_strided_slice %1072 {offsets = [0, 5], sizes = [2, 1], strides = [1, 1]} : vector<2x8xf32> to vector<2x1xf32>
    %1213 = vector.broadcast %1212 : vector<2x1xf32> to vector<2x8xf32>
    %1214 = vector.broadcast %320 : vector<1x8xf32> to vector<2x8xf32>
    %1215 = arith.addf %1213, %1214 : vector<2x8xf32>
    %1216 = vector.extract_strided_slice %1072 {offsets = [0, 6], sizes = [2, 1], strides = [1, 1]} : vector<2x8xf32> to vector<2x1xf32>
    %1217 = vector.broadcast %1216 : vector<2x1xf32> to vector<2x8xf32>
    %1218 = vector.broadcast %321 : vector<1x8xf32> to vector<2x8xf32>
    %1219 = arith.addf %1217, %1218 : vector<2x8xf32>
    %1220 = vector.extract_strided_slice %1072 {offsets = [0, 7], sizes = [2, 1], strides = [1, 1]} : vector<2x8xf32> to vector<2x1xf32>
    %1221 = vector.broadcast %1220 : vector<2x1xf32> to vector<2x8xf32>
    %1222 = vector.broadcast %322 : vector<1x8xf32> to vector<2x8xf32>
    %1223 = arith.addf %1221, %1222 : vector<2x8xf32>
    %1224 = arith.maximumf %1195, %1199 : vector<2x8xf32>
    %1225 = arith.maximumf %1224, %1203 : vector<2x8xf32>
    %1226 = arith.maximumf %1225, %1207 : vector<2x8xf32>
    %1227 = arith.maximumf %1226, %1211 : vector<2x8xf32>
    %1228 = arith.maximumf %1227, %1215 : vector<2x8xf32>
    %1229 = arith.maximumf %1228, %1219 : vector<2x8xf32>
    %1230 = arith.maximumf %1229, %1223 : vector<2x8xf32>
    %1231 = arith.subf %1195, %1230 : vector<2x8xf32>
    %1232 = math.exp %1231 : vector<2x8xf32>
    %1233 = arith.subf %1199, %1230 : vector<2x8xf32>
    %1234 = math.exp %1233 : vector<2x8xf32>
    %1235 = arith.addf %1232, %1234 : vector<2x8xf32>
    %1236 = arith.subf %1203, %1230 : vector<2x8xf32>
    %1237 = math.exp %1236 : vector<2x8xf32>
    %1238 = arith.addf %1235, %1237 : vector<2x8xf32>
    %1239 = arith.subf %1207, %1230 : vector<2x8xf32>
    %1240 = math.exp %1239 : vector<2x8xf32>
    %1241 = arith.addf %1238, %1240 : vector<2x8xf32>
    %1242 = arith.subf %1211, %1230 : vector<2x8xf32>
    %1243 = math.exp %1242 : vector<2x8xf32>
    %1244 = arith.addf %1241, %1243 : vector<2x8xf32>
    %1245 = arith.subf %1215, %1230 : vector<2x8xf32>
    %1246 = math.exp %1245 : vector<2x8xf32>
    %1247 = arith.addf %1244, %1246 : vector<2x8xf32>
    %1248 = arith.subf %1219, %1230 : vector<2x8xf32>
    %1249 = math.exp %1248 : vector<2x8xf32>
    %1250 = arith.addf %1247, %1249 : vector<2x8xf32>
    %1251 = arith.subf %1223, %1230 : vector<2x8xf32>
    %1252 = math.exp %1251 : vector<2x8xf32>
    %1253 = arith.addf %1250, %1252 : vector<2x8xf32>
    %1254 = math.log %1253 : vector<2x8xf32>
    %1255 = arith.addf %1230, %1254 : vector<2x8xf32>
    %1256 = arith.addf %1255, %366 : vector<2x8xf32>
    %1257 = vector.shape_cast %1142 : vector<2x1xi1> to vector<2x1xi1>
    %1258 = vector.broadcast %1257 : vector<2x1xi1> to vector<2x8xi1>
    %1259 = arith.select %1258, %1256, %1072 : vector<2x8xi1>, vector<2x8xf32>
    %1260 = vector.extract_strided_slice %1137 {offsets = [0, 0], sizes = [2, 1], strides = [1, 1]} : vector<2x8xf32> to vector<2x1xf32>
    %1261 = vector.broadcast %1260 : vector<2x1xf32> to vector<2x8xf32>
    %1262 = vector.broadcast %315 : vector<1x8xf32> to vector<2x8xf32>
    %1263 = arith.addf %1261, %1262 : vector<2x8xf32>
    %1264 = vector.extract_strided_slice %1137 {offsets = [0, 1], sizes = [2, 1], strides = [1, 1]} : vector<2x8xf32> to vector<2x1xf32>
    %1265 = vector.broadcast %1264 : vector<2x1xf32> to vector<2x8xf32>
    %1266 = vector.broadcast %316 : vector<1x8xf32> to vector<2x8xf32>
    %1267 = arith.addf %1265, %1266 : vector<2x8xf32>
    %1268 = vector.extract_strided_slice %1137 {offsets = [0, 2], sizes = [2, 1], strides = [1, 1]} : vector<2x8xf32> to vector<2x1xf32>
    %1269 = vector.broadcast %1268 : vector<2x1xf32> to vector<2x8xf32>
    %1270 = vector.broadcast %317 : vector<1x8xf32> to vector<2x8xf32>
    %1271 = arith.addf %1269, %1270 : vector<2x8xf32>
    %1272 = vector.extract_strided_slice %1137 {offsets = [0, 3], sizes = [2, 1], strides = [1, 1]} : vector<2x8xf32> to vector<2x1xf32>
    %1273 = vector.broadcast %1272 : vector<2x1xf32> to vector<2x8xf32>
    %1274 = vector.broadcast %318 : vector<1x8xf32> to vector<2x8xf32>
    %1275 = arith.addf %1273, %1274 : vector<2x8xf32>
    %1276 = vector.extract_strided_slice %1137 {offsets = [0, 4], sizes = [2, 1], strides = [1, 1]} : vector<2x8xf32> to vector<2x1xf32>
    %1277 = vector.broadcast %1276 : vector<2x1xf32> to vector<2x8xf32>
    %1278 = vector.broadcast %319 : vector<1x8xf32> to vector<2x8xf32>
    %1279 = arith.addf %1277, %1278 : vector<2x8xf32>
    %1280 = vector.extract_strided_slice %1137 {offsets = [0, 5], sizes = [2, 1], strides = [1, 1]} : vector<2x8xf32> to vector<2x1xf32>
    %1281 = vector.broadcast %1280 : vector<2x1xf32> to vector<2x8xf32>
    %1282 = vector.broadcast %320 : vector<1x8xf32> to vector<2x8xf32>
    %1283 = arith.addf %1281, %1282 : vector<2x8xf32>
    %1284 = vector.extract_strided_slice %1137 {offsets = [0, 6], sizes = [2, 1], strides = [1, 1]} : vector<2x8xf32> to vector<2x1xf32>
    %1285 = vector.broadcast %1284 : vector<2x1xf32> to vector<2x8xf32>
    %1286 = vector.broadcast %321 : vector<1x8xf32> to vector<2x8xf32>
    %1287 = arith.addf %1285, %1286 : vector<2x8xf32>
    %1288 = vector.extract_strided_slice %1137 {offsets = [0, 7], sizes = [2, 1], strides = [1, 1]} : vector<2x8xf32> to vector<2x1xf32>
    %1289 = vector.broadcast %1288 : vector<2x1xf32> to vector<2x8xf32>
    %1290 = vector.broadcast %322 : vector<1x8xf32> to vector<2x8xf32>
    %1291 = arith.addf %1289, %1290 : vector<2x8xf32>
    %c0_i32_195 = arith.constant 0 : i32
    %1292 = vector.broadcast %c0_i32_195 : i32 to vector<2x8xi32>
    %1293 = arith.cmpf ogt, %1267, %1263 : vector<2x8xf32>
    %c1_i32_196 = arith.constant 1 : i32
    %1294 = vector.broadcast %c1_i32_196 : i32 to vector<2x8xi32>
    %1295 = arith.select %1293, %1294, %1292 : vector<2x8xi1>, vector<2x8xi32>
    %1296 = arith.select %1293, %1267, %1263 : vector<2x8xi1>, vector<2x8xf32>
    %1297 = arith.cmpf ogt, %1271, %1296 : vector<2x8xf32>
    %c2_i32_197 = arith.constant 2 : i32
    %1298 = vector.broadcast %c2_i32_197 : i32 to vector<2x8xi32>
    %1299 = arith.select %1297, %1298, %1295 : vector<2x8xi1>, vector<2x8xi32>
    %1300 = arith.select %1297, %1271, %1296 : vector<2x8xi1>, vector<2x8xf32>
    %1301 = arith.cmpf ogt, %1275, %1300 : vector<2x8xf32>
    %c3_i32_198 = arith.constant 3 : i32
    %1302 = vector.broadcast %c3_i32_198 : i32 to vector<2x8xi32>
    %1303 = arith.select %1301, %1302, %1299 : vector<2x8xi1>, vector<2x8xi32>
    %1304 = arith.select %1301, %1275, %1300 : vector<2x8xi1>, vector<2x8xf32>
    %1305 = arith.cmpf ogt, %1279, %1304 : vector<2x8xf32>
    %c4_i32_199 = arith.constant 4 : i32
    %1306 = vector.broadcast %c4_i32_199 : i32 to vector<2x8xi32>
    %1307 = arith.select %1305, %1306, %1303 : vector<2x8xi1>, vector<2x8xi32>
    %1308 = arith.select %1305, %1279, %1304 : vector<2x8xi1>, vector<2x8xf32>
    %1309 = arith.cmpf ogt, %1283, %1308 : vector<2x8xf32>
    %c5_i32_200 = arith.constant 5 : i32
    %1310 = vector.broadcast %c5_i32_200 : i32 to vector<2x8xi32>
    %1311 = arith.select %1309, %1310, %1307 : vector<2x8xi1>, vector<2x8xi32>
    %1312 = arith.select %1309, %1283, %1308 : vector<2x8xi1>, vector<2x8xf32>
    %1313 = arith.cmpf ogt, %1287, %1312 : vector<2x8xf32>
    %c6_i32_201 = arith.constant 6 : i32
    %1314 = vector.broadcast %c6_i32_201 : i32 to vector<2x8xi32>
    %1315 = arith.select %1313, %1314, %1311 : vector<2x8xi1>, vector<2x8xi32>
    %1316 = arith.select %1313, %1287, %1312 : vector<2x8xi1>, vector<2x8xf32>
    %1317 = arith.cmpf ogt, %1291, %1316 : vector<2x8xf32>
    %c7_i32_202 = arith.constant 7 : i32
    %1318 = vector.broadcast %c7_i32_202 : i32 to vector<2x8xi32>
    %1319 = arith.select %1317, %1318, %1315 : vector<2x8xi1>, vector<2x8xi32>
    %1320 = arith.select %1317, %1291, %1316 : vector<2x8xi1>, vector<2x8xf32>
    %1321 = arith.addf %1320, %366 : vector<2x8xf32>
    %1322 = vector.shape_cast %1142 : vector<2x1xi1> to vector<2x1xi1>
    %1323 = vector.broadcast %1322 : vector<2x1xi1> to vector<2x8xi1>
    %1324 = arith.select %1323, %1321, %1137 : vector<2x8xi1>, vector<2x8xf32>
    %1325 = vector.shape_cast %1142 : vector<2x1xi1> to vector<2x1xi1>
    %1326 = vector.broadcast %1325 : vector<2x1xi1> to vector<2x8xi1>
    %1327 = arith.select %1326, %371, %1140 : vector<2x8xi1>, vector<2x8xf32>
    %c6_i32_203 = arith.constant 6 : i32
    %1328 = vector.broadcast %c6_i32_203 : i32 to vector<2x1xi32>
    %1329 = arith.cmpi sgt, %310, %1328 : vector<2x1xi32>
    %1330 = arith.mulf %374, %379 : vector<2x8xf32>
    %cst_204 = arith.constant dense<0.000000e+00> : vector<2xf32>
    %1331 = vector.multi_reduction <add>, %1330, %cst_204 [1] : vector<2x8xf32> to vector<2xf32>
    %1332 = vector.shape_cast %1331 : vector<2xf32> to vector<2x1xf32>
    %1333 = vector.extract_strided_slice %1327 {offsets = [0, 0], sizes = [2, 1], strides = [1, 1]} : vector<2x8xf32> to vector<2x1xf32>
    %1334 = vector.broadcast %1333 : vector<2x1xf32> to vector<2x8xf32>
    %1335 = vector.broadcast %315 : vector<1x8xf32> to vector<2x8xf32>
    %1336 = arith.mulf %1334, %1335 : vector<2x8xf32>
    %1337 = vector.extract_strided_slice %1327 {offsets = [0, 1], sizes = [2, 1], strides = [1, 1]} : vector<2x8xf32> to vector<2x1xf32>
    %1338 = vector.broadcast %1337 : vector<2x1xf32> to vector<2x8xf32>
    %1339 = vector.broadcast %316 : vector<1x8xf32> to vector<2x8xf32>
    %1340 = arith.mulf %1338, %1339 : vector<2x8xf32>
    %1341 = arith.addf %1336, %1340 : vector<2x8xf32>
    %1342 = vector.extract_strided_slice %1327 {offsets = [0, 2], sizes = [2, 1], strides = [1, 1]} : vector<2x8xf32> to vector<2x1xf32>
    %1343 = vector.broadcast %1342 : vector<2x1xf32> to vector<2x8xf32>
    %1344 = vector.broadcast %317 : vector<1x8xf32> to vector<2x8xf32>
    %1345 = arith.mulf %1343, %1344 : vector<2x8xf32>
    %1346 = arith.addf %1341, %1345 : vector<2x8xf32>
    %1347 = vector.extract_strided_slice %1327 {offsets = [0, 3], sizes = [2, 1], strides = [1, 1]} : vector<2x8xf32> to vector<2x1xf32>
    %1348 = vector.broadcast %1347 : vector<2x1xf32> to vector<2x8xf32>
    %1349 = vector.broadcast %318 : vector<1x8xf32> to vector<2x8xf32>
    %1350 = arith.mulf %1348, %1349 : vector<2x8xf32>
    %1351 = arith.addf %1346, %1350 : vector<2x8xf32>
    %1352 = vector.extract_strided_slice %1327 {offsets = [0, 4], sizes = [2, 1], strides = [1, 1]} : vector<2x8xf32> to vector<2x1xf32>
    %1353 = vector.broadcast %1352 : vector<2x1xf32> to vector<2x8xf32>
    %1354 = vector.broadcast %319 : vector<1x8xf32> to vector<2x8xf32>
    %1355 = arith.mulf %1353, %1354 : vector<2x8xf32>
    %1356 = arith.addf %1351, %1355 : vector<2x8xf32>
    %1357 = vector.extract_strided_slice %1327 {offsets = [0, 5], sizes = [2, 1], strides = [1, 1]} : vector<2x8xf32> to vector<2x1xf32>
    %1358 = vector.broadcast %1357 : vector<2x1xf32> to vector<2x8xf32>
    %1359 = vector.broadcast %320 : vector<1x8xf32> to vector<2x8xf32>
    %1360 = arith.mulf %1358, %1359 : vector<2x8xf32>
    %1361 = arith.addf %1356, %1360 : vector<2x8xf32>
    %1362 = vector.extract_strided_slice %1327 {offsets = [0, 6], sizes = [2, 1], strides = [1, 1]} : vector<2x8xf32> to vector<2x1xf32>
    %1363 = vector.broadcast %1362 : vector<2x1xf32> to vector<2x8xf32>
    %1364 = vector.broadcast %321 : vector<1x8xf32> to vector<2x8xf32>
    %1365 = arith.mulf %1363, %1364 : vector<2x8xf32>
    %1366 = arith.addf %1361, %1365 : vector<2x8xf32>
    %1367 = vector.extract_strided_slice %1327 {offsets = [0, 7], sizes = [2, 1], strides = [1, 1]} : vector<2x8xf32> to vector<2x1xf32>
    %1368 = vector.broadcast %1367 : vector<2x1xf32> to vector<2x8xf32>
    %1369 = vector.broadcast %322 : vector<1x8xf32> to vector<2x8xf32>
    %1370 = arith.mulf %1368, %1369 : vector<2x8xf32>
    %1371 = arith.addf %1366, %1370 : vector<2x8xf32>
    %1372 = arith.mulf %1371, %379 : vector<2x8xf32>
    %cst_205 = arith.constant dense<0.000000e+00> : vector<2xf32>
    %1373 = vector.multi_reduction <add>, %1372, %cst_205 [1] : vector<2x8xf32> to vector<2xf32>
    %1374 = vector.shape_cast %1373 : vector<2xf32> to vector<2x1xf32>
    %1375 = arith.addf %1332, %1374 : vector<2x1xf32>
    %cst_206 = arith.constant 0.000000e+00 : f32
    %1376 = vector.broadcast %cst_206 : f32 to vector<2x1xf32>
    %1377 = arith.select %1329, %1375, %1376 : vector<2x1xi1>, vector<2x1xf32>
    %1378 = arith.addf %1191, %1377 : vector<2x1xf32>
    %1379 = vector.extract_strided_slice %1259 {offsets = [0, 0], sizes = [2, 1], strides = [1, 1]} : vector<2x8xf32> to vector<2x1xf32>
    %1380 = vector.broadcast %1379 : vector<2x1xf32> to vector<2x8xf32>
    %1381 = vector.broadcast %315 : vector<1x8xf32> to vector<2x8xf32>
    %1382 = arith.addf %1380, %1381 : vector<2x8xf32>
    %1383 = vector.extract_strided_slice %1259 {offsets = [0, 1], sizes = [2, 1], strides = [1, 1]} : vector<2x8xf32> to vector<2x1xf32>
    %1384 = vector.broadcast %1383 : vector<2x1xf32> to vector<2x8xf32>
    %1385 = vector.broadcast %316 : vector<1x8xf32> to vector<2x8xf32>
    %1386 = arith.addf %1384, %1385 : vector<2x8xf32>
    %1387 = vector.extract_strided_slice %1259 {offsets = [0, 2], sizes = [2, 1], strides = [1, 1]} : vector<2x8xf32> to vector<2x1xf32>
    %1388 = vector.broadcast %1387 : vector<2x1xf32> to vector<2x8xf32>
    %1389 = vector.broadcast %317 : vector<1x8xf32> to vector<2x8xf32>
    %1390 = arith.addf %1388, %1389 : vector<2x8xf32>
    %1391 = vector.extract_strided_slice %1259 {offsets = [0, 3], sizes = [2, 1], strides = [1, 1]} : vector<2x8xf32> to vector<2x1xf32>
    %1392 = vector.broadcast %1391 : vector<2x1xf32> to vector<2x8xf32>
    %1393 = vector.broadcast %318 : vector<1x8xf32> to vector<2x8xf32>
    %1394 = arith.addf %1392, %1393 : vector<2x8xf32>
    %1395 = vector.extract_strided_slice %1259 {offsets = [0, 4], sizes = [2, 1], strides = [1, 1]} : vector<2x8xf32> to vector<2x1xf32>
    %1396 = vector.broadcast %1395 : vector<2x1xf32> to vector<2x8xf32>
    %1397 = vector.broadcast %319 : vector<1x8xf32> to vector<2x8xf32>
    %1398 = arith.addf %1396, %1397 : vector<2x8xf32>
    %1399 = vector.extract_strided_slice %1259 {offsets = [0, 5], sizes = [2, 1], strides = [1, 1]} : vector<2x8xf32> to vector<2x1xf32>
    %1400 = vector.broadcast %1399 : vector<2x1xf32> to vector<2x8xf32>
    %1401 = vector.broadcast %320 : vector<1x8xf32> to vector<2x8xf32>
    %1402 = arith.addf %1400, %1401 : vector<2x8xf32>
    %1403 = vector.extract_strided_slice %1259 {offsets = [0, 6], sizes = [2, 1], strides = [1, 1]} : vector<2x8xf32> to vector<2x1xf32>
    %1404 = vector.broadcast %1403 : vector<2x1xf32> to vector<2x8xf32>
    %1405 = vector.broadcast %321 : vector<1x8xf32> to vector<2x8xf32>
    %1406 = arith.addf %1404, %1405 : vector<2x8xf32>
    %1407 = vector.extract_strided_slice %1259 {offsets = [0, 7], sizes = [2, 1], strides = [1, 1]} : vector<2x8xf32> to vector<2x1xf32>
    %1408 = vector.broadcast %1407 : vector<2x1xf32> to vector<2x8xf32>
    %1409 = vector.broadcast %322 : vector<1x8xf32> to vector<2x8xf32>
    %1410 = arith.addf %1408, %1409 : vector<2x8xf32>
    %1411 = arith.maximumf %1382, %1386 : vector<2x8xf32>
    %1412 = arith.maximumf %1411, %1390 : vector<2x8xf32>
    %1413 = arith.maximumf %1412, %1394 : vector<2x8xf32>
    %1414 = arith.maximumf %1413, %1398 : vector<2x8xf32>
    %1415 = arith.maximumf %1414, %1402 : vector<2x8xf32>
    %1416 = arith.maximumf %1415, %1406 : vector<2x8xf32>
    %1417 = arith.maximumf %1416, %1410 : vector<2x8xf32>
    %1418 = arith.subf %1382, %1417 : vector<2x8xf32>
    %1419 = math.exp %1418 : vector<2x8xf32>
    %1420 = arith.subf %1386, %1417 : vector<2x8xf32>
    %1421 = math.exp %1420 : vector<2x8xf32>
    %1422 = arith.addf %1419, %1421 : vector<2x8xf32>
    %1423 = arith.subf %1390, %1417 : vector<2x8xf32>
    %1424 = math.exp %1423 : vector<2x8xf32>
    %1425 = arith.addf %1422, %1424 : vector<2x8xf32>
    %1426 = arith.subf %1394, %1417 : vector<2x8xf32>
    %1427 = math.exp %1426 : vector<2x8xf32>
    %1428 = arith.addf %1425, %1427 : vector<2x8xf32>
    %1429 = arith.subf %1398, %1417 : vector<2x8xf32>
    %1430 = math.exp %1429 : vector<2x8xf32>
    %1431 = arith.addf %1428, %1430 : vector<2x8xf32>
    %1432 = arith.subf %1402, %1417 : vector<2x8xf32>
    %1433 = math.exp %1432 : vector<2x8xf32>
    %1434 = arith.addf %1431, %1433 : vector<2x8xf32>
    %1435 = arith.subf %1406, %1417 : vector<2x8xf32>
    %1436 = math.exp %1435 : vector<2x8xf32>
    %1437 = arith.addf %1434, %1436 : vector<2x8xf32>
    %1438 = arith.subf %1410, %1417 : vector<2x8xf32>
    %1439 = math.exp %1438 : vector<2x8xf32>
    %1440 = arith.addf %1437, %1439 : vector<2x8xf32>
    %1441 = math.log %1440 : vector<2x8xf32>
    %1442 = arith.addf %1417, %1441 : vector<2x8xf32>
    %1443 = arith.addf %1442, %374 : vector<2x8xf32>
    %1444 = vector.shape_cast %1329 : vector<2x1xi1> to vector<2x1xi1>
    %1445 = vector.broadcast %1444 : vector<2x1xi1> to vector<2x8xi1>
    %1446 = arith.select %1445, %1443, %1259 : vector<2x8xi1>, vector<2x8xf32>
    %1447 = vector.extract_strided_slice %1324 {offsets = [0, 0], sizes = [2, 1], strides = [1, 1]} : vector<2x8xf32> to vector<2x1xf32>
    %1448 = vector.broadcast %1447 : vector<2x1xf32> to vector<2x8xf32>
    %1449 = vector.broadcast %315 : vector<1x8xf32> to vector<2x8xf32>
    %1450 = arith.addf %1448, %1449 : vector<2x8xf32>
    %1451 = vector.extract_strided_slice %1324 {offsets = [0, 1], sizes = [2, 1], strides = [1, 1]} : vector<2x8xf32> to vector<2x1xf32>
    %1452 = vector.broadcast %1451 : vector<2x1xf32> to vector<2x8xf32>
    %1453 = vector.broadcast %316 : vector<1x8xf32> to vector<2x8xf32>
    %1454 = arith.addf %1452, %1453 : vector<2x8xf32>
    %1455 = vector.extract_strided_slice %1324 {offsets = [0, 2], sizes = [2, 1], strides = [1, 1]} : vector<2x8xf32> to vector<2x1xf32>
    %1456 = vector.broadcast %1455 : vector<2x1xf32> to vector<2x8xf32>
    %1457 = vector.broadcast %317 : vector<1x8xf32> to vector<2x8xf32>
    %1458 = arith.addf %1456, %1457 : vector<2x8xf32>
    %1459 = vector.extract_strided_slice %1324 {offsets = [0, 3], sizes = [2, 1], strides = [1, 1]} : vector<2x8xf32> to vector<2x1xf32>
    %1460 = vector.broadcast %1459 : vector<2x1xf32> to vector<2x8xf32>
    %1461 = vector.broadcast %318 : vector<1x8xf32> to vector<2x8xf32>
    %1462 = arith.addf %1460, %1461 : vector<2x8xf32>
    %1463 = vector.extract_strided_slice %1324 {offsets = [0, 4], sizes = [2, 1], strides = [1, 1]} : vector<2x8xf32> to vector<2x1xf32>
    %1464 = vector.broadcast %1463 : vector<2x1xf32> to vector<2x8xf32>
    %1465 = vector.broadcast %319 : vector<1x8xf32> to vector<2x8xf32>
    %1466 = arith.addf %1464, %1465 : vector<2x8xf32>
    %1467 = vector.extract_strided_slice %1324 {offsets = [0, 5], sizes = [2, 1], strides = [1, 1]} : vector<2x8xf32> to vector<2x1xf32>
    %1468 = vector.broadcast %1467 : vector<2x1xf32> to vector<2x8xf32>
    %1469 = vector.broadcast %320 : vector<1x8xf32> to vector<2x8xf32>
    %1470 = arith.addf %1468, %1469 : vector<2x8xf32>
    %1471 = vector.extract_strided_slice %1324 {offsets = [0, 6], sizes = [2, 1], strides = [1, 1]} : vector<2x8xf32> to vector<2x1xf32>
    %1472 = vector.broadcast %1471 : vector<2x1xf32> to vector<2x8xf32>
    %1473 = vector.broadcast %321 : vector<1x8xf32> to vector<2x8xf32>
    %1474 = arith.addf %1472, %1473 : vector<2x8xf32>
    %1475 = vector.extract_strided_slice %1324 {offsets = [0, 7], sizes = [2, 1], strides = [1, 1]} : vector<2x8xf32> to vector<2x1xf32>
    %1476 = vector.broadcast %1475 : vector<2x1xf32> to vector<2x8xf32>
    %1477 = vector.broadcast %322 : vector<1x8xf32> to vector<2x8xf32>
    %1478 = arith.addf %1476, %1477 : vector<2x8xf32>
    %c0_i32_207 = arith.constant 0 : i32
    %1479 = vector.broadcast %c0_i32_207 : i32 to vector<2x8xi32>
    %1480 = arith.cmpf ogt, %1454, %1450 : vector<2x8xf32>
    %c1_i32_208 = arith.constant 1 : i32
    %1481 = vector.broadcast %c1_i32_208 : i32 to vector<2x8xi32>
    %1482 = arith.select %1480, %1481, %1479 : vector<2x8xi1>, vector<2x8xi32>
    %1483 = arith.select %1480, %1454, %1450 : vector<2x8xi1>, vector<2x8xf32>
    %1484 = arith.cmpf ogt, %1458, %1483 : vector<2x8xf32>
    %c2_i32_209 = arith.constant 2 : i32
    %1485 = vector.broadcast %c2_i32_209 : i32 to vector<2x8xi32>
    %1486 = arith.select %1484, %1485, %1482 : vector<2x8xi1>, vector<2x8xi32>
    %1487 = arith.select %1484, %1458, %1483 : vector<2x8xi1>, vector<2x8xf32>
    %1488 = arith.cmpf ogt, %1462, %1487 : vector<2x8xf32>
    %c3_i32_210 = arith.constant 3 : i32
    %1489 = vector.broadcast %c3_i32_210 : i32 to vector<2x8xi32>
    %1490 = arith.select %1488, %1489, %1486 : vector<2x8xi1>, vector<2x8xi32>
    %1491 = arith.select %1488, %1462, %1487 : vector<2x8xi1>, vector<2x8xf32>
    %1492 = arith.cmpf ogt, %1466, %1491 : vector<2x8xf32>
    %c4_i32_211 = arith.constant 4 : i32
    %1493 = vector.broadcast %c4_i32_211 : i32 to vector<2x8xi32>
    %1494 = arith.select %1492, %1493, %1490 : vector<2x8xi1>, vector<2x8xi32>
    %1495 = arith.select %1492, %1466, %1491 : vector<2x8xi1>, vector<2x8xf32>
    %1496 = arith.cmpf ogt, %1470, %1495 : vector<2x8xf32>
    %c5_i32_212 = arith.constant 5 : i32
    %1497 = vector.broadcast %c5_i32_212 : i32 to vector<2x8xi32>
    %1498 = arith.select %1496, %1497, %1494 : vector<2x8xi1>, vector<2x8xi32>
    %1499 = arith.select %1496, %1470, %1495 : vector<2x8xi1>, vector<2x8xf32>
    %1500 = arith.cmpf ogt, %1474, %1499 : vector<2x8xf32>
    %c6_i32_213 = arith.constant 6 : i32
    %1501 = vector.broadcast %c6_i32_213 : i32 to vector<2x8xi32>
    %1502 = arith.select %1500, %1501, %1498 : vector<2x8xi1>, vector<2x8xi32>
    %1503 = arith.select %1500, %1474, %1499 : vector<2x8xi1>, vector<2x8xf32>
    %1504 = arith.cmpf ogt, %1478, %1503 : vector<2x8xf32>
    %c7_i32_214 = arith.constant 7 : i32
    %1505 = vector.broadcast %c7_i32_214 : i32 to vector<2x8xi32>
    %1506 = arith.select %1504, %1505, %1502 : vector<2x8xi1>, vector<2x8xi32>
    %1507 = arith.select %1504, %1478, %1503 : vector<2x8xi1>, vector<2x8xf32>
    %1508 = arith.addf %1507, %374 : vector<2x8xf32>
    %1509 = vector.shape_cast %1329 : vector<2x1xi1> to vector<2x1xi1>
    %1510 = vector.broadcast %1509 : vector<2x1xi1> to vector<2x8xi1>
    %1511 = arith.select %1510, %1508, %1324 : vector<2x8xi1>, vector<2x8xf32>
    %1512 = vector.shape_cast %1329 : vector<2x1xi1> to vector<2x1xi1>
    %1513 = vector.broadcast %1512 : vector<2x1xi1> to vector<2x8xi1>
    %1514 = arith.select %1513, %379, %1327 : vector<2x8xi1>, vector<2x8xf32>
    %c7_i32_215 = arith.constant 7 : i32
    %1515 = vector.broadcast %c7_i32_215 : i32 to vector<2x1xi32>
    %1516 = arith.cmpi sgt, %310, %1515 : vector<2x1xi32>
    %1517 = arith.mulf %382, %387 : vector<2x8xf32>
    %cst_216 = arith.constant dense<0.000000e+00> : vector<2xf32>
    %1518 = vector.multi_reduction <add>, %1517, %cst_216 [1] : vector<2x8xf32> to vector<2xf32>
    %1519 = vector.shape_cast %1518 : vector<2xf32> to vector<2x1xf32>
    %1520 = vector.extract_strided_slice %1514 {offsets = [0, 0], sizes = [2, 1], strides = [1, 1]} : vector<2x8xf32> to vector<2x1xf32>
    %1521 = vector.broadcast %1520 : vector<2x1xf32> to vector<2x8xf32>
    %1522 = vector.broadcast %315 : vector<1x8xf32> to vector<2x8xf32>
    %1523 = arith.mulf %1521, %1522 : vector<2x8xf32>
    %1524 = vector.extract_strided_slice %1514 {offsets = [0, 1], sizes = [2, 1], strides = [1, 1]} : vector<2x8xf32> to vector<2x1xf32>
    %1525 = vector.broadcast %1524 : vector<2x1xf32> to vector<2x8xf32>
    %1526 = vector.broadcast %316 : vector<1x8xf32> to vector<2x8xf32>
    %1527 = arith.mulf %1525, %1526 : vector<2x8xf32>
    %1528 = arith.addf %1523, %1527 : vector<2x8xf32>
    %1529 = vector.extract_strided_slice %1514 {offsets = [0, 2], sizes = [2, 1], strides = [1, 1]} : vector<2x8xf32> to vector<2x1xf32>
    %1530 = vector.broadcast %1529 : vector<2x1xf32> to vector<2x8xf32>
    %1531 = vector.broadcast %317 : vector<1x8xf32> to vector<2x8xf32>
    %1532 = arith.mulf %1530, %1531 : vector<2x8xf32>
    %1533 = arith.addf %1528, %1532 : vector<2x8xf32>
    %1534 = vector.extract_strided_slice %1514 {offsets = [0, 3], sizes = [2, 1], strides = [1, 1]} : vector<2x8xf32> to vector<2x1xf32>
    %1535 = vector.broadcast %1534 : vector<2x1xf32> to vector<2x8xf32>
    %1536 = vector.broadcast %318 : vector<1x8xf32> to vector<2x8xf32>
    %1537 = arith.mulf %1535, %1536 : vector<2x8xf32>
    %1538 = arith.addf %1533, %1537 : vector<2x8xf32>
    %1539 = vector.extract_strided_slice %1514 {offsets = [0, 4], sizes = [2, 1], strides = [1, 1]} : vector<2x8xf32> to vector<2x1xf32>
    %1540 = vector.broadcast %1539 : vector<2x1xf32> to vector<2x8xf32>
    %1541 = vector.broadcast %319 : vector<1x8xf32> to vector<2x8xf32>
    %1542 = arith.mulf %1540, %1541 : vector<2x8xf32>
    %1543 = arith.addf %1538, %1542 : vector<2x8xf32>
    %1544 = vector.extract_strided_slice %1514 {offsets = [0, 5], sizes = [2, 1], strides = [1, 1]} : vector<2x8xf32> to vector<2x1xf32>
    %1545 = vector.broadcast %1544 : vector<2x1xf32> to vector<2x8xf32>
    %1546 = vector.broadcast %320 : vector<1x8xf32> to vector<2x8xf32>
    %1547 = arith.mulf %1545, %1546 : vector<2x8xf32>
    %1548 = arith.addf %1543, %1547 : vector<2x8xf32>
    %1549 = vector.extract_strided_slice %1514 {offsets = [0, 6], sizes = [2, 1], strides = [1, 1]} : vector<2x8xf32> to vector<2x1xf32>
    %1550 = vector.broadcast %1549 : vector<2x1xf32> to vector<2x8xf32>
    %1551 = vector.broadcast %321 : vector<1x8xf32> to vector<2x8xf32>
    %1552 = arith.mulf %1550, %1551 : vector<2x8xf32>
    %1553 = arith.addf %1548, %1552 : vector<2x8xf32>
    %1554 = vector.extract_strided_slice %1514 {offsets = [0, 7], sizes = [2, 1], strides = [1, 1]} : vector<2x8xf32> to vector<2x1xf32>
    %1555 = vector.broadcast %1554 : vector<2x1xf32> to vector<2x8xf32>
    %1556 = vector.broadcast %322 : vector<1x8xf32> to vector<2x8xf32>
    %1557 = arith.mulf %1555, %1556 : vector<2x8xf32>
    %1558 = arith.addf %1553, %1557 : vector<2x8xf32>
    %1559 = arith.mulf %1558, %387 : vector<2x8xf32>
    %cst_217 = arith.constant dense<0.000000e+00> : vector<2xf32>
    %1560 = vector.multi_reduction <add>, %1559, %cst_217 [1] : vector<2x8xf32> to vector<2xf32>
    %1561 = vector.shape_cast %1560 : vector<2xf32> to vector<2x1xf32>
    %1562 = arith.addf %1519, %1561 : vector<2x1xf32>
    %cst_218 = arith.constant 0.000000e+00 : f32
    %1563 = vector.broadcast %cst_218 : f32 to vector<2x1xf32>
    %1564 = arith.select %1516, %1562, %1563 : vector<2x1xi1>, vector<2x1xf32>
    %1565 = arith.addf %1378, %1564 : vector<2x1xf32>
    %1566 = vector.extract_strided_slice %1446 {offsets = [0, 0], sizes = [2, 1], strides = [1, 1]} : vector<2x8xf32> to vector<2x1xf32>
    %1567 = vector.broadcast %1566 : vector<2x1xf32> to vector<2x8xf32>
    %1568 = vector.broadcast %315 : vector<1x8xf32> to vector<2x8xf32>
    %1569 = arith.addf %1567, %1568 : vector<2x8xf32>
    %1570 = vector.extract_strided_slice %1446 {offsets = [0, 1], sizes = [2, 1], strides = [1, 1]} : vector<2x8xf32> to vector<2x1xf32>
    %1571 = vector.broadcast %1570 : vector<2x1xf32> to vector<2x8xf32>
    %1572 = vector.broadcast %316 : vector<1x8xf32> to vector<2x8xf32>
    %1573 = arith.addf %1571, %1572 : vector<2x8xf32>
    %1574 = vector.extract_strided_slice %1446 {offsets = [0, 2], sizes = [2, 1], strides = [1, 1]} : vector<2x8xf32> to vector<2x1xf32>
    %1575 = vector.broadcast %1574 : vector<2x1xf32> to vector<2x8xf32>
    %1576 = vector.broadcast %317 : vector<1x8xf32> to vector<2x8xf32>
    %1577 = arith.addf %1575, %1576 : vector<2x8xf32>
    %1578 = vector.extract_strided_slice %1446 {offsets = [0, 3], sizes = [2, 1], strides = [1, 1]} : vector<2x8xf32> to vector<2x1xf32>
    %1579 = vector.broadcast %1578 : vector<2x1xf32> to vector<2x8xf32>
    %1580 = vector.broadcast %318 : vector<1x8xf32> to vector<2x8xf32>
    %1581 = arith.addf %1579, %1580 : vector<2x8xf32>
    %1582 = vector.extract_strided_slice %1446 {offsets = [0, 4], sizes = [2, 1], strides = [1, 1]} : vector<2x8xf32> to vector<2x1xf32>
    %1583 = vector.broadcast %1582 : vector<2x1xf32> to vector<2x8xf32>
    %1584 = vector.broadcast %319 : vector<1x8xf32> to vector<2x8xf32>
    %1585 = arith.addf %1583, %1584 : vector<2x8xf32>
    %1586 = vector.extract_strided_slice %1446 {offsets = [0, 5], sizes = [2, 1], strides = [1, 1]} : vector<2x8xf32> to vector<2x1xf32>
    %1587 = vector.broadcast %1586 : vector<2x1xf32> to vector<2x8xf32>
    %1588 = vector.broadcast %320 : vector<1x8xf32> to vector<2x8xf32>
    %1589 = arith.addf %1587, %1588 : vector<2x8xf32>
    %1590 = vector.extract_strided_slice %1446 {offsets = [0, 6], sizes = [2, 1], strides = [1, 1]} : vector<2x8xf32> to vector<2x1xf32>
    %1591 = vector.broadcast %1590 : vector<2x1xf32> to vector<2x8xf32>
    %1592 = vector.broadcast %321 : vector<1x8xf32> to vector<2x8xf32>
    %1593 = arith.addf %1591, %1592 : vector<2x8xf32>
    %1594 = vector.extract_strided_slice %1446 {offsets = [0, 7], sizes = [2, 1], strides = [1, 1]} : vector<2x8xf32> to vector<2x1xf32>
    %1595 = vector.broadcast %1594 : vector<2x1xf32> to vector<2x8xf32>
    %1596 = vector.broadcast %322 : vector<1x8xf32> to vector<2x8xf32>
    %1597 = arith.addf %1595, %1596 : vector<2x8xf32>
    %1598 = arith.maximumf %1569, %1573 : vector<2x8xf32>
    %1599 = arith.maximumf %1598, %1577 : vector<2x8xf32>
    %1600 = arith.maximumf %1599, %1581 : vector<2x8xf32>
    %1601 = arith.maximumf %1600, %1585 : vector<2x8xf32>
    %1602 = arith.maximumf %1601, %1589 : vector<2x8xf32>
    %1603 = arith.maximumf %1602, %1593 : vector<2x8xf32>
    %1604 = arith.maximumf %1603, %1597 : vector<2x8xf32>
    %1605 = arith.subf %1569, %1604 : vector<2x8xf32>
    %1606 = math.exp %1605 : vector<2x8xf32>
    %1607 = arith.subf %1573, %1604 : vector<2x8xf32>
    %1608 = math.exp %1607 : vector<2x8xf32>
    %1609 = arith.addf %1606, %1608 : vector<2x8xf32>
    %1610 = arith.subf %1577, %1604 : vector<2x8xf32>
    %1611 = math.exp %1610 : vector<2x8xf32>
    %1612 = arith.addf %1609, %1611 : vector<2x8xf32>
    %1613 = arith.subf %1581, %1604 : vector<2x8xf32>
    %1614 = math.exp %1613 : vector<2x8xf32>
    %1615 = arith.addf %1612, %1614 : vector<2x8xf32>
    %1616 = arith.subf %1585, %1604 : vector<2x8xf32>
    %1617 = math.exp %1616 : vector<2x8xf32>
    %1618 = arith.addf %1615, %1617 : vector<2x8xf32>
    %1619 = arith.subf %1589, %1604 : vector<2x8xf32>
    %1620 = math.exp %1619 : vector<2x8xf32>
    %1621 = arith.addf %1618, %1620 : vector<2x8xf32>
    %1622 = arith.subf %1593, %1604 : vector<2x8xf32>
    %1623 = math.exp %1622 : vector<2x8xf32>
    %1624 = arith.addf %1621, %1623 : vector<2x8xf32>
    %1625 = arith.subf %1597, %1604 : vector<2x8xf32>
    %1626 = math.exp %1625 : vector<2x8xf32>
    %1627 = arith.addf %1624, %1626 : vector<2x8xf32>
    %1628 = math.log %1627 : vector<2x8xf32>
    %1629 = arith.addf %1604, %1628 : vector<2x8xf32>
    %1630 = arith.addf %1629, %382 : vector<2x8xf32>
    %1631 = vector.shape_cast %1516 : vector<2x1xi1> to vector<2x1xi1>
    %1632 = vector.broadcast %1631 : vector<2x1xi1> to vector<2x8xi1>
    %1633 = arith.select %1632, %1630, %1446 : vector<2x8xi1>, vector<2x8xf32>
    %1634 = vector.extract_strided_slice %1511 {offsets = [0, 0], sizes = [2, 1], strides = [1, 1]} : vector<2x8xf32> to vector<2x1xf32>
    %1635 = vector.broadcast %1634 : vector<2x1xf32> to vector<2x8xf32>
    %1636 = vector.broadcast %315 : vector<1x8xf32> to vector<2x8xf32>
    %1637 = arith.addf %1635, %1636 : vector<2x8xf32>
    %1638 = vector.extract_strided_slice %1511 {offsets = [0, 1], sizes = [2, 1], strides = [1, 1]} : vector<2x8xf32> to vector<2x1xf32>
    %1639 = vector.broadcast %1638 : vector<2x1xf32> to vector<2x8xf32>
    %1640 = vector.broadcast %316 : vector<1x8xf32> to vector<2x8xf32>
    %1641 = arith.addf %1639, %1640 : vector<2x8xf32>
    %1642 = vector.extract_strided_slice %1511 {offsets = [0, 2], sizes = [2, 1], strides = [1, 1]} : vector<2x8xf32> to vector<2x1xf32>
    %1643 = vector.broadcast %1642 : vector<2x1xf32> to vector<2x8xf32>
    %1644 = vector.broadcast %317 : vector<1x8xf32> to vector<2x8xf32>
    %1645 = arith.addf %1643, %1644 : vector<2x8xf32>
    %1646 = vector.extract_strided_slice %1511 {offsets = [0, 3], sizes = [2, 1], strides = [1, 1]} : vector<2x8xf32> to vector<2x1xf32>
    %1647 = vector.broadcast %1646 : vector<2x1xf32> to vector<2x8xf32>
    %1648 = vector.broadcast %318 : vector<1x8xf32> to vector<2x8xf32>
    %1649 = arith.addf %1647, %1648 : vector<2x8xf32>
    %1650 = vector.extract_strided_slice %1511 {offsets = [0, 4], sizes = [2, 1], strides = [1, 1]} : vector<2x8xf32> to vector<2x1xf32>
    %1651 = vector.broadcast %1650 : vector<2x1xf32> to vector<2x8xf32>
    %1652 = vector.broadcast %319 : vector<1x8xf32> to vector<2x8xf32>
    %1653 = arith.addf %1651, %1652 : vector<2x8xf32>
    %1654 = vector.extract_strided_slice %1511 {offsets = [0, 5], sizes = [2, 1], strides = [1, 1]} : vector<2x8xf32> to vector<2x1xf32>
    %1655 = vector.broadcast %1654 : vector<2x1xf32> to vector<2x8xf32>
    %1656 = vector.broadcast %320 : vector<1x8xf32> to vector<2x8xf32>
    %1657 = arith.addf %1655, %1656 : vector<2x8xf32>
    %1658 = vector.extract_strided_slice %1511 {offsets = [0, 6], sizes = [2, 1], strides = [1, 1]} : vector<2x8xf32> to vector<2x1xf32>
    %1659 = vector.broadcast %1658 : vector<2x1xf32> to vector<2x8xf32>
    %1660 = vector.broadcast %321 : vector<1x8xf32> to vector<2x8xf32>
    %1661 = arith.addf %1659, %1660 : vector<2x8xf32>
    %1662 = vector.extract_strided_slice %1511 {offsets = [0, 7], sizes = [2, 1], strides = [1, 1]} : vector<2x8xf32> to vector<2x1xf32>
    %1663 = vector.broadcast %1662 : vector<2x1xf32> to vector<2x8xf32>
    %1664 = vector.broadcast %322 : vector<1x8xf32> to vector<2x8xf32>
    %1665 = arith.addf %1663, %1664 : vector<2x8xf32>
    %c0_i32_219 = arith.constant 0 : i32
    %1666 = vector.broadcast %c0_i32_219 : i32 to vector<2x8xi32>
    %1667 = arith.cmpf ogt, %1641, %1637 : vector<2x8xf32>
    %c1_i32_220 = arith.constant 1 : i32
    %1668 = vector.broadcast %c1_i32_220 : i32 to vector<2x8xi32>
    %1669 = arith.select %1667, %1668, %1666 : vector<2x8xi1>, vector<2x8xi32>
    %1670 = arith.select %1667, %1641, %1637 : vector<2x8xi1>, vector<2x8xf32>
    %1671 = arith.cmpf ogt, %1645, %1670 : vector<2x8xf32>
    %c2_i32_221 = arith.constant 2 : i32
    %1672 = vector.broadcast %c2_i32_221 : i32 to vector<2x8xi32>
    %1673 = arith.select %1671, %1672, %1669 : vector<2x8xi1>, vector<2x8xi32>
    %1674 = arith.select %1671, %1645, %1670 : vector<2x8xi1>, vector<2x8xf32>
    %1675 = arith.cmpf ogt, %1649, %1674 : vector<2x8xf32>
    %c3_i32_222 = arith.constant 3 : i32
    %1676 = vector.broadcast %c3_i32_222 : i32 to vector<2x8xi32>
    %1677 = arith.select %1675, %1676, %1673 : vector<2x8xi1>, vector<2x8xi32>
    %1678 = arith.select %1675, %1649, %1674 : vector<2x8xi1>, vector<2x8xf32>
    %1679 = arith.cmpf ogt, %1653, %1678 : vector<2x8xf32>
    %c4_i32_223 = arith.constant 4 : i32
    %1680 = vector.broadcast %c4_i32_223 : i32 to vector<2x8xi32>
    %1681 = arith.select %1679, %1680, %1677 : vector<2x8xi1>, vector<2x8xi32>
    %1682 = arith.select %1679, %1653, %1678 : vector<2x8xi1>, vector<2x8xf32>
    %1683 = arith.cmpf ogt, %1657, %1682 : vector<2x8xf32>
    %c5_i32_224 = arith.constant 5 : i32
    %1684 = vector.broadcast %c5_i32_224 : i32 to vector<2x8xi32>
    %1685 = arith.select %1683, %1684, %1681 : vector<2x8xi1>, vector<2x8xi32>
    %1686 = arith.select %1683, %1657, %1682 : vector<2x8xi1>, vector<2x8xf32>
    %1687 = arith.cmpf ogt, %1661, %1686 : vector<2x8xf32>
    %c6_i32_225 = arith.constant 6 : i32
    %1688 = vector.broadcast %c6_i32_225 : i32 to vector<2x8xi32>
    %1689 = arith.select %1687, %1688, %1685 : vector<2x8xi1>, vector<2x8xi32>
    %1690 = arith.select %1687, %1661, %1686 : vector<2x8xi1>, vector<2x8xf32>
    %1691 = arith.cmpf ogt, %1665, %1690 : vector<2x8xf32>
    %c7_i32_226 = arith.constant 7 : i32
    %1692 = vector.broadcast %c7_i32_226 : i32 to vector<2x8xi32>
    %1693 = arith.select %1691, %1692, %1689 : vector<2x8xi1>, vector<2x8xi32>
    %1694 = arith.select %1691, %1665, %1690 : vector<2x8xi1>, vector<2x8xf32>
    %1695 = arith.addf %1694, %382 : vector<2x8xf32>
    %1696 = vector.shape_cast %1516 : vector<2x1xi1> to vector<2x1xi1>
    %1697 = vector.broadcast %1696 : vector<2x1xi1> to vector<2x8xi1>
    %1698 = arith.select %1697, %1695, %1511 : vector<2x8xi1>, vector<2x8xf32>
    %1699 = vector.shape_cast %1516 : vector<2x1xi1> to vector<2x1xi1>
    %1700 = vector.broadcast %1699 : vector<2x1xi1> to vector<2x8xi1>
    %1701 = arith.select %1700, %387, %1514 : vector<2x8xi1>, vector<2x8xf32>
    %1702 = vector.broadcast %313 : vector<1x8xf32> to vector<2x8xf32>
    %1703 = arith.mulf %1702, %1701 : vector<2x8xf32>
    %cst_227 = arith.constant dense<0.000000e+00> : vector<2xf32>
    %1704 = vector.multi_reduction <add>, %1703, %cst_227 [1] : vector<2x8xf32> to vector<2xf32>
    %1705 = vector.shape_cast %1704 : vector<2xf32> to vector<2x1xf32>
    %1706 = vector.broadcast %313 : vector<1x8xf32> to vector<2x8xf32>
    %1707 = arith.addf %1633, %1706 : vector<2x8xf32>
    %cst_228 = arith.constant dense<0xFF800000> : vector<2xf32>
    %1708 = vector.multi_reduction <maximumf>, %1707, %cst_228 [1] : vector<2x8xf32> to vector<2xf32>
    %1709 = vector.shape_cast %1708 : vector<2xf32> to vector<2x1xf32>
    %1710 = vector.broadcast %1709 : vector<2x1xf32> to vector<2x8xf32>
    %1711 = arith.subf %1707, %1710 : vector<2x8xf32>
    %1712 = math.exp %1711 : vector<2x8xf32>
    %cst_229 = arith.constant dense<0.000000e+00> : vector<2xf32>
    %1713 = vector.multi_reduction <add>, %1712, %cst_229 [1] : vector<2x8xf32> to vector<2xf32>
    %1714 = vector.shape_cast %1713 : vector<2xf32> to vector<2x1xf32>
    %1715 = math.log %1714 : vector<2x1xf32>
    %1716 = arith.addf %1709, %1715 : vector<2x1xf32>
    %1717 = arith.addf %1565, %1705 : vector<2x1xf32>
    %1718 = arith.subf %1717, %1716 : vector<2x1xf32>
    %cst_230 = arith.constant 0.000000e+00 : f32
    %1719 = vector.broadcast %cst_230 : f32 to vector<2x1xf32>
    %1720 = arith.subf %1719, %1718 : vector<2x1xf32>
    %cst_231 = arith.constant dense<0.000000e+00> : vector<1xf32>
    %1721 = vector.multi_reduction <add>, %1720, %cst_231 [0] : vector<2x1xf32> to vector<1xf32>
    %1722 = vector.shape_cast %1721 : vector<1xf32> to vector<1x1xf32>
    %cst_232 = arith.constant 5.000000e-01 : f32
    %1723 = vector.broadcast %cst_232 : f32 to vector<1x1xf32>
    %1724 = arith.mulf %1722, %1723 : vector<1x1xf32>
    %c0_233 = arith.constant 0 : index
    %c0_234 = arith.constant 0 : index
    %1725 = vector.load %arg24[%c0_233, %c0_234] : memref<1x1xf32, #tpu.memory_space<vmem>>, vector<1x1xf32>
    tpu.vector_store %arg24[%c0_233, %c0_234], %1724 {strides = array<i32>} : memref<1x1xf32, #tpu.memory_space<vmem>>, vector<1x1xf32>,
    %1726 = vector.broadcast %313 : vector<1x8xf32> to vector<2x8xf32>
    %1727 = arith.addf %1698, %1726 : vector<2x8xf32>
    %cst_235 = arith.constant dense<0xFF800000> : vector<2xf32>
    %1728 = vector.multi_reduction <maximumf>, %1727, %cst_235 [1] : vector<2x8xf32> to vector<2xf32>
    %1729 = vector.shape_cast %1728 : vector<2xf32> to vector<2x1xf32>
    %1730 = vector.broadcast %1729 : vector<2x1xf32> to vector<2x8xf32>
    %1731 = arith.cmpf oge, %1727, %1730 : vector<2x8xf32>
    %c8_i32 = arith.constant 8 : i32
    %1732 = vector.broadcast %c8_i32 : i32 to vector<2x8xi32>
    %1733 = arith.select %1731, %323, %1732 : vector<2x8xi1>, vector<2x8xi32>
    %cst_236 = arith.constant dense<2147483647> : vector<2xi32>
    %1734 = vector.multi_reduction <minsi>, %1733, %cst_236 [1] : vector<2x8xi32> to vector<2xi32>
    %1735 = vector.shape_cast %1734 : vector<2xi32> to vector<2x1xi32>
    %1736 = vector.broadcast %1735 : vector<2x1xi32> to vector<2x8xi32>
    %1737 = arith.cmpi eq, %323, %1736 : vector<2x8xi32>
    %1738 = arith.extui %1737 : vector<2x8xi1> to vector<2x8xi32>
    %1739 = arith.sitofp %1738 : vector<2x8xi32> to vector<2x8xf32>
    %c1_i32_237 = arith.constant 1 : i32
    %1740 = vector.broadcast %c1_i32_237 : i32 to vector<2x1xi32>
    %1741 = arith.subi %310, %1740 : vector<2x1xi32>
    %c7_i32_238 = arith.constant 7 : i32
    %1742 = vector.broadcast %c7_i32_238 : i32 to vector<2x1xi32>
    %1743 = arith.cmpi eq, %1741, %1742 : vector<2x1xi32>
    %c0_i32_239 = arith.constant 0 : i32
    %1744 = vector.broadcast %c0_i32_239 : i32 to vector<2x1xi32>
    %1745 = arith.select %1743, %1735, %1744 : vector<2x1xi1>, vector<2x1xi32>
    %cst_240 = arith.constant 0.000000e+00 : f32
    %1746 = vector.broadcast %cst_240 : f32 to vector<2x8xf32>
    %1747 = vector.shape_cast %1743 : vector<2x1xi1> to vector<2x1xi1>
    %1748 = vector.broadcast %1747 : vector<2x1xi1> to vector<2x8xi1>
    %1749 = arith.select %1748, %1739, %1746 : vector<2x8xi1>, vector<2x8xf32>
    %1750 = arith.sitofp %1693 : vector<2x8xi32> to vector<2x8xf32>
    %1751 = arith.mulf %1750, %1749 : vector<2x8xf32>
    %cst_241 = arith.constant dense<0.000000e+00> : vector<2xf32>
    %1752 = vector.multi_reduction <add>, %1751, %cst_241 [1] : vector<2x8xf32> to vector<2xf32>
    %1753 = vector.shape_cast %1752 : vector<2xf32> to vector<2x1xf32>
    %1754 = arith.fptosi %1753 : vector<2x1xf32> to vector<2x1xi32>
    %c6_i32_242 = arith.constant 6 : i32
    %1755 = vector.broadcast %c6_i32_242 : i32 to vector<2x1xi32>
    %1756 = arith.cmpi eq, %1741, %1755 : vector<2x1xi32>
    %c6_i32_243 = arith.constant 6 : i32
    %1757 = vector.broadcast %c6_i32_243 : i32 to vector<2x1xi32>
    %1758 = arith.cmpi sge, %1741, %1757 : vector<2x1xi32>
    %1759 = arith.select %1756, %1735, %1754 : vector<2x1xi1>, vector<2x1xi32>
    %c0_i32_244 = arith.constant 0 : i32
    %1760 = vector.broadcast %c0_i32_244 : i32 to vector<2x1xi32>
    %1761 = arith.select %1758, %1759, %1760 : vector<2x1xi1>, vector<2x1xi32>
    %1762 = vector.broadcast %1759 : vector<2x1xi32> to vector<2x8xi32>
    %1763 = arith.cmpi eq, %323, %1762 : vector<2x8xi32>
    %1764 = arith.extui %1763 : vector<2x8xi1> to vector<2x8xi32>
    %1765 = arith.sitofp %1764 : vector<2x8xi32> to vector<2x8xf32>
    %1766 = vector.shape_cast %1758 : vector<2x1xi1> to vector<2x1xi1>
    %1767 = vector.broadcast %1766 : vector<2x1xi1> to vector<2x8xi1>
    %1768 = arith.select %1767, %1765, %1749 : vector<2x8xi1>, vector<2x8xf32>
    %1769 = arith.sitofp %1506 : vector<2x8xi32> to vector<2x8xf32>
    %1770 = arith.mulf %1769, %1768 : vector<2x8xf32>
    %cst_245 = arith.constant dense<0.000000e+00> : vector<2xf32>
    %1771 = vector.multi_reduction <add>, %1770, %cst_245 [1] : vector<2x8xf32> to vector<2xf32>
    %1772 = vector.shape_cast %1771 : vector<2xf32> to vector<2x1xf32>
    %1773 = arith.fptosi %1772 : vector<2x1xf32> to vector<2x1xi32>
    %c5_i32_246 = arith.constant 5 : i32
    %1774 = vector.broadcast %c5_i32_246 : i32 to vector<2x1xi32>
    %1775 = arith.cmpi eq, %1741, %1774 : vector<2x1xi32>
    %c5_i32_247 = arith.constant 5 : i32
    %1776 = vector.broadcast %c5_i32_247 : i32 to vector<2x1xi32>
    %1777 = arith.cmpi sge, %1741, %1776 : vector<2x1xi32>
    %1778 = arith.select %1775, %1735, %1773 : vector<2x1xi1>, vector<2x1xi32>
    %c0_i32_248 = arith.constant 0 : i32
    %1779 = vector.broadcast %c0_i32_248 : i32 to vector<2x1xi32>
    %1780 = arith.select %1777, %1778, %1779 : vector<2x1xi1>, vector<2x1xi32>
    %1781 = vector.broadcast %1778 : vector<2x1xi32> to vector<2x8xi32>
    %1782 = arith.cmpi eq, %323, %1781 : vector<2x8xi32>
    %1783 = arith.extui %1782 : vector<2x8xi1> to vector<2x8xi32>
    %1784 = arith.sitofp %1783 : vector<2x8xi32> to vector<2x8xf32>
    %1785 = vector.shape_cast %1777 : vector<2x1xi1> to vector<2x1xi1>
    %1786 = vector.broadcast %1785 : vector<2x1xi1> to vector<2x8xi1>
    %1787 = arith.select %1786, %1784, %1768 : vector<2x8xi1>, vector<2x8xf32>
    %1788 = arith.sitofp %1319 : vector<2x8xi32> to vector<2x8xf32>
    %1789 = arith.mulf %1788, %1787 : vector<2x8xf32>
    %cst_249 = arith.constant dense<0.000000e+00> : vector<2xf32>
    %1790 = vector.multi_reduction <add>, %1789, %cst_249 [1] : vector<2x8xf32> to vector<2xf32>
    %1791 = vector.shape_cast %1790 : vector<2xf32> to vector<2x1xf32>
    %1792 = arith.fptosi %1791 : vector<2x1xf32> to vector<2x1xi32>
    %c4_i32_250 = arith.constant 4 : i32
    %1793 = vector.broadcast %c4_i32_250 : i32 to vector<2x1xi32>
    %1794 = arith.cmpi eq, %1741, %1793 : vector<2x1xi32>
    %c4_i32_251 = arith.constant 4 : i32
    %1795 = vector.broadcast %c4_i32_251 : i32 to vector<2x1xi32>
    %1796 = arith.cmpi sge, %1741, %1795 : vector<2x1xi32>
    %1797 = arith.select %1794, %1735, %1792 : vector<2x1xi1>, vector<2x1xi32>
    %c0_i32_252 = arith.constant 0 : i32
    %1798 = vector.broadcast %c0_i32_252 : i32 to vector<2x1xi32>
    %1799 = arith.select %1796, %1797, %1798 : vector<2x1xi1>, vector<2x1xi32>
    %1800 = vector.broadcast %1797 : vector<2x1xi32> to vector<2x8xi32>
    %1801 = arith.cmpi eq, %323, %1800 : vector<2x8xi32>
    %1802 = arith.extui %1801 : vector<2x8xi1> to vector<2x8xi32>
    %1803 = arith.sitofp %1802 : vector<2x8xi32> to vector<2x8xf32>
    %1804 = vector.shape_cast %1796 : vector<2x1xi1> to vector<2x1xi1>
    %1805 = vector.broadcast %1804 : vector<2x1xi1> to vector<2x8xi1>
    %1806 = arith.select %1805, %1803, %1787 : vector<2x8xi1>, vector<2x8xf32>
    %1807 = arith.sitofp %1132 : vector<2x8xi32> to vector<2x8xf32>
    %1808 = arith.mulf %1807, %1806 : vector<2x8xf32>
    %cst_253 = arith.constant dense<0.000000e+00> : vector<2xf32>
    %1809 = vector.multi_reduction <add>, %1808, %cst_253 [1] : vector<2x8xf32> to vector<2xf32>
    %1810 = vector.shape_cast %1809 : vector<2xf32> to vector<2x1xf32>
    %1811 = arith.fptosi %1810 : vector<2x1xf32> to vector<2x1xi32>
    %c3_i32_254 = arith.constant 3 : i32
    %1812 = vector.broadcast %c3_i32_254 : i32 to vector<2x1xi32>
    %1813 = arith.cmpi eq, %1741, %1812 : vector<2x1xi32>
    %c3_i32_255 = arith.constant 3 : i32
    %1814 = vector.broadcast %c3_i32_255 : i32 to vector<2x1xi32>
    %1815 = arith.cmpi sge, %1741, %1814 : vector<2x1xi32>
    %1816 = arith.select %1813, %1735, %1811 : vector<2x1xi1>, vector<2x1xi32>
    %c0_i32_256 = arith.constant 0 : i32
    %1817 = vector.broadcast %c0_i32_256 : i32 to vector<2x1xi32>
    %1818 = arith.select %1815, %1816, %1817 : vector<2x1xi1>, vector<2x1xi32>
    %1819 = vector.broadcast %1816 : vector<2x1xi32> to vector<2x8xi32>
    %1820 = arith.cmpi eq, %323, %1819 : vector<2x8xi32>
    %1821 = arith.extui %1820 : vector<2x8xi1> to vector<2x8xi32>
    %1822 = arith.sitofp %1821 : vector<2x8xi32> to vector<2x8xf32>
    %1823 = vector.shape_cast %1815 : vector<2x1xi1> to vector<2x1xi1>
    %1824 = vector.broadcast %1823 : vector<2x1xi1> to vector<2x8xi1>
    %1825 = arith.select %1824, %1822, %1806 : vector<2x8xi1>, vector<2x8xf32>
    %1826 = arith.sitofp %945 : vector<2x8xi32> to vector<2x8xf32>
    %1827 = arith.mulf %1826, %1825 : vector<2x8xf32>
    %cst_257 = arith.constant dense<0.000000e+00> : vector<2xf32>
    %1828 = vector.multi_reduction <add>, %1827, %cst_257 [1] : vector<2x8xf32> to vector<2xf32>
    %1829 = vector.shape_cast %1828 : vector<2xf32> to vector<2x1xf32>
    %1830 = arith.fptosi %1829 : vector<2x1xf32> to vector<2x1xi32>
    %c2_i32_258 = arith.constant 2 : i32
    %1831 = vector.broadcast %c2_i32_258 : i32 to vector<2x1xi32>
    %1832 = arith.cmpi eq, %1741, %1831 : vector<2x1xi32>
    %c2_i32_259 = arith.constant 2 : i32
    %1833 = vector.broadcast %c2_i32_259 : i32 to vector<2x1xi32>
    %1834 = arith.cmpi sge, %1741, %1833 : vector<2x1xi32>
    %1835 = arith.select %1832, %1735, %1830 : vector<2x1xi1>, vector<2x1xi32>
    %c0_i32_260 = arith.constant 0 : i32
    %1836 = vector.broadcast %c0_i32_260 : i32 to vector<2x1xi32>
    %1837 = arith.select %1834, %1835, %1836 : vector<2x1xi1>, vector<2x1xi32>
    %1838 = vector.broadcast %1835 : vector<2x1xi32> to vector<2x8xi32>
    %1839 = arith.cmpi eq, %323, %1838 : vector<2x8xi32>
    %1840 = arith.extui %1839 : vector<2x8xi1> to vector<2x8xi32>
    %1841 = arith.sitofp %1840 : vector<2x8xi32> to vector<2x8xf32>
    %1842 = vector.shape_cast %1834 : vector<2x1xi1> to vector<2x1xi1>
    %1843 = vector.broadcast %1842 : vector<2x1xi1> to vector<2x8xi1>
    %1844 = arith.select %1843, %1841, %1825 : vector<2x8xi1>, vector<2x8xf32>
    %1845 = arith.sitofp %758 : vector<2x8xi32> to vector<2x8xf32>
    %1846 = arith.mulf %1845, %1844 : vector<2x8xf32>
    %cst_261 = arith.constant dense<0.000000e+00> : vector<2xf32>
    %1847 = vector.multi_reduction <add>, %1846, %cst_261 [1] : vector<2x8xf32> to vector<2xf32>
    %1848 = vector.shape_cast %1847 : vector<2xf32> to vector<2x1xf32>
    %1849 = arith.fptosi %1848 : vector<2x1xf32> to vector<2x1xi32>
    %c1_i32_262 = arith.constant 1 : i32
    %1850 = vector.broadcast %c1_i32_262 : i32 to vector<2x1xi32>
    %1851 = arith.cmpi eq, %1741, %1850 : vector<2x1xi32>
    %c1_i32_263 = arith.constant 1 : i32
    %1852 = vector.broadcast %c1_i32_263 : i32 to vector<2x1xi32>
    %1853 = arith.cmpi sge, %1741, %1852 : vector<2x1xi32>
    %1854 = arith.select %1851, %1735, %1849 : vector<2x1xi1>, vector<2x1xi32>
    %c0_i32_264 = arith.constant 0 : i32
    %1855 = vector.broadcast %c0_i32_264 : i32 to vector<2x1xi32>
    %1856 = arith.select %1853, %1854, %1855 : vector<2x1xi1>, vector<2x1xi32>
    %1857 = vector.broadcast %1854 : vector<2x1xi32> to vector<2x8xi32>
    %1858 = arith.cmpi eq, %323, %1857 : vector<2x8xi32>
    %1859 = arith.extui %1858 : vector<2x8xi1> to vector<2x8xi32>
    %1860 = arith.sitofp %1859 : vector<2x8xi32> to vector<2x8xf32>
    %1861 = vector.shape_cast %1853 : vector<2x1xi1> to vector<2x1xi1>
    %1862 = vector.broadcast %1861 : vector<2x1xi1> to vector<2x8xi1>
    %1863 = arith.select %1862, %1860, %1844 : vector<2x8xi1>, vector<2x8xf32>
    %1864 = arith.sitofp %571 : vector<2x8xi32> to vector<2x8xf32>
    %1865 = arith.mulf %1864, %1863 : vector<2x8xf32>
    %cst_265 = arith.constant dense<0.000000e+00> : vector<2xf32>
    %1866 = vector.multi_reduction <add>, %1865, %cst_265 [1] : vector<2x8xf32> to vector<2xf32>
    %1867 = vector.shape_cast %1866 : vector<2xf32> to vector<2x1xf32>
    %1868 = arith.fptosi %1867 : vector<2x1xf32> to vector<2x1xi32>
    %c0_i32_266 = arith.constant 0 : i32
    %1869 = vector.broadcast %c0_i32_266 : i32 to vector<2x1xi32>
    %1870 = arith.cmpi eq, %1741, %1869 : vector<2x1xi32>
    %c0_i32_267 = arith.constant 0 : i32
    %1871 = vector.broadcast %c0_i32_267 : i32 to vector<2x1xi32>
    %1872 = arith.cmpi sge, %1741, %1871 : vector<2x1xi32>
    %1873 = arith.select %1870, %1735, %1868 : vector<2x1xi1>, vector<2x1xi32>
    %c0_i32_268 = arith.constant 0 : i32
    %1874 = vector.broadcast %c0_i32_268 : i32 to vector<2x1xi32>
    %1875 = arith.select %1872, %1873, %1874 : vector<2x1xi1>, vector<2x1xi32>
    %1876 = tpu.concatenate %1875, %1856, %1837, %1818, %1799, %1780, %1761, %1745 in 1 : vector<2x1xi32>, vector<2x1xi32>, vector<2x1xi32>, vector<2x1xi32>, vector<2x1xi32>, vector<2x1xi32>, vector<2x1xi32>, vector<2x1xi32> -> vector<2x8xi32>
    %c0_269 = arith.constant 0 : index
    %c0_270 = arith.constant 0 : index
    %1877 = vector.load %arg25[%c0_269, %c0_270] : memref<2x8xi32, #tpu.memory_space<vmem>>, vector<2x8xi32>
    tpu.vector_store %arg25[%c0_269, %c0_270], %1876 {strides = array<i32>} : memref<2x8xi32, #tpu.memory_space<vmem>>, vector<2x8xi32>,
    return
  }
  func.func @transform_0(%arg0: i32) -> (i32, i32) {
    %c0_i32 = arith.constant 0 : i32
    %c0_i32_0 = arith.constant 0 : i32
    %c0_i32_1 = arith.constant 0 : i32
    return %c0_i32, %c0_i32_0 : i32, i32
  }
  func.func @transform_1(%arg0: i32) -> (i32, i32, i32) {
    %c0_i32 = arith.constant 0 : i32
    %c0_i32_0 = arith.constant 0 : i32
    %c0_i32_1 = arith.constant 0 : i32
    %c0_i32_2 = arith.constant 0 : i32
    return %c0_i32, %c0_i32_0, %c0_i32_1 : i32, i32, i32
  }
  func.func @transform_2(%arg0: i32) -> (i32, i32) {
    %c0_i32 = arith.constant 0 : i32
    %c0_i32_0 = arith.constant 0 : i32
    %c0_i32_1 = arith.constant 0 : i32
    return %c0_i32, %c0_i32_0 : i32, i32
  }
  func.func @transform_3(%arg0: i32) -> (i32, i32) {
    %c0_i32 = arith.constant 0 : i32
    %c0_i32_0 = arith.constant 0 : i32
    %c0_i32_1 = arith.constant 0 : i32
    return %c0_i32, %c0_i32_0 : i32, i32
  }
  func.func @transform_4(%arg0: i32) -> (i32, i32) {
    %c0_i32 = arith.constant 0 : i32
    %c0_i32_0 = arith.constant 0 : i32
    %c0_i32_1 = arith.constant 0 : i32
    return %c0_i32, %c0_i32_0 : i32, i32
  }
  func.func @transform_5(%arg0: i32) -> (i32, i32) {
    %c0_i32 = arith.constant 0 : i32
    %c0_i32_0 = arith.constant 0 : i32
    %c0_i32_1 = arith.constant 0 : i32
    return %c0_i32, %c0_i32_0 : i32, i32
  }
  func.func @transform_6(%arg0: i32) -> (i32, i32, i32) {
    %c0_i32 = arith.constant 0 : i32
    %c0_i32_0 = arith.constant 0 : i32
    %c0_i32_1 = arith.constant 0 : i32
    %c0_i32_2 = arith.constant 0 : i32
    return %c0_i32, %c0_i32_0, %c0_i32_1 : i32, i32, i32
  }
  func.func @transform_7(%arg0: i32) -> (i32, i32, i32) {
    %c0_i32 = arith.constant 0 : i32
    %c0_i32_0 = arith.constant 0 : i32
    %c0_i32_1 = arith.constant 0 : i32
    %c0_i32_2 = arith.constant 0 : i32
    return %c0_i32, %c0_i32_0, %c0_i32_1 : i32, i32, i32
  }
  func.func @transform_8(%arg0: i32) -> (i32, i32, i32) {
    %c0_i32 = arith.constant 0 : i32
    %c0_i32_0 = arith.constant 0 : i32
    %c0_i32_1 = arith.constant 0 : i32
    %c0_i32_2 = arith.constant 0 : i32
    return %c0_i32, %c0_i32_0, %c0_i32_1 : i32, i32, i32
  }
  func.func @transform_9(%arg0: i32) -> (i32, i32, i32) {
    %c0_i32 = arith.constant 0 : i32
    %c0_i32_0 = arith.constant 0 : i32
    %c0_i32_1 = arith.constant 0 : i32
    %c0_i32_2 = arith.constant 0 : i32
    return %c0_i32, %c0_i32_0, %c0_i32_1 : i32, i32, i32
  }
  func.func @transform_10(%arg0: i32) -> (i32, i32, i32) {
    %c0_i32 = arith.constant 0 : i32
    %c0_i32_0 = arith.constant 0 : i32
    %c0_i32_1 = arith.constant 0 : i32
    %c0_i32_2 = arith.constant 0 : i32
    return %c0_i32, %c0_i32_0, %c0_i32_1 : i32, i32, i32
  }
  func.func @transform_11(%arg0: i32) -> (i32, i32, i32) {
    %c0_i32 = arith.constant 0 : i32
    %c0_i32_0 = arith.constant 0 : i32
    %c0_i32_1 = arith.constant 0 : i32
    %c0_i32_2 = arith.constant 0 : i32
    return %c0_i32, %c0_i32_0, %c0_i32_1 : i32, i32, i32
  }
  func.func @transform_12(%arg0: i32) -> (i32, i32, i32) {
    %c0_i32 = arith.constant 0 : i32
    %c0_i32_0 = arith.constant 0 : i32
    %c0_i32_1 = arith.constant 0 : i32
    %c0_i32_2 = arith.constant 0 : i32
    return %c0_i32, %c0_i32_0, %c0_i32_1 : i32, i32, i32
  }
  func.func @transform_13(%arg0: i32) -> (i32, i32, i32) {
    %c0_i32 = arith.constant 0 : i32
    %c0_i32_0 = arith.constant 0 : i32
    %c0_i32_1 = arith.constant 0 : i32
    %c0_i32_2 = arith.constant 0 : i32
    return %c0_i32, %c0_i32_0, %c0_i32_1 : i32, i32, i32
  }
  func.func @transform_14(%arg0: i32) -> (i32, i32, i32) {
    %c0_i32 = arith.constant 0 : i32
    %c0_i32_0 = arith.constant 0 : i32
    %c0_i32_1 = arith.constant 0 : i32
    %c0_i32_2 = arith.constant 0 : i32
    return %c0_i32, %c0_i32_0, %c0_i32_1 : i32, i32, i32
  }
  func.func @transform_15(%arg0: i32) -> (i32, i32, i32) {
    %c0_i32 = arith.constant 0 : i32
    %c0_i32_0 = arith.constant 0 : i32
    %c0_i32_1 = arith.constant 0 : i32
    %c0_i32_2 = arith.constant 0 : i32
    return %c0_i32, %c0_i32_0, %c0_i32_1 : i32, i32, i32
  }
  func.func @transform_16(%arg0: i32) -> (i32, i32, i32) {
    %c0_i32 = arith.constant 0 : i32
    %c0_i32_0 = arith.constant 0 : i32
    %c0_i32_1 = arith.constant 0 : i32
    %c0_i32_2 = arith.constant 0 : i32
    return %c0_i32, %c0_i32_0, %c0_i32_1 : i32, i32, i32
  }
  func.func @transform_17(%arg0: i32) -> (i32, i32, i32) {
    %c0_i32 = arith.constant 0 : i32
    %c0_i32_0 = arith.constant 0 : i32
    %c0_i32_1 = arith.constant 0 : i32
    %c0_i32_2 = arith.constant 0 : i32
    return %c0_i32, %c0_i32_0, %c0_i32_1 : i32, i32, i32
  }
  func.func @transform_18(%arg0: i32) -> (i32, i32) {
    %c0_i32 = arith.constant 0 : i32
    %c0_i32_0 = arith.constant 0 : i32
    %c0_i32_1 = arith.constant 0 : i32
    return %c0_i32, %c0_i32_0 : i32, i32
  }
  func.func @transform_19(%arg0: i32) -> (i32, i32) {
    %c0_i32 = arith.constant 0 : i32
    %c0_i32_0 = arith.constant 0 : i32
    %c0_i32_1 = arith.constant 0 : i32
    return %c0_i32, %c0_i32_0 : i32, i32
  }
  func.func @transform_20(%arg0: i32) -> (i32, i32) {
    %c0_i32 = arith.constant 0 : i32
    %c0_i32_0 = arith.constant 0 : i32
    %c0_i32_1 = arith.constant 0 : i32
    return %c0_i32, %c0_i32_0 : i32, i32
  }
  func.func @transform_21(%arg0: i32) -> (i32, i32) {
    %c0_i32 = arith.constant 0 : i32
    %c0_i32_0 = arith.constant 0 : i32
    %c0_i32_1 = arith.constant 0 : i32
    return %c0_i32, %c0_i32_0 : i32, i32
  }
  func.func @transform_22(%arg0: i32) -> (i32, i32) {
    %c0_i32 = arith.constant 0 : i32
    %c0_i32_0 = arith.constant 0 : i32
    %c0_i32_1 = arith.constant 0 : i32
    return %c0_i32, %c0_i32_0 : i32, i32
  }
  func.func @transform_23(%arg0: i32) -> (i32, i32) {
    %c0_i32 = arith.constant 0 : i32
    %c0_i32_0 = arith.constant 0 : i32
    %c0_i32_1 = arith.constant 0 : i32
    return %c0_i32, %c0_i32_0 : i32, i32
  }
  func.func @transform_24(%arg0: i32) -> (i32, i32) {
    %c0_i32 = arith.constant 0 : i32
    %c0_i32_0 = arith.constant 0 : i32
    %c0_i32_1 = arith.constant 0 : i32
    return %c0_i32, %c0_i32_0 : i32, i32
  }
}

</mosaic_0001>

<bundles_post_ra>
// kernel: bert_crf_forward.1
= control target key start
LH: loop header
LB: loop body
LE: loop exit
PB: predicated region body
PF: predicated region fallthrough
CT: control target
= control target key end

     0   :  { %s6277_s0 = inlined_call_operand.vmem [shape: f32[16,32], index: 0, kind: input, shape index: {}]   ;;  %s6278_s1 = inlined_call_operand.vmem [shape: f32[2,1,8], index: 1, kind: input, shape index: {}]   ;;  %s6279_s2 = inlined_call_operand.vmem [shape: s32[2,1], index: 2, kind: input, shape index: {}]   ;;  %s6280_s3 = inlined_call_operand.vmem [shape: s32[2,8], index: 3, kind: input, shape index: {}]   ;;  %s6281_s4 = inlined_call_operand.vmem [shape: f32[1,32], index: 4, kind: input, shape index: {}]   ;;  %s6282_s5 = inlined_call_operand.vmem [shape: f32[1,32], index: 5, kind: input, shape index: {}]   ;;  %s6283_s6 = inlined_call_operand.vmem [shape: bf16[2,32,96], index: 6, kind: input, shape index: {}]   ;;  %s6284_s7 = inlined_call_operand.vmem [shape: f32[2,1,96], index: 7, kind: input, shape index: {}]   ;;  %s6285_s8 = inlined_call_operand.vmem [shape: bf16[2,32,32], index: 8, kind: input, shape index: {}]   ;;  %s6286_s9 = inlined_call_operand.vmem [shape: f32[2,1,32], index: 9, kind: input, shape index: {}]   ;;  %s6287_s10 = inlined_call_operand.vmem [shape: f32[2,1,32], index: 10, kind: input, shape index: {}]   ;;  %s6288_s11 = inlined_call_operand.vmem [shape: f32[2,1,32], index: 11, kind: input, shape index: {}]   ;;  %s6289_s12 = inlined_call_operand.vmem [shape: bf16[2,32,64], index: 12, kind: input, shape index: {}]   ;;  %s6290_s13 = inlined_call_operand.vmem [shape: f32[2,1,64], index: 13, kind: input, shape index: {}]   ;;  %s6291_s14 = inlined_call_operand.vmem [shape: bf16[2,64,32], index: 14, kind: input, shape index: {}]   ;;  %s6292_s15 = inlined_call_operand.vmem [shape: f32[2,1,32], index: 15, kind: input, shape index: {}]   ;;  %s6293_s16 = inlined_call_operand.vmem [shape: f32[2,1,32], index: 16, kind: input, shape index: {}]   ;;  %s6294_s17 = inlined_call_operand.vmem [shape: f32[2,1,32], index: 17, kind: input, shape index: {}]   ;;  %s6295_s18 = inlined_call_operand.vmem [shape: bf16[32,8], index: 18, kind: input, shape index: {}]   ;;  %s6296_s19 = inlined_call_operand.vmem [shape: f32[1,8], index: 19, kind: input, shape index: {}]   ;;  %s6297_s20 = inlined_call_operand.vmem [shape: f32[1,8], index: 20, kind: input, shape index: {}]   ;;  %s6298_s21 = inlined_call_operand.vmem [shape: f32[1,8], index: 21, kind: input, shape index: {}]   ;;  %s6299_s22 = inlined_call_operand.vmem [shape: f32[8,8], index: 22, kind: input, shape index: {}]   ;;  %s6300_s23 = inlined_call_operand.hbm [shape: f32[1,1], index: 23, kind: output, shape index: {0}]   ;;  %s6301_s24 = inlined_call_operand.hbm [shape: s32[2,8], index: 24, kind: output, shape index: {1}]  }
   0x1   :  { %6346 = sst [smem:[#allocation23_spill]] %s6277_s0 }
   0x2   :  { %6347 = sst [smem:[#allocation24_spill]] %s6278_s1 }
   0x3   :  { %6348 = sst [smem:[#allocation25_spill]] %s6279_s2 }
   0x4   :  { %6349 = sst [smem:[#allocation26_spill]] %s6280_s3 }
   0x5   :  { %6350 = sst [smem:[#allocation27_spill]] %s6281_s4 }
   0x6   :  { %6351 = sst [smem:[#allocation28_spill]] %s6282_s5 }
   0x7   :  { %6352 = sst [smem:[#allocation29_spill]] %s6283_s6 }
   0x8   :  { %6353 = sst [smem:[#allocation30_spill]] %s6284_s7 }
   0x9   :  { %6354 = sst [smem:[#allocation31_spill]] %s6285_s8 }
   0xa   :  { %30 = vsyncpa [#allocation3], 0  ;;  %s6355_s27 = sld [smem:[#allocation23_spill]]  ;;  %vm83_vm0 = vcmask 261120  }
  0x10   :  { %v79_v0 = vld [vmem:[%s6355_s27] sm:$0xff]  ;;  %v80_v1 = vld [vmem:[%s6355_s27 + $0x8] sm:$0xff] }
  0x11   :  { %v84_v2 = vsel %vm83_vm0, %v79_v0, 0.0  ;;  %v87_v3 = vsel %vm83_vm0, %v80_v1, 0.0 }
  0x12   :  { %85 = vadd.xlane.f32.xlu0 %v84_v2 }
  0x16   :  { %88 = vadd.xlane.f32.xlu0 %v87_v3 }
  0x17   :  { %31 = vsyncpa [#allocation5], 0  ;;  %s6356_s0 = sld [smem:[#allocation29_spill]]  ;;  %v6329_v15 = vmov 0.0   ;;  %vm4720_vm1 = vmmov 0   ;;  %s4721_s6 = smov 96  }
  0x18   :  { %3962 = vmatprep.subr.bf16.mxu0 %v6329_v15  ;;  %3966 = vmatprep.mubr.msk.bf16.mxu0 %vm4720_vm1, %v6329_v15  ;;  %s6357_s8 = sld [smem:[#allocation27_spill]]  ;;  %vm214_vm2 = vcmask 130048   ;;  %vm310_vm3 = vcmask 64512   ;;  %s4722_s25 = smov 64   ;;  %vm340_vm4 = vcmask 1043456   ;;  %vm902_vm5 = vcmask 523264  }
  0x19   :  { %3970 = vmatprep.subr.bf16.mxu1 %v6329_v15  ;;  %3972 = vmatprep.mubr.msk.bf16.mxu1 %vm4720_vm1, %v6329_v15  ;;  %s6358_s5 = sld [smem:[#allocation28_spill]]  ;;  %s4724_s4 = smov 112   ;;  %vm1931_vm6 = vcmask 1040384  }
  0x1a   :  { %s6359_s28 = sld [smem:[#allocation30_spill]]  ;;  %s6309_s1 = smov 48  }
  0x1b   :  { %s6360_s7 = sld [smem:[#allocation24_spill]]  ;;  %s6363_s3 = smov 16  }
  0x1c   :  { %s6361_s27 = sld [smem:[#allocation31_spill]]  ;;  %s4741_s26 = smov 7  }
  0x1d   :  { %v4461_v14 = vld [vmem:[%s6356_s0 + $0x8] sm:$0xff]   ;;  %v4462_v16 = vld [vmem:[%s6356_s0] sm:$0xff]   ;;  %s4742_s2 = smov [#allocation2]  }
  0x1e   :  { %3963 = vmatpush3.bf16.msra.mxu0 %v4461_v14  ;;  %v3785_v25 = vld [vmem:[%s6357_s8] ss:$0 sm:$0xff]  ;;  %s4723_s8 = smov 80   ;;  %s3763_s29 = sshll.u32 %s4742_s2, 4  ;;  %s3764_s29 = int_to_ptr.vmem [resolvable:$true] %s3763_s29 }
  0x1f   :  { %3964 = vmatprep.subr.bf16.mxu0 %v6329_v15  ;;  %v3786_v29 = vld [vmem:[%s6358_s5] ss:$0 sm:$0xff]  ;;  %s4739_s5 = smov 5   ;;  %p4680_p1 = scmp.lt.s32.totalorder %s3764_s29, %s3764_s29 }
  0x20   :  { %v3787_v34 = vld [vmem:[%s6359_s28] ss:$0 sm:$0xff] }
  0x21   :  { %v4934_v47 = vld [vmem:[%s6360_s7] ss:$0 sm:$0xff]  ;;  %v4940_v51 = vld [vmem:[%s6360_s7 + $0x1] ss:$0 sm:$0xff]  ;;  %s6308_s7 = smov 16  }
  0x22   :  { %3965 = vmatpush3.bf16.msra.mxu0 %v4462_v16 }
  0x23   :  { %3976 = vmatprep.subr.bf16.mxu0 %v6329_v15 }
  0x9b   :  { %v86_v4 = vpop.xlane.xlu0 %85 }
  0x9c   :  { %v91_v5 = vmul.f32 0.03125, %v86_v4 }
  0x9e   :  { %v93_v6 = vsub.f32 %v79_v0, %v91_v5 }
  0x9f   :  { %v89_v7 = vpop.xlane.xlu0 %88 }
  0xa0   :  { %v92_v8 = vmul.f32 0.03125, %v89_v7  ;;  %v95_v9 = vmul.f32 %v93_v6, %v93_v6 }
  0xa2   :  { %v94_v10 = vsub.f32 %v80_v1, %v92_v8  ;;  %v97_v11 = vsel %vm83_vm0, %v95_v9, 0.0 }
  0xa3   :  { %98 = vadd.xlane.f32.xlu1 %v97_v11 }
  0xa4   :  { %v96_v12 = vmul.f32 %v94_v10, %v94_v10 }
  0xa6   :  { %v100_v13 = vsel %vm83_vm0, %v96_v12, 0.0 }
  0xa7   :  { %101 = vadd.xlane.f32.xlu1 %v100_v13 }
 0x12c   :  { %v99_v17 = vpop.xlane.xlu1 %98 }
 0x12d   :  { %v103_v18 = vmul.f32 0.03125, %v99_v17 }
 0x12f   :  { %v105_v19 = vadd.f32 1e-12, %v103_v18 }
 0x130   :  { %v102_v20 = vpop.xlane.xlu1 %101 }
 0x131   :  { %4483 = vrsqrt.f32 %v105_v19  ;;  %v104_v21 = vmul.f32 0.03125, %v102_v20 }
 0x133   :  { %v106_v22 = vadd.f32 1e-12, %v104_v21 }
 0x135   :  { %4485 = vrsqrt.f32 %v106_v22 }
 0x13e   :  { %v4484_v23 = vpop.eup %4483 }
 0x13f   :  { %v109_v24 = vmul.f32 %v4484_v23, %v93_v6 }
 0x141   :  { %v117_v28 = vmul.f32 %v3785_v25, %v109_v24 }
 0x142   :  { %v4486_v26 = vpop.eup %4485 }
 0x143   :  { %v110_v27 = vmul.f32 %v4486_v26, %v94_v10  ;;  %v4899_v31 = vadd.f32 %v3786_v29, %v117_v28 }
 0x145   :  { %v118_v30 = vmul.f32 %v3785_v25, %v110_v27 }
 0x147   :  { %v4901_v32 = vadd.f32 %v3786_v29, %v118_v30 }
 0x149   :  { %v133_v33 = vpack.c.bf16 %v4901_v32, %v4899_v31 }
 0x14b   :  { %3967 = vmatmul.mubr.msk.bf16.vlgmr.msra.gmra.mxu0 %vm83_vm0, %v133_v33 }
 0x14c   :  { %3978 = vmatprep.mubr.msk.bf16.mxu0 %vm4720_vm1, %v6329_v15 }
 0x20b   :  { %v190_v35 = vpop.f32.mrf.mxu0 }
 0x20c   :  { %v191_v36 = vadd.f32 %v3787_v34, %v190_v35 }
 0x20d   :  { %v3968_v37 = vpop.f32.mrf.mxu0 }
 0x20e   :  { %v4911_v38 = vpack.c.bf16 %v191_v36, %v191_v36 }
 0x20f   :  { %v193_v39 = vpop.f32.mrf.mxu0 }
 0x210   :  { %v194_v40 = vadd.f32 %v3787_v34, %v193_v39  ;;  %212 = vrot.lane.b32.xlu0 %v4911_v38, %s4721_s6 }
 0x211   :  { %v3969_v41 = vpop.f32.mrf.mxu0 }
 0x212   :  { %v4915_v42 = vpack.c.bf16 %v194_v40, %v194_v40 }
 0x214   :  { %262 = vrot.lane.b32.xlu1 %v4915_v42, %s4721_s6 }
 0x282   :  { %v213_v43 = vpop.permute.xlu0 %212 }
 0x283   :  { %v219_v44 = vsel %vm214_vm2, %v213_v43, 0 }
 0x284   :  { %3971 = vmatpush3.bf16.xpose.msra.mxu1 %v219_v44 }
 0x285   :  { %3982 = vmatprep.subr.bf16.mxu1 %v6329_v15 }
 0x286   :  { %v263_v45 = vpop.permute.xlu1 %262 }
 0x287   :  { %v268_v46 = vsel %vm214_vm2, %v263_v45, 0 }
 0x288   :  { %3977 = vmatpush3.bf16.xpose.msra.mxu0 %v268_v46 }
 0x289   :  { %3988 = vmatprep.subr.bf16.mxu0 %v6329_v15 }
 0x28b   :  { %3973 = vmatmul.mubr.msk.bf16.vlgmr.msra.gmra.mxu1 %vm214_vm2, %v4911_v38 }
 0x28c   :  { %3984 = vmatprep.mubr.msk.bf16.mxu1 %vm4720_vm1, %v6329_v15 }
 0x28f   :  { %3979 = vmatmul.mubr.msk.bf16.vlgmr.msra.gmra.mxu0 %vm214_vm2, %v4915_v42 }
 0x290   :  { %3990 = vmatprep.mubr.msk.bf16.mxu0 %vm4720_vm1, %v6329_v15 }
 0x34b   :  { %v255_v48 = vpop.f32.mrf.mxu1 }
 0x34c   :  { %v256_v49 = vadd.f32 %v4934_v47, %v255_v48 }
 0x34d   :  { %v3974_v50 = vpop.f32.mrf.mxu1 }
 0x34e   :  { %v311_v52 = vsel %vm310_vm3, %v256_v49, -inf }
 0x34f   :  { %v258_v53 = vpop.f32.mrf.mxu1  ;;  %312 = vmax.xlane.f32.xlu1 %v311_v52  ;;  %v304_v54 = vpop.f32.mrf.mxu0 }
 0x350   :  { %v305_v55 = vadd.f32 %v4940_v51, %v304_v54 }
 0x351   :  { %v3975_v56 = vpop.f32.mrf.mxu1  ;;  %v3980_v57 = vpop.f32.mrf.mxu0 }
 0x352   :  { %v314_v58 = vsel %vm310_vm3, %v305_v55, -inf }
 0x353   :  { %315 = vmax.xlane.f32.xlu0 %v314_v58  ;;  %v307_v59 = vpop.f32.mrf.mxu0 }
 0x355   :  { %v3981_v60 = vpop.f32.mrf.mxu0 }
 0x360   :  { %384 = vrot.lane.b32.xlu1 %v4915_v42, %s4722_s25 }
 0x364   :  { %434 = vrot.lane.b32.xlu1 %v4911_v38, %s4723_s8 }
 0x3d8   :  { %v313_v61 = vpop.xlane.xlu1 %312 }
 0x3d9   :  { %v317_v62 = vsub.f32 %v256_v49, %v313_v61 }
 0x3db   :  { %v319_v63 = vmul.f32 1.442695, %v317_v62 }
 0x3dc   :  { %v385_v0 = vpop.permute.xlu1 %384  ;;  %v316_v1 = vpop.xlane.xlu0 %315 }
 0x3dd   :  { %4487 = vpow2.f32 %v319_v63  ;;  %v390_v2 = vsel %vm340_vm4, %v385_v0, 0  ;;  %v318_v3 = vsub.f32 %v305_v55, %v316_v1 }
 0x3de   :  { %3989 = vmatpush3.bf16.msra.mxu0 %v390_v2 }
 0x3df   :  { %v321_v4 = vmul.f32 1.442695, %v318_v3  ;;  %4000 = vmatprep.subr.bf16.mxu0 %v6329_v15 }
 0x3e0   :  { %v435_v9 = vpop.permute.xlu1 %434 }
 0x3e1   :  { %4489 = vpow2.f32 %v321_v4  ;;  %v440_v19 = vsel %vm214_vm2, %v435_v9, 0  ;;  %v4464_v9 = vld [vmem:[%s6361_s27] sm:$0xff]  }
 0x3ea   :  { %v4488_v5 = vpop.eup %4487 }
 0x3eb   :  { %v323_v6 = vsel %vm310_vm3, %v4488_v5, 0.0 }
 0x3ec   :  { %324 = vadd.xlane.f32.xlu0 %v323_v6 }
 0x3ee   :  { %v4490_v7 = vpop.eup %4489 }
 0x3ef   :  { %v326_v8 = vsel %vm310_vm3, %v4490_v7, 0.0 }
 0x3f0   :  { %327 = vadd.xlane.f32.xlu1 %v326_v8  ;;  %v4463_v8 = vld [vmem:[%s6361_s27 + $0x8] sm:$0xff]  }
 0x401   :  { %484 = vrot.lane.b32.xlu1 %v4915_v42, %s4723_s8 }
 0x402   :  { %335 = vrot.lane.b32.xlu0 %v4911_v38, %s4722_s25 }
 0x405   :  { %482 = vrot.lane.b32.xlu1 %v4915_v42, %s4724_s4 }
 0x406   :  { %432 = vrot.lane.b32.xlu0 %v4911_v38, %s4724_s4 }
 0x475   :  { %v325_v10 = vpop.xlane.xlu0 %324 }
 0x476   :  { %4491 = vrcp.f32 %v325_v10 }
 0x479   :  { %v328_v11 = vpop.xlane.xlu1 %327  ;;  %v336_v12 = vpop.permute.xlu0 %335 }
 0x47a   :  { %4493 = vrcp.f32 %v328_v11  ;;  %v342_v13 = vsel %vm340_vm4, %v336_v12, 0 }
 0x47b   :  { %3983 = vmatpush3.bf16.msra.mxu1 %v342_v13 }
 0x47c   :  { %3994 = vmatprep.subr.bf16.mxu1 %v6329_v15 }
 0x47d   :  { %v485_v21 = vpop.permute.xlu1 %484  ;;  %v433_v24 = vpop.permute.xlu0 %432 }
 0x47e   :  { %v490_v23 = vsel %vm214_vm2, %v485_v21, 0 }
 0x481   :  { %v483_v25 = vpop.permute.xlu1 %482 }
 0x483   :  { %v4492_v14 = vpop.eup %4491 }
 0x484   :  { %v331_v16 = vmul.f32 %v4492_v14, %v4488_v5 }
 0x486   :  { %v333_v17 = vpack.c.bf16 %v331_v16, %v331_v16 }
 0x487   :  { %v4494_v18 = vpop.eup %4493 }
 0x488   :  { %3985 = vmatmul.mubr.msk.bf16.vlgmr.msra.gmra.mxu1 %vm310_vm3, %v333_v17  ;;  %v332_v20 = vmul.f32 %v4494_v18, %v4490_v7 }
 0x489   :  { %3995 = vmatpush3.bf16.xpose.msra.mxu1 %v440_v19  ;;  %3996 = vmatprep.mubr.msk.bf16.mxu1 %vm4720_vm1, %v6329_v15 }
 0x48a   :  { %v334_v22 = vpack.c.bf16 %v332_v20, %v332_v20  ;;  %4006 = vmatprep.subr.bf16.mxu1 %v6329_v15 }
 0x48c   :  { %3991 = vmatmul.mubr.msk.bf16.vlgmr.msra.gmra.mxu0 %vm310_vm3, %v334_v22 }
 0x48d   :  { %4001 = vmatpush3.bf16.xpose.msra.mxu0 %v490_v23  ;;  %4002 = vmatprep.mubr.msk.bf16.mxu0 %vm4720_vm1, %v6329_v15 }
 0x48e   :  { %4012 = vmatprep.subr.bf16.mxu0 %v6329_v15 }
 0x490   :  { %3997 = vmatmul.mubr.msk.bf16.vlgmr.msra.gmra.mxu1 %vm214_vm2, %v433_v24 }
 0x491   :  { %4008 = vmatprep.mubr.msk.bf16.mxu1 %vm4720_vm1, %v6329_v15 }
 0x494   :  { %4003 = vmatmul.mubr.msk.bf16.vlgmr.msra.gmra.mxu0 %vm214_vm2, %v483_v25 }
 0x495   :  { %4014 = vmatprep.mubr.msk.bf16.mxu0 %vm4720_vm1, %v6329_v15 }
 0x548   :  { %v4979_v26 = vpop.f32.mrf.mxu1 }
 0x54a   :  { %v3986_v27 = vpop.f32.mrf.mxu1 }
 0x54b   :  { %v3801_v27 = vld [vmem:[%s6286_s9] ss:$0 sm:$0xff] }
 0x54c   :  { %v381_v28 = vpop.f32.mrf.mxu1  ;;  %v4981_v29 = vpop.f32.mrf.mxu0 }
 0x54e   :  { %v3987_v30 = vpop.f32.mrf.mxu1  ;;  %v3992_v33 = vpop.f32.mrf.mxu0 }
 0x550   :  { %v429_v34 = vpop.f32.mrf.mxu0  ;;  %v476_v35 = vpop.f32.mrf.mxu1 }
 0x551   :  { %v477_v36 = vadd.f32 %v4934_v47, %v476_v35 }
 0x552   :  { %v3993_v37 = vpop.f32.mrf.mxu0  ;;  %v3998_v39 = vpop.f32.mrf.mxu1 }
 0x553   :  { %v532_v40 = vsel %vm310_vm3, %v477_v36, -inf }
 0x554   :  { %533 = vmax.xlane.f32.xlu0 %v532_v40  ;;  %v479_v41 = vpop.f32.mrf.mxu1  ;;  %v526_v43 = vpop.f32.mrf.mxu0 }
 0x555   :  { %v527_v44 = vadd.f32 %v4940_v51, %v526_v43 }
 0x556   :  { %v3999_v45 = vpop.f32.mrf.mxu1  ;;  %v4004_v46 = vpop.f32.mrf.mxu0 }
 0x557   :  { %v535_v48 = vsel %vm310_vm3, %v527_v44, -inf }
 0x558   :  { %536 = vmax.xlane.f32.xlu1 %v535_v48  ;;  %v529_v49 = vpop.f32.mrf.mxu0 }
 0x55a   :  { %v4005_v50 = vpop.f32.mrf.mxu0 }
 0x569   :  { %604 = vrot.lane.b32.xlu1 %v4915_v42, %s6309_s1 }
 0x5dd   :  { %v534_v52 = vpop.xlane.xlu0 %533 }
 0x5de   :  { %v538_v53 = vsub.f32 %v477_v36, %v534_v52  ;;  %v4466_v52 = vld [vmem:[%s6289_s12] sm:$0xff]  }
 0x5e0   :  { %v540_v54 = vmul.f32 1.442695, %v538_v53 }
 0x5e1   :  { %v537_v55 = vpop.xlane.xlu1 %536 }
 0x5e2   :  { %4495 = vpow2.f32 %v540_v54  ;;  %v539_v56 = vsub.f32 %v527_v44, %v537_v55 }
 0x5e4   :  { %v542_v57 = vmul.f32 1.442695, %v539_v56 }
 0x5e5   :  { %v605_v58 = vpop.permute.xlu1 %604 }
 0x5e6   :  { %4497 = vpow2.f32 %v542_v57  ;;  %v610_v59 = vsel %vm340_vm4, %v605_v58, 0 }
 0x5e7   :  { %4013 = vmatpush3.bf16.msra.mxu0 %v610_v59 }
 0x5e8   :  { %4026 = vmatprep.subr.bf16.mxu0 %v6329_v15 }
 0x5ef   :  { %v4496_v60 = vpop.eup %4495 }
 0x5f0   :  { %v544_v61 = vsel %vm310_vm3, %v4496_v60, 0.0 }
 0x5f1   :  { %545 = vadd.xlane.f32.xlu0 %v544_v61  ;;  %v3805_v61 = vld [vmem:[%s6287_s10] ss:$0 sm:$0xff] }
 0x5f3   :  { %v4498_v62 = vpop.eup %4497 }
 0x5f4   :  { %v547_v42 = vsel %vm310_vm3, %v4498_v62, 0.0 }
 0x5f5   :  { %548 = vadd.xlane.f32.xlu0 %v547_v42 }
 0x60b   :  { %556 = vrot.lane.b32.xlu0 %v4911_v38, %s6309_s1 }
 0x67a   :  { %v546_v63 = vpop.xlane.xlu0 %545 }
 0x67b   :  { %4499 = vrcp.f32 %v546_v63 }
 0x67e   :  { %v549_v0 = vpop.xlane.xlu0 %548 }
 0x67f   :  { %4501 = vrcp.f32 %v549_v0  ;;  %v3806_v0 = vld [vmem:[%s6288_s11] ss:$0 sm:$0xff] }
 0x682   :  { %v557_v1 = vpop.permute.xlu0 %556 }
 0x683   :  { %v562_v2 = vsel %vm340_vm4, %v557_v1, 0 }
 0x684   :  { %4007 = vmatpush3.bf16.msra.mxu1 %v562_v2 }
 0x685   :  { %4018 = vmatprep.subr.bf16.mxu1 %v6329_v15 }
 0x688   :  { %v4500_v3 = vpop.eup %4499 }
 0x689   :  { %v552_v4 = vmul.f32 %v4500_v3, %v4496_v60 }
 0x68b   :  { %v554_v5 = vpack.c.bf16 %v552_v4, %v552_v4 }
 0x68c   :  { %v4502_v6 = vpop.eup %4501 }
 0x68d   :  { %4009 = vmatmul.mubr.msk.bf16.vlgmr.msra.gmra.mxu1 %vm310_vm3, %v554_v5  ;;  %v553_v7 = vmul.f32 %v4502_v6, %v4498_v62  ;;  %v4467_v5 = vld [vmem:[%s6291_s14 + $0x18] sm:$0xff]   ;;  %v4468_v6 = vld [vmem:[%s6291_s14 + $0x10] sm:$0xff]  }
 0x68e   :  { %4022 = vmatprep.mubr.msk.bf16.mxu1 %vm4720_vm1, %v6329_v15  ;;  %4019 = vmatpush3.bf16.msra.mxu1 %v4463_v8  ;;  %v3807_v8 = vld [vmem:[%s6290_s13] ss:$0 sm:$0xff] }
 0x68f   :  { %v555_v38 = vpack.c.bf16 %v553_v7, %v553_v7  ;;  %4020 = vmatprep.subr.bf16.mxu1 %v6329_v15  ;;  %v4469_v7 = vld [vmem:[%s6291_s14 + $0x8] sm:$0xff]  }
 0x691   :  { %4015 = vmatmul.mubr.msk.bf16.vlgmr.msra.gmra.mxu0 %vm310_vm3, %v555_v38  ;;  %v4470_v38 = vld [vmem:[%s6291_s14] sm:$0xff]  }
 0x692   :  { %4030 = vmatprep.mubr.msk.bf16.mxu0 %vm4720_vm1, %v6329_v15  ;;  %4021 = vmatpush3.bf16.msra.mxu1 %v4464_v9 }
 0x693   :  { %4034 = vmatprep.subr.bf16.mxu1 %v6329_v15 }
 0x74d   :  { %v598_v10 = vpop.f32.mrf.mxu1 }
 0x74f   :  { %v4010_v11 = vpop.f32.mrf.mxu1 }
 0x751   :  { %v601_v12 = vpop.f32.mrf.mxu1  ;;  %v646_v13 = vpop.f32.mrf.mxu0 }
 0x752   :  { %v4177_v14 = vpack.i.bf16 %v646_v13, %v598_v10 }
 0x753   :  { %v4011_v16 = vpop.f32.mrf.mxu1  ;;  %v4016_v17 = vpop.f32.mrf.mxu0 }
 0x754   :  { %4178 = vrot.lane.b32.xlu1 %v4177_v14, %s6308_s7  ;;  %s6366_s7 = sld [smem:[#allocation25_spill]] }
 0x755   :  { %v649_v18 = vpop.f32.mrf.mxu0 }
 0x757   :  { %v4017_v19 = vpop.f32.mrf.mxu0 }
 0x7c6   :  { %v4179_v20 = vpop.permute.xlu1 %4178 }
 0x7c7   :  { %v4181_v21 = vunpack.i.h.bf16 %v4179_v20  ;;  %v4180_v22 = vunpack.i.l.bf16 %v4179_v20 }
 0x7c9   :  { %v661_v23 = vsel %vm214_vm2, %v4981_v29, %v4181_v21  ;;  %v660_v24 = vsel %vm214_vm2, %v4979_v26, %v4180_v22 }
 0x7ca   :  { %v666_v25 = vpack.c.bf16 %v661_v23, %v660_v24 }
 0x7cc   :  { %4023 = vmatmul.mubr.msk.bf16.vlgmr.msra.gmra.mxu1 %vm83_vm0, %v666_v25 }
 0x7cd   :  { %4042 = vmatprep.mubr.msk.bf16.mxu1 %vm4720_vm1, %v6329_v15  ;;  %4035 = vmatpush3.bf16.msra.mxu1 %v4467_v5  ;;  %v3817_v5 = vld [vmem:[%s6293_s16] ss:$0 sm:$0xff] }
 0x7ce   :  { %4036 = vmatprep.subr.bf16.mxu1 %v6329_v15 }
 0x7d1   :  { %4037 = vmatpush3.bf16.msra.mxu1 %v4468_v6 }
 0x7d2   :  { %4038 = vmatprep.subr.bf16.mxu1 %v6329_v15 }
 0x7d5   :  { %4039 = vmatpush3.bf16.msra.mxu1 %v4469_v7 }
 0x7d6   :  { %4040 = vmatprep.subr.bf16.mxu1 %v6329_v15 }
 0x7d9   :  { %4041 = vmatpush3.bf16.msra.mxu1 %v4470_v38 }
 0x7da   :  { %4060 = vmatprep.subr.bf16.mxu1 %v6329_v15 }
 0x88c   :  { %v723_v28 = vpop.f32.mrf.mxu1 }
 0x88d   :  { %v724_v30 = vadd.f32 %v3801_v27, %v723_v28 }
 0x88e   :  { %v4024_v33 = vpop.f32.mrf.mxu1 }
 0x88f   :  { %v730_v34 = vadd.f32 %v724_v30, %v4899_v31 }
 0x890   :  { %v726_v35 = vpop.f32.mrf.mxu1 }
 0x891   :  { %v727_v29 = vadd.f32 %v3801_v27, %v726_v35  ;;  %v734_v36 = vsel %vm83_vm0, %v730_v34, 0.0 }
 0x892   :  { %735 = vadd.xlane.f32.xlu1 %v734_v36  ;;  %v4025_v26 = vpop.f32.mrf.mxu1 }
 0x893   :  { %v731_v37 = vadd.f32 %v727_v29, %v4901_v32  ;;  %v4465_v32 = vld [vmem:[%s6289_s12 + $0x8] sm:$0xff]  }
 0x894   :  { %4027 = vmatpush3.bf16.msra.mxu0 %v4465_v32 }
 0x895   :  { %v737_v39 = vsel %vm83_vm0, %v731_v37, 0.0  ;;  %4028 = vmatprep.subr.bf16.mxu0 %v6329_v15 }
 0x896   :  { %738 = vadd.xlane.f32.xlu0 %v737_v39 }
 0x898   :  { %4029 = vmatpush3.bf16.msra.mxu0 %v4466_v52 }
 0x899   :  { %4046 = vmatprep.subr.bf16.mxu0 %v6329_v15 }
 0x91b   :  { %v736_v40 = vpop.xlane.xlu1 %735 }
 0x91c   :  { %v740_v41 = vmul.f32 0.03125, %v736_v40 }
 0x91e   :  { %v742_v43 = vsub.f32 %v730_v34, %v740_v41 }
 0x91f   :  { %v739_v44 = vpop.xlane.xlu0 %738 }
 0x920   :  { %v741_v45 = vmul.f32 0.03125, %v739_v44  ;;  %v744_v46 = vmul.f32 %v742_v43, %v742_v43 }
 0x922   :  { %v743_v48 = vsub.f32 %v731_v37, %v741_v45  ;;  %v746_v31 = vsel %vm83_vm0, %v744_v46, 0.0  ;;  %v3811_v37 = vld [vmem:[%s6292_s15] ss:$0 sm:$0xff] }
 0x923   :  { %747 = vadd.xlane.f32.xlu0 %v746_v31 }
 0x924   :  { %v745_v49 = vmul.f32 %v743_v48, %v743_v48 }
 0x926   :  { %v749_v50 = vsel %vm83_vm0, %v745_v49, 0.0 }
 0x927   :  { %750 = vadd.xlane.f32.xlu0 %v749_v50 }
 0x9ac   :  { %v748_v53 = vpop.xlane.xlu0 %747 }
 0x9ad   :  { %v752_v54 = vmul.f32 0.03125, %v748_v53 }
 0x9af   :  { %v754_v55 = vadd.f32 1e-12, %v752_v54 }
 0x9b0   :  { %v751_v56 = vpop.xlane.xlu0 %750 }
 0x9b1   :  { %4503 = vrsqrt.f32 %v754_v55  ;;  %v753_v57 = vmul.f32 0.03125, %v751_v56 }
 0x9b3   :  { %v755_v58 = vadd.f32 1e-12, %v753_v57 }
 0x9b5   :  { %4505 = vrsqrt.f32 %v755_v58 }
 0x9be   :  { %v4504_v59 = vpop.eup %4503 }
 0x9bf   :  { %v758_v60 = vmul.f32 %v4504_v59, %v742_v43 }
 0x9c1   :  { %v766_v63 = vmul.f32 %v3805_v61, %v758_v60  ;;  %v4471_v60 = vld [vmem:[%s6356_s0 + $0x18] sm:$0xff]  }
 0x9c2   :  { %v4506_v62 = vpop.eup %4505 }
 0x9c3   :  { %v759_v42 = vmul.f32 %v4506_v62, %v743_v48  ;;  %v774_v2 = vadd.f32 %v3806_v0, %v766_v63 }
 0x9c5   :  { %v767_v1 = vmul.f32 %v3805_v61, %v759_v42  ;;  %v4472_v61 = vld [vmem:[%s6356_s0 + $0x10] sm:$0xff]   ;;  %s4679_s0 = scalar_lea.vmem %s3764_s29, 32 }
 0x9c7   :  { %v775_v3 = vadd.f32 %v3806_v0, %v767_v1 }
 0x9c9   :  { %v780_v4 = vpack.c.bf16 %v775_v3, %v774_v2 }
 0x9cb   :  { %4031 = vmatmul.mubr.msk.bf16.vlgmr.msra.gmra.mxu0 %vm83_vm0, %v780_v4 }
 0x9cc   :  { %4050 = vmatprep.mubr.msk.bf16.mxu0 %vm4720_vm1, %v6329_v15  ;;  %4047 = vmatpush3.bf16.msra.mxu0 %v4471_v60 }
 0x9cd   :  { %4048 = vmatprep.subr.bf16.mxu0 %v6329_v15 }
 0x9d0   :  { %4049 = vmatpush3.bf16.msra.mxu0 %v4472_v61 }
 0x9d1   :  { %4054 = vmatprep.subr.bf16.mxu0 %v6329_v15 }
 0xa8b   :  { %v837_v9 = vpop.f32.mrf.mxu0 }
 0xa8c   :  { %v838_v10 = vadd.f32 %v3807_v8, %v837_v9 }
 0xa8d   :  { %v4032_v11 = vpop.f32.mrf.mxu0 }
 0xa8e   :  { %v846_v12 = vmul.f32 0.044715, %v838_v10  ;;  %v844_v33 = vmul.f32 0.5, %v838_v10 }
 0xa8f   :  { %v840_v13 = vpop.f32.mrf.mxu0 }
 0xa90   :  { %v848_v14 = vmul.f32 %v846_v12, %v838_v10  ;;  %v841_v16 = vadd.f32 %v3807_v8, %v840_v13  ;;  %v3818_v8 = vld [vmem:[%s6294_s17] ss:$0 sm:$0xff]  ;;  %v3824_v13 = vld [vmem:[%s6359_s28 + $0x1] ss:$0 sm:$0xff]  ;;  %s6362_s28 = smov 48  }
 0xa91   :  { %v4033_v17 = vpop.f32.mrf.mxu0 }
 0xa92   :  { %v850_v18 = vmul.f32 %v848_v14, %v838_v10  ;;  %v847_v19 = vmul.f32 0.044715, %v841_v16  ;;  %v845_v34 = vmul.f32 0.5, %v841_v16 }
 0xa94   :  { %v852_v20 = vadd.f32 %v850_v18, %v838_v10  ;;  %v849_v21 = vmul.f32 %v847_v19, %v841_v16 }
 0xa96   :  { %v854_v22 = vmul.f32 0.7978846, %v852_v20  ;;  %v851_v23 = vmul.f32 %v849_v21, %v841_v16 }
 0xa98   :  { %4507 = vtanh.f32 %v854_v22  ;;  %v853_v24 = vadd.f32 %v851_v23, %v841_v16 }
 0xa9a   :  { %v855_v25 = vmul.f32 0.7978846, %v853_v24 }
 0xa9c   :  { %4509 = vtanh.f32 %v855_v25 }
 0xaa5   :  { %v4508_v27 = vpop.eup %4507 }
 0xaa6   :  { %v858_v28 = vadd.f32 1.0, %v4508_v27 }
 0xaa8   :  { %v860_v29 = vmul.f32 %v858_v28, %v844_v33 }
 0xaa9   :  { %v4510_v30 = vpop.eup %4509 }
 0xaaa   :  { %v859_v35 = vadd.f32 1.0, %v4510_v30 }
 0xaac   :  { %v861_v36 = vmul.f32 %v859_v35, %v845_v34 }
 0xaae   :  { %v870_v26 = vpack.c.bf16 %v861_v36, %v860_v29 }
 0xab0   :  { %4043 = vmatmul.mubr.msk.bf16.vlgmr.msra.gmra.mxu1 %vm902_vm5, %v870_v26 }
 0xab1   :  { %4062 = vmatprep.mubr.msk.bf16.mxu1 %vm4720_vm1, %v6329_v15 }
 0xb70   :  { %v940_v39 = vpop.f32.mrf.mxu1 }
 0xb71   :  { %v941_v40 = vadd.f32 %v3811_v37, %v940_v39 }
 0xb72   :  { %v4044_v41 = vpop.f32.mrf.mxu1 }
 0xb73   :  { %v947_v43 = vadd.f32 %v941_v40, %v774_v2 }
 0xb74   :  { %v943_v44 = vpop.f32.mrf.mxu1 }
 0xb75   :  { %v944_v45 = vadd.f32 %v3811_v37, %v943_v44  ;;  %v951_v46 = vsel %vm83_vm0, %v947_v43, 0.0 }
 0xb76   :  { %952 = vadd.xlane.f32.xlu1 %v951_v46  ;;  %v4045_v48 = vpop.f32.mrf.mxu1 }
 0xb77   :  { %v948_v31 = vadd.f32 %v944_v45, %v775_v3 }
 0xb79   :  { %v954_v49 = vsel %vm83_vm0, %v948_v31, 0.0 }
 0xb7a   :  { %955 = vadd.xlane.f32.xlu0 %v954_v49 }
 0xbff   :  { %v953_v50 = vpop.xlane.xlu1 %952 }
 0xc00   :  { %v957_v32 = vmul.f32 0.03125, %v953_v50 }
 0xc02   :  { %v959_v52 = vsub.f32 %v947_v43, %v957_v32 }
 0xc03   :  { %v956_v53 = vpop.xlane.xlu0 %955 }
 0xc04   :  { %v958_v54 = vmul.f32 0.03125, %v956_v53  ;;  %v961_v55 = vmul.f32 %v959_v52, %v959_v52 }
 0xc06   :  { %v960_v56 = vsub.f32 %v948_v31, %v958_v54  ;;  %v963_v57 = vsel %vm83_vm0, %v961_v55, 0.0 }
 0xc07   :  { %964 = vadd.xlane.f32.xlu1 %v963_v57 }
 0xc08   :  { %v962_v58 = vmul.f32 %v960_v56, %v960_v56 }
 0xc0a   :  { %v966_v59 = vsel %vm83_vm0, %v962_v58, 0.0 }
 0xc0b   :  { %967 = vadd.xlane.f32.xlu0 %v966_v59 }
 0xc90   :  { %v965_v62 = vpop.xlane.xlu1 %964 }
 0xc91   :  { %v969_v42 = vmul.f32 0.03125, %v965_v62 }
 0xc93   :  { %v971_v63 = vadd.f32 1e-12, %v969_v42 }
 0xc94   :  { %v968_v0 = vpop.xlane.xlu0 %967 }
 0xc95   :  { %4511 = vrsqrt.f32 %v971_v63  ;;  %v970_v1 = vmul.f32 0.03125, %v968_v0 }
 0xc97   :  { %v972_v2 = vadd.f32 1e-12, %v970_v1 }
 0xc99   :  { %4513 = vrsqrt.f32 %v972_v2 }
 0xca2   :  { %v4512_v3 = vpop.eup %4511 }
 0xca3   :  { %v975_v4 = vmul.f32 %v4512_v3, %v959_v52 }
 0xca5   :  { %v983_v38 = vmul.f32 %v3817_v5, %v975_v4 }
 0xca6   :  { %v4514_v6 = vpop.eup %4513 }
 0xca7   :  { %v976_v7 = vmul.f32 %v4514_v6, %v960_v56  ;;  %v5088_v10 = vadd.f32 %v3818_v8, %v983_v38 }
 0xca9   :  { %v984_v9 = vmul.f32 %v3817_v5, %v976_v7 }
 0xcab   :  { %v5090_v11 = vadd.f32 %v3818_v8, %v984_v9 }
 0xcad   :  { %v998_v12 = vpack.c.bf16 %v5090_v11, %v5088_v10 }
 0xcaf   :  { %4051 = vmatmul.mubr.msk.bf16.vlgmr.msra.gmra.mxu0 %vm83_vm0, %v998_v12 }
 0xcb0   :  { %4056 = vmatprep.mubr.msk.bf16.mxu0 %vm4720_vm1, %v6329_v15 }
 0xd6f   :  { %v1056_v14 = vpop.f32.mrf.mxu0 }
 0xd70   :  { %v1057_v16 = vadd.f32 %v3824_v13, %v1056_v14 }
 0xd71   :  { %v4052_v17 = vpop.f32.mrf.mxu0 }
 0xd72   :  { %v5100_v18 = vpack.c.bf16 %v1057_v16, %v1057_v16 }
 0xd73   :  { %v1059_v19 = vpop.f32.mrf.mxu0 }
 0xd74   :  { %v1060_v20 = vadd.f32 %v3824_v13, %v1059_v19  ;;  %1066 = vrot.lane.b32.xlu1 %v5100_v18, %s4721_s6 }
 0xd75   :  { %v4053_v21 = vpop.f32.mrf.mxu0 }
 0xd76   :  { %v5104_v22 = vpack.c.bf16 %v1060_v20, %v1060_v20 }
 0xd78   :  { %1115 = vrot.lane.b32.xlu0 %v5104_v22, %s4721_s6  ;;  %s6374_s6 = sld [smem:[#allocation26_spill]] }
 0xde6   :  { %v1067_v23 = vpop.permute.xlu1 %1066 }
 0xde7   :  { %v1072_v24 = vsel %vm214_vm2, %v1067_v23, 0 }
 0xde8   :  { %4055 = vmatpush3.bf16.xpose.msra.mxu0 %v1072_v24 }
 0xde9   :  { %4066 = vmatprep.subr.bf16.mxu0 %v6329_v15 }
 0xdea   :  { %v1116_v25 = vpop.permute.xlu0 %1115 }
 0xdeb   :  { %v1121_v27 = vsel %vm214_vm2, %v1116_v25, 0 }
 0xdec   :  { %4061 = vmatpush3.bf16.xpose.msra.mxu1 %v1121_v27 }
 0xded   :  { %4072 = vmatprep.subr.bf16.mxu1 %v6329_v15 }
 0xdef   :  { %4057 = vmatmul.mubr.msk.bf16.vlgmr.msra.gmra.mxu0 %vm214_vm2, %v5100_v18 }
 0xdf0   :  { %4068 = vmatprep.mubr.msk.bf16.mxu0 %vm4720_vm1, %v6329_v15 }
 0xdf3   :  { %4063 = vmatmul.mubr.msk.bf16.vlgmr.msra.gmra.mxu1 %vm214_vm2, %v5104_v22 }
 0xdf4   :  { %4074 = vmatprep.mubr.msk.bf16.mxu1 %vm4720_vm1, %v6329_v15 }
 0xeaf   :  { %v1108_v28 = vpop.f32.mrf.mxu0 }
 0xeb0   :  { %v1109_v30 = vadd.f32 %v4934_v47, %v1108_v28 }
 0xeb1   :  { %v4058_v33 = vpop.f32.mrf.mxu0 }
 0xeb2   :  { %v1163_v34 = vsel %vm310_vm3, %v1109_v30, -inf }
 0xeb3   :  { %v1157_v35 = vpop.f32.mrf.mxu1  ;;  %1164 = vmax.xlane.f32.xlu1 %v1163_v34  ;;  %v1111_v29 = vpop.f32.mrf.mxu0 }
 0xeb4   :  { %v1158_v36 = vadd.f32 %v4940_v51, %v1157_v35 }
 0xeb5   :  { %v4059_v26 = vpop.f32.mrf.mxu0  ;;  %v4064_v37 = vpop.f32.mrf.mxu1 }
 0xeb6   :  { %v1166_v39 = vsel %vm310_vm3, %v1158_v36, -inf }
 0xeb7   :  { %1167 = vmax.xlane.f32.xlu0 %v1166_v39  ;;  %v1160_v40 = vpop.f32.mrf.mxu1 }
 0xeb9   :  { %v4065_v41 = vpop.f32.mrf.mxu1 }
 0xec4   :  { %1187 = vrot.lane.b32.xlu1 %v5100_v18, %s4722_s25 }
 0xf3c   :  { %v1165_v43 = vpop.xlane.xlu1 %1164 }
 0xf3d   :  { %v1169_v44 = vsub.f32 %v1109_v30, %v1165_v43 }
 0xf3f   :  { %v1171_v45 = vmul.f32 1.442695, %v1169_v44 }
 0xf40   :  { %v1168_v46 = vpop.xlane.xlu0 %1167  ;;  %v1188_v48 = vpop.permute.xlu1 %1187 }
 0xf41   :  { %4515 = vpow2.f32 %v1171_v45  ;;  %v1170_v31 = vsub.f32 %v1158_v36, %v1168_v46  ;;  %v1193_v49 = vsel %vm340_vm4, %v1188_v48, 0 }
 0xf42   :  { %4067 = vmatpush3.bf16.msra.mxu0 %v1193_v49 }
 0xf43   :  { %v1173_v50 = vmul.f32 1.442695, %v1170_v31  ;;  %4078 = vmatprep.subr.bf16.mxu0 %v6329_v15 }
 0xf45   :  { %4517 = vpow2.f32 %v1173_v50 }
 0xf4e   :  { %v4516_v32 = vpop.eup %4515 }
 0xf4f   :  { %v1175_v52 = vsel %vm310_vm3, %v4516_v32, 0.0 }
 0xf50   :  { %1176 = vadd.xlane.f32.xlu1 %v1175_v52  ;;  %v4473_v52 = vld [vmem:[%s6361_s27 + $0x18] sm:$0xff]  }
 0xf52   :  { %v4518_v53 = vpop.eup %4517 }
 0xf53   :  { %v1178_v54 = vsel %vm310_vm3, %v4518_v53, 0.0 }
 0xf54   :  { %1179 = vadd.xlane.f32.xlu0 %v1178_v54 }
 0xf61   :  { %1285 = vrot.lane.b32.xlu1 %v5100_v18, %s4723_s8 }
 0xf65   :  { %1335 = vrot.lane.b32.xlu1 %v5104_v22, %s4723_s8 }
 0xf69   :  { %1283 = vrot.lane.b32.xlu1 %v5100_v18, %s4724_s4 }
 0xf6a   :  { %1235 = vrot.lane.b32.xlu0 %v5104_v22, %s4722_s25 }
 0xf6e   :  { %1333 = vrot.lane.b32.xlu0 %v5104_v22, %s4724_s4 }
 0xfd9   :  { %v1177_v55 = vpop.xlane.xlu1 %1176 }
 0xfda   :  { %4519 = vrcp.f32 %v1177_v55 }
 0xfdd   :  { %v1180_v56 = vpop.xlane.xlu0 %1179  ;;  %v1286_v60 = vpop.permute.xlu1 %1285 }
 0xfde   :  { %4521 = vrcp.f32 %v1180_v56  ;;  %v1291_v63 = vsel %vm214_vm2, %v1286_v60, 0 }
 0xfe1   :  { %v1236_v57 = vpop.permute.xlu0 %1235  ;;  %v1336_v1 = vpop.permute.xlu1 %1335 }
 0xfe2   :  { %v1241_v58 = vsel %vm340_vm4, %v1236_v57, 0  ;;  %v1341_v3 = vsel %vm214_vm2, %v1336_v1, 0 }
 0xfe3   :  { %4073 = vmatpush3.bf16.msra.mxu1 %v1241_v58 }
 0xfe4   :  { %4084 = vmatprep.subr.bf16.mxu1 %v6329_v15 }
 0xfe5   :  { %v1284_v4 = vpop.permute.xlu1 %1283  ;;  %v1334_v5 = vpop.permute.xlu0 %1333 }
 0xfe7   :  { %v4520_v59 = vpop.eup %4519 }
 0xfe8   :  { %v1183_v61 = vmul.f32 %v4520_v59, %v4516_v32 }
 0xfea   :  { %v1185_v62 = vpack.c.bf16 %v1183_v61, %v1183_v61 }
 0xfeb   :  { %v4522_v42 = vpop.eup %4521 }
 0xfec   :  { %4069 = vmatmul.mubr.msk.bf16.vlgmr.msra.gmra.mxu0 %vm310_vm3, %v1185_v62  ;;  %v1184_v0 = vmul.f32 %v4522_v42, %v4518_v53  ;;  %v4474_v53 = vld [vmem:[%s6361_s27 + $0x10] sm:$0xff]  }
 0xfed   :  { %4079 = vmatpush3.bf16.xpose.msra.mxu0 %v1291_v63  ;;  %4080 = vmatprep.mubr.msk.bf16.mxu0 %vm4720_vm1, %v6329_v15 }
 0xfee   :  { %v1186_v2 = vpack.c.bf16 %v1184_v0, %v1184_v0  ;;  %4090 = vmatprep.subr.bf16.mxu0 %v6329_v15 }
 0xff0   :  { %4075 = vmatmul.mubr.msk.bf16.vlgmr.msra.gmra.mxu1 %vm310_vm3, %v1186_v2 }
 0xff1   :  { %4085 = vmatpush3.bf16.xpose.msra.mxu1 %v1341_v3  ;;  %4086 = vmatprep.mubr.msk.bf16.mxu1 %vm4720_vm1, %v6329_v15 }
 0xff2   :  { %4096 = vmatprep.subr.bf16.mxu1 %v6329_v15 }
 0xff4   :  { %4081 = vmatmul.mubr.msk.bf16.vlgmr.msra.gmra.mxu0 %vm214_vm2, %v1284_v4  ;;  %v3841_v4 = vld [vmem:[%s6286_s9 + $0x1] ss:$0 sm:$0xff]  ;;  %s4740_s9 = smov 6  }
 0xff5   :  { %4092 = vmatprep.mubr.msk.bf16.mxu0 %vm4720_vm1, %v6329_v15 }
 0xff8   :  { %4087 = vmatmul.mubr.msk.bf16.vlgmr.msra.gmra.mxu1 %vm214_vm2, %v1334_v5 }
 0xff9   :  { %4098 = vmatprep.mubr.msk.bf16.mxu1 %vm4720_vm1, %v6329_v15 }
0x10ac   :  { %v5158_v6 = vpop.f32.mrf.mxu0 }
0x10ae   :  { %v4070_v7 = vpop.f32.mrf.mxu0 }
0x10b0   :  { %v1232_v38 = vpop.f32.mrf.mxu0  ;;  %v5160_v8 = vpop.f32.mrf.mxu1 }
0x10b2   :  { %v4071_v9 = vpop.f32.mrf.mxu0  ;;  %v4076_v12 = vpop.f32.mrf.mxu1 }
0x10b4   :  { %v1280_v13 = vpop.f32.mrf.mxu1  ;;  %v1327_v14 = vpop.f32.mrf.mxu0 }
0x10b5   :  { %v1328_v16 = vadd.f32 %v4934_v47, %v1327_v14 }
0x10b6   :  { %v4077_v17 = vpop.f32.mrf.mxu1  ;;  %v4082_v19 = vpop.f32.mrf.mxu0 }
0x10b7   :  { %v1383_v20 = vsel %vm310_vm3, %v1328_v16, -inf }
0x10b8   :  { %v1377_v21 = vpop.f32.mrf.mxu1  ;;  %1384 = vmax.xlane.f32.xlu1 %v1383_v20  ;;  %v1330_v23 = vpop.f32.mrf.mxu0 }
0x10b9   :  { %v1378_v24 = vadd.f32 %v4940_v51, %v1377_v21 }
0x10ba   :  { %v4083_v25 = vpop.f32.mrf.mxu0  ;;  %v4088_v27 = vpop.f32.mrf.mxu1 }
0x10bb   :  { %v1386_v28 = vsel %vm310_vm3, %v1378_v24, -inf }
0x10bc   :  { %1387 = vmax.xlane.f32.xlu0 %v1386_v28  ;;  %v1380_v30 = vpop.f32.mrf.mxu1 }
0x10bd   :  { %v4476_v30 = vld [vmem:[%s6289_s12 + $0x10] sm:$0xff]  }
0x10be   :  { %v4089_v33 = vpop.f32.mrf.mxu1 }
0x10c9   :  { %1407 = vrot.lane.b32.xlu1 %v5100_v18, %s6362_s28 }
0x1141   :  { %v1385_v47 = vpop.xlane.xlu1 %1384 }
0x1142   :  { %v1389_v34 = vsub.f32 %v1328_v16, %v1385_v47 }
0x1144   :  { %v1391_v35 = vmul.f32 1.442695, %v1389_v34 }
0x1145   :  { %v1388_v29 = vpop.xlane.xlu0 %1387  ;;  %v1408_v36 = vpop.permute.xlu1 %1407 }
0x1146   :  { %4523 = vpow2.f32 %v1391_v35  ;;  %v1390_v26 = vsub.f32 %v1378_v24, %v1388_v29  ;;  %v1413_v37 = vsel %vm340_vm4, %v1408_v36, 0 }
0x1147   :  { %4091 = vmatpush3.bf16.msra.mxu0 %v1413_v37 }
0x1148   :  { %v1393_v51 = vmul.f32 1.442695, %v1390_v26  ;;  %4102 = vmatprep.subr.bf16.mxu0 %v6329_v15 }
0x114a   :  { %4525 = vpow2.f32 %v1393_v51  ;;  %v3847_v51 = vld [vmem:[%s6287_s10 + $0x1] ss:$0 sm:$0xff] }
0x1153   :  { %v4524_v39 = vpop.eup %4523 }
0x1154   :  { %v1395_v40 = vsel %vm310_vm3, %v4524_v39, 0.0 }
0x1155   :  { %1396 = vadd.xlane.f32.xlu0 %v1395_v40 }
0x1157   :  { %v4526_v41 = vpop.eup %4525 }
0x1158   :  { %v1398_v18 = vsel %vm310_vm3, %v4526_v41, 0.0 }
0x1159   :  { %1399 = vadd.xlane.f32.xlu0 %v1398_v18  ;;  %v3848_v18 = vld [vmem:[%s6288_s11 + $0x1] ss:$0 sm:$0xff] }
0x116f   :  { %1455 = vrot.lane.b32.xlu0 %v5104_v22, %s6362_s28 }
0x11de   :  { %v1397_v43 = vpop.xlane.xlu0 %1396 }
0x11df   :  { %4527 = vrcp.f32 %v1397_v43 }
0x11e2   :  { %v1400_v44 = vpop.xlane.xlu0 %1399 }
0x11e3   :  { %4529 = vrcp.f32 %v1400_v44 }
0x11e6   :  { %v1456_v45 = vpop.permute.xlu0 %1455 }
0x11e7   :  { %v1461_v46 = vsel %vm340_vm4, %v1456_v45, 0 }
0x11e8   :  { %4097 = vmatpush3.bf16.msra.mxu1 %v1461_v46 }
0x11e9   :  { %4110 = vmatprep.subr.bf16.mxu1 %v6329_v15 }
0x11ec   :  { %v4528_v48 = vpop.eup %4527 }
0x11ed   :  { %v1403_v31 = vmul.f32 %v4528_v48, %v4524_v39  ;;  %v4477_v48 = vld [vmem:[%s6291_s14 + $0x38] sm:$0xff]  }
0x11ef   :  { %v1405_v49 = vpack.c.bf16 %v1403_v31, %v1403_v31  ;;  %v4478_v31 = vld [vmem:[%s6291_s14 + $0x30] sm:$0xff]  }
0x11f0   :  { %v4530_v50 = vpop.eup %4529 }
0x11f1   :  { %4093 = vmatmul.mubr.msk.bf16.vlgmr.msra.gmra.mxu0 %vm310_vm3, %v1405_v49  ;;  %v1404_v32 = vmul.f32 %v4530_v50, %v4526_v41  ;;  %v4479_v49 = vld [vmem:[%s6291_s14 + $0x28] sm:$0xff]   ;;  %v4480_v50 = vld [vmem:[%s6291_s14 + $0x20] sm:$0xff]   ;;  %s4737_s14 = smov 3  }
0x11f2   :  { %4106 = vmatprep.mubr.msk.bf16.mxu0 %vm4720_vm1, %v6329_v15  ;;  %4103 = vmatpush3.bf16.msra.mxu0 %v4473_v52 }
0x11f3   :  { %v1406_v22 = vpack.c.bf16 %v1404_v32, %v1404_v32  ;;  %4104 = vmatprep.subr.bf16.mxu0 %v6329_v15  ;;  %v3854_v32 = vld [vmem:[%s6290_s13 + $0x1] ss:$0 sm:$0xff]  ;;  %s4736_s13 = smov 2  }
0x11f5   :  { %4099 = vmatmul.mubr.msk.bf16.vlgmr.msra.gmra.mxu1 %vm310_vm3, %v1406_v22 }
0x11f6   :  { %4114 = vmatprep.mubr.msk.bf16.mxu1 %vm4720_vm1, %v6329_v15  ;;  %4105 = vmatpush3.bf16.msra.mxu0 %v4474_v53 }
0x11f7   :  { %4118 = vmatprep.subr.bf16.mxu0 %v6329_v15 }
0x12b1   :  { %v1449_v54 = vpop.f32.mrf.mxu0 }
0x12b3   :  { %v4094_v55 = vpop.f32.mrf.mxu0 }
0x12b5   :  { %v1452_v56 = vpop.f32.mrf.mxu0  ;;  %v1497_v57 = vpop.f32.mrf.mxu1 }
0x12b6   :  { %v4182_v58 = vpack.i.bf16 %v1497_v57, %v1449_v54 }
0x12b7   :  { %v4095_v59 = vpop.f32.mrf.mxu0  ;;  %v4100_v60 = vpop.f32.mrf.mxu1 }
0x12b8   :  { %4183 = vrot.lane.b32.xlu1 %v4182_v58, %s6363_s3 }
0x12b9   :  { %v1500_v61 = vpop.f32.mrf.mxu1 }
0x12bb   :  { %v4101_v62 = vpop.f32.mrf.mxu1 }
0x132a   :  { %v4184_v42 = vpop.permute.xlu1 %4183 }
0x132b   :  { %v4186_v63 = vunpack.i.h.bf16 %v4184_v42  ;;  %v4185_v0 = vunpack.i.l.bf16 %v4184_v42 }
0x132d   :  { %v1512_v1 = vsel %vm214_vm2, %v5160_v8, %v4186_v63  ;;  %v1511_v2 = vsel %vm214_vm2, %v5158_v6, %v4185_v0 }
0x132e   :  { %v1518_v3 = vpack.c.bf16 %v1512_v1, %v1511_v2 }
0x1330   :  { %4107 = vmatmul.mubr.msk.bf16.vlgmr.msra.gmra.mxu0 %vm83_vm0, %v1518_v3 }
0x1331   :  { %4126 = vmatprep.mubr.msk.bf16.mxu0 %vm4720_vm1, %v6329_v15  ;;  %4119 = vmatpush3.bf16.msra.mxu0 %v4477_v48 }
0x1332   :  { %4120 = vmatprep.subr.bf16.mxu0 %v6329_v15 }
0x1335   :  { %4121 = vmatpush3.bf16.msra.mxu0 %v4478_v31 }
0x1336   :  { %4122 = vmatprep.subr.bf16.mxu0 %v6329_v15 }
0x1339   :  { %4123 = vmatpush3.bf16.msra.mxu0 %v4479_v49  ;;  %v3876_v49 = vld [vmem:[%s6294_s17 + $0x1] ss:$0 sm:$0xff] }
0x133a   :  { %4124 = vmatprep.subr.bf16.mxu0 %v6329_v15 }
0x133d   :  { %4125 = vmatpush3.bf16.msra.mxu0 %v4480_v50 }
0x13f0   :  { %v1576_v5 = vpop.f32.mrf.mxu0 }
0x13f1   :  { %v1577_v7 = vadd.f32 %v3841_v4, %v1576_v5 }
0x13f2   :  { %v4108_v38 = vpop.f32.mrf.mxu0 }
0x13f3   :  { %v1583_v9 = vadd.f32 %v1577_v7, %v5088_v10 }
0x13f4   :  { %v1579_v12 = vpop.f32.mrf.mxu0 }
0x13f5   :  { %v1580_v8 = vadd.f32 %v3841_v4, %v1579_v12  ;;  %v1589_v13 = vsel %vm83_vm0, %v1583_v9, 0.0 }
0x13f6   :  { %1590 = vadd.xlane.f32.xlu1 %v1589_v13  ;;  %v4109_v6 = vpop.f32.mrf.mxu0  ;;  %v3867_v13 = vld [vmem:[%s6292_s15 + $0x1] ss:$0 sm:$0xff]  ;;  %s4738_s15 = smov 4  }
0x13f7   :  { %v1584_v14 = vadd.f32 %v1580_v8, %v5090_v11  ;;  %v4475_v11 = vld [vmem:[%s6289_s12 + $0x18] sm:$0xff]  }
0x13f8   :  { %4111 = vmatpush3.bf16.msra.mxu1 %v4475_v11 }
0x13f9   :  { %v1592_v16 = vsel %vm83_vm0, %v1584_v14, 0.0  ;;  %4112 = vmatprep.subr.bf16.mxu1 %v6329_v15 }
0x13fa   :  { %1593 = vadd.xlane.f32.xlu0 %v1592_v16 }
0x13fc   :  { %4113 = vmatpush3.bf16.msra.mxu1 %v4476_v30 }
0x13fd   :  { %4130 = vmatprep.subr.bf16.mxu1 %v6329_v15 }
0x147f   :  { %v1591_v17 = vpop.xlane.xlu1 %1590 }
0x1480   :  { %v1595_v19 = vmul.f32 0.03125, %v1591_v17 }
0x1482   :  { %v1597_v20 = vsub.f32 %v1583_v9, %v1595_v19 }
0x1483   :  { %v1594_v21 = vpop.xlane.xlu0 %1593 }
0x1484   :  { %v1596_v23 = vmul.f32 0.03125, %v1594_v21  ;;  %v1599_v24 = vmul.f32 %v1597_v20, %v1597_v20 }
0x1486   :  { %v1598_v25 = vsub.f32 %v1584_v14, %v1596_v23  ;;  %v1601_v10 = vsel %vm83_vm0, %v1599_v24, 0.0 }
0x1487   :  { %1602 = vadd.xlane.f32.xlu0 %v1601_v10 }
0x1488   :  { %v1600_v27 = vmul.f32 %v1598_v25, %v1598_v25 }
0x148a   :  { %v1604_v28 = vsel %vm83_vm0, %v1600_v27, 0.0 }
0x148b   :  { %1605 = vadd.xlane.f32.xlu1 %v1604_v28 }
0x1510   :  { %v1603_v33 = vpop.xlane.xlu0 %1602 }
0x1511   :  { %v1607_v47 = vmul.f32 0.03125, %v1603_v33 }
0x1513   :  { %v1609_v34 = vadd.f32 1e-12, %v1607_v47 }
0x1514   :  { %v1606_v35 = vpop.xlane.xlu1 %1605 }
0x1515   :  { %4531 = vrsqrt.f32 %v1609_v34  ;;  %v1608_v29 = vmul.f32 0.03125, %v1606_v35 }
0x1517   :  { %v1610_v36 = vadd.f32 1e-12, %v1608_v29 }
0x1519   :  { %4533 = vrsqrt.f32 %v1610_v36  ;;  %v4481_v36 = vld [vmem:[%s6295_s18 + $0x8] sm:$0xff]  }
0x1522   :  { %v4532_v26 = vpop.eup %4531 }
0x1523   :  { %v1613_v37 = vmul.f32 %v4532_v26, %v1597_v20  ;;  %v4482_v26 = vld [vmem:[%s6295_s18] sm:$0xff]   ;;  %s4675_s18 = scalar_lea.vmem %s3764_s29, 16 }
0x1524   :  { %p4676_p0 = scmp.ne.s32.totalorder %s3764_s29, %s4675_s18  ;;  %p4681_p2 = scmp.lt.s32.totalorder %s4679_s0, %s4675_s18 }
0x1525   :  { %v1621_v41 = vmul.f32 %v3847_v51, %v1613_v37 }
0x1526   :  { %v4534_v39 = vpop.eup %4533  ;;  %p4682_p3 = por %p4681_p2, %p4680_p1 }
0x1527   :  { %v1614_v40 = vmul.f32 %v4534_v39, %v1598_v25  ;;  %v1629_v44 = vadd.f32 %v3848_v18, %v1621_v41 }
0x1528   :  { %p4683_p4 = pnand %p4682_p3, %p4676_p0 }
0x1529   :  { %v1622_v43 = vmul.f32 %v3847_v51, %v1614_v40 }
0x152b   :  { %v1630_v45 = vadd.f32 %v3848_v18, %v1622_v43 }
0x152d   :  { %v1636_v46 = vpack.c.bf16 %v1630_v45, %v1629_v44 }
0x152f   :  { %4115 = vmatmul.mubr.msk.bf16.vlgmr.msra.gmra.mxu1 %vm83_vm0, %v1636_v46 }
0x1530   :  { %4134 = vmatprep.mubr.msk.bf16.mxu1 %vm4720_vm1, %v6329_v15  ;;  %4131 = vmatpush3.bf16.msra.mxu1 %v4481_v36 }
0x1531   :  { %4132 = vmatprep.subr.bf16.mxu1 %v6329_v15 }
0x1534   :  { %4133 = vmatpush3.bf16.msra.mxu1 %v4482_v26  ;;  %v1925_v26 = vld [vmem:[%s6299_s22] sm:$0xff] }
0x15ef   :  { %v1694_v22 = vpop.f32.mrf.mxu1 }
0x15f0   :  { %v1695_v52 = vadd.f32 %v3854_v32, %v1694_v22 }
0x15f1   :  { %v4116_v53 = vpop.f32.mrf.mxu1 }
0x15f2   :  { %v1703_v54 = vmul.f32 0.044715, %v1695_v52  ;;  %v1701_v5 = vmul.f32 0.5, %v1695_v52  ;;  %v6325_v53 = vmov 1  }
0x15f3   :  { %v1697_v55 = vpop.f32.mrf.mxu1  ;;  %4188 = vset.pattern.permute.xlu1 %v6325_v53 }
0x15f4   :  { %v1705_v56 = vmul.f32 %v1703_v54, %v1695_v52  ;;  %v1698_v57 = vadd.f32 %v3854_v32, %v1697_v55  ;;  %v6327_v54 = vmov 0   ;;  %v3877_v55 = vld [vmem:[%s6296_s19] ss:$0 sm:$0xff] }
0x15f5   :  { %v4117_v58 = vpop.f32.mrf.mxu1  ;;  %4187 = vset.pattern.permute.xlu0 %v6327_v54 }
0x15f6   :  { %v1707_v59 = vmul.f32 %v1705_v56, %v1695_v52  ;;  %v1704_v60 = vmul.f32 0.044715, %v1698_v57  ;;  %v1702_v7 = vmul.f32 0.5, %v1698_v57 }
0x15f8   :  { %v1709_v61 = vadd.f32 %v1707_v59, %v1695_v52  ;;  %v1706_v62 = vmul.f32 %v1704_v60, %v1698_v57 }
0x15fa   :  { %v1711_v42 = vmul.f32 0.7978846, %v1709_v61  ;;  %v1708_v63 = vmul.f32 %v1706_v62, %v1698_v57 }
0x15fc   :  { %4535 = vtanh.f32 %v1711_v42  ;;  %v1710_v0 = vadd.f32 %v1708_v63, %v1698_v57 }
0x15fe   :  { %v1712_v1 = vmul.f32 0.7978846, %v1710_v0 }
0x1600   :  { %4537 = vtanh.f32 %v1712_v1 }
0x1609   :  { %v4536_v2 = vpop.eup %4535 }
0x160a   :  { %v1715_v3 = vadd.f32 1.0, %v4536_v2  ;;  %v3889_v2 = vld [vmem:[%s6297_s20] ss:$0 sm:$0xff] }
0x160c   :  { %v1717_v9 = vmul.f32 %v1715_v3, %v1701_v5 }
0x160d   :  { %v4538_v4 = vpop.eup %4537 }
0x160e   :  { %v1716_v38 = vadd.f32 1.0, %v4538_v4 }
0x1610   :  { %v1718_v12 = vmul.f32 %v1716_v38, %v1702_v7 }
0x1612   :  { %v1728_v8 = vpack.c.bf16 %v1718_v12, %v1717_v9 }
0x1614   :  { %4127 = vmatmul.mubr.msk.bf16.vlgmr.msra.gmra.mxu0 %vm902_vm5, %v1728_v8 }
0x16d4   :  { %v1798_v6 = vpop.f32.mrf.mxu0 }
0x16d5   :  { %v1799_v14 = vadd.f32 %v3867_v13, %v1798_v6 }
0x16d6   :  { %v4128_v16 = vpop.f32.mrf.mxu0 }
0x16d7   :  { %v1805_v17 = vadd.f32 %v1799_v14, %v1629_v44 }
0x16d8   :  { %v1801_v19 = vpop.f32.mrf.mxu0 }
0x16d9   :  { %v1802_v20 = vadd.f32 %v3867_v13, %v1801_v19  ;;  %v1811_v21 = vsel %vm83_vm0, %v1805_v17, 0.0 }
0x16da   :  { %1812 = vadd.xlane.f32.xlu0 %v1811_v21  ;;  %v4129_v23 = vpop.f32.mrf.mxu0 }
0x16db   :  { %v1806_v24 = vadd.f32 %v1802_v20, %v1630_v45  ;;  %v3875_v45 = vld [vmem:[%s6293_s16 + $0x1] ss:$0 sm:$0xff] }
0x16dd   :  { %v1814_v25 = vsel %vm83_vm0, %v1806_v24, 0.0 }
0x16de   :  { %1815 = vadd.xlane.f32.xlu1 %v1814_v25  ;;  %v6317_v25 = vmov 2  }
0x1763   :  { %v1813_v10 = vpop.xlane.xlu0 %1812 }
0x1764   :  { %v1817_v27 = vmul.f32 0.03125, %v1813_v10  ;;  %v6323_v10 = vmov 3  }
0x1766   :  { %v1819_v28 = vsub.f32 %v1805_v17, %v1817_v27  ;;  %v6321_v27 = vmov 4  }
0x1767   :  { %v1816_v11 = vpop.xlane.xlu1 %1815 }
0x1768   :  { %v1818_v30 = vmul.f32 0.03125, %v1816_v11  ;;  %v1821_v33 = vmul.f32 %v1819_v28, %v1819_v28  ;;  %v6315_v11 = vmov 6  }
0x176a   :  { %v1820_v47 = vsub.f32 %v1806_v24, %v1818_v30  ;;  %v1823_v34 = vsel %vm83_vm0, %v1821_v33, 0.0  ;;  %v5311_v30 = vld [vmem:[%s6366_s7] sm:$0x3]  ;;  %v6313_v33 = vmov 7  }
0x176b   :  { %1824 = vadd.xlane.f32.xlu0 %v1823_v34  ;;  %vm2027_vm7 = vcmp.gt.s32.totalorder %v5311_v30, 1  ;;  %v1926_v34 = vlaneseq }
0x176c   :  { %v1822_v35 = vmul.f32 %v1820_v47, %v1820_v47 }
0x176e   :  { %v1826_v29 = vsel %vm83_vm0, %v1822_v35, 0.0  ;;  %v2038_v35 = vshrl.u32 %v1926_v34, 7 }
0x176f   :  { %1827 = vadd.xlane.f32.xlu1 %v1826_v29 }
0x1770   :  { %v2048_v29 = vsub.s32 1, %v2038_v35  ;;  %v2039_v36 = vsub.s32 0, %v2038_v35 }
0x17f4   :  { %v1825_v37 = vpop.xlane.xlu0 %1824 }
0x17f5   :  { %v1829_v51 = vmul.f32 0.03125, %v1825_v37  ;;  %v5325_v37 = vrot.slane %v1925_v26, %v2048_v29 }
0x17f7   :  { %v1831_v39 = vadd.f32 1e-12, %v1829_v51  ;;  %v5327_v51 = vrot.slane %v1925_v26, %v2039_v36 }
0x17f8   :  { %v1828_v40 = vpop.xlane.xlu1 %1827 }
0x17f9   :  { %4539 = vrsqrt.f32 %v1831_v39  ;;  %v1830_v41 = vmul.f32 0.03125, %v1828_v40  ;;  %v2058_v39 = vsub.s32 2, %v2038_v35 }
0x17fb   :  { %v1832_v18 = vadd.f32 1e-12, %v1830_v41 }
0x17fd   :  { %4541 = vrsqrt.f32 %v1832_v18 }
0x1806   :  { %v4540_v43 = vpop.eup %4539 }
0x1807   :  { %v1835_v44 = vmul.f32 %v4540_v43, %v1819_v28  ;;  %v6319_v28 = vmov 5  }
0x1809   :  { %v1843_v31 = vmul.f32 %v3875_v45, %v1835_v44  ;;  %v5333_v44 = vrot.slane %v1925_v26, %v2058_v39 }
0x180a   :  { %v4542_v46 = vpop.eup %4541 }
0x180b   :  { %v1836_v48 = vmul.f32 %v4542_v46, %v1820_v47  ;;  %v1851_v32 = vadd.f32 %v3876_v49, %v1843_v31  ;;  %v2202_v47 = vsel %vm2027_vm7, 1, %v6327_v54  ;;  %v2068_v46 = vsub.s32 3, %v2038_v35 }
0x180d   :  { %v1844_v50 = vmul.f32 %v3875_v45, %v1836_v48 }
0x180f   :  { %v1852_v22 = vadd.f32 %v3876_v49, %v1844_v50  ;;  %v5339_v50 = vrot.slane %v1925_v26, %v2068_v46 }
0x1811   :  { %v1857_v52 = vpack.c.bf16 %v1852_v22, %v1851_v32 }
0x1813   :  { %4135 = vmatmul.mubr.msk.bf16.vlgmr.msra.gmra.mxu1 %vm83_vm0, %v1857_v52  ;;  %v2078_v52 = vsub.s32 4, %v2038_v35  ;;  %vm2232_vm0 = vcmp.gt.s32.totalorder %v5311_v30, 2 }
0x18d3   :  { %v1914_v56 = vpop.f32.mrf.mxu1 }
0x18d4   :  { %v1915_v57 = vadd.f32 %v3877_v55, %v1914_v56 }
0x18d5   :  { %v4136_v58 = vpop.f32.mrf.mxu1 }
0x18d6   :  { %v1940_v61 = vrot.slane %v1915_v57, 1  ;;  %v1949_v42 = vrot.slane %v1915_v57, 2  ;;  %v1960_v63 = vrot.slane %v1915_v57, 3  ;;  %v1971_v0 = vrot.slane %v1915_v57, 4 }
0x18d7   :  { %v1917_v59 = vpop.f32.mrf.mxu1  ;;  %v1982_v1 = vrot.slane %v1915_v57, 5  ;;  %v1993_v7 = vrot.slane %v1915_v57, 6  ;;  %v2004_v14 = vrot.slane %v1915_v57, 7 }
0x18d8   :  { %v1918_v60 = vadd.f32 %v3877_v55, %v1917_v59  ;;  %v5343_v59 = vrot.slane %v1925_v26, %v2078_v52 }
0x18d9   :  { %v4137_v62 = vpop.f32.mrf.mxu1 }
0x18da   :  { %v1929_v3 = vrot.slane %v1918_v60, 7  ;;  %v5273_v4 = vsel %vm1931_vm6, %v1940_v61, %v1918_v60  ;;  %v1951_v5 = vrot.slane %v1918_v60, 1  ;;  %v1962_v38 = vrot.slane %v1918_v60, 2 }
0x18db   :  { %v1973_v9 = vrot.slane %v1918_v60, 3  ;;  %v1984_v12 = vrot.slane %v1918_v60, 4  ;;  %v1995_v8 = vrot.slane %v1918_v60, 5  ;;  %v2006_v16 = vrot.slane %v1918_v60, 6 }
0x18dc   :  { %v1932_v13 = vsel %vm1931_vm6, %v1915_v57, %v1929_v3  ;;  %v5277_v6 = vsel %vm1931_vm6, %v1949_v42, %v1951_v5  ;;  %v5282_v19 = vsel %vm1931_vm6, %v1960_v63, %v1962_v38  ;;  %v2088_v61 = vsub.s32 5, %v2038_v35 }
0x18dd   :  { %v5279_v17 = vadd.f32 %v3889_v2, %v1932_v13  ;;  %v5285_v20 = vsel %vm1931_vm6, %v1971_v0, %v1973_v9  ;;  %v5288_v21 = vsel %vm1931_vm6, %v1982_v1, %v1984_v12  ;;  %v5291_v23 = vsel %vm1931_vm6, %v1993_v7, %v1995_v8 }
0x18de   :  { %6364 = vst [vmem:[#allocation8_spill] sm:$0xff] %v5291_v23  ;;  %v5294_v24 = vsel %vm1931_vm6, %v2004_v14, %v2006_v16  ;;  %v5346_v1 = vrot.slane %v1925_v26, %v2088_v61  ;;  %v2098_v3 = vsub.s32 6, %v2038_v35  ;;  %v2108_v13 = vsub.s32 7, %v2038_v35 }
0x18df   :  { %6365 = vst [vmem:[#allocation9_spill] sm:$0xff] %v5294_v24  ;;  %2126 = vperm.xlu1 %4188, %v5279_v17   ;;  %2121 = vperm.xlu0 %4187, %v5279_v17  }
0x18e0   :  { %v5349_v12 = vrot.slane %v1925_v26, %v2098_v3  ;;  %v5352_v36 = vrot.slane %v1925_v26, %v2108_v13 }
0x18e3   :  { %4189 = vset.pattern.permute.xlu1 %v6317_v25 }
0x18e4   :  { %2131 = vperm.xlu1 %4189, %v5279_v17  }
0x18e8   :  { %4190 = vset.pattern.permute.xlu1 %v6323_v10 }
0x18e9   :  { %2136 = vperm.xlu1 %4190, %v5279_v17  }
0x18ed   :  { %4191 = vset.pattern.permute.xlu1 %v6321_v27 }
0x18ee   :  { %2141 = vperm.xlu1 %4191, %v5279_v17  }
0x18f2   :  { %4192 = vset.pattern.permute.xlu1 %v6319_v28 }
0x18f3   :  { %2146 = vperm.xlu1 %4192, %v5279_v17  }
0x18f7   :  { %4193 = vset.pattern.permute.xlu1 %v6315_v11 }
0x18f8   :  { %2151 = vperm.xlu1 %4193, %v5279_v17  }
0x18fc   :  { %4194 = vset.pattern.permute.xlu1 %v6313_v33 }
0x18fd   :  { %2156 = vperm.xlu1 %4194, %v5279_v17  }
0x1901   :  { %4195 = vset.pattern.permute.xlu1 %v6327_v54 }
0x1902   :  { %2204 = vperm.xlu1 %4195, %v2202_v47  }
0x1906   :  { %4196 = vset.pattern.permute.xlu1 %v6325_v53 }
0x195a   :  { %v2127_v40 = vpop.permute.xlu1 %2126  ;;  %v2122_v41 = vpop.permute.xlu0 %2121 }
0x195b   :  { %v5330_v18 = vadd.f32 %v2127_v40, %v5325_v37  ;;  %v2124_v43 = vadd.f32 %v2122_v41, %v5327_v51 }
0x195d   :  { %v2160_v45 = vmax.f32 %v2124_v43, %v5330_v18  ;;  %vm2208_vm8 = vcmp.gt.f32.partialorder %v5330_v18, %v2124_v43 }
0x195e   :  { %v2210_v49 = vsel %vm2208_vm8, %v5330_v18, %v2124_v43  ;;  %v2209_v32 = vsel %vm2208_vm8, 1, %v6327_v54 }
0x195f   :  { %v2132_v48 = vpop.permute.xlu1 %2131 }
0x1960   :  { %v2134_v31 = vadd.f32 %v2132_v48, %v5333_v44 }
0x1962   :  { %v2161_v22 = vmax.f32 %v2160_v45, %v2134_v31  ;;  %vm2211_vm9 = vcmp.gt.f32.partialorder %v2134_v31, %v2210_v49 }
0x1963   :  { %v2212_v55 = vsel %vm2211_vm9, 2, %v2209_v32  ;;  %v2213_v58 = vsel %vm2211_vm9, %v2134_v31, %v2210_v49 }
0x1964   :  { %v2137_v56 = vpop.permute.xlu1 %2136 }
0x1965   :  { %v2139_v57 = vadd.f32 %v2137_v56, %v5339_v50 }
0x1967   :  { %v2162_v60 = vmax.f32 %v2161_v22, %v2139_v57  ;;  %vm2214_vm10 = vcmp.gt.f32.partialorder %v2139_v57, %v2213_v58 }
0x1968   :  { %v2215_v62 = vsel %vm2214_vm10, 3, %v2212_v55  ;;  %v2216_v0 = vsel %vm2214_vm10, %v2139_v57, %v2213_v58  ;;  %vm2446_vm10 = vcmp.gt.s32.totalorder %v5311_v30, 3 }
0x1969   :  { %v2142_v42 = vpop.permute.xlu1 %2141 }
0x196a   :  { %v2144_v63 = vadd.f32 %v2142_v42, %v5343_v59 }
0x196c   :  { %v2163_v2 = vmax.f32 %v2162_v60, %v2144_v63  ;;  %vm2217_vm11 = vcmp.gt.f32.partialorder %v2144_v63, %v2216_v0 }
0x196d   :  { %v2218_v5 = vsel %vm2217_vm11, 4, %v2215_v62  ;;  %v2219_v9 = vsel %vm2217_vm11, %v2144_v63, %v2216_v0 }
0x196e   :  { %v2147_v7 = vpop.permute.xlu1 %2146 }
0x196f   :  { %v2149_v38 = vadd.f32 %v2147_v7, %v5346_v1  ;;  %v2375_v7 = vsel %vm2232_vm0, 1, %v6327_v54 }
0x1971   :  { %v2164_v8 = vmax.f32 %v2163_v2, %v2149_v38  ;;  %vm2220_vm12 = vcmp.gt.f32.partialorder %v2149_v38, %v2219_v9 }
0x1972   :  { %v2221_v14 = vsel %vm2220_vm12, 5, %v2218_v5  ;;  %v2222_v29 = vsel %vm2220_vm12, %v2149_v38, %v2219_v9 }
0x1973   :  { %v2152_v16 = vpop.permute.xlu1 %2151 }
0x1974   :  { %v2154_v47 = vadd.f32 %v2152_v16, %v5349_v12 }
0x1976   :  { %v2165_v39 = vmax.f32 %v2164_v8, %v2154_v47  ;;  %vm2223_vm13 = vcmp.gt.f32.partialorder %v2154_v47, %v2222_v29 }
0x1977   :  { %v2224_v40 = vsel %vm2223_vm13, 6, %v2221_v14  ;;  %v2225_v46 = vsel %vm2223_vm13, %v2154_v47, %v2222_v29 }
0x1978   :  { %v2157_v41 = vpop.permute.xlu1 %2156 }
0x1979   :  { %v2159_v45 = vadd.f32 %v2157_v41, %v5352_v36 }
0x197b   :  { %v5355_v48 = vmax.f32 %v2165_v39, %v2159_v45  ;;  %vm2226_vm14 = vcmp.gt.f32.partialorder %v2159_v45, %v2225_v46 }
0x197c   :  { %v2228_v49 = vsel %vm2226_vm14, %v2159_v45, %v2225_v46  ;;  %v5357_v32 = vsel %vm2226_vm14, 7, %v2224_v40 }
0x197d   :  { %6367 = vst [vmem:[#allocation10_spill] sm:$0xff] %v5357_v32  ;;  %v2194_v35 = vsub.f32 %v2159_v45, %v5355_v48  ;;  %v2167_v22 = vsub.f32 %v2124_v43, %v5355_v48  ;;  %v2170_v26 = vsub.f32 %v5330_v18, %v5355_v48  ;;  %v2174_v52 = vsub.f32 %v2134_v31, %v5355_v48  ;;  %v5364_v55 = vpop.permute.xlu1 %2204 }
0x197e   :  { %v2178_v56 = vsub.f32 %v2139_v57, %v5355_v48  ;;  %v2182_v58 = vsub.f32 %v2144_v63, %v5355_v48  ;;  %v2186_v60 = vsub.f32 %v2149_v38, %v5355_v48  ;;  %v2190_v61 = vsub.f32 %v2154_v47, %v5355_v48 }
0x197f   :  { %v2168_v62 = vmul.f32 1.442695, %v2167_v22  ;;  %v2171_v42 = vmul.f32 1.442695, %v2170_v26  ;;  %v2229_v0 = vadd.f32 %v2228_v49, %v5273_v4  ;;  %v2175_v43 = vmul.f32 1.442695, %v2174_v52 }
0x1980   :  { %vm2206_vm15 = vcmp.eq.s32.totalorder %v5364_v55, 1  ;;  %v2179_v31 = vmul.f32 1.442695, %v2178_v56  ;;  %v2183_v57 = vmul.f32 1.442695, %v2182_v58  ;;  %v6386_v55 = vmov 5  }
0x1981   :  { %4543 = vpow2.f32 %v2168_v62  ;;  %v5375_v18 = vsel %vm2206_vm15, %v2229_v0, %v5279_v17  ;;  %v2187_v63 = vmul.f32 1.442695, %v2186_v60  ;;  %v2191_v2 = vmul.f32 1.442695, %v2190_v61 }
0x1982   :  { %4545 = vpow2.f32 %v2171_v42  ;;  %2388 = vperm.xlu1 %4196, %v5375_v18   ;;  %2383 = vperm.xlu0 %4187, %v5375_v18   ;;  %v2195_v3 = vmul.f32 1.442695, %v2194_v35 }
0x1983   :  { %4547 = vpow2.f32 %v2175_v43 }
0x1984   :  { %4549 = vpow2.f32 %v2179_v31 }
0x1985   :  { %4551 = vpow2.f32 %v2183_v57 }
0x1986   :  { %4198 = vset.pattern.permute.xlu1 %v6323_v10  ;;  %4197 = vset.pattern.permute.xlu0 %v6317_v25  ;;  %4553 = vpow2.f32 %v2187_v63 }
0x1987   :  { %2398 = vperm.xlu1 %4198, %v5375_v18   ;;  %2393 = vperm.xlu0 %4197, %v5375_v18   ;;  %4555 = vpow2.f32 %v2191_v2 }
0x1988   :  { %4557 = vpow2.f32 %v2195_v3 }
0x198b   :  { %4199 = vset.pattern.permute.xlu1 %v6321_v27  ;;  %4200 = vset.pattern.permute.xlu0 %v6319_v28 }
0x198c   :  { %2403 = vperm.xlu1 %4199, %v5375_v18   ;;  %2408 = vperm.xlu0 %4200, %v5375_v18  }
0x198e   :  { %v4544_v5 = vpop.eup %4543 }
0x198f   :  { %v4546_v38 = vpop.eup %4545 }
0x1990   :  { %v2173_v9 = vadd.f32 %v4546_v38, %v4544_v5  ;;  %4201 = vset.pattern.permute.xlu1 %v6315_v11  ;;  %4203 = vset.pattern.permute.xlu0 %v6327_v54  ;;  %v4548_v8 = vpop.eup %4547 }
0x1991   :  { %2413 = vperm.xlu1 %4201, %v5375_v18   ;;  %2377 = vperm.xlu0 %4203, %v2375_v7   ;;  %v4550_v14 = vpop.eup %4549 }
0x1992   :  { %v2177_v13 = vadd.f32 %v4548_v8, %v2173_v9  ;;  %v4552_v47 = vpop.eup %4551 }
0x1993   :  { %v4554_v39 = vpop.eup %4553 }
0x1994   :  { %v2181_v16 = vadd.f32 %v4550_v14, %v2177_v13  ;;  %v4556_v41 = vpop.eup %4555 }
0x1995   :  { %4202 = vset.pattern.permute.xlu1 %v6313_v33  ;;  %4206 = vset.pattern.permute.xlu0 %v6317_v25  ;;  %v4558_v46 = vpop.eup %4557 }
0x1996   :  { %v2185_v29 = vadd.f32 %v4552_v47, %v2181_v16  ;;  %2418 = vperm.xlu1 %4202, %v5375_v18  }
0x1998   :  { %v2189_v40 = vadd.f32 %v4554_v39, %v2185_v29 }
0x199a   :  { %v2193_v45 = vadd.f32 %v4556_v41, %v2189_v40  ;;  %4204 = vset.pattern.permute.xlu1 %v6327_v54 }
0x199c   :  { %v2197_v49 = vadd.f32 %v4558_v46, %v2193_v45 }
0x199e   :  { %4559 = vlog2.f32 %v2197_v49 }
0x19ab   :  { %v4560_v35 = vpop.eup %4559 }
0x19ac   :  { %v2199_v22 = vmul.f32 0.6931472, %v4560_v35 }
0x19ae   :  { %v5399_v26 = vadd.f32 %v2199_v22, %v5355_v48 }
0x19fd   :  { %v2389_v52 = vpop.permute.xlu1 %2388  ;;  %v2384_v56 = vpop.permute.xlu0 %2383 }
0x19fe   :  { %v2391_v58 = vadd.f32 %v2389_v52, %v5325_v37  ;;  %v2386_v60 = vadd.f32 %v2384_v56, %v5327_v51  ;;  %v2589_v52 = vsel %vm2446_vm10, 1, %v6327_v54 }
0x1a00   :  { %vm2422_vm1 = vcmp.gt.f32.partialorder %v2391_v58, %v2386_v60 }
0x1a01   :  { %v2424_v0 = vsel %vm2422_vm1, %v2391_v58, %v2386_v60  ;;  %v2423_v43 = vsel %vm2422_vm1, 1, %v6327_v54 }
0x1a02   :  { %v2399_v61 = vpop.permute.xlu1 %2398  ;;  %v2394_v62 = vpop.permute.xlu0 %2393 }
0x1a03   :  { %v2396_v42 = vadd.f32 %v2394_v62, %v5333_v44  ;;  %v2401_v31 = vadd.f32 %v2399_v61, %v5339_v50 }
0x1a05   :  { %vm2425_vm2 = vcmp.gt.f32.partialorder %v2396_v42, %v2424_v0 }
0x1a06   :  { %v2426_v57 = vsel %vm2425_vm2, 2, %v2423_v43  ;;  %v2427_v48 = vsel %vm2425_vm2, %v2396_v42, %v2424_v0 }
0x1a07   :  { %v2404_v63 = vpop.permute.xlu1 %2403  ;;  %vm2428_vm3 = vcmp.gt.f32.partialorder %v2401_v31, %v2427_v48  ;;  %v2409_v2 = vpop.permute.xlu0 %2408 }
0x1a08   :  { %v2406_v3 = vadd.f32 %v2404_v63, %v5343_v59  ;;  %v2429_v5 = vsel %vm2428_vm3, 3, %v2426_v57  ;;  %v2430_v7 = vsel %vm2428_vm3, %v2401_v31, %v2427_v48  ;;  %v2411_v38 = vadd.f32 %v2409_v2, %v5346_v1 }
0x1a0a   :  { %vm2431_vm4 = vcmp.gt.f32.partialorder %v2406_v3, %v2430_v7 }
0x1a0b   :  { %v2432_v9 = vsel %vm2431_vm4, 4, %v2429_v5  ;;  %v2433_v8 = vsel %vm2431_vm4, %v2406_v3, %v2430_v7 }
0x1a0c   :  { %vm2434_vm5 = vcmp.gt.f32.partialorder %v2411_v38, %v2433_v8  ;;  %v2414_v13 = vpop.permute.xlu1 %2413  ;;  %v5410_v41 = vpop.permute.xlu0 %2377 }
0x1a0d   :  { %v2435_v14 = vsel %vm2434_vm5, 5, %v2432_v9  ;;  %v2416_v16 = vadd.f32 %v2414_v13, %v5349_v12  ;;  %v2436_v47 = vsel %vm2434_vm5, %v2411_v38, %v2433_v8  ;;  %vm2379_vm9 = vcmp.eq.s32.totalorder %v5410_v41, 1 }
0x1a0e   :  { %vm2660_vm5 = vcmp.gt.s32.totalorder %v5311_v30, 4 }
0x1a0f   :  { %vm2437_vm6 = vcmp.gt.f32.partialorder %v2416_v16, %v2436_v47 }
0x1a10   :  { %v2438_v29 = vsel %vm2437_vm6, 6, %v2435_v14  ;;  %v2439_v45 = vsel %vm2437_vm6, %v2416_v16, %v2436_v47 }
0x1a11   :  { %v2419_v39 = vpop.permute.xlu1 %2418 }
0x1a12   :  { %v2421_v40 = vadd.f32 %v2419_v39, %v5352_v36 }
0x1a14   :  { %vm2440_vm8 = vcmp.gt.f32.partialorder %v2421_v40, %v2439_v45 }
0x1a15   :  { %v5412_v46 = vsel %vm2440_vm8, 7, %v2438_v29  ;;  %v2442_v49 = vsel %vm2440_vm8, %v2421_v40, %v2439_v45 }
0x1a16   :  { %6368 = vst [vmem:[#allocation11_spill] sm:$0xff] %v5412_v46  ;;  %v2443_v35 = vadd.f32 %v2442_v49, %v5277_v6 }
0x1a18   :  { %v2444_v22 = vsel %vm2379_vm9, %v2443_v35, %v5375_v18 }
0x1a19   :  { %2607 = vperm.xlu0 %4206, %v2444_v22   ;;  %2597 = vperm.xlu1 %4204, %v2444_v22  }
0x1a1d   :  { %4209 = vset.pattern.permute.xlu0 %v6319_v28  ;;  %4205 = vset.pattern.permute.xlu1 %v6325_v53 }
0x1a1e   :  { %2622 = vperm.xlu0 %4209, %v2444_v22   ;;  %2602 = vperm.xlu1 %4205, %v2444_v22  }
0x1a22   :  { %4207 = vset.pattern.permute.xlu1 %v6323_v10  ;;  %4212 = vset.pattern.permute.xlu0 %v6327_v54 }
0x1a23   :  { %2612 = vperm.xlu1 %4207, %v2444_v22   ;;  %2591 = vperm.xlu0 %4212, %v2589_v52  }
0x1a27   :  { %4208 = vset.pattern.permute.xlu1 %v6321_v27  ;;  %4215 = vset.pattern.permute.xlu0 %v6317_v25 }
0x1a28   :  { %2617 = vperm.xlu1 %4208, %v2444_v22  }
0x1a2c   :  { %4210 = vset.pattern.permute.xlu1 %v6315_v11 }
0x1a2d   :  { %2627 = vperm.xlu1 %4210, %v2444_v22  }
0x1a31   :  { %4211 = vset.pattern.permute.xlu1 %v6313_v33 }
0x1a32   :  { %2632 = vperm.xlu1 %4211, %v2444_v22  }
0x1a36   :  { %4213 = vset.pattern.permute.xlu1 %v6327_v54 }
0x1a94   :  { %v2598_v18 = vpop.permute.xlu1 %2597  ;;  %v2608_v56 = vpop.permute.xlu0 %2607 }
0x1a95   :  { %v2600_v60 = vadd.f32 %v2598_v18, %v5327_v51  ;;  %v2610_v62 = vadd.f32 %v2608_v56, %v5333_v44 }
0x1a99   :  { %v2603_v58 = vpop.permute.xlu1 %2602  ;;  %v2623_v2 = vpop.permute.xlu0 %2622 }
0x1a9a   :  { %v2605_v61 = vadd.f32 %v2603_v58, %v5325_v37  ;;  %v2625_v38 = vadd.f32 %v2623_v2, %v5346_v1  ;;  %v2803_v58 = vsel %vm2660_vm5, 1, %v6327_v54 }
0x1a9c   :  { %vm2636_vm11 = vcmp.gt.f32.partialorder %v2605_v61, %v2600_v60 }
0x1a9d   :  { %v2637_v42 = vsel %vm2636_vm11, 1, %v6327_v54  ;;  %v2638_v0 = vsel %vm2636_vm11, %v2605_v61, %v2600_v60 }
0x1a9e   :  { %vm2639_vm12 = vcmp.gt.f32.partialorder %v2610_v62, %v2638_v0  ;;  %v2613_v43 = vpop.permute.xlu1 %2612  ;;  %v5441_v45 = vpop.permute.xlu0 %2591 }
0x1a9f   :  { %v2640_v31 = vsel %vm2639_vm12, 2, %v2637_v42  ;;  %v2641_v57 = vsel %vm2639_vm12, %v2610_v62, %v2638_v0  ;;  %v2615_v48 = vadd.f32 %v2613_v43, %v5339_v50  ;;  %vm2593_vm4 = vcmp.eq.s32.totalorder %v5441_v45, 1 }
0x1aa1   :  { %vm2642_vm13 = vcmp.gt.f32.partialorder %v2615_v48, %v2641_v57 }
0x1aa2   :  { %v2643_v63 = vsel %vm2642_vm13, 3, %v2640_v31  ;;  %v2644_v7 = vsel %vm2642_vm13, %v2615_v48, %v2641_v57 }
0x1aa3   :  { %v2618_v3 = vpop.permute.xlu1 %2617 }
0x1aa4   :  { %v2620_v5 = vadd.f32 %v2618_v3, %v5343_v59 }
0x1aa6   :  { %vm2645_vm14 = vcmp.gt.f32.partialorder %v2620_v5, %v2644_v7 }
0x1aa7   :  { %v2646_v9 = vsel %vm2645_vm14, 4, %v2643_v63  ;;  %v2647_v8 = vsel %vm2645_vm14, %v2620_v5, %v2644_v7 }
0x1aa8   :  { %vm2648_vm1 = vcmp.gt.f32.partialorder %v2625_v38, %v2647_v8  ;;  %v2628_v13 = vpop.permute.xlu1 %2627 }
0x1aa9   :  { %v2649_v14 = vsel %vm2648_vm1, 5, %v2646_v9  ;;  %v2650_v16 = vsel %vm2648_vm1, %v2625_v38, %v2647_v8  ;;  %v2630_v47 = vadd.f32 %v2628_v13, %v5349_v12 }
0x1aab   :  { %vm2651_vm2 = vcmp.gt.f32.partialorder %v2630_v47, %v2650_v16 }
0x1aac   :  { %v2652_v29 = vsel %vm2651_vm2, 6, %v2649_v14  ;;  %v2653_v49 = vsel %vm2651_vm2, %v2630_v47, %v2650_v16 }
0x1aad   :  { %v2633_v39 = vpop.permute.xlu1 %2632 }
0x1aae   :  { %v2635_v40 = vadd.f32 %v2633_v39, %v5352_v36 }
0x1ab0   :  { %vm2654_vm3 = vcmp.gt.f32.partialorder %v2635_v40, %v2653_v49 }
0x1ab1   :  { %v5443_v35 = vsel %vm2654_vm3, 7, %v2652_v29  ;;  %v2656_v52 = vsel %vm2654_vm3, %v2635_v40, %v2653_v49  ;;  %vm2874_vm3 = vcmp.gt.s32.totalorder %v5311_v30, 5 }
0x1ab2   :  { %6369 = vst [vmem:[#allocation12_spill] sm:$0xff] %v5443_v35  ;;  %v2657_v18 = vadd.f32 %v2656_v52, %v5282_v19 }
0x1ab4   :  { %v2658_v56 = vsel %vm2593_vm4, %v2657_v18, %v2444_v22 }
0x1ab5   :  { %2821 = vperm.xlu0 %4215, %v2658_v56   ;;  %2811 = vperm.xlu1 %4213, %v2658_v56  }
0x1ab9   :  { %4218 = vset.pattern.permute.xlu0 %v6319_v28  ;;  %4214 = vset.pattern.permute.xlu1 %v6325_v53 }
0x1aba   :  { %2836 = vperm.xlu0 %4218, %v2658_v56   ;;  %2816 = vperm.xlu1 %4214, %v2658_v56  }
0x1abe   :  { %4216 = vset.pattern.permute.xlu1 %v6323_v10  ;;  %4221 = vset.pattern.permute.xlu0 %v6327_v54 }
0x1abf   :  { %2826 = vperm.xlu1 %4216, %v2658_v56   ;;  %2805 = vperm.xlu0 %4221, %v2803_v58  }
0x1ac3   :  { %4217 = vset.pattern.permute.xlu1 %v6321_v27  ;;  %4224 = vset.pattern.permute.xlu0 %v6317_v25 }
0x1ac4   :  { %2831 = vperm.xlu1 %4217, %v2658_v56  }
0x1ac8   :  { %4219 = vset.pattern.permute.xlu1 %v6315_v11 }
0x1ac9   :  { %2841 = vperm.xlu1 %4219, %v2658_v56  }
0x1acd   :  { %4220 = vset.pattern.permute.xlu1 %v6313_v33 }
0x1ace   :  { %2846 = vperm.xlu1 %4220, %v2658_v56  }
0x1ad2   :  { %4222 = vset.pattern.permute.xlu1 %v6327_v54 }
0x1b30   :  { %v2812_v22 = vpop.permute.xlu1 %2811  ;;  %v2822_v60 = vpop.permute.xlu0 %2821 }
0x1b31   :  { %v2814_v62 = vadd.f32 %v2812_v22, %v5327_v51  ;;  %v2824_v0 = vadd.f32 %v2822_v60, %v5333_v44 }
0x1b35   :  { %v2817_v61 = vpop.permute.xlu1 %2816  ;;  %v2837_v5 = vpop.permute.xlu0 %2836 }
0x1b36   :  { %v2819_v42 = vadd.f32 %v2817_v61, %v5325_v37  ;;  %v2839_v8 = vadd.f32 %v2837_v5, %v5346_v1 }
0x1b38   :  { %vm2850_vm6 = vcmp.gt.f32.partialorder %v2819_v42, %v2814_v62 }
0x1b39   :  { %v2851_v43 = vsel %vm2850_vm6, 1, %v6327_v54  ;;  %v2852_v31 = vsel %vm2850_vm6, %v2819_v42, %v2814_v62  ;;  %v3017_v42 = vsel %vm2874_vm3, 1, %v6327_v54 }
0x1b3a   :  { %vm2853_vm8 = vcmp.gt.f32.partialorder %v2824_v0, %v2852_v31  ;;  %v2827_v57 = vpop.permute.xlu1 %2826  ;;  %v5471_v18 = vpop.permute.xlu0 %2805 }
0x1b3b   :  { %v2854_v48 = vsel %vm2853_vm8, 2, %v2851_v43  ;;  %v2855_v63 = vsel %vm2853_vm8, %v2824_v0, %v2852_v31  ;;  %v2829_v2 = vadd.f32 %v2827_v57, %v5339_v50  ;;  %6370 = vst [vmem:[#allocation13_spill] sm:$0xff] %v5471_v18  ;;  %vm2807_vm2 = vcmp.eq.s32.totalorder %v5471_v18, 1 }
0x1b3d   :  { %vm2856_vm11 = vcmp.gt.f32.partialorder %v2829_v2, %v2855_v63 }
0x1b3e   :  { %v2857_v3 = vsel %vm2856_vm11, 3, %v2854_v48  ;;  %v2858_v9 = vsel %vm2856_vm11, %v2829_v2, %v2855_v63 }
0x1b3f   :  { %v2832_v7 = vpop.permute.xlu1 %2831 }
0x1b40   :  { %v2834_v38 = vadd.f32 %v2832_v7, %v5343_v59 }
0x1b42   :  { %vm2859_vm12 = vcmp.gt.f32.partialorder %v2834_v38, %v2858_v9 }
0x1b43   :  { %v2860_v13 = vsel %vm2859_vm12, 4, %v2857_v3  ;;  %v2861_v14 = vsel %vm2859_vm12, %v2834_v38, %v2858_v9 }
0x1b44   :  { %vm2862_vm13 = vcmp.gt.f32.partialorder %v2839_v8, %v2861_v14  ;;  %v2842_v16 = vpop.permute.xlu1 %2841 }
0x1b45   :  { %v2863_v47 = vsel %vm2862_vm13, 5, %v2860_v13  ;;  %v2864_v29 = vsel %vm2862_vm13, %v2839_v8, %v2861_v14  ;;  %v2844_v39 = vadd.f32 %v2842_v16, %v5349_v12 }
0x1b47   :  { %vm2865_vm14 = vcmp.gt.f32.partialorder %v2844_v39, %v2864_v29 }
0x1b48   :  { %v2866_v40 = vsel %vm2865_vm14, 6, %v2863_v47  ;;  %v2867_v58 = vsel %vm2865_vm14, %v2844_v39, %v2864_v29 }
0x1b49   :  { %v2847_v49 = vpop.permute.xlu1 %2846 }
0x1b4a   :  { %v2849_v52 = vadd.f32 %v2847_v49, %v5352_v36 }
0x1b4c   :  { %vm2868_vm1 = vcmp.gt.f32.partialorder %v2849_v52, %v2867_v58 }
0x1b4d   :  { %v5473_v22 = vsel %vm2868_vm1, 7, %v2866_v40  ;;  %v2870_v60 = vsel %vm2868_vm1, %v2849_v52, %v2867_v58 }
0x1b4e   :  { %6371 = vst [vmem:[#allocation14_spill] sm:$0xff] %v5473_v22  ;;  %v2871_v61 = vadd.f32 %v2870_v60, %v5285_v20 }
0x1b50   :  { %v2872_v62 = vsel %vm2807_vm2, %v2871_v61, %v2658_v56 }
0x1b51   :  { %3035 = vperm.xlu0 %4224, %v2872_v62   ;;  %3025 = vperm.xlu1 %4222, %v2872_v62  }
0x1b55   :  { %4227 = vset.pattern.permute.xlu0 %v6319_v28  ;;  %4223 = vset.pattern.permute.xlu1 %v6325_v53 }
0x1b56   :  { %3050 = vperm.xlu0 %4227, %v2872_v62   ;;  %3030 = vperm.xlu1 %4223, %v2872_v62  }
0x1b5a   :  { %4225 = vset.pattern.permute.xlu1 %v6323_v10  ;;  %4230 = vset.pattern.permute.xlu0 %v6327_v54 }
0x1b5b   :  { %3040 = vperm.xlu1 %4225, %v2872_v62   ;;  %3019 = vperm.xlu0 %4230, %v3017_v42  }
0x1b5f   :  { %4226 = vset.pattern.permute.xlu1 %v6321_v27  ;;  %4233 = vset.pattern.permute.xlu0 %v6317_v25 }
0x1b60   :  { %3045 = vperm.xlu1 %4226, %v2872_v62  }
0x1b64   :  { %4228 = vset.pattern.permute.xlu1 %v6315_v11 }
0x1b65   :  { %3055 = vperm.xlu1 %4228, %v2872_v62  }
0x1b69   :  { %4229 = vset.pattern.permute.xlu1 %v6313_v33 }
0x1b6a   :  { %3060 = vperm.xlu1 %4229, %v2872_v62  }
0x1b6e   :  { %4231 = vset.pattern.permute.xlu1 %v6327_v54 }
0x1bcc   :  { %v3026_v56 = vpop.permute.xlu1 %3025  ;;  %v3036_v0 = vpop.permute.xlu0 %3035 }
0x1bcd   :  { %v3028_v31 = vadd.f32 %v3026_v56, %v5327_v51  ;;  %v3038_v48 = vadd.f32 %v3036_v0, %v5333_v44 }
0x1bd1   :  { %v3031_v43 = vpop.permute.xlu1 %3030  ;;  %v3051_v8 = vpop.permute.xlu0 %3050 }
0x1bd2   :  { %v3033_v57 = vadd.f32 %v3031_v43, %v5325_v37  ;;  %v3053_v47 = vadd.f32 %v3051_v8, %v5346_v1 }
0x1bd4   :  { %vm3064_vm6 = vcmp.gt.f32.partialorder %v3033_v57, %v3028_v31 }
0x1bd5   :  { %v3065_v63 = vsel %vm3064_vm6, 1, %v6327_v54  ;;  %v3066_v2 = vsel %vm3064_vm6, %v3033_v57, %v3028_v31 }
0x1bd6   :  { %vm3067_vm8 = vcmp.gt.f32.partialorder %v3038_v48, %v3066_v2  ;;  %v3041_v3 = vpop.permute.xlu1 %3040  ;;  %v5501_v56 = vpop.permute.xlu0 %3019 }
0x1bd7   :  { %v3068_v5 = vsel %vm3067_vm8, 2, %v3065_v63  ;;  %v3069_v7 = vsel %vm3067_vm8, %v3038_v48, %v3066_v2  ;;  %v3043_v38 = vadd.f32 %v3041_v3, %v5339_v50  ;;  %6372 = vst [vmem:[#allocation15_spill] sm:$0xff] %v5501_v56  ;;  %vm3021_vm6 = vcmp.eq.s32.totalorder %v5501_v56, 1 }
0x1bd8   :  { %vm6312_vm8 = vcmp.gt.s32.totalorder %v5311_v30, 6 }
0x1bd9   :  { %vm3070_vm11 = vcmp.gt.f32.partialorder %v3043_v38, %v3069_v7  ;;  %v3231_v63 = vsel %vm6312_vm8, 1, %v6327_v54 }
0x1bda   :  { %v3071_v9 = vsel %vm3070_vm11, 3, %v3068_v5  ;;  %v3072_v16 = vsel %vm3070_vm11, %v3043_v38, %v3069_v7 }
0x1bdb   :  { %v3046_v13 = vpop.permute.xlu1 %3045 }
0x1bdc   :  { %v3048_v14 = vadd.f32 %v3046_v13, %v5343_v59 }
0x1bde   :  { %vm3073_vm12 = vcmp.gt.f32.partialorder %v3048_v14, %v3072_v16 }
0x1bdf   :  { %v3074_v29 = vsel %vm3073_vm12, 4, %v3071_v9  ;;  %v3075_v39 = vsel %vm3073_vm12, %v3048_v14, %v3072_v16 }
0x1be0   :  { %vm3076_vm13 = vcmp.gt.f32.partialorder %v3053_v47, %v3075_v39  ;;  %v3056_v40 = vpop.permute.xlu1 %3055 }
0x1be1   :  { %v3077_v49 = vsel %vm3076_vm13, 5, %v3074_v29  ;;  %v3078_v52 = vsel %vm3076_vm13, %v3053_v47, %v3075_v39  ;;  %v3058_v58 = vadd.f32 %v3056_v40, %v5349_v12 }
0x1be3   :  { %vm3079_vm14 = vcmp.gt.f32.partialorder %v3058_v58, %v3078_v52 }
0x1be4   :  { %v3080_v60 = vsel %vm3079_vm14, 6, %v3077_v49  ;;  %v3081_v0 = vsel %vm3079_vm14, %v3058_v58, %v3078_v52 }
0x1be5   :  { %v3061_v61 = vpop.permute.xlu1 %3060 }
0x1be6   :  { %v3063_v42 = vadd.f32 %v3061_v61, %v5352_v36 }
0x1be8   :  { %vm3082_vm1 = vcmp.gt.f32.partialorder %v3063_v42, %v3081_v0 }
0x1be9   :  { %v5503_v43 = vsel %vm3082_vm1, 7, %v3080_v60  ;;  %v3084_v31 = vsel %vm3082_vm1, %v3063_v42, %v3081_v0 }
0x1bea   :  { %6373 = vst [vmem:[#allocation16_spill] sm:$0xff] %v5503_v43  ;;  %v3085_v57 = vadd.f32 %v3084_v31, %v5288_v21 }
0x1bec   :  { %v5509_v48 = vsel %vm3021_vm6, %v3085_v57, %v2872_v62  ;;  %v5527_v62 = vld [vmem:[%s6374_s6] sm:$0x3] }
0x1bed   :  { %3249 = vperm.xlu0 %4233, %v5509_v48   ;;  %3239 = vperm.xlu1 %4231, %v5509_v48  }
0x1bf1   :  { %4236 = vset.pattern.permute.xlu0 %v6319_v28  ;;  %4232 = vset.pattern.permute.xlu1 %v6325_v53 }
0x1bf2   :  { %3264 = vperm.xlu0 %4236, %v5509_v48   ;;  %3244 = vperm.xlu1 %4232, %v5509_v48  }
0x1bf6   :  { %4239 = vset.pattern.permute.xlu0 %v6327_v54  ;;  %4234 = vset.pattern.permute.xlu1 %v6323_v10 }
0x1bf7   :  { %3233 = vperm.xlu0 %4239, %v3231_v63   ;;  %3254 = vperm.xlu1 %4234, %v5509_v48  }
0x1bfb   :  { %4244 = vset.pattern.permute.xlu0 %v6319_v28  ;;  %4235 = vset.pattern.permute.xlu1 %v6321_v27 }
0x1bfc   :  { %1988 = vperm.xlu0 %4244, %v5527_v62   ;;  %3259 = vperm.xlu1 %4235, %v5509_v48  }
0x1c00   :  { %4237 = vset.pattern.permute.xlu1 %v6315_v11  ;;  %4255 = vset.pattern.permute.xlu0 %v6327_v54 }
0x1c01   :  { %3269 = vperm.xlu1 %4237, %v5509_v48  }
0x1c05   :  { %4238 = vset.pattern.permute.xlu1 %v6313_v33 }
0x1c06   :  { %3274 = vperm.xlu1 %4238, %v5509_v48  }
0x1c0a   :  { %4240 = vset.pattern.permute.xlu1 %v6327_v54 }
0x1c0b   :  { %1934 = vperm.xlu1 %4240, %v5527_v62  }
0x1c0f   :  { %4241 = vset.pattern.permute.xlu1 %v6325_v53 }
0x1c10   :  { %1944 = vperm.xlu1 %4241, %v5527_v62  }
0x1c14   :  { %4242 = vset.pattern.permute.xlu1 %v6323_v10 }
0x1c15   :  { %1966 = vperm.xlu1 %4242, %v5527_v62  }
0x1c19   :  { %4243 = vset.pattern.permute.xlu1 %v6321_v27 }
0x1c1a   :  { %1977 = vperm.xlu1 %4243, %v5527_v62  }
0x1c1e   :  { %4245 = vset.pattern.permute.xlu1 %v6315_v11 }
0x1c1f   :  { %1999 = vperm.xlu1 %4245, %v5527_v62  }
0x1c23   :  { %4246 = vset.pattern.permute.xlu1 %v6313_v33 }
0x1c24   :  { %2010 = vperm.xlu1 %4246, %v5527_v62  }
0x1c28   :  { %4247 = vset.pattern.permute.xlu1 %v6327_v54 }
0x1c68   :  { %v3240_v2 = vpop.permute.xlu1 %3239  ;;  %v3250_v3 = vpop.permute.xlu0 %3249 }
0x1c69   :  { %v3242_v7 = vadd.f32 %v3240_v2, %v5327_v51  ;;  %v3252_v9 = vadd.f32 %v3250_v3, %v5333_v44 }
0x1c6d   :  { %v3245_v5 = vpop.permute.xlu1 %3244  ;;  %v3265_v40 = vpop.permute.xlu0 %3264 }
0x1c6e   :  { %v3247_v38 = vadd.f32 %v3245_v5, %v5325_v37  ;;  %v3267_v60 = vadd.f32 %v3265_v40, %v5346_v1 }
0x1c70   :  { %vm3278_vm11 = vcmp.gt.f32.partialorder %v3247_v38, %v3242_v7 }
0x1c71   :  { %v3279_v8 = vsel %vm3278_vm11, 1, %v6327_v54  ;;  %v3280_v13 = vsel %vm3278_vm11, %v3247_v38, %v3242_v7 }
0x1c72   :  { %vm3281_vm12 = vcmp.gt.f32.partialorder %v3252_v9, %v3280_v13  ;;  %v3255_v14 = vpop.permute.xlu1 %3254  ;;  %v5560_v38 = vpop.permute.xlu0 %3233 }
0x1c73   :  { %v3282_v16 = vsel %vm3281_vm12, 2, %v3279_v8  ;;  %v3283_v47 = vsel %vm3281_vm12, %v3252_v9, %v3280_v13  ;;  %v3257_v29 = vadd.f32 %v3255_v14, %v5339_v50  ;;  %6375 = vst [vmem:[#allocation17_spill] sm:$0xff] %v5560_v38  ;;  %v5564_v9 = vand.u32 127, %v1926_v34 }
0x1c75   :  { %vm3284_vm13 = vcmp.gt.f32.partialorder %v3257_v29, %v3283_v47 }
0x1c76   :  { %v3285_v39 = vsel %vm3284_vm13, 3, %v3282_v16  ;;  %v3286_v58 = vsel %vm3284_vm13, %v3257_v29, %v3283_v47  ;;  %vm6336_vm13 = vcmp.eq.s32.totalorder %v5560_v38, 1 }
0x1c77   :  { %v3260_v49 = vpop.permute.xlu1 %3259 }
0x1c78   :  { %v3262_v52 = vadd.f32 %v3260_v49, %v5343_v59 }
0x1c7a   :  { %vm3287_vm14 = vcmp.gt.f32.partialorder %v3262_v52, %v3286_v58 }
0x1c7b   :  { %v3288_v61 = vsel %vm3287_vm14, 4, %v3285_v39  ;;  %v3289_v42 = vsel %vm3287_vm14, %v3262_v52, %v3286_v58 }
0x1c7c   :  { %vm3290_vm1 = vcmp.gt.f32.partialorder %v3267_v60, %v3289_v42  ;;  %v3270_v0 = vpop.permute.xlu1 %3269 }
0x1c7d   :  { %v3291_v31 = vsel %vm3290_vm1, 5, %v3288_v61  ;;  %v3292_v57 = vsel %vm3290_vm1, %v3267_v60, %v3289_v42  ;;  %v3272_v63 = vadd.f32 %v3270_v0, %v5349_v12  ;;  %vm2023_vm1 = vcmask 58368  }
0x1c7f   :  { %vm3293_vm11 = vcmp.gt.f32.partialorder %v3272_v63, %v3292_v57 }
0x1c80   :  { %v3294_v2 = vsel %vm3293_vm11, 6, %v3291_v31  ;;  %v3295_v7 = vsel %vm3293_vm11, %v3272_v63, %v3292_v57  ;;  %vm6311_vm11 = vcmp.gt.s32.totalorder %v5311_v30, 7 }
0x1c81   :  { %v3275_v3 = vpop.permute.xlu1 %3274 }
0x1c82   :  { %v3277_v5 = vadd.f32 %v3275_v3, %v5352_v36 }
0x1c84   :  { %vm3296_vm12 = vcmp.gt.f32.partialorder %v3277_v5, %v3295_v7 }
0x1c85   :  { %v5566_v8 = vsel %vm3296_vm12, 7, %v3294_v2  ;;  %v3298_v13 = vsel %vm3296_vm12, %v3277_v5, %v3295_v7 }
0x1c86   :  { %v3299_v14 = vadd.f32 %v3298_v13, %v5291_v23  ;;  %v1935_v16 = vpop.permute.xlu1 %1934 }
0x1c87   :  { %vm1936_vm14 = vcmp.eq.s32.totalorder %v5564_v9, %v1935_v16 }
0x1c88   :  { %v5573_v47 = vsel %vm6336_vm13, %v3299_v14, %v5509_v48  ;;  %v3881_v29 = vsel %vm1936_vm14, 1.0, %v6329_v15  ;;  %v3445_v48 = vsel %vm6311_vm11, 1, %v6327_v54 }
0x1c89   :  { %3453 = vperm.xlu1 %4247, %v5573_v47   ;;  %v2022_v34 = vmul.f32 %v3881_v29, %v5279_v17 }
0x1c8b   :  { %v2024_v39 = vsel %vm2023_vm1, %v2022_v34, 0.0  ;;  %v1945_v40 = vpop.permute.xlu1 %1944 }
0x1c8c   :  { %2025 = vadd.xlane.f32.xlu0 %v2024_v39  ;;  %vm1946_vm12 = vcmp.eq.s32.totalorder %v5564_v9, %v1945_v40 }
0x1c8d   :  { %4248 = vset.pattern.permute.xlu1 %v6325_v53  ;;  %v5601_v49 = vsel %vm1946_vm12, 1.0, %v6329_v15 }
0x1c8e   :  { %3458 = vperm.xlu1 %4248, %v5573_v47   ;;  %v2028_v52 = vmul.f32 %v5601_v49, %v5273_v4  ;;  %v5609_v60 = vsel %vm2206_vm15, %v5601_v49, %v3881_v29 }
0x1c8f   :  { %v5612_v61 = vpack.i.bf16 %v5609_v60, %v3881_v29 }
0x1c90   :  { %v2029_v58 = vsel %vm2023_vm1, %v2028_v52, 0.0  ;;  %v5619_v42 = vpop.permute.xlu1 %1966 }
0x1c92   :  { %4249 = vset.pattern.permute.xlu1 %v6317_v25 }
0x1c93   :  { %3463 = vperm.xlu1 %4249, %v5573_v47  }
0x1c95   :  { %v5623_v0 = vpop.permute.xlu1 %1977 }
0x1c97   :  { %4250 = vset.pattern.permute.xlu1 %v6323_v10 }
0x1c98   :  { %3468 = vperm.xlu1 %4250, %v5573_v47  }
0x1c9a   :  { %v5628_v31 = vpop.permute.xlu1 %1999 }
0x1c9b   :  { %6376 = vst [vmem:[#allocation18_spill] sm:$0xff] %v5628_v31 }
0x1c9c   :  { %4251 = vset.pattern.permute.xlu1 %v6321_v27 }
0x1c9d   :  { %3473 = vperm.xlu1 %4251, %v5573_v47  }
0x1c9f   :  { %v5633_v57 = vpop.permute.xlu1 %2010 }
0x1ca0   :  { %6377 = vst [vmem:[#allocation19_spill] sm:$0xff] %v5633_v57 }
0x1ca1   :  { %4252 = vset.pattern.permute.xlu1 %v6319_v28 }
0x1ca2   :  { %3478 = vperm.xlu1 %4252, %v5573_v47   ;;  %3447 = vperm.xlu0 %4255, %v3445_v48  }
0x1ca6   :  { %4253 = vset.pattern.permute.xlu1 %v6315_v11  ;;  %4292 = vset.pattern.permute.xlu0 %v6315_v11 }
0x1ca7   :  { %3483 = vperm.xlu1 %4253, %v5573_v47  }
0x1cab   :  { %4254 = vset.pattern.permute.xlu1 %v6313_v33 }
0x1cac   :  { %3488 = vperm.xlu1 %4254, %v5573_v47  }
0x1cb0   :  { %4256 = vset.pattern.permute.xlu1 %v6327_v54 }
0x1cd0   :  { %2030 = vadd.xlane.f32.xlu1 %v2029_v58 }
0x1ce1   :  { %4258 = vperm.xlu1 %4256, %v5612_v61  }
0x1ce5   :  { %4262 = vset.pattern.permute.xlu1 %v6325_v53 }
0x1ce6   :  { %4264 = vperm.xlu1 %4262, %v5612_v61  }
0x1cea   :  { %4268 = vset.pattern.permute.xlu1 %v6317_v25 }
0x1ceb   :  { %4270 = vperm.xlu1 %4268, %v5612_v61  }
0x1cef   :  { %4274 = vset.pattern.permute.xlu1 %v6323_v10 }
0x1cf0   :  { %4276 = vperm.xlu1 %4274, %v5612_v61  }
0x1cf4   :  { %4280 = vset.pattern.permute.xlu1 %v6321_v27 }
0x1cf5   :  { %4282 = vperm.xlu1 %4280, %v5612_v61  }
0x1cf9   :  { %4286 = vset.pattern.permute.xlu1 %v6319_v28 }
0x1cfa   :  { %4288 = vperm.xlu1 %4286, %v5612_v61  }
0x1cfe   :  { %4299 = vset.pattern.permute.xlu1 %v6313_v33 }
0x1cff   :  { %4301 = vperm.xlu1 %4299, %v5612_v61  }
0x1d03   :  { %4305 = vset.pattern.permute.xlu1 %v6327_v54 }
0x1d04   :  { %v3454_v63 = vpop.permute.xlu1 %3453 }
0x1d05   :  { %v3456_v5 = vadd.f32 %v3454_v63, %v5327_v51 }
0x1d09   :  { %v3459_v2 = vpop.permute.xlu1 %3458 }
0x1d0a   :  { %v3461_v3 = vadd.f32 %v3459_v2, %v5325_v37 }
0x1d0c   :  { %vm3492_vm14 = vcmp.gt.f32.partialorder %v3461_v3, %v3456_v5 }
0x1d0d   :  { %v3494_v14 = vsel %vm3492_vm14, %v3461_v3, %v3456_v5  ;;  %v3493_v16 = vsel %vm3492_vm14, 1, %v6327_v54  ;;  %v5643_v5 = vpop.permute.xlu0 %1988 }
0x1d0e   :  { %v3464_v7 = vpop.permute.xlu1 %3463  ;;  %vm1990_vm13 = vcmp.eq.s32.totalorder %v5564_v9, %v5643_v5 }
0x1d0f   :  { %v3466_v13 = vadd.f32 %v3464_v7, %v5333_v44 }
0x1d11   :  { %vm3495_vm12 = vcmp.gt.f32.partialorder %v3466_v13, %v3494_v14 }
0x1d12   :  { %v3496_v29 = vsel %vm3495_vm12, 2, %v3493_v16  ;;  %v3497_v48 = vsel %vm3495_vm12, %v3466_v13, %v3494_v14 }
0x1d13   :  { %v3469_v34 = vpop.permute.xlu1 %3468 }
0x1d14   :  { %v3471_v39 = vadd.f32 %v3469_v34, %v5339_v50 }
0x1d15   :  { %v5646_v13 = vpop.xlane.xlu0 %2025 }
0x1d16   :  { %vm3498_vm11 = vcmp.gt.f32.partialorder %v3471_v39, %v3497_v48 }
0x1d17   :  { %v3499_v40 = vsel %vm3498_vm11, 3, %v3496_v29  ;;  %v3500_v2 = vsel %vm3498_vm11, %v3471_v39, %v3497_v48 }
0x1d18   :  { %v3474_v52 = vpop.permute.xlu1 %3473 }
0x1d19   :  { %v3476_v58 = vadd.f32 %v3474_v52, %v5343_v59 }
0x1d1b   :  { %vm3501_vm8 = vcmp.gt.f32.partialorder %v3476_v58, %v3500_v2 }
0x1d1c   :  { %v3502_v63 = vsel %vm3501_vm8, 4, %v3499_v40  ;;  %v3503_v3 = vsel %vm3501_vm8, %v3476_v58, %v3500_v2 }
0x1d1d   :  { %v3479_v33 = vpop.permute.xlu1 %3478  ;;  %v5649_v48 = vpop.permute.xlu0 %3447 }
0x1d1e   :  { %v3481_v7 = vadd.f32 %v3479_v33, %v5346_v1  ;;  %6378 = vst [vmem:[#allocation20_spill] sm:$0xff] %v5649_v48  ;;  %vm6335_vm8 = vcmp.eq.s32.totalorder %v5649_v48, 1 }
0x1d20   :  { %vm3504_vm14 = vcmp.gt.f32.partialorder %v3481_v7, %v3503_v3 }
0x1d21   :  { %v3505_v16 = vsel %vm3504_vm14, 5, %v3502_v63  ;;  %v3506_v14 = vsel %vm3504_vm14, %v3481_v7, %v3503_v3  ;;  %vm1968_vm14 = vcmp.eq.s32.totalorder %v5564_v9, %v5619_v42 }
0x1d22   :  { %v3484_v11 = vpop.permute.xlu1 %3483 }
0x1d23   :  { %v3486_v34 = vadd.f32 %v3484_v11, %v5349_v12  ;;  %v3890_v11 = vld [vmem:[%s6298_s21] ss:$0 sm:$0xff] }
0x1d25   :  { %vm3507_vm12 = vcmp.gt.f32.partialorder %v3486_v34, %v3506_v14 }
0x1d26   :  { %v3508_v29 = vsel %vm3507_vm12, 6, %v3505_v16  ;;  %v3509_v40 = vsel %vm3507_vm12, %v3486_v34, %v3506_v14 }
0x1d27   :  { %v3489_v52 = vpop.permute.xlu1 %3488 }
0x1d28   :  { %v3491_v39 = vadd.f32 %v3489_v52, %v5352_v36 }
0x1d2a   :  { %vm3510_vm11 = vcmp.gt.f32.partialorder %v3491_v39, %v3509_v40 }
0x1d2b   :  { %v5651_v33 = vsel %vm3510_vm11, 7, %v3508_v29  ;;  %v3512_v58 = vsel %vm3510_vm11, %v3491_v39, %v3509_v40 }
0x1d2c   :  { %v3513_v2 = vadd.f32 %v3512_v58, %v5294_v24 }
0x1d2e   :  { %v3514_v63 = vsel %vm6335_vm8, %v3513_v2, %v5573_v47  ;;  %vm1979_vm8 = vcmp.eq.s32.totalorder %v5564_v9, %v5623_v0 }
0x1d2f   :  { %v5661_v7 = vadd.f32 %v3890_v11, %v3514_v63 }
0x1d31   :  { %v3554_v3 = vsel %vm2023_vm1, %v5661_v7, -inf }
0x1d32   :  { %3555 = vmax.xlane.f32.xlu0 %v3554_v3 }
0x1d48   :  { %4294 = vperm.xlu0 %4292, %v5612_v61  }
0x1d4c   :  { %4298 = vset.pattern.permute.xlu0 %v6317_v25 }
0x1d4d   :  { %1955 = vperm.xlu0 %4298, %v5527_v62  }
0x1d59   :  { %v5668_v16 = vpop.xlane.xlu1 %2030 }
0x1d5d   :  { %v4259_v34 = vpop.permute.xlu1 %4258 }
0x1d5e   :  { %v4261_v58 = vunpack.i.h.bf16 %v4259_v34  ;;  %v4260_v2 = vunpack.i.l.bf16 %v4259_v34 }
0x1d60   :  { %v2242_v62 = vmul.f32 %v4261_v58, %v5327_v51  ;;  %v2041_v27 = vmul.f32 %v4260_v2, %v5327_v51 }
0x1d61   :  { %v4265_v14 = vpop.permute.xlu1 %4264 }
0x1d62   :  { %v4267_v39 = vunpack.i.h.bf16 %v4265_v14  ;;  %v4266_v47 = vunpack.i.l.bf16 %v4265_v14 }
0x1d64   :  { %v2247_v3 = vmul.f32 %v4267_v39, %v5325_v37  ;;  %v2050_v61 = vmul.f32 %v4266_v47, %v5325_v37 }
0x1d66   :  { %v4271_v29 = vpop.permute.xlu1 %4270  ;;  %v2051_v34 = vadd.f32 %v2050_v61, %v2041_v27  ;;  %v2248_v32 = vadd.f32 %v2247_v3, %v2242_v62 }
0x1d67   :  { %v4273_v11 = vunpack.i.h.bf16 %v4271_v29  ;;  %v4272_v63 = vunpack.i.l.bf16 %v4271_v29 }
0x1d69   :  { %v2253_v10 = vmul.f32 %v4273_v11, %v5333_v44  ;;  %v2060_v53 = vmul.f32 %v4272_v63, %v5333_v44 }
0x1d6b   :  { %v4277_v52 = vpop.permute.xlu1 %4276  ;;  %v2254_v48 = vadd.f32 %v2253_v10, %v2248_v32 }
0x1d6c   :  { %v4279_v25 = vunpack.i.h.bf16 %v4277_v52  ;;  %v4278_v28 = vunpack.i.l.bf16 %v4277_v52  ;;  %v2061_v52 = vadd.f32 %v2060_v53, %v2051_v34 }
0x1d6e   :  { %v2259_v29 = vmul.f32 %v4279_v25, %v5339_v50  ;;  %v2070_v39 = vmul.f32 %v4278_v28, %v5339_v50 }
0x1d70   :  { %v4283_v40 = vpop.permute.xlu1 %4282  ;;  %v2071_v35 = vadd.f32 %v2070_v39, %v2061_v52  ;;  %v2260_v63 = vadd.f32 %v2259_v29, %v2254_v48  ;;  %v6379_v39 = vmov 0.0  }
0x1d71   :  { %v4285_v14 = vunpack.i.h.bf16 %v4283_v40  ;;  %v4284_v54 = vunpack.i.l.bf16 %v4283_v40 }
0x1d73   :  { %v2265_v58 = vmul.f32 %v4285_v14, %v5343_v59  ;;  %v2080_v2 = vmul.f32 %v4284_v54, %v5343_v59 }
0x1d75   :  { %v4289_v15 = vpop.permute.xlu1 %4288  ;;  %v2081_v3 = vadd.f32 %v2080_v2, %v2071_v35  ;;  %v2266_v25 = vadd.f32 %v2265_v58, %v2260_v63  ;;  %v5693_v2 = vsel %vm1968_vm14, 1.0, %v6379_v39 }
0x1d76   :  { %v4291_v47 = vunpack.i.h.bf16 %v4289_v15  ;;  %v4290_v46 = vunpack.i.l.bf16 %v4289_v15 }
0x1d78   :  { %v2271_v40 = vmul.f32 %v4291_v47, %v5346_v1  ;;  %v2090_v27 = vmul.f32 %v4290_v46, %v5346_v1 }
0x1d7a   :  { %v4302_v38 = vpop.permute.xlu1 %4301  ;;  %v2091_v10 = vadd.f32 %v2090_v27, %v2081_v3  ;;  %v2272_v32 = vadd.f32 %v2271_v40, %v2266_v25  ;;  %v5710_v3 = vsel %vm1979_vm8, 1.0, %v6379_v39  ;;  %v5714_v25 = vsel %vm1990_vm13, 1.0, %v6379_v39 }
0x1d7b   :  { %v4304_v28 = vunpack.i.h.bf16 %v4302_v38  ;;  %v4303_v62 = vunpack.i.l.bf16 %v4302_v38  ;;  %6380 = vst [vmem:[#allocation21_spill] sm:$0xff] %v5714_v25 }
0x1d7d   :  { %v2283_v46 = vmul.f32 %v4304_v28, %v5352_v36  ;;  %v2110_v35 = vmul.f32 %v4303_v62, %v5352_v36 }
0x1dbb   :  { %v3556_v11 = vpop.xlane.xlu0 %3555 }
0x1dbc   :  { %vm3557_vm12 = vcmp.ge.f32.partialorder %v5661_v7, %v3556_v11 }
0x1dbd   :  { %v3558_v29 = vsel %vm3557_vm12, %v5564_v9, 8 }
0x1dbe   :  { %v3559_v40 = vsel %vm2023_vm1, %v3558_v29, 2147483647 }
0x1dbf   :  { %v3560_v29 = vand.u32 65535, %v3559_v40 }
0x1dc3   :  { %v4295_v61 = vpop.permute.xlu0 %4294 }
0x1dc4   :  { %v4297_v15 = vunpack.i.h.bf16 %v4295_v61  ;;  %v4296_v53 = vunpack.i.l.bf16 %v4295_v61  ;;  %v3561_v61 = vshra.s32 %v3559_v40, 16 }
0x1dc6   :  { %v2277_v14 = vmul.f32 %v4297_v15, %v5349_v12  ;;  %v2100_v54 = vmul.f32 %v4296_v53, %v5349_v12  ;;  %v3563_v53 = vcvt.s32.f32 %v3561_v61 }
0x1dc8   :  { %v2101_v48 = vadd.f32 %v2100_v54, %v2091_v10  ;;  %v2278_v34 = vadd.f32 %v2277_v14, %v2272_v32  ;;  %v1956_v38 = vpop.permute.xlu0 %1955  ;;  %v4673_v10 = vld [vmem:[%s6366_s7] sm:$0x3]  ;;  %v2201_v14 = vadd.f32 %v5399_v26, %v5273_v4  ;;  %v6384_v4 = vmov 3  }
0x1dc9   :  { %vm1957_vm11 = vcmp.eq.s32.totalorder %v5564_v9, %v1956_v38  ;;  %v5733_v32 = vadd.s32 4294967295, %v4673_v10  ;;  %v6387_v26 = vmov 6  }
0x1dca   :  { %v3883_v47 = vsel %vm1957_vm11, 1.0, %v6379_v39  ;;  %v2111_v52 = vadd.f32 %v2110_v35, %v2101_v48  ;;  %v2284_v58 = vadd.f32 %v2283_v46, %v2278_v34  ;;  %v5741_v54 = vsel %vm2206_vm15, %v2201_v14, %v5279_v17 }
0x1dcb   :  { %v2445_v42 = vsel %vm2379_vm9, %v3883_v47, %v5609_v60  ;;  %v2233_v7 = vmul.f32 %v3883_v47, %v5277_v6  ;;  %vm3578_vm13 = vcmp.eq.s32.totalorder %v5733_v32, 7  ;;  %v6382_v46 = vmov 0  }
0x1dcc   :  { %v2659_v11 = vsel %vm2593_vm4, %v5693_v2, %v2445_v42  ;;  %v2112_v63 = vmul.f32 %v5601_v49, %v2111_v52  ;;  %v2285_v0 = vmul.f32 %v3883_v47, %v2284_v58  ;;  %v3580_v35 = vsel %vm3578_vm13, 1, %v6382_v46 }
0x1dcd   :  { %v2234_v27 = vsel %vm2023_vm1, %v2233_v7, 0.0  ;;  %v5716_v5 = vpack.i.bf16 %v2659_v11, %v2445_v42  ;;  %v2873_v49 = vsel %vm2807_vm2, %v5710_v3, %v2659_v11  ;;  %v6383_v48 = vmov 1  }
0x1dce   :  { %2235 = vadd.xlane.f32.xlu0 %v2234_v27  ;;  %v2113_v60 = vsel %vm2023_vm1, %v2112_v63, 0.0  ;;  %v5724_v28 = vsel %vm3021_vm6, %v5714_v25, %v2873_v49  ;;  %v2286_v62 = vsel %vm2023_vm1, %v2285_v0, 0.0  ;;  %v6385_v17 = vmov 4  }
0x1dcf   :  { %2114 = vadd.xlane.f32.xlu1 %v2113_v60  ;;  %6381 = vst [vmem:[#allocation22_spill] sm:$0xff] %v5724_v28  ;;  %v5728_v15 = vpack.i.bf16 %v5724_v28, %v2873_v49  ;;  %v3562_v52 = vcvt.s32.f32 %v3560_v29  ;;  %v6388_v42 = vmov 7   ;;  %v2447_v7 = vmul.f32 %v5693_v2, %v5282_v19 }
0x1dd0   :  { %v6389_v63 = vmov 2   ;;  %vm3593_vm12 = vcmp.ge.s32.totalorder %v5733_v32, 6  ;;  %vm3592_vm11 = vcmp.eq.s32.totalorder %v5733_v32, 6 }
0x1dd1   :  { %v2448_v11 = vsel %vm2023_vm1, %v2447_v7, 0.0 }
0x1dd3   :  { %2287 = vadd.xlane.f32.xlu1 %v2286_v62 }
0x1dd7   :  { %3564 = vmin.xlane.f32.xlu1 %v3563_v53 }
0x1de4   :  { %2304 = vperm.xlu0 %4298, %v5741_v54  }
0x1de8   :  { %3582 = vperm.xlu1 %4305, %v3580_v35   ;;  %4318 = vset.pattern.permute.xlu0 %v6383_v48 }
0x1dec   :  { %2294 = vperm.xlu1 %4305, %v5741_v54  }
0x1df0   :  { %4306 = vset.pattern.permute.xlu1 %v6383_v48 }
0x1df1   :  { %2299 = vperm.xlu1 %4306, %v5741_v54  }
0x1df5   :  { %4307 = vset.pattern.permute.xlu1 %v6384_v4 }
0x1df6   :  { %2309 = vperm.xlu1 %4307, %v5741_v54  }
0x1dfa   :  { %4308 = vset.pattern.permute.xlu1 %v6385_v17 }
0x1dfb   :  { %2314 = vperm.xlu1 %4308, %v5741_v54  }
0x1dff   :  { %4309 = vset.pattern.permute.xlu1 %v6386_v55 }
0x1e00   :  { %2319 = vperm.xlu1 %4309, %v5741_v54  }
0x1e04   :  { %4310 = vset.pattern.permute.xlu1 %v6387_v26 }
0x1e57   :  { %v5783_v49 = vpop.xlane.xlu0 %2235 }
0x1e58   :  { %v5758_v34 = vpop.xlane.xlu1 %2114 }
0x1e5c   :  { %v5760_v38 = vpop.xlane.xlu1 %2287 }
0x1e5f   :  { %v2305_v10 = vpop.permute.xlu0 %2304 }
0x1e60   :  { %v3565_v47 = vpop.xlane.xlu1 %3564  ;;  %v2307_v29 = vadd.f32 %v2305_v10, %v5333_v44 }
0x1e61   :  { %vm3566_vm15 = vcmp.eq.f32.partialorder %v3563_v53, %v3565_v47 }
0x1e62   :  { %v3567_v58 = vsel %vm3566_vm15, %v3562_v52, inf  ;;  %v3571_v52 = vcvt.f32.s32 %v3565_v47  ;;  %v3586_v47 = vcvt.s32.f32 %v5651_v33 }
0x1e63   :  { %3568 = vmin.xlane.f32.xlu1 %v3567_v58 }
0x1e64   :  { %v3583_v40 = vpop.permute.xlu1 %3582  ;;  %v3572_v28 = vshll.u32 %v3571_v52, 16 }
0x1e65   :  { %vm3584_vm14 = vcmp.eq.s32.totalorder %v3583_v40, 1 }
0x1e68   :  { %v2295_v27 = vpop.permute.xlu1 %2294 }
0x1e69   :  { %v2297_v53 = vadd.f32 %v2295_v27, %v5327_v51 }
0x1e6c   :  { %v2300_v0 = vpop.permute.xlu1 %2299 }
0x1e6d   :  { %v2302_v62 = vadd.f32 %v2300_v0, %v5325_v37 }
0x1e6f   :  { %v2333_v14 = vmax.f32 %v2297_v53, %v2302_v62 }
0x1e71   :  { %v2310_v60 = vpop.permute.xlu1 %2309  ;;  %v2334_v58 = vmax.f32 %v2333_v14, %v2307_v29 }
0x1e72   :  { %v2312_v7 = vadd.f32 %v2310_v60, %v5339_v50 }
0x1e74   :  { %2324 = vperm.xlu1 %4310, %v5741_v54   ;;  %v2335_v56 = vmax.f32 %v2334_v58, %v2312_v7 }
0x1e76   :  { %v2315_v61 = vpop.permute.xlu1 %2314 }
0x1e77   :  { %v2317_v24 = vadd.f32 %v2315_v61, %v5343_v59 }
0x1e78   :  { %4311 = vset.pattern.permute.xlu1 %v6388_v42 }
0x1e79   :  { %2329 = vperm.xlu1 %4311, %v5741_v54   ;;  %v2336_v23 = vmax.f32 %v2335_v56, %v2317_v24 }
0x1e7b   :  { %v2320_v35 = vpop.permute.xlu1 %2319 }
0x1e7c   :  { %v2322_v22 = vadd.f32 %v2320_v35, %v5346_v1 }
0x1e7d   :  { %4312 = vset.pattern.permute.xlu1 %v6382_v46 }
0x1e7e   :  { %v2337_v10 = vmax.f32 %v2336_v23, %v2322_v22 }
0x1e9d   :  { %2449 = vadd.xlane.f32.xlu1 %v2448_v11 }
0x1eae   :  { %4314 = vperm.xlu1 %4312, %v5716_v5  }
0x1eb2   :  { %4324 = vset.pattern.permute.xlu1 %v6389_v63 }
0x1eb3   :  { %4326 = vperm.xlu1 %4324, %v5716_v5  }
0x1eb7   :  { %4330 = vset.pattern.permute.xlu1 %v6384_v4 }
0x1eb8   :  { %4332 = vperm.xlu1 %4330, %v5716_v5  }
0x1ebc   :  { %4336 = vset.pattern.permute.xlu1 %v6385_v17 }
0x1ebd   :  { %4338 = vperm.xlu1 %4336, %v5716_v5  }
0x1ec1   :  { %4342 = vset.pattern.permute.xlu1 %v6386_v55 }
0x1ec2   :  { %4344 = vperm.xlu1 %4342, %v5716_v5  }
0x1ec6   :  { %4348 = vset.pattern.permute.xlu1 %v6387_v26 }
0x1ec7   :  { %4350 = vperm.xlu1 %4348, %v5716_v5  }
0x1ecb   :  { %4354 = vset.pattern.permute.xlu1 %v6388_v42 }
0x1ecc   :  { %4356 = vperm.xlu1 %4354, %v5716_v5  }
0x1ed0   :  { %4362 = vset.pattern.permute.xlu1 %v6389_v63 }
0x1eec   :  { %v3569_v11 = vpop.xlane.xlu1 %3568 }
0x1eed   :  { %v3570_v57 = vcvt.f32.s32 %v3569_v11 }
0x1eef   :  { %v5791_v0 = vadd.s32 %v3572_v28, %v3570_v57 }
0x1ef0   :  { %v2325_v27 = vpop.permute.xlu1 %2324 }
0x1ef1   :  { %v2327_v31 = vadd.f32 %v2325_v27, %v5349_v12  ;;  %vm3574_vm8 = vcmp.eq.s32.totalorder %v5564_v9, %v5791_v0 }
0x1ef2   :  { %v3891_v60 = vsel %vm3574_vm8, 1.0, %v6379_v39 }
0x1ef3   :  { %v5798_v61 = vsel %vm3584_vm14, %v3891_v60, 0.0  ;;  %v2338_v57 = vmax.f32 %v2337_v10, %v2327_v31 }
0x1ef4   :  { %v2330_v14 = vpop.permute.xlu1 %2329  ;;  %v3587_v35 = vmul.f32 %v3586_v47, %v5798_v61 }
0x1ef5   :  { %v2332_v28 = vadd.f32 %v2330_v14, %v5352_v36 }
0x1ef6   :  { %v3588_v56 = vsel %vm2023_vm1, %v3587_v35, 0.0 }
0x1ef7   :  { %v2339_v52 = vmax.f32 %v2338_v57, %v2332_v28  ;;  %3589 = vadd.xlane.f32.xlu0 %v3588_v56 }
0x1ef9   :  { %v2340_v58 = vsub.f32 %v2297_v53, %v2339_v52  ;;  %v2343_v11 = vsub.f32 %v2302_v62, %v2339_v52  ;;  %v2347_v27 = vsub.f32 %v2307_v29, %v2339_v52  ;;  %v2351_v33 = vsub.f32 %v2312_v7, %v2339_v52 }
0x1efa   :  { %v2355_v23 = vsub.f32 %v2317_v24, %v2339_v52  ;;  %v2359_v25 = vsub.f32 %v2322_v22, %v2339_v52  ;;  %v2363_v10 = vsub.f32 %v2327_v31, %v2339_v52  ;;  %v2367_v35 = vsub.f32 %v2332_v28, %v2339_v52 }
0x1efb   :  { %v2341_v40 = vmul.f32 1.442695, %v2340_v58  ;;  %v2344_v18 = vmul.f32 1.442695, %v2343_v11  ;;  %v2348_v43 = vmul.f32 1.442695, %v2347_v27 }
0x1efc   :  { %v2352_v60 = vmul.f32 1.442695, %v2351_v33  ;;  %v2356_v47 = vmul.f32 1.442695, %v2355_v23  ;;  %v2360_v14 = vmul.f32 1.442695, %v2359_v25 }
0x1efd   :  { %4561 = vpow2.f32 %v2341_v40  ;;  %v2364_v57 = vmul.f32 1.442695, %v2363_v10  ;;  %v2368_v62 = vmul.f32 1.442695, %v2367_v35 }
0x1efe   :  { %4563 = vpow2.f32 %v2344_v18 }
0x1eff   :  { %4565 = vpow2.f32 %v2348_v43  ;;  %v3602_v43 = vsel %vm3593_vm12, 1, %v6382_v46 }
0x1f00   :  { %4567 = vpow2.f32 %v2352_v60 }
0x1f01   :  { %4569 = vpow2.f32 %v2356_v47 }
0x1f02   :  { %4571 = vpow2.f32 %v2360_v14 }
0x1f03   :  { %4573 = vpow2.f32 %v2364_v57 }
0x1f04   :  { %4575 = vpow2.f32 %v2368_v62 }
0x1f0a   :  { %v4562_v53 = vpop.eup %4561 }
0x1f0b   :  { %v4564_v29 = vpop.eup %4563 }
0x1f0c   :  { %v2346_v7 = vadd.f32 %v4564_v29, %v4562_v53  ;;  %v4566_v24 = vpop.eup %4565 }
0x1f0d   :  { %4320 = vperm.xlu0 %4318, %v5716_v5   ;;  %v4568_v22 = vpop.eup %4567 }
0x1f0e   :  { %v2350_v18 = vadd.f32 %v4566_v24, %v2346_v7  ;;  %v4570_v25 = vpop.eup %4569 }
0x1f0f   :  { %v4572_v56 = vpop.eup %4571 }
0x1f10   :  { %v2354_v31 = vadd.f32 %v4568_v22, %v2350_v18  ;;  %v4574_v11 = vpop.eup %4573 }
0x1f11   :  { %4360 = vset.pattern.permute.xlu0 %v6382_v46  ;;  %v4576_v33 = vpop.eup %4575 }
0x1f12   :  { %v2358_v28 = vadd.f32 %v4570_v25, %v2354_v31  ;;  %3604 = vperm.xlu0 %4360, %v3602_v43  }
0x1f14   :  { %v2362_v58 = vadd.f32 %v4572_v56, %v2358_v28 }
0x1f16   :  { %v2366_v27 = vadd.f32 %v4574_v11, %v2362_v58 }
0x1f18   :  { %v2370_v40 = vadd.f32 %v4576_v33, %v2366_v27 }
0x1f1a   :  { %4577 = vlog2.f32 %v2370_v40 }
0x1f26   :  { %v5816_v14 = vpop.xlane.xlu1 %2449 }
0x1f27   :  { %v4578_v5 = vpop.eup %4577 }
0x1f28   :  { %v2372_v23 = vmul.f32 0.6931472, %v4578_v5 }
0x1f2a   :  { %v2373_v60 = vadd.f32 %v2372_v23, %v2339_v52  ;;  %v4315_v35 = vpop.permute.xlu1 %4314 }
0x1f2c   :  { %v2374_v47 = vadd.f32 %v2373_v60, %v5277_v6 }
0x1f2e   :  { %v5813_v10 = vsel %vm2379_vm9, %v2374_v47, %v5741_v54  ;;  %v4327_v57 = vpop.permute.xlu1 %4326  ;;  %v4316_v54 = vunpack.i.l.bf16 %v4315_v35 }
0x1f2f   :  { %2508 = vperm.xlu0 %4360, %v5813_v10   ;;  %v4328_v18 = vunpack.i.l.bf16 %v4327_v57 }
0x1f30   :  { %v2456_v31 = vmul.f32 %v4316_v54, %v5327_v51 }
0x1f31   :  { %v2467_v56 = vmul.f32 %v4328_v18, %v5333_v44 }
0x1f33   :  { %v5818_v62 = vpop.permute.xlu1 %4332 }
0x1f34   :  { %v4334_v25 = vunpack.i.l.bf16 %v5818_v62 }
0x1f36   :  { %v2473_v27 = vmul.f32 %v4334_v25, %v5339_v50 }
0x1f38   :  { %v5820_v53 = vpop.permute.xlu1 %4338 }
0x1f39   :  { %v4340_v58 = vunpack.i.l.bf16 %v5820_v53 }
0x1f3b   :  { %v2479_v23 = vmul.f32 %v4340_v58, %v5343_v59 }
0x1f3d   :  { %v5823_v52 = vpop.permute.xlu1 %4344 }
0x1f3e   :  { %v4346_v33 = vunpack.i.l.bf16 %v5823_v52 }
0x1f42   :  { %v4351_v43 = vpop.permute.xlu1 %4350 }
0x1f43   :  { %v4352_v60 = vunpack.i.l.bf16 %v4351_v43 }
0x1f45   :  { %v2491_v54 = vmul.f32 %v4352_v60, %v5349_v12  ;;  %v4335_v60 = vunpack.i.h.bf16 %v5818_v62 }
0x1f47   :  { %v4357_v5 = vpop.permute.xlu1 %4356 }
0x1f80   :  { %v3590_v29 = vpop.xlane.xlu0 %3589 }
0x1f81   :  { %v4138_v7 = vtrunc.f32 %v3590_v29  ;;  %v2485_v29 = vmul.f32 %v4346_v33, %v5346_v1  ;;  %v4329_v33 = vunpack.i.h.bf16 %v4327_v57 }
0x1f83   :  { %v4139_v6 = vcvt.f32.s32 %v4138_v7  ;;  %v4358_v7 = vunpack.i.l.bf16 %v4357_v5 }
0x1f85   :  { %v5826_v41 = vsel %vm3592_vm11, %v5791_v0, %v4139_v6  ;;  %vm3659_vm11 = vcmp.ge.s32.totalorder %v5733_v32, 3 }
0x1f86   :  { %3597 = vperm.xlu0 %4360, %v5826_v41  }
0x1f88   :  { %v4321_v24 = vpop.permute.xlu0 %4320 }
0x1f89   :  { %v4322_v22 = vunpack.i.l.bf16 %v4321_v24  ;;  %v4323_v58 = vunpack.i.h.bf16 %v4321_v24  ;;  %v2687_v24 = vmul.f32 %v4335_v60, %v5339_v50  ;;  %v2116_v60 = vadd.f32 %v5758_v34, %v5668_v16 }
0x1f8a   :  { %4361 = vset.pattern.permute.xlu0 %v6383_v48 }
0x1f8b   :  { %v2461_v28 = vmul.f32 %v4322_v22, %v5325_v37  ;;  %2513 = vperm.xlu0 %4361, %v5813_v10   ;;  %v2497_v22 = vmul.f32 %v4358_v7, %v5352_v36 }
0x1f8d   :  { %v2462_v11 = vadd.f32 %v2461_v28, %v2456_v31 }
0x1f8f   :  { %v2468_v40 = vadd.f32 %v2467_v56, %v2462_v11  ;;  %4363 = vset.pattern.permute.xlu0 %v6384_v4  ;;  %v4317_v11 = vunpack.i.h.bf16 %v4315_v35 }
0x1f90   :  { %2523 = vperm.xlu0 %4363, %v5813_v10  }
0x1f91   :  { %v2474_v47 = vadd.f32 %v2473_v27, %v2468_v40  ;;  %v2675_v27 = vmul.f32 %v4323_v58, %v5325_v37 }
0x1f93   :  { %v2480_v6 = vadd.f32 %v2479_v23, %v2474_v47  ;;  %v2681_v23 = vmul.f32 %v4329_v33, %v5333_v44 }
0x1f94   :  { %4364 = vset.pattern.permute.xlu0 %v6385_v17 }
0x1f95   :  { %2528 = vperm.xlu0 %4364, %v5813_v10   ;;  %v2486_v18 = vadd.f32 %v2485_v29, %v2480_v6  ;;  %v4341_v29 = vunpack.i.h.bf16 %v5820_v53  ;;  %v4347_v6 = vunpack.i.h.bf16 %v5823_v52 }
0x1f97   :  { %v2492_v31 = vadd.f32 %v2491_v54, %v2486_v18  ;;  %v2693_v35 = vmul.f32 %v4341_v29, %v5343_v59  ;;  %v2699_v18 = vmul.f32 %v4347_v6, %v5346_v1 }
0x1f99   :  { %4367 = vset.pattern.permute.xlu0 %v6388_v42  ;;  %v2498_v25 = vadd.f32 %v2497_v22, %v2492_v31  ;;  %v4353_v22 = vunpack.i.h.bf16 %v4351_v43  ;;  %v3605_v43 = vpop.permute.xlu0 %3604 }
0x1f9a   :  { %2543 = vperm.xlu0 %4367, %v5813_v10   ;;  %vm3606_vm15 = vcmp.eq.s32.totalorder %v3605_v43, 1 }
0x1f9b   :  { %v2499_v28 = vmul.f32 %v5693_v2, %v2498_v25  ;;  %v2670_v2 = vmul.f32 %v4317_v11, %v5327_v51  ;;  %v2705_v31 = vmul.f32 %v4353_v22, %v5349_v12  ;;  %v4359_v25 = vunpack.i.h.bf16 %v4357_v5 }
0x1f9c   :  { %v3608_v5 = vcvt.s32.f32 %v5566_v8  ;;  %v2117_v8 = vsel %vm2027_vm7, %v2116_v60, 0.0  ;;  %vm3615_vm7 = vcmp.ge.s32.totalorder %v5733_v32, 5 }
0x1f9d   :  { %v2500_v56 = vsel %vm2023_vm1, %v2499_v28, 0.0  ;;  %v2676_v40 = vadd.f32 %v2675_v27, %v2670_v2  ;;  %v2711_v62 = vmul.f32 %v4359_v25, %v5352_v36 }
0x1f9e   :  { %2501 = vadd.xlane.f32.xlu1 %v2500_v56  ;;  %4368 = vset.pattern.permute.xlu0 %v6382_v46  ;;  %v2661_v56 = vmul.f32 %v5710_v3, %v5285_v20 }
0x1f9f   :  { %v2682_v47 = vadd.f32 %v2681_v23, %v2676_v40 }
0x1fa0   :  { %v2662_v58 = vsel %vm2023_vm1, %v2661_v56, 0.0 }
0x1fa1   :  { %v2688_v7 = vadd.f32 %v2687_v24, %v2682_v47  ;;  %v2289_v24 = vadd.f32 %v5760_v38, %v5783_v49 }
0x1fa3   :  { %v2694_v54 = vadd.f32 %v2693_v35, %v2688_v7  ;;  %v2290_v29 = vsel %vm2232_vm0, %v2289_v24, 0.0  ;;  %vm3614_vm0 = vcmp.eq.s32.totalorder %v5733_v32, 5 }
0x1fa5   :  { %v2700_v57 = vadd.f32 %v2699_v18, %v2694_v54 }
0x1fa7   :  { %v2706_v28 = vadd.f32 %v2705_v31, %v2700_v57 }
0x1fa9   :  { %v2712_v53 = vadd.f32 %v2711_v62, %v2706_v28 }
0x1faa   :  { %v2509_v27 = vpop.permute.xlu0 %2508 }
0x1fab   :  { %v2713_v11 = vmul.f32 %v5710_v3, %v2712_v53  ;;  %v2511_v16 = vadd.f32 %v2509_v27, %v5327_v51 }
0x1fad   :  { %v2714_v52 = vsel %vm2023_vm1, %v2713_v11, 0.0 }
0x1faf   :  { %2518 = vperm.xlu1 %4362, %v5813_v10  }
0x1fb3   :  { %4365 = vset.pattern.permute.xlu1 %v6386_v55 }
0x1fb4   :  { %2533 = vperm.xlu1 %4365, %v5813_v10  }
0x1fb8   :  { %4366 = vset.pattern.permute.xlu1 %v6387_v26 }
0x1fb9   :  { %2538 = vperm.xlu1 %4366, %v5813_v10  }
0x1fbd   :  { %4369 = vset.pattern.permute.xlu1 %v6383_v48 }
0x1fdd   :  { %2663 = vadd.xlane.f32.xlu1 %v2662_v58 }
0x1fe1   :  { %2715 = vadd.xlane.f32.xlu1 %v2714_v52 }
0x2001   :  { %v3598_v2 = vpop.permute.xlu0 %3597 }
0x2002   :  { %vm3599_vm9 = vcmp.eq.s32.totalorder %v5564_v9, %v3598_v2 }
0x2003   :  { %v3893_v33 = vsel %vm3599_vm9, 1.0, %v6379_v39 }
0x2004   :  { %v5877_v40 = vsel %vm3606_vm15, %v3893_v33, %v5798_v61  ;;  %v2118_v61 = vadd.f32 %v2117_v8, %v5646_v13  ;;  %vm3658_vm15 = vcmp.eq.s32.totalorder %v5733_v32, 3 }
0x2005   :  { %v3609_v23 = vmul.f32 %v3608_v5, %v5877_v40 }
0x2006   :  { %v2514_v47 = vpop.permute.xlu0 %2513  ;;  %v2291_v18 = vadd.f32 %v2290_v29, %v2118_v61 }
0x2007   :  { %v3610_v3 = vsel %vm2023_vm1, %v3609_v23, 0.0  ;;  %v2516_v6 = vadd.f32 %v2514_v47, %v5325_v37 }
0x2008   :  { %3611 = vadd.xlane.f32.xlu0 %v3610_v3 }
0x2009   :  { %v2547_v22 = vmax.f32 %v2511_v16, %v2516_v6 }
0x200b   :  { %v2524_v7 = vpop.permute.xlu0 %2523 }
0x200c   :  { %v2526_v13 = vadd.f32 %v2524_v7, %v5339_v50 }
0x2010   :  { %v2529_v31 = vpop.permute.xlu0 %2528 }
0x2011   :  { %v2531_v62 = vadd.f32 %v2529_v31, %v5343_v59 }
0x2015   :  { %v2544_v58 = vpop.permute.xlu0 %2543 }
0x2016   :  { %v2546_v27 = vadd.f32 %v2544_v58, %v5352_v36 }
0x2027   :  { %v2502_v35 = vpop.xlane.xlu1 %2501 }
0x2028   :  { %v2503_v54 = vadd.f32 %v2502_v35, %v5816_v14 }
0x202a   :  { %v2504_v34 = vsel %vm2446_vm10, %v2503_v54, 0.0 }
0x202b   :  { %v5895_v38 = vadd.f32 %v2504_v34, %v2291_v18  ;;  %v2519_v49 = vpop.permute.xlu1 %2518 }
0x202c   :  { %v2521_v57 = vadd.f32 %v2519_v49, %v5333_v44 }
0x202e   :  { %v2548_v25 = vmax.f32 %v2547_v22, %v2521_v57 }
0x202f   :  { %v2534_v28 = vpop.permute.xlu1 %2533 }
0x2030   :  { %v2549_v14 = vmax.f32 %v2548_v25, %v2526_v13  ;;  %v2536_v53 = vadd.f32 %v2534_v28, %v5346_v1 }
0x2032   :  { %v2550_v56 = vmax.f32 %v2549_v14, %v2531_v62 }
0x2034   :  { %v2551_v11 = vmax.f32 %v2550_v56, %v2536_v53  ;;  %v2539_v52 = vpop.permute.xlu1 %2538 }
0x2035   :  { %v2541_v43 = vadd.f32 %v2539_v52, %v5349_v12 }
0x2037   :  { %v2552_v2 = vmax.f32 %v2551_v11, %v2541_v43 }
0x2039   :  { %v2553_v5 = vmax.f32 %v2552_v2, %v2546_v27 }
0x203b   :  { %v2554_v33 = vsub.f32 %v2511_v16, %v2553_v5  ;;  %v2557_v23 = vsub.f32 %v2516_v6, %v2553_v5  ;;  %v2561_v3 = vsub.f32 %v2521_v57, %v2553_v5  ;;  %v2565_v60 = vsub.f32 %v2526_v13, %v2553_v5 }
0x203c   :  { %v2569_v29 = vsub.f32 %v2531_v62, %v2553_v5  ;;  %v2573_v7 = vsub.f32 %v2536_v53, %v2553_v5  ;;  %v2577_v54 = vsub.f32 %v2541_v43, %v2553_v5  ;;  %v2581_v34 = vsub.f32 %v2546_v27, %v2553_v5 }
0x203d   :  { %v2555_v47 = vmul.f32 1.442695, %v2554_v33  ;;  %v2558_v24 = vmul.f32 1.442695, %v2557_v23  ;;  %v2562_v8 = vmul.f32 1.442695, %v2561_v3 }
0x203e   :  { %v2566_v61 = vmul.f32 1.442695, %v2565_v60  ;;  %v2570_v35 = vmul.f32 1.442695, %v2569_v29  ;;  %v2574_v18 = vmul.f32 1.442695, %v2573_v7 }
0x203f   :  { %4579 = vpow2.f32 %v2555_v47  ;;  %v2578_v49 = vmul.f32 1.442695, %v2577_v54  ;;  %v2582_v6 = vmul.f32 1.442695, %v2581_v34 }
0x2040   :  { %4581 = vpow2.f32 %v2558_v24 }
0x2041   :  { %4583 = vpow2.f32 %v2562_v8 }
0x2042   :  { %4585 = vpow2.f32 %v2566_v61  ;;  %v6390_v61 = vld [vmem:[#allocation21_spill] sm:$0xff] }
0x2043   :  { %4587 = vpow2.f32 %v2570_v35  ;;  %v2875_v7 = vmul.f32 %v6390_v61, %v5288_v21 }
0x2044   :  { %4589 = vpow2.f32 %v2574_v18 }
0x2045   :  { %4591 = vpow2.f32 %v2578_v49  ;;  %v2876_v35 = vsel %vm2023_vm1, %v2875_v7, 0.0 }
0x2046   :  { %4593 = vpow2.f32 %v2582_v6 }
0x204c   :  { %v4580_v16 = vpop.eup %4579 }
0x204d   :  { %v4582_v22 = vpop.eup %4581 }
0x204e   :  { %v2560_v57 = vadd.f32 %v4582_v22, %v4580_v16  ;;  %v4584_v31 = vpop.eup %4583  ;;  %v6391_v22 = vld [vmem:[#allocation16_spill] sm:$0xff] }
0x204f   :  { %v4586_v25 = vpop.eup %4585 }
0x2050   :  { %v2564_v13 = vadd.f32 %v4584_v31, %v2560_v57  ;;  %v4588_v62 = vpop.eup %4587  ;;  %v3630_v57 = vcvt.s32.f32 %v6391_v22 }
0x2051   :  { %v4590_v56 = vpop.eup %4589 }
0x2052   :  { %v2568_v28 = vadd.f32 %v4586_v25, %v2564_v13  ;;  %v4592_v58 = vpop.eup %4591 }
0x2053   :  { %v4594_v52 = vpop.eup %4593 }
0x2054   :  { %v2572_v14 = vadd.f32 %v4588_v62, %v2568_v28 }
0x2056   :  { %v2576_v53 = vadd.f32 %v4590_v56, %v2572_v14 }
0x2058   :  { %v2580_v11 = vadd.f32 %v4592_v58, %v2576_v53 }
0x205a   :  { %v2584_v43 = vadd.f32 %v4594_v52, %v2580_v11 }
0x205c   :  { %4595 = vlog2.f32 %v2584_v43 }
0x2066   :  { %v2664_v27 = vpop.xlane.xlu1 %2663 }
0x2069   :  { %v4596_v2 = vpop.eup %4595 }
0x206a   :  { %v2586_v33 = vmul.f32 0.6931472, %v4596_v2  ;;  %v2716_v23 = vpop.xlane.xlu1 %2715 }
0x206b   :  { %v2717_v3 = vadd.f32 %v2716_v23, %v2664_v27 }
0x206c   :  { %v2587_v60 = vadd.f32 %v2586_v33, %v2553_v5  ;;  %v3624_v5 = vsel %vm3615_vm7, 1, %v6382_v46 }
0x206d   :  { %v2718_v47 = vsel %vm2660_vm5, %v2717_v3, 0.0  ;;  %vm3636_vm5 = vcmp.eq.s32.totalorder %v5733_v32, 4 }
0x206e   :  { %v5906_v24 = vadd.f32 %v2718_v47, %v5895_v38  ;;  %v2588_v8 = vadd.f32 %v2587_v60, %v5282_v19 }
0x2070   :  { %v5912_v29 = vsel %vm2593_vm4, %v2588_v8, %v5813_v10 }
0x2071   :  { %2727 = vperm.xlu1 %4369, %v5912_v29   ;;  %2722 = vperm.xlu0 %4368, %v5912_v29  }
0x2075   :  { %4370 = vset.pattern.permute.xlu1 %v6382_v46  ;;  %4377 = vset.pattern.permute.xlu0 %v6388_v42 }
0x2076   :  { %3626 = vperm.xlu1 %4370, %v3624_v5   ;;  %2757 = vperm.xlu0 %4377, %v5912_v29  }
0x207a   :  { %4371 = vset.pattern.permute.xlu1 %v6389_v63  ;;  %4378 = vset.pattern.permute.xlu0 %v6382_v46 }
0x207b   :  { %2732 = vperm.xlu1 %4371, %v5912_v29   ;;  %4380 = vperm.xlu0 %4378, %v5728_v15  }
0x207f   :  { %4372 = vset.pattern.permute.xlu1 %v6384_v4 }
0x2080   :  { %2737 = vperm.xlu1 %4372, %v5912_v29  }
0x2084   :  { %4373 = vset.pattern.permute.xlu1 %v6382_v46 }
0x2091   :  { %v3612_v19 = vpop.xlane.xlu0 %3611 }
0x2092   :  { %v4140_v45 = vtrunc.f32 %v3612_v19 }
0x2094   :  { %v4141_v10 = vcvt.f32.s32 %v4140_v45 }
0x2096   :  { %v5932_v38 = vsel %vm3614_vm0, %v5791_v0, %v4141_v10 }
0x2097   :  { %3619 = vperm.xlu1 %4373, %v5932_v38  }
0x209b   :  { %4374 = vset.pattern.permute.xlu1 %v6385_v17 }
0x209c   :  { %2742 = vperm.xlu1 %4374, %v5912_v29  }
0x20a0   :  { %4375 = vset.pattern.permute.xlu1 %v6386_v55 }
0x20a1   :  { %2747 = vperm.xlu1 %4375, %v5912_v29  }
0x20a5   :  { %4376 = vset.pattern.permute.xlu1 %v6387_v26 }
0x20a6   :  { %2752 = vperm.xlu1 %4376, %v5912_v29  }
0x20aa   :  { %4384 = vset.pattern.permute.xlu1 %v6383_v48 }
0x20ca   :  { %2877 = vadd.xlane.f32.xlu1 %v2876_v35 }
0x20db   :  { %4386 = vperm.xlu1 %4384, %v5728_v15  }
0x20df   :  { %4390 = vset.pattern.permute.xlu1 %v6389_v63 }
0x20e0   :  { %4392 = vperm.xlu1 %4390, %v5728_v15  }
0x20e4   :  { %4396 = vset.pattern.permute.xlu1 %v6384_v4 }
0x20e5   :  { %4398 = vperm.xlu1 %4396, %v5728_v15  }
0x20e9   :  { %4402 = vset.pattern.permute.xlu1 %v6385_v17 }
0x20ea   :  { %4404 = vperm.xlu1 %4402, %v5728_v15  }
0x20ec   :  { %v2728_v54 = vpop.permute.xlu1 %2727  ;;  %v2723_v16 = vpop.permute.xlu0 %2722 }
0x20ed   :  { %v2730_v25 = vadd.f32 %v2728_v54, %v5325_v37 }
0x20ee   :  { %4408 = vset.pattern.permute.xlu1 %v6386_v55 }
0x20ef   :  { %4410 = vperm.xlu1 %4408, %v5728_v15  }
0x20f1   :  { %v3627_v18 = vpop.permute.xlu1 %3626  ;;  %v2758_v33 = vpop.permute.xlu0 %2757 }
0x20f2   :  { %vm3628_vm4 = vcmp.eq.s32.totalorder %v3627_v18, 1  ;;  %v2760_v47 = vadd.f32 %v2758_v33, %v5352_v36 }
0x20f3   :  { %4414 = vset.pattern.permute.xlu1 %v6387_v26 }
0x20f4   :  { %4416 = vperm.xlu1 %4414, %v5728_v15  }
0x20f6   :  { %v2733_v34 = vpop.permute.xlu1 %2732 }
0x20f7   :  { %v2735_v14 = vadd.f32 %v2733_v34, %v5333_v44 }
0x20f8   :  { %4420 = vset.pattern.permute.xlu1 %v6388_v42 }
0x20f9   :  { %4422 = vperm.xlu1 %4420, %v5728_v15   ;;  %v2725_v15 = vadd.f32 %v2723_v16, %v5327_v51 }
0x20fb   :  { %v2738_v49 = vpop.permute.xlu1 %2737  ;;  %v2761_v53 = vmax.f32 %v2725_v15, %v2730_v25 }
0x20fc   :  { %v2740_v58 = vadd.f32 %v2738_v49, %v5339_v50 }
0x20fd   :  { %4430 = vset.pattern.permute.xlu1 %v6386_v55  ;;  %v2762_v11 = vmax.f32 %v2761_v53, %v2735_v14 }
0x20ff   :  { %v2763_v43 = vmax.f32 %v2762_v11, %v2740_v58 }
0x2112   :  { %v3620_v6 = vpop.permute.xlu1 %3619 }
0x2113   :  { %vm3621_vm10 = vcmp.eq.s32.totalorder %v5564_v9, %v3620_v6 }
0x2114   :  { %v3894_v31 = vsel %vm3621_vm10, 1.0, %v6379_v39 }
0x2115   :  { %v5963_v13 = vsel %vm3628_vm4, %v3894_v31, %v5877_v40 }
0x2116   :  { %v3631_v28 = vmul.f32 %v3630_v57, %v5963_v13 }
0x2117   :  { %v2743_v62 = vpop.permute.xlu1 %2742 }
0x2118   :  { %v3632_v56 = vsel %vm2023_vm1, %v3631_v28, 0.0  ;;  %v2745_v52 = vadd.f32 %v2743_v62, %v5343_v59 }
0x2119   :  { %3633 = vadd.xlane.f32.xlu0 %v3632_v56 }
0x211a   :  { %v2764_v2 = vmax.f32 %v2763_v43, %v2745_v52 }
0x211c   :  { %v2748_v40 = vpop.permute.xlu1 %2747 }
0x211d   :  { %v2750_v27 = vadd.f32 %v2748_v40, %v5346_v1 }
0x211f   :  { %v2765_v3 = vmax.f32 %v2764_v2, %v2750_v27 }
0x2121   :  { %v2753_v23 = vpop.permute.xlu1 %2752 }
0x2122   :  { %v2755_v60 = vadd.f32 %v2753_v23, %v5349_v12 }
0x2124   :  { %v2766_v8 = vmax.f32 %v2765_v3, %v2755_v60 }
0x2126   :  { %v2767_v5 = vmax.f32 %v2766_v8, %v2760_v47 }
0x2128   :  { %v2768_v19 = vsub.f32 %v2725_v15, %v2767_v5  ;;  %v2771_v45 = vsub.f32 %v2730_v25, %v2767_v5  ;;  %v2775_v10 = vsub.f32 %v2735_v14, %v2767_v5  ;;  %v2779_v7 = vsub.f32 %v2740_v58, %v2767_v5 }
0x2129   :  { %v2783_v34 = vsub.f32 %v2745_v52, %v2767_v5  ;;  %v2787_v6 = vsub.f32 %v2750_v27, %v2767_v5  ;;  %v2791_v22 = vsub.f32 %v2755_v60, %v2767_v5  ;;  %v2795_v31 = vsub.f32 %v2760_v47, %v2767_v5  ;;  %v4381_v47 = vpop.permute.xlu0 %4380 }
0x212a   :  { %v2769_v35 = vmul.f32 1.442695, %v2768_v19  ;;  %v2772_v54 = vmul.f32 1.442695, %v2771_v45  ;;  %v2776_v18 = vmul.f32 1.442695, %v2775_v10  ;;  %v4383_v10 = vunpack.i.h.bf16 %v4381_v47 }
0x212b   :  { %v2780_v49 = vmul.f32 1.442695, %v2779_v7  ;;  %v2784_v16 = vmul.f32 1.442695, %v2783_v34  ;;  %v2788_v57 = vmul.f32 1.442695, %v2787_v6 }
0x212c   :  { %4597 = vpow2.f32 %v2769_v35  ;;  %v2792_v28 = vmul.f32 1.442695, %v2791_v22  ;;  %v2796_v15 = vmul.f32 1.442695, %v2795_v31 }
0x212d   :  { %4599 = vpow2.f32 %v2772_v54 }
0x212e   :  { %4601 = vpow2.f32 %v2776_v18 }
0x212f   :  { %4603 = vpow2.f32 %v2780_v49  ;;  %v3098_v49 = vmul.f32 %v4383_v10, %v5327_v51 }
0x2130   :  { %4605 = vpow2.f32 %v2784_v16 }
0x2131   :  { %4607 = vpow2.f32 %v2788_v57 }
0x2132   :  { %4609 = vpow2.f32 %v2792_v28 }
0x2133   :  { %4611 = vpow2.f32 %v2796_v15 }
0x2139   :  { %v4598_v25 = vpop.eup %4597 }
0x213a   :  { %v4600_v62 = vpop.eup %4599 }
0x213b   :  { %v2774_v14 = vadd.f32 %v4600_v62, %v4598_v25  ;;  %v4602_v56 = vpop.eup %4601 }
0x213c   :  { %v4604_v58 = vpop.eup %4603 }
0x213d   :  { %v2778_v53 = vadd.f32 %v4602_v56, %v2774_v14  ;;  %v4606_v52 = vpop.eup %4605 }
0x213e   :  { %v4608_v43 = vpop.eup %4607 }
0x213f   :  { %v2782_v11 = vadd.f32 %v4604_v58, %v2778_v53  ;;  %v4610_v2 = vpop.eup %4609 }
0x2140   :  { %v4612_v23 = vpop.eup %4611 }
0x2141   :  { %v2786_v40 = vadd.f32 %v4606_v52, %v2782_v11 }
0x2143   :  { %v2790_v27 = vadd.f32 %v4608_v43, %v2786_v40 }
0x2145   :  { %v2794_v33 = vadd.f32 %v4610_v2, %v2790_v27 }
0x2147   :  { %v2798_v3 = vadd.f32 %v4612_v23, %v2794_v33 }
0x2149   :  { %4613 = vlog2.f32 %v2798_v3 }
0x2153   :  { %v5975_v60 = vpop.xlane.xlu1 %2877 }
0x2156   :  { %v4614_v8 = vpop.eup %4613 }
0x2157   :  { %v2800_v19 = vmul.f32 0.6931472, %v4614_v8  ;;  %v4387_v45 = vpop.permute.xlu1 %4386 }
0x2158   :  { %v4389_v7 = vunpack.i.h.bf16 %v4387_v45  ;;  %v4388_v25 = vunpack.i.l.bf16 %v4387_v45 }
0x2159   :  { %v2801_v35 = vadd.f32 %v2800_v19, %v2767_v5 }
0x215a   :  { %v3103_v54 = vmul.f32 %v4389_v7, %v5325_v37  ;;  %v2889_v11 = vmul.f32 %v4388_v25, %v5325_v37 }
0x215b   :  { %v4393_v18 = vpop.permute.xlu1 %4392  ;;  %v2802_v34 = vadd.f32 %v2801_v35, %v5285_v20 }
0x215c   :  { %v4395_v6 = vunpack.i.h.bf16 %v4393_v18  ;;  %v3104_v57 = vadd.f32 %v3103_v54, %v3098_v49  ;;  %v4394_v53 = vunpack.i.l.bf16 %v4393_v18 }
0x215d   :  { %v5983_v22 = vsel %vm2807_vm2, %v2802_v34, %v5912_v29  ;;  %v4382_v29 = vunpack.i.l.bf16 %v4381_v47  ;;  %vm3637_vm2 = vcmp.ge.s32.totalorder %v5733_v32, 4 }
0x215e   :  { %v3109_v31 = vmul.f32 %v4395_v6, %v5333_v44  ;;  %2936 = vperm.xlu0 %4378, %v5983_v22   ;;  %v2895_v2 = vmul.f32 %v4394_v53, %v5333_v44 }
0x215f   :  { %v2884_v27 = vmul.f32 %v4382_v29, %v5327_v51 }
0x2160   :  { %v3110_v28 = vadd.f32 %v3109_v31, %v3104_v57  ;;  %v4399_v5 = vpop.permute.xlu1 %4398 }
0x2161   :  { %v4401_v15 = vunpack.i.h.bf16 %v4399_v5  ;;  %v4400_v52 = vunpack.i.l.bf16 %v4399_v5  ;;  %v2890_v3 = vadd.f32 %v2889_v11, %v2884_v27  ;;  %v3646_v11 = vsel %vm3637_vm2, 1, %v6382_v46 }
0x2162   :  { %4426 = vset.pattern.permute.xlu0 %v6383_v48 }
0x2163   :  { %v3115_v20 = vmul.f32 %v4401_v15, %v5339_v50  ;;  %2941 = vperm.xlu0 %4426, %v5983_v22   ;;  %v2901_v47 = vmul.f32 %v4400_v52, %v5339_v50  ;;  %v2896_v45 = vadd.f32 %v2895_v2, %v2890_v3  ;;  %v6393_v52 = vld [vmem:[#allocation18_spill] sm:$0xff] }
0x2164   :  { %vm2001_vm8 = vcmp.eq.s32.totalorder %v5564_v9, %v6393_v52 }
0x2165   :  { %v3116_v62 = vadd.f32 %v3115_v20, %v3110_v28  ;;  %v4405_v14 = vpop.permute.xlu1 %4404  ;;  %v2902_v34 = vadd.f32 %v2901_v47, %v2896_v45 }
0x2166   :  { %v4407_v56 = vunpack.i.h.bf16 %v4405_v14  ;;  %v4406_v33 = vunpack.i.l.bf16 %v4405_v14 }
0x2167   :  { %4427 = vset.pattern.permute.xlu0 %v6389_v63 }
0x2168   :  { %v3121_v58 = vmul.f32 %v4407_v56, %v5343_v59  ;;  %2946 = vperm.xlu0 %4427, %v5983_v22   ;;  %v2907_v10 = vmul.f32 %v4406_v33, %v5343_v59 }
0x216a   :  { %v3122_v40 = vadd.f32 %v3121_v58, %v3116_v62  ;;  %v4411_v43 = vpop.permute.xlu1 %4410  ;;  %v2908_v16 = vadd.f32 %v2907_v10, %v2902_v34 }
0x216b   :  { %v4413_v23 = vunpack.i.h.bf16 %v4411_v43  ;;  %v4412_v19 = vunpack.i.l.bf16 %v4411_v43  ;;  %v6394_v43 = vld [vmem:[#allocation8_spill] sm:$0xff] }
0x216c   :  { %4428 = vset.pattern.permute.xlu0 %v6384_v4 }
0x216d   :  { %v3127_v8 = vmul.f32 %v4413_v23, %v5346_v1  ;;  %2951 = vperm.xlu0 %4428, %v5983_v22   ;;  %v2913_v49 = vmul.f32 %v4412_v19, %v5346_v1 }
0x216f   :  { %v3128_v7 = vadd.f32 %v3127_v8, %v3122_v40  ;;  %v4417_v35 = vpop.permute.xlu1 %4416  ;;  %v2914_v5 = vadd.f32 %v2913_v49, %v2908_v16  ;;  %v6033_v40 = vsel %vm2001_vm8, 1.0, %v6379_v39  ;;  %vm6404_vm8 = vcmp.gt.s32.totalorder %v5311_v30, 6 }
0x2170   :  { %v4419_v54 = vunpack.i.h.bf16 %v4417_v35  ;;  %v4418_v18 = vunpack.i.l.bf16 %v4417_v35  ;;  %v3089_v27 = vmul.f32 %v6033_v40, %v6394_v43 }
0x2171   :  { %4429 = vset.pattern.permute.xlu0 %v6385_v17 }
0x2172   :  { %v3133_v6 = vmul.f32 %v4419_v54, %v5349_v12  ;;  %2956 = vperm.xlu0 %4429, %v5983_v22   ;;  %v2919_v57 = vmul.f32 %v4418_v18, %v5349_v12  ;;  %v3090_v2 = vsel %vm2023_vm1, %v3089_v27, 0.0 }
0x2174   :  { %v6006_v31 = vadd.f32 %v3133_v6, %v3128_v7  ;;  %v6008_v28 = vpop.permute.xlu1 %4422  ;;  %v2920_v20 = vadd.f32 %v2919_v57, %v2914_v5 }
0x2175   :  { %v4424_v15 = vunpack.i.l.bf16 %v6008_v28 }
0x2176   :  { %4431 = vset.pattern.permute.xlu0 %v6387_v26 }
0x2177   :  { %v2925_v25 = vmul.f32 %v4424_v15, %v5352_v36  ;;  %2966 = vperm.xlu0 %4431, %v5983_v22  }
0x2179   :  { %v2926_v62 = vadd.f32 %v2925_v25, %v2920_v20 }
0x217b   :  { %v2927_v14 = vmul.f32 %v6390_v61, %v2926_v62  ;;  %4433 = vset.pattern.permute.xlu0 %v6382_v46 }
0x217d   :  { %v2928_v56 = vsel %vm2023_vm1, %v2927_v14, 0.0 }
0x217e   :  { %2929 = vadd.xlane.f32.xlu1 %v2928_v56 }
0x218f   :  { %2961 = vperm.xlu1 %4430, %v5983_v22  }
0x2193   :  { %4432 = vset.pattern.permute.xlu1 %v6388_v42 }
0x2194   :  { %2971 = vperm.xlu1 %4432, %v5983_v22  }
0x2198   :  { %4434 = vset.pattern.permute.xlu1 %v6383_v48 }
0x21a2   :  { %v3634_v29 = vpop.xlane.xlu0 %3633 }
0x21a3   :  { %v4142_v53 = vtrunc.f32 %v3634_v29 }
0x21a5   :  { %v4143_v58 = vcvt.f32.s32 %v4142_v53 }
0x21a7   :  { %v6023_v61 = vsel %vm3636_vm5, %v5791_v0, %v4143_v58  ;;  %vm3681_vm5 = vcmp.ge.s32.totalorder %v5733_v32, 2 }
0x21a8   :  { %3641 = vperm.xlu0 %4433, %v6023_v61  }
0x21ac   :  { %3648 = vperm.xlu0 %4433, %v3646_v11  }
0x21b8   :  { %3091 = vadd.xlane.f32.xlu1 %v3090_v2 }
0x21d9   :  { %v2937_v33 = vpop.permute.xlu0 %2936 }
0x21da   :  { %v2939_v19 = vadd.f32 %v2937_v33, %v5327_v51 }
0x21de   :  { %v2942_v23 = vpop.permute.xlu0 %2941 }
0x21df   :  { %v2944_v8 = vadd.f32 %v2942_v23, %v5325_v37 }
0x21e1   :  { %v2975_v7 = vmax.f32 %v2939_v19, %v2944_v8 }
0x21e3   :  { %v2947_v3 = vpop.permute.xlu0 %2946 }
0x21e4   :  { %v2949_v45 = vadd.f32 %v2947_v3, %v5333_v44 }
0x21e6   :  { %v2976_v18 = vmax.f32 %v2975_v7, %v2949_v45 }
0x21e8   :  { %v2952_v47 = vpop.permute.xlu0 %2951 }
0x21e9   :  { %v2954_v35 = vadd.f32 %v2952_v47, %v5339_v50 }
0x21eb   :  { %v2977_v6 = vmax.f32 %v2976_v18, %v2954_v35 }
0x21ed   :  { %v2957_v10 = vpop.permute.xlu0 %2956 }
0x21ee   :  { %v2959_v34 = vadd.f32 %v2957_v10, %v5343_v59 }
0x21f0   :  { %v2978_v20 = vmax.f32 %v2977_v6, %v2959_v34 }
0x21f2   :  { %v2967_v57 = vpop.permute.xlu0 %2966 }
0x21f3   :  { %v2969_v62 = vadd.f32 %v2967_v57, %v5349_v12  ;;  %v6395_v57 = vld [vmem:[#allocation14_spill] sm:$0xff] }
0x2207   :  { %v2930_v54 = vpop.xlane.xlu1 %2929 }
0x2208   :  { %v2931_v49 = vadd.f32 %v2930_v54, %v5975_v60 }
0x220a   :  { %v2932_v16 = vsel %vm2874_vm3, %v2931_v49, 0.0 }
0x220b   :  { %v6047_v5 = vadd.f32 %v2932_v16, %v5906_v24  ;;  %v2962_v15 = vpop.permute.xlu1 %2961 }
0x220c   :  { %v2964_v25 = vadd.f32 %v2962_v15, %v5346_v1  ;;  %v3652_v15 = vcvt.s32.f32 %v6395_v57 }
0x220e   :  { %v2979_v14 = vmax.f32 %v2978_v20, %v2964_v25 }
0x220f   :  { %v2972_v56 = vpop.permute.xlu1 %2971 }
0x2210   :  { %v2980_v29 = vmax.f32 %v2979_v14, %v2969_v62  ;;  %v2974_v53 = vadd.f32 %v2972_v56, %v5352_v36 }
0x2212   :  { %v2981_v60 = vmax.f32 %v2980_v29, %v2974_v53 }
0x2214   :  { %v2982_v58 = vsub.f32 %v2939_v19, %v2981_v60  ;;  %v2985_v11 = vsub.f32 %v2944_v8, %v2981_v60  ;;  %v2989_v52 = vsub.f32 %v2949_v45, %v2981_v60  ;;  %v2993_v27 = vsub.f32 %v2954_v35, %v2981_v60 }
0x2215   :  { %v2997_v23 = vsub.f32 %v2959_v34, %v2981_v60  ;;  %v3001_v47 = vsub.f32 %v2964_v25, %v2981_v60  ;;  %v3005_v7 = vsub.f32 %v2969_v62, %v2981_v60  ;;  %v3009_v18 = vsub.f32 %v2974_v53, %v2981_v60 }
0x2216   :  { %v2983_v2 = vmul.f32 1.442695, %v2982_v58  ;;  %v2986_v33 = vmul.f32 1.442695, %v2985_v11  ;;  %v2990_v24 = vmul.f32 1.442695, %v2989_v52 }
0x2217   :  { %v2994_v3 = vmul.f32 1.442695, %v2993_v27  ;;  %v2998_v10 = vmul.f32 1.442695, %v2997_v23  ;;  %v3002_v54 = vmul.f32 1.442695, %v3001_v47 }
0x2218   :  { %4615 = vpow2.f32 %v2983_v2  ;;  %v3006_v49 = vmul.f32 1.442695, %v3005_v7  ;;  %v3010_v8 = vmul.f32 1.442695, %v3009_v18  ;;  %v6398_v18 = vld [vmem:[#allocation9_spill] sm:$0xff] }
0x2219   :  { %4617 = vpow2.f32 %v2986_v33 }
0x221a   :  { %4619 = vpow2.f32 %v2990_v24 }
0x221b   :  { %4621 = vpow2.f32 %v2994_v3 }
0x221c   :  { %4623 = vpow2.f32 %v2998_v10 }
0x221d   :  { %4625 = vpow2.f32 %v3002_v54 }
0x221e   :  { %4627 = vpow2.f32 %v3006_v49 }
0x221f   :  { %4629 = vpow2.f32 %v3010_v8 }
0x2223   :  { %v3642_v19 = vpop.permute.xlu0 %3641 }
0x2224   :  { %vm3643_vm3 = vcmp.eq.s32.totalorder %v5564_v9, %v3642_v19  ;;  %v6399_v19 = vld [vmem:[#allocation22_spill] sm:$0xff] }
0x2225   :  { %v4616_v45 = vpop.eup %4615  ;;  %v3895_v20 = vsel %vm3643_vm3, 1.0, %v6379_v39  ;;  %vm3680_vm3 = vcmp.eq.s32.totalorder %v5733_v32, 2 }
0x2226   :  { %v4618_v35 = vpop.eup %4617 }
0x2227   :  { %v2988_v34 = vadd.f32 %v4618_v35, %v4616_v45  ;;  %v3649_v6 = vpop.permute.xlu0 %3648  ;;  %v4620_v16 = vpop.eup %4619  ;;  %v6400_v45 = vld [vmem:[#allocation17_spill] sm:$0xff] }
0x2228   :  { %vm3650_vm14 = vcmp.eq.s32.totalorder %v3649_v6, 1  ;;  %v4622_v14 = vpop.eup %4621  ;;  %vm6401_vm9 = vcmp.eq.s32.totalorder %v6400_v45, 1 }
0x2229   :  { %v2992_v25 = vadd.f32 %v4620_v16, %v2988_v34  ;;  %v6056_v62 = vsel %vm3650_vm14, %v3895_v20, %v5963_v13  ;;  %v4624_v53 = vpop.eup %4623  ;;  %v6099_v35 = vsel %vm6401_vm9, %v6033_v40, %v6399_v19  ;;  %vm6402_vm0 = vmmov %vm6401_vm9 }
0x222a   :  { %v3653_v56 = vmul.f32 %v3652_v15, %v6056_v62  ;;  %v4626_v52 = vpop.eup %4625 }
0x222b   :  { %v2996_v29 = vadd.f32 %v4622_v14, %v2992_v25  ;;  %v4628_v2 = vpop.eup %4627 }
0x222c   :  { %v3654_v58 = vsel %vm2023_vm1, %v3653_v56, 0.0  ;;  %v4630_v24 = vpop.eup %4629 }
0x222d   :  { %v3000_v11 = vadd.f32 %v4624_v53, %v2996_v29  ;;  %3655 = vadd.xlane.f32.xlu0 %v3654_v58 }
0x222f   :  { %v3004_v27 = vadd.f32 %v4626_v52, %v3000_v11 }
0x2231   :  { %v3008_v33 = vadd.f32 %v4628_v2, %v3004_v27  ;;  %v4425_v27 = vunpack.i.h.bf16 %v6008_v28 }
0x2233   :  { %v3012_v23 = vadd.f32 %v4630_v24, %v3008_v33 }
0x2235   :  { %4631 = vlog2.f32 %v3012_v23 }
0x2241   :  { %v6112_v15 = vpop.xlane.xlu1 %3091 }
0x2242   :  { %v4632_v3 = vpop.eup %4631 }
0x2243   :  { %v3014_v47 = vmul.f32 0.6931472, %v4632_v3  ;;  %v3139_v3 = vmul.f32 %v4425_v27, %v5352_v36 }
0x2245   :  { %v3015_v13 = vadd.f32 %v3014_v47, %v2981_v60 }
0x2247   :  { %v3016_v10 = vadd.f32 %v3015_v13, %v5288_v21  ;;  %v3668_v21 = vsel %vm3659_vm11, 1, %v6382_v46 }
0x2249   :  { %v6064_v54 = vsel %vm3021_vm6, %v3016_v10, %v5983_v22  ;;  %v6397_v22 = vld [vmem:[#allocation19_spill] sm:$0xff] }
0x224a   :  { %3155 = vperm.xlu1 %4434, %v6064_v54   ;;  %3150 = vperm.xlu0 %4433, %v6064_v54   ;;  %vm2012_vm6 = vcmp.eq.s32.totalorder %v5564_v9, %v6397_v22 }
0x224b   :  { %v6090_v60 = vsel %vm2012_vm6, 1.0, %v6379_v39 }
0x224c   :  { %v3303_v49 = vmul.f32 %v6090_v60, %v6398_v18 }
0x224e   :  { %4435 = vset.pattern.permute.xlu1 %v6389_v63  ;;  %4436 = vset.pattern.permute.xlu0 %v6384_v4  ;;  %v3304_v8 = vsel %vm2023_vm1, %v3303_v49, 0.0  ;;  %v3140_v49 = vadd.f32 %v3139_v3, %v6006_v31 }
0x224f   :  { %3160 = vperm.xlu1 %4435, %v6064_v54   ;;  %3165 = vperm.xlu0 %4436, %v6064_v54  }
0x2253   :  { %4437 = vset.pattern.permute.xlu1 %v6385_v17  ;;  %4439 = vset.pattern.permute.xlu0 %v6387_v26 }
0x2254   :  { %3170 = vperm.xlu1 %4437, %v6064_v54   ;;  %3180 = vperm.xlu0 %4439, %v6064_v54  }
0x2258   :  { %4438 = vset.pattern.permute.xlu1 %v6386_v55  ;;  %4441 = vset.pattern.permute.xlu0 %v6382_v46 }
0x2259   :  { %3175 = vperm.xlu1 %4438, %v6064_v54   ;;  %3670 = vperm.xlu0 %4441, %v3668_v21  }
0x225d   :  { %4440 = vset.pattern.permute.xlu1 %v6388_v42  ;;  %4443 = vset.pattern.permute.xlu0 %v6383_v48 }
0x225e   :  { %3185 = vperm.xlu1 %4440, %v6064_v54  }
0x2262   :  { %4442 = vset.pattern.permute.xlu1 %v6382_v46 }
0x2278   :  { %3305 = vadd.xlane.f32.xlu0 %v3304_v8 }
0x228e   :  { %3314 = vperm.xlu0 %4443, %v6099_v35  }
0x2292   :  { %4446 = vset.pattern.permute.xlu0 %v6385_v17 }
0x2293   :  { %3332 = vperm.xlu0 %4446, %v6099_v35  }
0x2297   :  { %4447 = vset.pattern.permute.xlu0 %v6386_v55 }
0x2298   :  { %3338 = vperm.xlu0 %4447, %v6099_v35  }
0x229c   :  { %4448 = vset.pattern.permute.xlu0 %v6382_v46 }
0x22b6   :  { %v3656_v34 = vpop.xlane.xlu0 %3655 }
0x22b7   :  { %v4144_v6 = vtrunc.f32 %v3656_v34  ;;  %v3141_v34 = vmul.f32 %v6033_v40, %v3140_v49 }
0x22b9   :  { %v4145_v16 = vcvt.f32.s32 %v4144_v6 }
0x22bb   :  { %v6109_v57 = vsel %vm3658_vm15, %v5791_v0, %v4145_v16 }
0x22bc   :  { %3663 = vperm.xlu1 %4442, %v6109_v57  }
0x22c5   :  { %v3151_v20 = vpop.permute.xlu0 %3150  ;;  %v3156_v25 = vpop.permute.xlu1 %3155 }
0x22c6   :  { %v3153_v14 = vadd.f32 %v3151_v20, %v5327_v51  ;;  %v3158_v56 = vadd.f32 %v3156_v25, %v5325_v37 }
0x22c8   :  { %v3189_v53 = vmax.f32 %v3153_v14, %v3158_v56 }
0x22ca   :  { %v3161_v29 = vpop.permute.xlu1 %3160  ;;  %v3166_v11 = vpop.permute.xlu0 %3165 }
0x22cb   :  { %v3163_v58 = vadd.f32 %v3161_v29, %v5333_v44  ;;  %v3168_v2 = vadd.f32 %v3166_v11, %v5339_v50 }
0x22cd   :  { %v3190_v52 = vmax.f32 %v3189_v53, %v3163_v58  ;;  %v3142_v53 = vsel %vm2023_vm1, %v3141_v34, 0.0 }
0x22cf   :  { %v3171_v33 = vpop.permute.xlu1 %3170  ;;  %v3191_v24 = vmax.f32 %v3190_v52, %v3168_v2  ;;  %v3181_v47 = vpop.permute.xlu0 %3180 }
0x22d0   :  { %v3173_v23 = vadd.f32 %v3171_v33, %v5343_v59  ;;  %v3183_v21 = vadd.f32 %v3181_v47, %v5349_v12 }
0x22d2   :  { %v3192_v10 = vmax.f32 %v3191_v24, %v3173_v23 }
0x22d4   :  { %v3176_v13 = vpop.permute.xlu1 %3175 }
0x22d5   :  { %v3178_v7 = vadd.f32 %v3176_v13, %v5346_v1 }
0x22d7   :  { %v3193_v22 = vmax.f32 %v3192_v10, %v3178_v7 }
0x22d9   :  { %v3194_v8 = vmax.f32 %v3193_v22, %v3183_v21  ;;  %v3186_v28 = vpop.permute.xlu1 %3185 }
0x22da   :  { %v3188_v19 = vadd.f32 %v3186_v28, %v5352_v36 }
0x22dc   :  { %v3195_v6 = vmax.f32 %v3194_v8, %v3188_v19 }
0x22de   :  { %v3196_v16 = vsub.f32 %v3153_v14, %v3195_v6  ;;  %v3199_v20 = vsub.f32 %v3158_v56, %v3195_v6  ;;  %v3203_v25 = vsub.f32 %v3163_v58, %v3195_v6  ;;  %v3207_v29 = vsub.f32 %v3168_v2, %v3195_v6 }
0x22df   :  { %v3211_v33 = vsub.f32 %v3173_v23, %v3195_v6  ;;  %v3215_v24 = vsub.f32 %v3178_v7, %v3195_v6  ;;  %v3219_v47 = vsub.f32 %v3183_v21, %v3195_v6  ;;  %v3223_v14 = vsub.f32 %v3188_v19, %v3195_v6 }
0x22e0   :  { %v3197_v11 = vmul.f32 1.442695, %v3196_v16  ;;  %v3200_v52 = vmul.f32 1.442695, %v3199_v20  ;;  %3143 = vadd.xlane.f32.xlu1 %v3142_v53  ;;  %v3204_v27 = vmul.f32 1.442695, %v3203_v25 }
0x22e1   :  { %v3208_v31 = vmul.f32 1.442695, %v3207_v29  ;;  %v3212_v3 = vmul.f32 1.442695, %v3211_v33  ;;  %v3216_v40 = vmul.f32 1.442695, %v3215_v24 }
0x22e2   :  { %4633 = vpow2.f32 %v3197_v11  ;;  %v3220_v56 = vmul.f32 1.442695, %v3219_v47  ;;  %v3224_v58 = vmul.f32 1.442695, %v3223_v14 }
0x22e3   :  { %4635 = vpow2.f32 %v3200_v52 }
0x22e4   :  { %4637 = vpow2.f32 %v3204_v27 }
0x22e5   :  { %4639 = vpow2.f32 %v3208_v31  ;;  %v3690_v31 = vsel %vm3681_vm5, 1, %v6382_v46 }
0x22e6   :  { %4641 = vpow2.f32 %v3212_v3 }
0x22e7   :  { %4643 = vpow2.f32 %v3216_v40 }
0x22e8   :  { %4645 = vpow2.f32 %v3220_v56 }
0x22e9   :  { %4647 = vpow2.f32 %v3224_v58 }
0x22ef   :  { %v4634_v2 = vpop.eup %4633 }
0x22f0   :  { %v4636_v13 = vpop.eup %4635 }
0x22f1   :  { %v3202_v10 = vadd.f32 %v4636_v13, %v4634_v2  ;;  %3309 = vperm.xlu1 %4442, %v6099_v35   ;;  %v4638_v23 = vpop.eup %4637 }
0x22f2   :  { %v4640_v7 = vpop.eup %4639 }
0x22f3   :  { %v3206_v22 = vadd.f32 %v4638_v23, %v3202_v10  ;;  %v4642_v21 = vpop.eup %4641 }
0x22f4   :  { %v4644_v28 = vpop.eup %4643 }
0x22f5   :  { %v3210_v49 = vadd.f32 %v4640_v7, %v3206_v22  ;;  %4444 = vset.pattern.permute.xlu1 %v6389_v63  ;;  %v4646_v34 = vpop.eup %4645 }
0x22f6   :  { %3320 = vperm.xlu1 %4444, %v6099_v35   ;;  %v4648_v20 = vpop.eup %4647 }
0x22f7   :  { %v3214_v8 = vadd.f32 %v4642_v21, %v3210_v49 }
0x22f9   :  { %v3218_v19 = vadd.f32 %v4644_v28, %v3214_v8 }
0x22fa   :  { %4445 = vset.pattern.permute.xlu1 %v6384_v4 }
0x22fb   :  { %v3222_v16 = vadd.f32 %v4646_v34, %v3218_v19  ;;  %3326 = vperm.xlu1 %4445, %v6099_v35  }
0x22fd   :  { %v3226_v25 = vadd.f32 %v4648_v20, %v3222_v16 }
0x22ff   :  { %4649 = vlog2.f32 %v3226_v25  ;;  %4449 = vset.pattern.permute.xlu1 %v6383_v48  ;;  %v3671_v48 = vpop.permute.xlu0 %3670 }
0x2300   :  { %vm3672_vm10 = vcmp.eq.s32.totalorder %v3671_v48, 1 }
0x230c   :  { %v4650_v29 = vpop.eup %4649 }
0x230d   :  { %v3228_v53 = vmul.f32 0.6931472, %v4650_v29 }
0x230f   :  { %v3229_v11 = vadd.f32 %v3228_v53, %v3195_v6 }
0x2311   :  { %v3230_v52 = vadd.f32 %v3229_v11, %v6394_v43 }
0x2313   :  { %v6137_v27 = vsel %vm6402_vm0, %v3230_v52, %v6064_v54  ;;  %v6403_v54 = vld [vmem:[#allocation12_spill] sm:$0xff]  ;;  %vm3703_vm0 = vcmp.ge.s32.totalorder %v5733_v32, 1 }
0x2314   :  { %3364 = vperm.xlu0 %4448, %v6137_v27   ;;  %v3674_v45 = vcvt.s32.f32 %v6403_v54 }
0x2318   :  { %4450 = vset.pattern.permute.xlu0 %v6389_v63 }
0x2319   :  { %3374 = vperm.xlu0 %4450, %v6137_v27  }
0x231d   :  { %4451 = vset.pattern.permute.xlu0 %v6384_v4 }
0x231e   :  { %3379 = vperm.xlu0 %4451, %v6137_v27  }
0x2322   :  { %4454 = vset.pattern.permute.xlu0 %v6387_v26 }
0x2323   :  { %3394 = vperm.xlu0 %4454, %v6137_v27  }
0x2327   :  { %4457 = vset.pattern.permute.xlu0 %v6382_v46 }
0x2328   :  { %3692 = vperm.xlu0 %4457, %v3690_v31   ;;  %v6405_v31 = vld [vmem:[#allocation20_spill] sm:$0xff] }
0x2329   :  { %vm6406_vm14 = vcmp.eq.s32.totalorder %v6405_v31, 1 }
0x232a   :  { %vm6408_vm15 = vmmov %vm6406_vm14 }
0x2337   :  { %v3664_v43 = vpop.permute.xlu1 %3663 }
0x2338   :  { %vm3665_vm4 = vcmp.eq.s32.totalorder %v5564_v9, %v3664_v43 }
0x2339   :  { %v3896_v63 = vsel %vm3665_vm4, 1.0, %v6379_v39  ;;  %vm3702_vm4 = vcmp.eq.s32.totalorder %v5733_v32, 1 }
0x233a   :  { %v6151_v6 = vsel %vm3672_vm10, %v3896_v63, %v6056_v62  ;;  %v6167_v62 = vpop.xlane.xlu0 %3305  ;;  %vm6409_vm10 = vcmp.gt.s32.totalorder %v5311_v30, 7 }
0x233b   :  { %v3675_v4 = vmul.f32 %v3674_v45, %v6151_v6 }
0x233d   :  { %v3676_v33 = vsel %vm2023_vm1, %v3675_v4, 0.0 }
0x233e   :  { %3677 = vadd.xlane.f32.xlu1 %v3676_v33  ;;  %v3315_v47 = vpop.permute.xlu0 %3314 }
0x233f   :  { %v3317_v14 = vmul.f32 %v3315_v47, %v5325_v37 }
0x2342   :  { %v3333_v13 = vpop.permute.xlu0 %3332 }
0x2343   :  { %v3335_v49 = vmul.f32 %v3333_v13, %v5343_v59 }
0x2346   :  { %v3339_v7 = vpop.permute.xlu0 %3338 }
0x234f   :  { %3369 = vperm.xlu1 %4449, %v6137_v27  }
0x2353   :  { %4452 = vset.pattern.permute.xlu1 %v6385_v17 }
0x2354   :  { %3384 = vperm.xlu1 %4452, %v6137_v27  }
0x2358   :  { %4453 = vset.pattern.permute.xlu1 %v6386_v55 }
0x2359   :  { %3389 = vperm.xlu1 %4453, %v6137_v27  }
0x235d   :  { %4455 = vset.pattern.permute.xlu1 %v6388_v42 }
0x235e   :  { %3399 = vperm.xlu1 %4455, %v6137_v27  }
0x2362   :  { %4456 = vset.pattern.permute.xlu1 %v6382_v46 }
0x2369   :  { %v3144_v24 = vpop.xlane.xlu1 %3143 }
0x236a   :  { %v3145_v3 = vadd.f32 %v3144_v24, %v6112_v15 }
0x236c   :  { %v3146_v17 = vsel %vm6404_vm8, %v3145_v3, 0.0 }
0x236d   :  { %v6173_v40 = vadd.f32 %v3146_v17, %v6047_v5  ;;  %v3310_v55 = vpop.permute.xlu1 %3309  ;;  %v3341_v5 = vmul.f32 %v3339_v7, %v5346_v1 }
0x236e   :  { %v3312_v56 = vmul.f32 %v3310_v55, %v5327_v51 }
0x2370   :  { %v3318_v58 = vadd.f32 %v3317_v14, %v3312_v56 }
0x2371   :  { %v3321_v2 = vpop.permute.xlu1 %3320 }
0x2372   :  { %v3323_v10 = vmul.f32 %v3321_v2, %v5333_v44 }
0x2374   :  { %v3324_v23 = vadd.f32 %v3323_v10, %v3318_v58 }
0x2376   :  { %v3327_v22 = vpop.permute.xlu1 %3326 }
0x2377   :  { %v3329_v15 = vmul.f32 %v3327_v22, %v5339_v50 }
0x2379   :  { %v3330_v21 = vadd.f32 %v3329_v15, %v3324_v23 }
0x237b   :  { %v3336_v8 = vadd.f32 %v3335_v49, %v3330_v21 }
0x237d   :  { %v6181_v28 = vadd.f32 %v3341_v5, %v3336_v8 }
0x238f   :  { %v3365_v25 = vpop.permute.xlu0 %3364 }
0x2390   :  { %v3367_v52 = vadd.f32 %v3365_v25, %v5327_v51 }
0x2394   :  { %v3375_v11 = vpop.permute.xlu0 %3374 }
0x2395   :  { %v3377_v43 = vadd.f32 %v3375_v11, %v5333_v44  ;;  %v6206_v44 = vld [vmem:[%s6298_s21] ss:$0 sm:$0xff]  ;;  %s4735_s21 = smov 1  }
0x2399   :  { %v3380_v54 = vpop.permute.xlu0 %3379 }
0x239a   :  { %v3382_v63 = vadd.f32 %v3380_v54, %v5339_v50 }
0x239e   :  { %v3395_v50 = vpop.permute.xlu0 %3394 }
0x239f   :  { %v3397_v55 = vadd.f32 %v3395_v50, %v5349_v12  ;;  %v6407_v50 = vld [vmem:[#allocation11_spill] sm:$0xff] }
0x23c7   :  { %v3678_v19 = vpop.xlane.xlu1 %3677 }
0x23c8   :  { %v4146_v34 = vtrunc.f32 %v3678_v19 }
0x23ca   :  { %v4147_v16 = vcvt.f32.s32 %v4146_v34 }
0x23cb   :  { %v3370_v29 = vpop.permute.xlu1 %3369 }
0x23cc   :  { %v6185_v20 = vsel %vm3680_vm3, %v5791_v0, %v4147_v16  ;;  %v3372_v53 = vadd.f32 %v3370_v29, %v5325_v37  ;;  %v3515_v37 = vsel %vm6406_vm14, %v6090_v60, %v6099_v35 }
0x23cd   :  { %3685 = vperm.xlu1 %4456, %v6185_v20   ;;  %v3522_v3 = vmul.f32 %v6206_v44, %v3515_v37 }
0x23ce   :  { %v3403_v48 = vmax.f32 %v3367_v52, %v3372_v53 }
0x23d0   :  { %v3404_v45 = vmax.f32 %v3403_v48, %v3377_v43 }
0x23d1   :  { %4458 = vset.pattern.permute.xlu1 %v6387_v26  ;;  %v3385_v26 = vpop.permute.xlu1 %3384 }
0x23d2   :  { %3344 = vperm.xlu1 %4458, %v6099_v35   ;;  %v3387_v33 = vadd.f32 %v3385_v26, %v5343_v59  ;;  %v3523_v59 = vsel %vm2023_vm1, %v3522_v3, 0.0 }
0x23d5   :  { %v3390_v4 = vpop.permute.xlu1 %3389 }
0x23d6   :  { %4459 = vset.pattern.permute.xlu1 %v6388_v42  ;;  %v3405_v42 = vmax.f32 %v3404_v45, %v3382_v63  ;;  %v3392_v51 = vadd.f32 %v3390_v4, %v5346_v1 }
0x23d7   :  { %3350 = vperm.xlu1 %4459, %v6099_v35  }
0x23d8   :  { %v3406_v24 = vmax.f32 %v3405_v42, %v3387_v33 }
0x23d9   :  { %v3400_v17 = vpop.permute.xlu1 %3399 }
0x23da   :  { %v3407_v47 = vmax.f32 %v3406_v24, %v3392_v51  ;;  %v3402_v35 = vadd.f32 %v3400_v17, %v5352_v36  ;;  %v3693_v24 = vpop.permute.xlu0 %3692 }
0x23db   :  { %4460 = vset.pattern.permute.xlu1 %v6382_v46  ;;  %vm3694_vm6 = vcmp.eq.s32.totalorder %v3693_v24, 1 }
0x23dc   :  { %v3408_v14 = vmax.f32 %v3407_v47, %v3397_v55  ;;  %v3696_v47 = vcvt.s32.f32 %v6407_v50 }
0x23de   :  { %v3409_v56 = vmax.f32 %v3408_v14, %v3402_v35 }
0x23e0   :  { %v3410_v1 = vsub.f32 %v3367_v52, %v3409_v56  ;;  %v3413_v58 = vsub.f32 %v3372_v53, %v3409_v56  ;;  %v3417_v10 = vsub.f32 %v3377_v43, %v3409_v56  ;;  %v3421_v22 = vsub.f32 %v3382_v63, %v3409_v56 }
0x23e1   :  { %v3425_v7 = vsub.f32 %v3387_v33, %v3409_v56  ;;  %v3429_v21 = vsub.f32 %v3392_v51, %v3409_v56  ;;  %v3433_v34 = vsub.f32 %v3397_v55, %v3409_v56  ;;  %v3437_v25 = vsub.f32 %v3402_v35, %v3409_v56 }
0x23e2   :  { %v3411_v2 = vmul.f32 1.442695, %v3410_v1  ;;  %v3414_v13 = vmul.f32 1.442695, %v3413_v58  ;;  %v3418_v23 = vmul.f32 1.442695, %v3417_v10 }
0x23e3   :  { %v3422_v15 = vmul.f32 1.442695, %v3421_v22  ;;  %v3426_v49 = vmul.f32 1.442695, %v3425_v7  ;;  %v3430_v19 = vmul.f32 1.442695, %v3429_v21 }
0x23e4   :  { %4651 = vpow2.f32 %v3411_v2  ;;  %v3434_v29 = vmul.f32 1.442695, %v3433_v34  ;;  %v3438_v52 = vmul.f32 1.442695, %v3437_v25 }
0x23e5   :  { %4653 = vpow2.f32 %v3414_v13 }
0x23e6   :  { %4655 = vpow2.f32 %v3418_v23 }
0x23e7   :  { %4657 = vpow2.f32 %v3422_v15 }
0x23e8   :  { %4659 = vpow2.f32 %v3426_v49 }
0x23e9   :  { %4661 = vpow2.f32 %v3430_v19 }
0x23ea   :  { %4663 = vpow2.f32 %v3434_v29  ;;  %v3661_v29 = vsel %vm3659_vm11, %v6109_v57, 0  ;;  %v3579_v57 = vsel %vm3578_vm13, %v5791_v0, 0  ;;  %vm3542_vm13 = vcmask 1024  }
0x23eb   :  { %4665 = vpow2.f32 %v3438_v52 }
0x23f1   :  { %v4652_v5 = vpop.eup %4651 }
0x23f2   :  { %v4654_v8 = vpop.eup %4653 }
0x23f3   :  { %v3416_v16 = vadd.f32 %v4654_v8, %v4652_v5  ;;  %v4656_v53 = vpop.eup %4655 }
0x23f4   :  { %v4658_v48 = vpop.eup %4657 }
0x23f5   :  { %v3420_v11 = vadd.f32 %v4656_v53, %v3416_v16  ;;  %v4660_v54 = vpop.eup %4659  ;;  %v3639_v53 = vsel %vm3637_vm2, %v6023_v61, 0 }
0x23f6   :  { %v4662_v45 = vpop.eup %4661 }
0x23f7   :  { %v3424_v43 = vadd.f32 %v4658_v48, %v3420_v11  ;;  %v4664_v42 = vpop.eup %4663  ;;  %v3617_v11 = vsel %vm3615_vm7, %v5932_v38, 0 }
0x23f8   :  { %v4666_v33 = vpop.eup %4665 }
0x23f9   :  { %v3428_v26 = vadd.f32 %v4660_v54, %v3424_v43  ;;  %v6410_v43 = vld [vmem:[#allocation10_spill] sm:$0xff] }
0x23fa   :  { %v3718_v54 = vcvt.s32.f32 %v6410_v43 }
0x23fb   :  { %3524 = vadd.xlane.f32.xlu1 %v3523_v59  ;;  %v3432_v63 = vadd.f32 %v4662_v45, %v3428_v26 }
0x23fd   :  { %v3436_v4 = vadd.f32 %v4664_v42, %v3432_v63 }
0x23ff   :  { %v3440_v37 = vadd.f32 %v4666_v33, %v3436_v4 }
0x2401   :  { %4667 = vlog2.f32 %v3440_v37 }
0x240e   :  { %v4668_v51 = vpop.eup %4667 }
0x240f   :  { %v3442_v59 = vmul.f32 0.6931472, %v4668_v51 }
0x2411   :  { %v3443_v58 = vadd.f32 %v3442_v59, %v3409_v56 }
0x2413   :  { %v3444_v10 = vadd.f32 %v3443_v58, %v6398_v18 }
0x2448   :  { %v3686_v3 = vpop.permute.xlu1 %3685 }
0x2449   :  { %vm3687_vm9 = vcmp.eq.s32.totalorder %v5564_v9, %v3686_v3 }
0x244a   :  { %v3897_v17 = vsel %vm3687_vm9, 1.0, %v6379_v39 }
0x244b   :  { %v6216_v55 = vsel %vm3694_vm6, %v3897_v17, %v6151_v6  ;;  %v3450_v6 = vsel %vm6408_vm15, %v3444_v10, %v6137_v27 }
0x244c   :  { %v3697_v14 = vmul.f32 %v3696_v47, %v6216_v55  ;;  %v3526_v56 = vadd.f32 %v6206_v44, %v3450_v6 }
0x244d   :  { %v3345_v35 = vpop.permute.xlu1 %3344 }
0x244e   :  { %v3698_v1 = vsel %vm2023_vm1, %v3697_v14, 0.0  ;;  %v3347_v2 = vmul.f32 %v3345_v35, %v5349_v12  ;;  %v3527_v12 = vsel %vm2023_vm1, %v3526_v56, -inf }
0x244f   :  { %3699 = vadd.xlane.f32.xlu1 %v3698_v1 }
0x2450   :  { %v3348_v23 = vadd.f32 %v3347_v2, %v6181_v28 }
0x2452   :  { %v3351_v13 = vpop.permute.xlu1 %3350 }
0x2453   :  { %v3353_v22 = vmul.f32 %v3351_v13, %v5352_v36  ;;  %v3712_v36 = vsel %vm3703_vm0, 1, %v6382_v46 }
0x2455   :  { %v3354_v15 = vadd.f32 %v3353_v22, %v3348_v23 }
0x2457   :  { %v3355_v7 = vmul.f32 %v6090_v60, %v3354_v15 }
0x2459   :  { %v3356_v49 = vsel %vm2023_vm1, %v3355_v7, 0.0 }
0x245a   :  { %3357 = vadd.xlane.f32.xlu0 %v3356_v49 }
0x245e   :  { %3528 = vmax.xlane.f32.xlu0 %v3527_v12 }
0x2460   :  { %3714 = vperm.xlu1 %4460, %v3712_v36  }
0x2484   :  { %v3525_v44 = vpop.xlane.xlu1 %3524 }
0x24d8   :  { %v3700_v46 = vpop.xlane.xlu1 %3699 }
0x24d9   :  { %v4148_v16 = vtrunc.f32 %v3700_v46 }
0x24db   :  { %v4149_v25 = vcvt.f32.s32 %v4148_v16 }
0x24dc   :  { %v3715_v52 = vpop.permute.xlu1 %3714 }
0x24dd   :  { %v3704_v30 = vsel %vm3702_vm4, %v5791_v0, %v4149_v25  ;;  %vm3716_vm2 = vcmp.eq.s32.totalorder %v3715_v52, 1 }
0x24e3   :  { %v3358_v18 = vpop.xlane.xlu0 %3357 }
0x24e4   :  { %v3359_v27 = vadd.f32 %v3358_v18, %v6167_v62  ;;  %v3705_v62 = vsel %vm3703_vm0, %v3704_v30, 0 }
0x24e6   :  { %v3360_v60 = vsel %vm6409_vm10, %v3359_v27, 0.0 }
0x24e7   :  { %v3361_v28 = vadd.f32 %v3360_v60, %v6173_v40  ;;  %v3529_v31 = vpop.xlane.xlu0 %3528  ;;  %v3683_v40 = vsel %vm3681_vm5, %v6185_v20, 0  ;;  %v3595_v20 = vsel %vm3593_vm12, %v5826_v41, 0  ;;  %vm3551_vm12 = vcmask 0  }
0x24e8   :  { %v3530_v21 = vsub.f32 %v3526_v56, %v3529_v31 }
0x24e9   :  { %v3539_v5 = vadd.f32 %v3525_v44, %v3361_v28 }
0x24ea   :  { %v3531_v8 = vmul.f32 1.442695, %v3530_v21 }
0x24ec   :  { %4669 = vpow2.f32 %v3531_v8 }
0x24f9   :  { %v4670_v19 = vpop.eup %4669 }
0x24fa   :  { %v3533_v34 = vsel %vm2023_vm1, %v4670_v19, 0.0 }
0x24fb   :  { %3534 = vadd.xlane.f32.xlu0 %v3533_v34 }
0x2511   :  { %3707 = vperm.xlu0 %4457, %v3704_v30  }
0x2515   :  { %3728 = vrot.lane.b32.xlu0 %v3705_v62, %s4735_s21 }
0x2519   :  { %3730 = vrot.lane.b32.xlu0 %v3683_v40, %s4736_s13 }
0x251d   :  { %3732 = vrot.lane.b32.xlu0 %v3661_v29, %s4737_s14 }
0x2521   :  { %3734 = vrot.lane.b32.xlu0 %v3639_v53, %s4738_s15 }
0x2525   :  { %3736 = vrot.lane.b32.xlu0 %v3617_v11, %s4739_s5 }
0x2529   :  { %3738 = vrot.lane.b32.xlu0 %v3595_v20, %s4740_s9 }
0x252d   :  { %3740 = vrot.lane.b32.xlu0 %v3579_v57, %s4741_s26 }
0x2584   :  { %v3535_v61 = vpop.xlane.xlu0 %3534 }
0x2585   :  { %4671 = vlog2.f32 %v3535_v61 }
0x258c   :  { %v3708_v48 = vpop.permute.xlu0 %3707 }
0x258d   :  { %vm3709_vm7 = vcmp.eq.s32.totalorder %v5564_v9, %v3708_v48 }
0x258e   :  { %v3898_v38 = vsel %vm3709_vm7, 1.0, %v6379_v39 }
0x258f   :  { %v3717_v41 = vsel %vm3716_vm2, %v3898_v38, %v6216_v55 }
0x2590   :  { %v3719_v26 = vmul.f32 %v3718_v54, %v3717_v41 }
0x2592   :  { %v4672_v45 = vpop.eup %4671  ;;  %v3720_v63 = vsel %vm2023_vm1, %v3719_v26, 0.0 }
0x2593   :  { %v3537_v42 = vmul.f32 0.6931472, %v4672_v45  ;;  %3721 = vadd.xlane.f32.xlu1 %v3720_v63 }
0x2595   :  { %v3538_v4 = vadd.f32 %v3537_v42, %v3529_v31 }
0x2597   :  { %v3540_v33 = vsub.f32 %v3539_v5, %v3538_v4 }
0x2599   :  { %v3541_v37 = vsub.f32 0.0, %v3540_v33 }
0x259b   :  { %v3543_v24 = vsel %vm3542_vm13, %v3541_v37, 0.0 }
0x259c   :  { %v3544_v51 = vrot.slane %v3543_v24, 4 }
0x259e   :  { %v3545_v3 = vadd.f32 %v3544_v51, %v3543_v24 }
0x25a0   :  { %v3546_v9 = vrot.slane %v3545_v3, 2 }
0x25a2   :  { %v3547_v50 = vadd.f32 %v3546_v9, %v3545_v3 }
0x25a4   :  { %v3548_v39 = vrot.slane %v3547_v50, 1 }
0x25a6   :  { %v3549_v47 = vadd.f32 %v3548_v39, %v3547_v50 }
0x25a8   :  { %v3550_v17 = vmul.f32 0.5, %v3549_v47 }
0x25aa   :  { %3552 = vst.msk [vmem:[#allocation2] sm:$0x1] %vm3551_vm12, %v3550_v17 }
0x25ab   :  { %4686 = shalt.err (!%p4683_p4)
}
0x25ac   :  { %3766 = dma.vmem_to_hbm [thread:$0]  %s3764_s29, 16, %s6300_s23, [#allocation3]   ;;  %v3729_v59 = vpop.permute.xlu0 %3728  ;;  %vm3724_vm11 = vcmp.eq.s32.totalorder %v5733_v32, 0  ;;  %vm3725_vm5 = vcmp.ge.s32.totalorder %v5733_v32, 0  ;;  %vm3742_vm8 = vcmask 7168   ;;  %vm3744_vm3 = vcmask 15360  }
0x25ad   :  { %vm3746_vm14 = vcmask 23552   ;;  %vm3748_vm6 = vcmask 31744   ;;  %vm3750_vm9 = vcmask 39936   ;;  %vm3752_vm15 = vcmask 48128   ;;  %s4743_s23 = smov [#allocation4]  }
0x25ae   :  { %s3773_s17 = sshll.u32 %s4743_s23, 4  ;;  %vm3754_vm0 = vcmask 56320   ;;  %s3774_s17 = int_to_ptr.vmem [resolvable:$true] %s3773_s17 }
0x25af   :  { %s4695_s12 = scalar_lea.vmem %s3774_s17, 32  ;;  %p4700_p6 = scmp.lt.s32.totalorder %s3774_s17, %s3774_s17 }
0x25b0   :  { %v3731_v55 = vpop.permute.xlu0 %3730  ;;  %p4696_p5 = scmp.ne.s32.totalorder %s3774_s17, %s4695_s12  ;;  %p4701_p7 = scmp.lt.s32.totalorder %s4695_s12, %s4695_s12 }
0x25b2   :  { %p4702_p8 = por %p4701_p7, %p4700_p6 }
0x25b4   :  { %v3733_v14 = vpop.permute.xlu0 %3732  ;;  %p4703_p9 = pnand %p4702_p8, %p4696_p5 }
0x25b8   :  { %v3735_v35 = vpop.permute.xlu0 %3734 }
0x25bc   :  { %v3737_v1 = vpop.permute.xlu0 %3736 }
0x25c0   :  { %v3739_v23 = vpop.permute.xlu0 %3738 }
0x25c4   :  { %v3741_v32 = vpop.permute.xlu0 %3740 }
0x261c   :  { %v3722_v58 = vpop.xlane.xlu1 %3721 }
0x261d   :  { %v4150_v2 = vtrunc.f32 %v3722_v58 }
0x261f   :  { %v4151_v13 = vcvt.f32.s32 %v4150_v2 }
0x2621   :  { %v3726_v10 = vsel %vm3724_vm11, %v5791_v0, %v4151_v13 }
0x2622   :  { %v3727_v22 = vsel %vm3725_vm5, %v3726_v10, 0 }
0x2623   :  { %v3743_v15 = vsel %vm3742_vm8, %v3727_v22, %v3729_v59 }
0x2624   :  { %v3745_v6 = vsel %vm3744_vm3, %v3743_v15, %v3731_v55 }
0x2625   :  { %v3747_v7 = vsel %vm3746_vm14, %v3745_v6, %v3733_v14 }
0x2626   :  { %v3749_v49 = vsel %vm3748_vm6, %v3747_v7, %v3735_v35 }
0x2627   :  { %v3751_v56 = vsel %vm3750_vm9, %v3749_v49, %v3737_v1 }
0x2628   :  { %v3753_v12 = vsel %vm3752_vm15, %v3751_v56, %v3739_v23 }
0x2629   :  { %v3755_v36 = vsel %vm3754_vm0, %v3753_v12, %v3741_v32 }
0x262a   :  { %3756 = vst.msk [vmem:[#allocation4] sm:$0x3] %vm2023_vm1, %v3755_v36 }
0x262b   :  { %4706 = shalt.err (!%p4703_p9)
}
0x262c   :  { %3776 = dma.vmem_to_hbm [thread:$0]  %s3774_s17, 32, %s6301_s24, [#allocation5]  }
0x262d   :  { %4715 = dma.done.wait [#allocation3], 16  }
0x262e   :  { %4716 = vsyncadd [#allocation3], 4294967280 }
0x262f   :  { %4717 = dma.done.wait [#allocation5], 32  }
0x2630   :  { %4718 = vsyncadd [#allocation5], 4294967264 }
0x2631   :  { %3783 = vsyncpa [#allocation3], 1 }
0x2632   :  { %3784 = vsyncpa [#allocation5], 1 }

</bundles_post_ra>
